<compile_context>
chip_gen: v7x
topology: tpu7x:2x2x1
jax: 0.10.0
libtpu: 0.0.40
codegen_flags: <defaults>
</compile_context>

<pallas_src>
import functools

import jax
import jax.numpy as jnp
from jax.experimental import pallas as pl
from jax.experimental.pallas import tpu as pltpu

EPS = 1e-5
LANE = 128


def _round_up(x, m):
    return (x + m - 1) // m * m


@functools.lru_cache(maxsize=None)
def _vmem_limit_bytes():
    cap = 64 << 20
    try:
        cap = int(getattr(pltpu.get_tpu_info(), "vmem_capacity_bytes", cap))
    except Exception:
        pass
    # leave headroom for Mosaic internal scratch: ~48 MiB on v7x, ~96 MiB on v5e/v6e
    return max(32 << 20, (cap * 3) // 4)


# ---------------------------------------------------------------------------
# Pallas kernels
# ---------------------------------------------------------------------------

def _conv_stats_kernel(p0_ref, p1_ref, p2_ref, w_ref, y_ref, stat_ref):
    """One (n, d) step: 3x3x3 conv of one output depth plane + per-step BN partials.

    p*_ref : (H+2, W+2, Cin) bf16   -- padded input planes at depth d, d+1, d+2
    w_ref  : (27, Cin, Cpad) bf16   -- tap-major weights, Cout zero-padded to lanes
    y_ref  : (H*W, Cout)     bf16   -- pre-BN activations (real channels only)
    stat_ref: (2, Cpad)      f32    -- per-step (sum, sum-of-squares)
    """
    hp2, wp2, cin = p0_ref.shape
    hh, ww = hp2 - 2, wp2 - 2
    cpad = w_ref.shape[-1]
    cout = y_ref.shape[-1]

    acc = jnp.zeros((hh * ww, cpad), jnp.float32)
    for kd, p_ref in enumerate((p0_ref, p1_ref, p2_ref)):
        for kh in range(3):
            for kw in range(3):
                lhs = p_ref[kh:kh + hh, kw:kw + ww, :].reshape(hh * ww, cin)
                acc = acc + jnp.dot(lhs, w_ref[kd * 9 + kh * 3 + kw],
                                    preferred_element_type=jnp.float32)

    # BN partials from the f32 accumulator; two direct sub-stores (no concat).
    stat_ref[0:1, :] = jnp.sum(acc, axis=0, keepdims=True)
    stat_ref[1:2, :] = jnp.sum(acc * acc, axis=0, keepdims=True)

    # bf16 intermediate, sliced to the real output channels before hitting HBM.
    y_ref[...] = acc[:, :cout].astype(y_ref.dtype)


def _bn_relu_kernel(y_ref, scale_ref, shift_ref, o_ref):
    """One (n, d) step: folded BN affine + ReLU; epilogue math in f32."""
    h, w, cout = o_ref.shape
    y = y_ref[...].astype(jnp.float32)                       # (H*W, Cout)
    o = jnp.maximum(y * scale_ref[...] + shift_ref[...], 0.0)
    o_ref[...] = o.reshape(h, w, cout).astype(o_ref.dtype)


# ---------------------------------------------------------------------------
# pallas_call wrappers
# ---------------------------------------------------------------------------

def _conv3d_stats(xp, w3, *, out_channels):
    """xp: (N, D+2, H+2, W+2, Cin) bf16 zero-padded input. w3: (27, Cin, Cpad) bf16."""
    n, dp2, hp2, wp2, cin = xp.shape
    d, h, w = dp2 - 2, hp2 - 2, wp2 - 2
    taps, _, cpad = w3.shape

    def plane_spec(kd):
        return pl.BlockSpec((None, None, hp2, wp2, cin),
                            lambda i, j, kd=kd: (i, j + kd, 0, 0, 0))

    return pl.pallas_call(
        _conv_stats_kernel,
        out_shape=(
            jax.ShapeDtypeStruct((n, d, h * w, out_channels), jnp.bfloat16),
            jax.ShapeDtypeStruct((n, d, 2, cpad), jnp.float32),
        ),
        grid_spec=pltpu.PrefetchScalarGridSpec(
            num_scalar_prefetch=0,
            grid=(n, d),
            in_specs=[
                plane_spec(0), plane_spec(1), plane_spec(2),
                pl.BlockSpec((taps, cin, cpad), lambda i, j: (0, 0, 0)),  # resident
            ],
            out_specs=[
                pl.BlockSpec((None, None, h * w, out_channels),
                             lambda i, j: (i, j, 0, 0)),
                pl.BlockSpec((None, None, 2, cpad), lambda i, j: (i, j, 0, 0)),
            ],
        ),
        compiler_params=pltpu.CompilerParams(
            dimension_semantics=("parallel", "parallel"),
            vmem_limit_bytes=_vmem_limit_bytes(),
        ),
        cost_estimate=pl.CostEstimate(
            flops=2 * n * d * h * w * taps * cin * cpad,
            transcendentals=0,
            bytes_accessed=(3 * n * d * hp2 * wp2 * cin * 2
                            + taps * cin * cpad * 2
                            + n * d * h * w * out_channels * 2
                            + n * d * 2 * cpad * 4),
        ),
    )(xp, xp, xp, w3)


def _bn_relu_apply(y_pre, scale, shift, *, h, w, out_dtype):
    """y_pre: (N, D, H*W, Cout) bf16 -> (N, D, H, W, Cout) out_dtype."""
    n, d, hw, cout = y_pre.shape
    return pl.pallas_call(
        _bn_relu_kernel,
        out_shape=jax.ShapeDtypeStruct((n, d, h, w, cout), out_dtype),
        grid_spec=pltpu.PrefetchScalarGridSpec(
            num_scalar_prefetch=0,
            grid=(n, d),
            in_specs=[
                pl.BlockSpec((None, None, hw, cout), lambda i, j: (i, j, 0, 0)),
                pl.BlockSpec((1, cout), lambda i, j: (0, 0)),   # resident
                pl.BlockSpec((1, cout), lambda i, j: (0, 0)),   # resident
            ],
            out_specs=pl.BlockSpec((None, None, h, w, cout),
                                   lambda i, j: (i, j, 0, 0, 0)),
        ),
        compiler_params=pltpu.CompilerParams(
            dimension_semantics=("parallel", "parallel"),
            vmem_limit_bytes=_vmem_limit_bytes(),
        ),
    )(y_pre, scale.reshape(1, cout), shift.reshape(1, cout))


# ---------------------------------------------------------------------------
# Plain-JAX glue (O(Cout) stat combine + layout plumbing only)
# ---------------------------------------------------------------------------

def _bn_fold(stats, gamma, beta, *, rows_per_step, cout):
    """Combine per-step (sum, sumsq) with a chunked (Welford-style) variance and fold
    train-mode BatchNorm into per-channel scale/shift (all f32)."""
    s = stats[..., :cout].astype(jnp.float32)          # (N, D, 2, Cout)
    sums = s[:, :, 0, :].reshape(-1, cout)             # (S, Cout)
    sumsq = s[:, :, 1, :].reshape(-1, cout)
    n_i = float(rows_per_step)
    total = n_i * sums.shape[0]

    mean_i = sums / n_i
    m2_i = sumsq - sums * mean_i                        # per-step sum of squared devs
    mean = jnp.sum(sums, axis=0) / total
    m2 = jnp.sum(m2_i, axis=0) + n_i * jnp.sum((mean_i - mean[None, :]) ** 2, axis=0)
    var = jnp.maximum(m2 / total, 0.0)                  # biased, like BatchNorm

    scale = gamma * jax.lax.rsqrt(var + EPS)
    shift = beta - mean * scale
    return scale, shift


def _conv_bn_relu_block(x_ndhwc, params, out_channels, *, out_dtype):
    w3, gamma, beta = params
    _, _, h, w, _ = x_ndhwc.shape
    xp = jnp.pad(x_ndhwc, ((0, 0), (1, 1), (1, 1), (1, 1), (0, 0)))   # zero pad, bf16
    y_pre, stats = _conv3d_stats(xp, w3, out_channels=out_channels)
    scale, shift = _bn_fold(stats, gamma, beta,
                            rows_per_step=h * w, cout=out_channels)
    return _bn_relu_apply(y_pre, scale, shift, h=h, w=w, out_dtype=out_dtype)


@functools.partial(jax.jit, static_argnames=("out_channels",))
def conv_block_up(x_ncdhw, params1, params2, *, out_channels):
    # NCDHW -> NDHWC, bf16 operands for the MXU (f32 accumulation inside the kernel)
    x = jnp.transpose(x_ncdhw, (0, 2, 3, 4, 1)).astype(jnp.bfloat16)
    y1 = _conv_bn_relu_block(x, params1, out_channels, out_dtype=jnp.bfloat16)
    y2 = _conv_bn_relu_block(y1, params2, out_channels, out_dtype=jnp.float32)
    return jnp.transpose(y2, (0, 4, 1, 2, 3))           # back to PyTorch NCDHW layout


def make_params(key, in_channels, out_channels):
    """Synthetic Conv3d+BN parameters, pre-packed for the kernels (+ raw copies)."""
    kw_, kg_, kb_ = jax.random.split(key, 3)
    fan_in = in_channels * 27
    w = jax.random.normal(kw_, (out_channels, in_channels, 3, 3, 3),
                          jnp.float32) / jnp.sqrt(fan_in)
    gamma = 1.0 + 0.1 * jax.random.normal(kg_, (out_channels,), jnp.float32)
    beta = 0.1 * jax.random.normal(kb_, (out_channels,), jnp.float32)
    # Conv bias omitted on purpose: train-mode BN mean subtraction cancels it exactly.
    c_pad = _round_up(out_channels, LANE)
    # tap-major (kd, kh, kw) weights; Cout zero-padded to a lane multiple so the MXU /
    # stat lanes stay dense (sliced back to the real Cout before any HBM store).
    w3 = jnp.transpose(w, (2, 3, 4, 1, 0)).reshape(27, in_channels, out_channels)
    w3 = jnp.pad(w3, ((0, 0), (0, 0), (0, c_pad - out_channels))).astype(jnp.bfloat16)
    return (w3, gamma, beta), (w, gamma, beta)


def _reference_block(x_ncdhw, w, gamma, beta):
    """Pure-JAX f32 reference: Conv3d(pad=1, no bias) -> BN(train batch stats) -> ReLU."""
    y = jax.lax.conv_general_dilated(
        x_ncdhw, w, window_strides=(1, 1, 1),
        padding=((1, 1), (1, 1), (1, 1)),
        dimension_numbers=("NCDHW", "OIDHW", "NCDHW"))
    mean = jnp.mean(y, axis=(0, 2, 3, 4), keepdims=True)
    var = jnp.var(y, axis=(0, 2, 3, 4), keepdims=True)   # biased, like BatchNorm
    y = (y - mean) * jax.lax.rsqrt(var + EPS)
    y = y * gamma.reshape(1, -1, 1, 1, 1) + beta.reshape(1, -1, 1, 1, 1)
    return jnp.maximum(y, 0.0)


if __name__ == "__main__":
    n, c_in, c_out = 2, 4, 8
    d = h = w = 8

    key = jax.random.PRNGKey(0)
    kx, k1, k2 = jax.random.split(key, 3)
    x = jax.random.normal(kx, (n, c_in, d, h, w), jnp.float32)
    params1, raw1 = make_params(k1, c_in, c_out)
    params2, raw2 = make_params(k2, c_out, c_out)

    y = conv_block_up(x, params1, params2, out_channels=c_out)
    y = jax.block_until_ready(y)

    assert y.shape == (n, c_out, d, h, w), y.shape
    assert bool(jnp.all(jnp.isfinite(y))), "non-finite output"

    # loose correctness check vs an f32 reference (kernel uses bf16 operands/intermediate)
    y_ref = _reference_block(_reference_block(x, *raw1), *raw2)
    max_err = float(jnp.max(jnp.abs(y.astype(jnp.float32) - y_ref)))
    assert max_err < 0.25, f"mismatch vs reference: max abs err {max_err}"

    print("KERNEL_OK")
</pallas_src>

<mosaic_0001>
module attributes {stable_mosaic.version = 11 : i64} {
  func.func @_conv_stats_kernel(%arg0: i32, %arg1: i32, %arg2: memref<1x1x10x10x4xbf16, #tpu.memory_space<vmem>>, %arg3: memref<1x1x10x10x4xbf16, #tpu.memory_space<vmem>>, %arg4: memref<1x1x10x10x4xbf16, #tpu.memory_space<vmem>>, %arg5: memref<27x4x128xbf16, #tpu.memory_space<vmem>>, %arg6: memref<1x1x64x8xbf16, #tpu.memory_space<vmem>>, %arg7: memref<1x1x2x128xf32, #tpu.memory_space<vmem>>) attributes {dimension_semantics = [#tpu.dimension_semantics<parallel>, #tpu.dimension_semantics<parallel>], iteration_bounds = array<i64: 2, 8>, scalar_prefetch = 0 : i64, scratch_operands = 0 : i64, tpu.core_type = #tpu.core_type<tc>, window_params = [{transform_indices = @transform_0, window_bounds = array<i64: 1, 1, 10, 10, 4>}, {transform_indices = @transform_1, window_bounds = array<i64: 1, 1, 10, 10, 4>}, {transform_indices = @transform_2, window_bounds = array<i64: 1, 1, 10, 10, 4>}, {pipeline_mode = #tpu.pipeline_mode<synchronous>, transform_indices = @transform_3, window_bounds = array<i64: 27, 4, 128>}, {transform_indices = @transform_4, window_bounds = array<i64: 1, 1, 64, 8>}, {transform_indices = @transform_5, window_bounds = array<i64: 1, 1, 2, 128>}]} {
    %cst = arith.constant 0.000000e+00 : f32
    %0 = vector.broadcast %cst : f32 to vector<64x128xf32>
    %c0 = arith.constant 0 : index
    %c0_0 = arith.constant 0 : index
    %c0_1 = arith.constant 0 : index
    %c0_2 = arith.constant 0 : index
    %c0_3 = arith.constant 0 : index
    %1 = vector.load %arg2[%c0, %c0_0, %c0_1, %c0_2, %c0_3] : memref<1x1x10x10x4xbf16, #tpu.memory_space<vmem>>, vector<1x1x8x8x4xbf16>
    %2 = vector.shape_cast %1 : vector<1x1x8x8x4xbf16> to vector<8x8x4xbf16>
    %3 = vector.shape_cast %2 : vector<8x8x4xbf16> to vector<64x4xbf16>
    %c0_4 = arith.constant 0 : index
    %c0_5 = arith.constant 0 : index
    %c0_6 = arith.constant 0 : index
    %4 = vector.load %arg5[%c0_4, %c0_5, %c0_6] : memref<27x4x128xbf16, #tpu.memory_space<vmem>>, vector<1x4x128xbf16>
    %5 = vector.shape_cast %4 : vector<1x4x128xbf16> to vector<4x128xbf16>
    %cst_7 = arith.constant dense<0.000000e+00> : vector<64x128xf32>
    %6 = tpu.matmul %3, %5, %cst_7 {dimension_numbers = #tpu.dot_dimension_numbers<[1], [0], [0], [1], [0, 0, 1, 1], [], []>} : vector<64x4xbf16>, vector<4x128xbf16>, vector<64x128xf32> -> vector<64x128xf32>
    %7 = arith.addf %0, %6 : vector<64x128xf32>
    %c0_8 = arith.constant 0 : index
    %c0_9 = arith.constant 0 : index
    %c0_10 = arith.constant 0 : index
    %c1 = arith.constant 1 : index
    %c0_11 = arith.constant 0 : index
    %8 = vector.load %arg2[%c0_8, %c0_9, %c0_10, %c1, %c0_11] : memref<1x1x10x10x4xbf16, #tpu.memory_space<vmem>>, vector<1x1x8x8x4xbf16>
    %9 = vector.shape_cast %8 : vector<1x1x8x8x4xbf16> to vector<8x8x4xbf16>
    %10 = vector.shape_cast %9 : vector<8x8x4xbf16> to vector<64x4xbf16>
    %c1_12 = arith.constant 1 : index
    %c0_13 = arith.constant 0 : index
    %c0_14 = arith.constant 0 : index
    %11 = vector.load %arg5[%c1_12, %c0_13, %c0_14] : memref<27x4x128xbf16, #tpu.memory_space<vmem>>, vector<1x4x128xbf16>
    %12 = vector.shape_cast %11 : vector<1x4x128xbf16> to vector<4x128xbf16>
    %cst_15 = arith.constant dense<0.000000e+00> : vector<64x128xf32>
    %13 = tpu.matmul %10, %12, %cst_15 {dimension_numbers = #tpu.dot_dimension_numbers<[1], [0], [0], [1], [0, 0, 1, 1], [], []>} : vector<64x4xbf16>, vector<4x128xbf16>, vector<64x128xf32> -> vector<64x128xf32>
    %14 = arith.addf %7, %13 : vector<64x128xf32>
    %c0_16 = arith.constant 0 : index
    %c0_17 = arith.constant 0 : index
    %c0_18 = arith.constant 0 : index
    %c2 = arith.constant 2 : index
    %c0_19 = arith.constant 0 : index
    %15 = vector.load %arg2[%c0_16, %c0_17, %c0_18, %c2, %c0_19] : memref<1x1x10x10x4xbf16, #tpu.memory_space<vmem>>, vector<1x1x8x8x4xbf16>
    %16 = vector.shape_cast %15 : vector<1x1x8x8x4xbf16> to vector<8x8x4xbf16>
    %17 = vector.shape_cast %16 : vector<8x8x4xbf16> to vector<64x4xbf16>
    %c2_20 = arith.constant 2 : index
    %c0_21 = arith.constant 0 : index
    %c0_22 = arith.constant 0 : index
    %18 = vector.load %arg5[%c2_20, %c0_21, %c0_22] : memref<27x4x128xbf16, #tpu.memory_space<vmem>>, vector<1x4x128xbf16>
    %19 = vector.shape_cast %18 : vector<1x4x128xbf16> to vector<4x128xbf16>
    %cst_23 = arith.constant dense<0.000000e+00> : vector<64x128xf32>
    %20 = tpu.matmul %17, %19, %cst_23 {dimension_numbers = #tpu.dot_dimension_numbers<[1], [0], [0], [1], [0, 0, 1, 1], [], []>} : vector<64x4xbf16>, vector<4x128xbf16>, vector<64x128xf32> -> vector<64x128xf32>
    %21 = arith.addf %14, %20 : vector<64x128xf32>
    %c0_24 = arith.constant 0 : index
    %c0_25 = arith.constant 0 : index
    %c1_26 = arith.constant 1 : index
    %c0_27 = arith.constant 0 : index
    %c0_28 = arith.constant 0 : index
    %22 = vector.load %arg2[%c0_24, %c0_25, %c1_26, %c0_27, %c0_28] : memref<1x1x10x10x4xbf16, #tpu.memory_space<vmem>>, vector<1x1x8x8x4xbf16>
    %23 = vector.shape_cast %22 : vector<1x1x8x8x4xbf16> to vector<8x8x4xbf16>
    %24 = vector.shape_cast %23 : vector<8x8x4xbf16> to vector<64x4xbf16>
    %c3 = arith.constant 3 : index
    %c0_29 = arith.constant 0 : index
    %c0_30 = arith.constant 0 : index
    %25 = vector.load %arg5[%c3, %c0_29, %c0_30] : memref<27x4x128xbf16, #tpu.memory_space<vmem>>, vector<1x4x128xbf16>
    %26 = vector.shape_cast %25 : vector<1x4x128xbf16> to vector<4x128xbf16>
    %cst_31 = arith.constant dense<0.000000e+00> : vector<64x128xf32>
    %27 = tpu.matmul %24, %26, %cst_31 {dimension_numbers = #tpu.dot_dimension_numbers<[1], [0], [0], [1], [0, 0, 1, 1], [], []>} : vector<64x4xbf16>, vector<4x128xbf16>, vector<64x128xf32> -> vector<64x128xf32>
    %28 = arith.addf %21, %27 : vector<64x128xf32>
    %c0_32 = arith.constant 0 : index
    %c0_33 = arith.constant 0 : index
    %c1_34 = arith.constant 1 : index
    %c1_35 = arith.constant 1 : index
    %c0_36 = arith.constant 0 : index
    %29 = vector.load %arg2[%c0_32, %c0_33, %c1_34, %c1_35, %c0_36] : memref<1x1x10x10x4xbf16, #tpu.memory_space<vmem>>, vector<1x1x8x8x4xbf16>
    %30 = vector.shape_cast %29 : vector<1x1x8x8x4xbf16> to vector<8x8x4xbf16>
    %31 = vector.shape_cast %30 : vector<8x8x4xbf16> to vector<64x4xbf16>
    %c4 = arith.constant 4 : index
    %c0_37 = arith.constant 0 : index
    %c0_38 = arith.constant 0 : index
    %32 = vector.load %arg5[%c4, %c0_37, %c0_38] : memref<27x4x128xbf16, #tpu.memory_space<vmem>>, vector<1x4x128xbf16>
    %33 = vector.shape_cast %32 : vector<1x4x128xbf16> to vector<4x128xbf16>
    %cst_39 = arith.constant dense<0.000000e+00> : vector<64x128xf32>
    %34 = tpu.matmul %31, %33, %cst_39 {dimension_numbers = #tpu.dot_dimension_numbers<[1], [0], [0], [1], [0, 0, 1, 1], [], []>} : vector<64x4xbf16>, vector<4x128xbf16>, vector<64x128xf32> -> vector<64x128xf32>
    %35 = arith.addf %28, %34 : vector<64x128xf32>
    %c0_40 = arith.constant 0 : index
    %c0_41 = arith.constant 0 : index
    %c1_42 = arith.constant 1 : index
    %c2_43 = arith.constant 2 : index
    %c0_44 = arith.constant 0 : index
    %36 = vector.load %arg2[%c0_40, %c0_41, %c1_42, %c2_43, %c0_44] : memref<1x1x10x10x4xbf16, #tpu.memory_space<vmem>>, vector<1x1x8x8x4xbf16>
    %37 = vector.shape_cast %36 : vector<1x1x8x8x4xbf16> to vector<8x8x4xbf16>
    %38 = vector.shape_cast %37 : vector<8x8x4xbf16> to vector<64x4xbf16>
    %c5 = arith.constant 5 : index
    %c0_45 = arith.constant 0 : index
    %c0_46 = arith.constant 0 : index
    %39 = vector.load %arg5[%c5, %c0_45, %c0_46] : memref<27x4x128xbf16, #tpu.memory_space<vmem>>, vector<1x4x128xbf16>
    %40 = vector.shape_cast %39 : vector<1x4x128xbf16> to vector<4x128xbf16>
    %cst_47 = arith.constant dense<0.000000e+00> : vector<64x128xf32>
    %41 = tpu.matmul %38, %40, %cst_47 {dimension_numbers = #tpu.dot_dimension_numbers<[1], [0], [0], [1], [0, 0, 1, 1], [], []>} : vector<64x4xbf16>, vector<4x128xbf16>, vector<64x128xf32> -> vector<64x128xf32>
    %42 = arith.addf %35, %41 : vector<64x128xf32>
    %c0_48 = arith.constant 0 : index
    %c0_49 = arith.constant 0 : index
    %c2_50 = arith.constant 2 : index
    %c0_51 = arith.constant 0 : index
    %c0_52 = arith.constant 0 : index
    %43 = vector.load %arg2[%c0_48, %c0_49, %c2_50, %c0_51, %c0_52] : memref<1x1x10x10x4xbf16, #tpu.memory_space<vmem>>, vector<1x1x8x8x4xbf16>
    %44 = vector.shape_cast %43 : vector<1x1x8x8x4xbf16> to vector<8x8x4xbf16>
    %45 = vector.shape_cast %44 : vector<8x8x4xbf16> to vector<64x4xbf16>
    %c6 = arith.constant 6 : index
    %c0_53 = arith.constant 0 : index
    %c0_54 = arith.constant 0 : index
    %46 = vector.load %arg5[%c6, %c0_53, %c0_54] : memref<27x4x128xbf16, #tpu.memory_space<vmem>>, vector<1x4x128xbf16>
    %47 = vector.shape_cast %46 : vector<1x4x128xbf16> to vector<4x128xbf16>
    %cst_55 = arith.constant dense<0.000000e+00> : vector<64x128xf32>
    %48 = tpu.matmul %45, %47, %cst_55 {dimension_numbers = #tpu.dot_dimension_numbers<[1], [0], [0], [1], [0, 0, 1, 1], [], []>} : vector<64x4xbf16>, vector<4x128xbf16>, vector<64x128xf32> -> vector<64x128xf32>
    %49 = arith.addf %42, %48 : vector<64x128xf32>
    %c0_56 = arith.constant 0 : index
    %c0_57 = arith.constant 0 : index
    %c2_58 = arith.constant 2 : index
    %c1_59 = arith.constant 1 : index
    %c0_60 = arith.constant 0 : index
    %50 = vector.load %arg2[%c0_56, %c0_57, %c2_58, %c1_59, %c0_60] : memref<1x1x10x10x4xbf16, #tpu.memory_space<vmem>>, vector<1x1x8x8x4xbf16>
    %51 = vector.shape_cast %50 : vector<1x1x8x8x4xbf16> to vector<8x8x4xbf16>
    %52 = vector.shape_cast %51 : vector<8x8x4xbf16> to vector<64x4xbf16>
    %c7 = arith.constant 7 : index
    %c0_61 = arith.constant 0 : index
    %c0_62 = arith.constant 0 : index
    %53 = vector.load %arg5[%c7, %c0_61, %c0_62] : memref<27x4x128xbf16, #tpu.memory_space<vmem>>, vector<1x4x128xbf16>
    %54 = vector.shape_cast %53 : vector<1x4x128xbf16> to vector<4x128xbf16>
    %cst_63 = arith.constant dense<0.000000e+00> : vector<64x128xf32>
    %55 = tpu.matmul %52, %54, %cst_63 {dimension_numbers = #tpu.dot_dimension_numbers<[1], [0], [0], [1], [0, 0, 1, 1], [], []>} : vector<64x4xbf16>, vector<4x128xbf16>, vector<64x128xf32> -> vector<64x128xf32>
    %56 = arith.addf %49, %55 : vector<64x128xf32>
    %c0_64 = arith.constant 0 : index
    %c0_65 = arith.constant 0 : index
    %c2_66 = arith.constant 2 : index
    %c2_67 = arith.constant 2 : index
    %c0_68 = arith.constant 0 : index
    %57 = vector.load %arg2[%c0_64, %c0_65, %c2_66, %c2_67, %c0_68] : memref<1x1x10x10x4xbf16, #tpu.memory_space<vmem>>, vector<1x1x8x8x4xbf16>
    %58 = vector.shape_cast %57 : vector<1x1x8x8x4xbf16> to vector<8x8x4xbf16>
    %59 = vector.shape_cast %58 : vector<8x8x4xbf16> to vector<64x4xbf16>
    %c8 = arith.constant 8 : index
    %c0_69 = arith.constant 0 : index
    %c0_70 = arith.constant 0 : index
    %60 = vector.load %arg5[%c8, %c0_69, %c0_70] : memref<27x4x128xbf16, #tpu.memory_space<vmem>>, vector<1x4x128xbf16>
    %61 = vector.shape_cast %60 : vector<1x4x128xbf16> to vector<4x128xbf16>
    %cst_71 = arith.constant dense<0.000000e+00> : vector<64x128xf32>
    %62 = tpu.matmul %59, %61, %cst_71 {dimension_numbers = #tpu.dot_dimension_numbers<[1], [0], [0], [1], [0, 0, 1, 1], [], []>} : vector<64x4xbf16>, vector<4x128xbf16>, vector<64x128xf32> -> vector<64x128xf32>
    %63 = arith.addf %56, %62 : vector<64x128xf32>
    %c0_72 = arith.constant 0 : index
    %c0_73 = arith.constant 0 : index
    %c0_74 = arith.constant 0 : index
    %c0_75 = arith.constant 0 : index
    %c0_76 = arith.constant 0 : index
    %64 = vector.load %arg3[%c0_72, %c0_73, %c0_74, %c0_75, %c0_76] : memref<1x1x10x10x4xbf16, #tpu.memory_space<vmem>>, vector<1x1x8x8x4xbf16>
    %65 = vector.shape_cast %64 : vector<1x1x8x8x4xbf16> to vector<8x8x4xbf16>
    %66 = vector.shape_cast %65 : vector<8x8x4xbf16> to vector<64x4xbf16>
    %c9 = arith.constant 9 : index
    %c0_77 = arith.constant 0 : index
    %c0_78 = arith.constant 0 : index
    %67 = vector.load %arg5[%c9, %c0_77, %c0_78] : memref<27x4x128xbf16, #tpu.memory_space<vmem>>, vector<1x4x128xbf16>
    %68 = vector.shape_cast %67 : vector<1x4x128xbf16> to vector<4x128xbf16>
    %cst_79 = arith.constant dense<0.000000e+00> : vector<64x128xf32>
    %69 = tpu.matmul %66, %68, %cst_79 {dimension_numbers = #tpu.dot_dimension_numbers<[1], [0], [0], [1], [0, 0, 1, 1], [], []>} : vector<64x4xbf16>, vector<4x128xbf16>, vector<64x128xf32> -> vector<64x128xf32>
    %70 = arith.addf %63, %69 : vector<64x128xf32>
    %c0_80 = arith.constant 0 : index
    %c0_81 = arith.constant 0 : index
    %c0_82 = arith.constant 0 : index
    %c1_83 = arith.constant 1 : index
    %c0_84 = arith.constant 0 : index
    %71 = vector.load %arg3[%c0_80, %c0_81, %c0_82, %c1_83, %c0_84] : memref<1x1x10x10x4xbf16, #tpu.memory_space<vmem>>, vector<1x1x8x8x4xbf16>
    %72 = vector.shape_cast %71 : vector<1x1x8x8x4xbf16> to vector<8x8x4xbf16>
    %73 = vector.shape_cast %72 : vector<8x8x4xbf16> to vector<64x4xbf16>
    %c10 = arith.constant 10 : index
    %c0_85 = arith.constant 0 : index
    %c0_86 = arith.constant 0 : index
    %74 = vector.load %arg5[%c10, %c0_85, %c0_86] : memref<27x4x128xbf16, #tpu.memory_space<vmem>>, vector<1x4x128xbf16>
    %75 = vector.shape_cast %74 : vector<1x4x128xbf16> to vector<4x128xbf16>
    %cst_87 = arith.constant dense<0.000000e+00> : vector<64x128xf32>
    %76 = tpu.matmul %73, %75, %cst_87 {dimension_numbers = #tpu.dot_dimension_numbers<[1], [0], [0], [1], [0, 0, 1, 1], [], []>} : vector<64x4xbf16>, vector<4x128xbf16>, vector<64x128xf32> -> vector<64x128xf32>
    %77 = arith.addf %70, %76 : vector<64x128xf32>
    %c0_88 = arith.constant 0 : index
    %c0_89 = arith.constant 0 : index
    %c0_90 = arith.constant 0 : index
    %c2_91 = arith.constant 2 : index
    %c0_92 = arith.constant 0 : index
    %78 = vector.load %arg3[%c0_88, %c0_89, %c0_90, %c2_91, %c0_92] : memref<1x1x10x10x4xbf16, #tpu.memory_space<vmem>>, vector<1x1x8x8x4xbf16>
    %79 = vector.shape_cast %78 : vector<1x1x8x8x4xbf16> to vector<8x8x4xbf16>
    %80 = vector.shape_cast %79 : vector<8x8x4xbf16> to vector<64x4xbf16>
    %c11 = arith.constant 11 : index
    %c0_93 = arith.constant 0 : index
    %c0_94 = arith.constant 0 : index
    %81 = vector.load %arg5[%c11, %c0_93, %c0_94] : memref<27x4x128xbf16, #tpu.memory_space<vmem>>, vector<1x4x128xbf16>
    %82 = vector.shape_cast %81 : vector<1x4x128xbf16> to vector<4x128xbf16>
    %cst_95 = arith.constant dense<0.000000e+00> : vector<64x128xf32>
    %83 = tpu.matmul %80, %82, %cst_95 {dimension_numbers = #tpu.dot_dimension_numbers<[1], [0], [0], [1], [0, 0, 1, 1], [], []>} : vector<64x4xbf16>, vector<4x128xbf16>, vector<64x128xf32> -> vector<64x128xf32>
    %84 = arith.addf %77, %83 : vector<64x128xf32>
    %c0_96 = arith.constant 0 : index
    %c0_97 = arith.constant 0 : index
    %c1_98 = arith.constant 1 : index
    %c0_99 = arith.constant 0 : index
    %c0_100 = arith.constant 0 : index
    %85 = vector.load %arg3[%c0_96, %c0_97, %c1_98, %c0_99, %c0_100] : memref<1x1x10x10x4xbf16, #tpu.memory_space<vmem>>, vector<1x1x8x8x4xbf16>
    %86 = vector.shape_cast %85 : vector<1x1x8x8x4xbf16> to vector<8x8x4xbf16>
    %87 = vector.shape_cast %86 : vector<8x8x4xbf16> to vector<64x4xbf16>
    %c12 = arith.constant 12 : index
    %c0_101 = arith.constant 0 : index
    %c0_102 = arith.constant 0 : index
    %88 = vector.load %arg5[%c12, %c0_101, %c0_102] : memref<27x4x128xbf16, #tpu.memory_space<vmem>>, vector<1x4x128xbf16>
    %89 = vector.shape_cast %88 : vector<1x4x128xbf16> to vector<4x128xbf16>
    %cst_103 = arith.constant dense<0.000000e+00> : vector<64x128xf32>
    %90 = tpu.matmul %87, %89, %cst_103 {dimension_numbers = #tpu.dot_dimension_numbers<[1], [0], [0], [1], [0, 0, 1, 1], [], []>} : vector<64x4xbf16>, vector<4x128xbf16>, vector<64x128xf32> -> vector<64x128xf32>
    %91 = arith.addf %84, %90 : vector<64x128xf32>
    %c0_104 = arith.constant 0 : index
    %c0_105 = arith.constant 0 : index
    %c1_106 = arith.constant 1 : index
    %c1_107 = arith.constant 1 : index
    %c0_108 = arith.constant 0 : index
    %92 = vector.load %arg3[%c0_104, %c0_105, %c1_106, %c1_107, %c0_108] : memref<1x1x10x10x4xbf16, #tpu.memory_space<vmem>>, vector<1x1x8x8x4xbf16>
    %93 = vector.shape_cast %92 : vector<1x1x8x8x4xbf16> to vector<8x8x4xbf16>
    %94 = vector.shape_cast %93 : vector<8x8x4xbf16> to vector<64x4xbf16>
    %c13 = arith.constant 13 : index
    %c0_109 = arith.constant 0 : index
    %c0_110 = arith.constant 0 : index
    %95 = vector.load %arg5[%c13, %c0_109, %c0_110] : memref<27x4x128xbf16, #tpu.memory_space<vmem>>, vector<1x4x128xbf16>
    %96 = vector.shape_cast %95 : vector<1x4x128xbf16> to vector<4x128xbf16>
    %cst_111 = arith.constant dense<0.000000e+00> : vector<64x128xf32>
    %97 = tpu.matmul %94, %96, %cst_111 {dimension_numbers = #tpu.dot_dimension_numbers<[1], [0], [0], [1], [0, 0, 1, 1], [], []>} : vector<64x4xbf16>, vector<4x128xbf16>, vector<64x128xf32> -> vector<64x128xf32>
    %98 = arith.addf %91, %97 : vector<64x128xf32>
    %c0_112 = arith.constant 0 : index
    %c0_113 = arith.constant 0 : index
    %c1_114 = arith.constant 1 : index
    %c2_115 = arith.constant 2 : index
    %c0_116 = arith.constant 0 : index
    %99 = vector.load %arg3[%c0_112, %c0_113, %c1_114, %c2_115, %c0_116] : memref<1x1x10x10x4xbf16, #tpu.memory_space<vmem>>, vector<1x1x8x8x4xbf16>
    %100 = vector.shape_cast %99 : vector<1x1x8x8x4xbf16> to vector<8x8x4xbf16>
    %101 = vector.shape_cast %100 : vector<8x8x4xbf16> to vector<64x4xbf16>
    %c14 = arith.constant 14 : index
    %c0_117 = arith.constant 0 : index
    %c0_118 = arith.constant 0 : index
    %102 = vector.load %arg5[%c14, %c0_117, %c0_118] : memref<27x4x128xbf16, #tpu.memory_space<vmem>>, vector<1x4x128xbf16>
    %103 = vector.shape_cast %102 : vector<1x4x128xbf16> to vector<4x128xbf16>
    %cst_119 = arith.constant dense<0.000000e+00> : vector<64x128xf32>
    %104 = tpu.matmul %101, %103, %cst_119 {dimension_numbers = #tpu.dot_dimension_numbers<[1], [0], [0], [1], [0, 0, 1, 1], [], []>} : vector<64x4xbf16>, vector<4x128xbf16>, vector<64x128xf32> -> vector<64x128xf32>
    %105 = arith.addf %98, %104 : vector<64x128xf32>
    %c0_120 = arith.constant 0 : index
    %c0_121 = arith.constant 0 : index
    %c2_122 = arith.constant 2 : index
    %c0_123 = arith.constant 0 : index
    %c0_124 = arith.constant 0 : index
    %106 = vector.load %arg3[%c0_120, %c0_121, %c2_122, %c0_123, %c0_124] : memref<1x1x10x10x4xbf16, #tpu.memory_space<vmem>>, vector<1x1x8x8x4xbf16>
    %107 = vector.shape_cast %106 : vector<1x1x8x8x4xbf16> to vector<8x8x4xbf16>
    %108 = vector.shape_cast %107 : vector<8x8x4xbf16> to vector<64x4xbf16>
    %c15 = arith.constant 15 : index
    %c0_125 = arith.constant 0 : index
    %c0_126 = arith.constant 0 : index
    %109 = vector.load %arg5[%c15, %c0_125, %c0_126] : memref<27x4x128xbf16, #tpu.memory_space<vmem>>, vector<1x4x128xbf16>
    %110 = vector.shape_cast %109 : vector<1x4x128xbf16> to vector<4x128xbf16>
    %cst_127 = arith.constant dense<0.000000e+00> : vector<64x128xf32>
    %111 = tpu.matmul %108, %110, %cst_127 {dimension_numbers = #tpu.dot_dimension_numbers<[1], [0], [0], [1], [0, 0, 1, 1], [], []>} : vector<64x4xbf16>, vector<4x128xbf16>, vector<64x128xf32> -> vector<64x128xf32>
    %112 = arith.addf %105, %111 : vector<64x128xf32>
    %c0_128 = arith.constant 0 : index
    %c0_129 = arith.constant 0 : index
    %c2_130 = arith.constant 2 : index
    %c1_131 = arith.constant 1 : index
    %c0_132 = arith.constant 0 : index
    %113 = vector.load %arg3[%c0_128, %c0_129, %c2_130, %c1_131, %c0_132] : memref<1x1x10x10x4xbf16, #tpu.memory_space<vmem>>, vector<1x1x8x8x4xbf16>
    %114 = vector.shape_cast %113 : vector<1x1x8x8x4xbf16> to vector<8x8x4xbf16>
    %115 = vector.shape_cast %114 : vector<8x8x4xbf16> to vector<64x4xbf16>
    %c16 = arith.constant 16 : index
    %c0_133 = arith.constant 0 : index
    %c0_134 = arith.constant 0 : index
    %116 = vector.load %arg5[%c16, %c0_133, %c0_134] : memref<27x4x128xbf16, #tpu.memory_space<vmem>>, vector<1x4x128xbf16>
    %117 = vector.shape_cast %116 : vector<1x4x128xbf16> to vector<4x128xbf16>
    %cst_135 = arith.constant dense<0.000000e+00> : vector<64x128xf32>
    %118 = tpu.matmul %115, %117, %cst_135 {dimension_numbers = #tpu.dot_dimension_numbers<[1], [0], [0], [1], [0, 0, 1, 1], [], []>} : vector<64x4xbf16>, vector<4x128xbf16>, vector<64x128xf32> -> vector<64x128xf32>
    %119 = arith.addf %112, %118 : vector<64x128xf32>
    %c0_136 = arith.constant 0 : index
    %c0_137 = arith.constant 0 : index
    %c2_138 = arith.constant 2 : index
    %c2_139 = arith.constant 2 : index
    %c0_140 = arith.constant 0 : index
    %120 = vector.load %arg3[%c0_136, %c0_137, %c2_138, %c2_139, %c0_140] : memref<1x1x10x10x4xbf16, #tpu.memory_space<vmem>>, vector<1x1x8x8x4xbf16>
    %121 = vector.shape_cast %120 : vector<1x1x8x8x4xbf16> to vector<8x8x4xbf16>
    %122 = vector.shape_cast %121 : vector<8x8x4xbf16> to vector<64x4xbf16>
    %c17 = arith.constant 17 : index
    %c0_141 = arith.constant 0 : index
    %c0_142 = arith.constant 0 : index
    %123 = vector.load %arg5[%c17, %c0_141, %c0_142] : memref<27x4x128xbf16, #tpu.memory_space<vmem>>, vector<1x4x128xbf16>
    %124 = vector.shape_cast %123 : vector<1x4x128xbf16> to vector<4x128xbf16>
    %cst_143 = arith.constant dense<0.000000e+00> : vector<64x128xf32>
    %125 = tpu.matmul %122, %124, %cst_143 {dimension_numbers = #tpu.dot_dimension_numbers<[1], [0], [0], [1], [0, 0, 1, 1], [], []>} : vector<64x4xbf16>, vector<4x128xbf16>, vector<64x128xf32> -> vector<64x128xf32>
    %126 = arith.addf %119, %125 : vector<64x128xf32>
    %c0_144 = arith.constant 0 : index
    %c0_145 = arith.constant 0 : index
    %c0_146 = arith.constant 0 : index
    %c0_147 = arith.constant 0 : index
    %c0_148 = arith.constant 0 : index
    %127 = vector.load %arg4[%c0_144, %c0_145, %c0_146, %c0_147, %c0_148] : memref<1x1x10x10x4xbf16, #tpu.memory_space<vmem>>, vector<1x1x8x8x4xbf16>
    %128 = vector.shape_cast %127 : vector<1x1x8x8x4xbf16> to vector<8x8x4xbf16>
    %129 = vector.shape_cast %128 : vector<8x8x4xbf16> to vector<64x4xbf16>
    %c18 = arith.constant 18 : index
    %c0_149 = arith.constant 0 : index
    %c0_150 = arith.constant 0 : index
    %130 = vector.load %arg5[%c18, %c0_149, %c0_150] : memref<27x4x128xbf16, #tpu.memory_space<vmem>>, vector<1x4x128xbf16>
    %131 = vector.shape_cast %130 : vector<1x4x128xbf16> to vector<4x128xbf16>
    %cst_151 = arith.constant dense<0.000000e+00> : vector<64x128xf32>
    %132 = tpu.matmul %129, %131, %cst_151 {dimension_numbers = #tpu.dot_dimension_numbers<[1], [0], [0], [1], [0, 0, 1, 1], [], []>} : vector<64x4xbf16>, vector<4x128xbf16>, vector<64x128xf32> -> vector<64x128xf32>
    %133 = arith.addf %126, %132 : vector<64x128xf32>
    %c0_152 = arith.constant 0 : index
    %c0_153 = arith.constant 0 : index
    %c0_154 = arith.constant 0 : index
    %c1_155 = arith.constant 1 : index
    %c0_156 = arith.constant 0 : index
    %134 = vector.load %arg4[%c0_152, %c0_153, %c0_154, %c1_155, %c0_156] : memref<1x1x10x10x4xbf16, #tpu.memory_space<vmem>>, vector<1x1x8x8x4xbf16>
    %135 = vector.shape_cast %134 : vector<1x1x8x8x4xbf16> to vector<8x8x4xbf16>
    %136 = vector.shape_cast %135 : vector<8x8x4xbf16> to vector<64x4xbf16>
    %c19 = arith.constant 19 : index
    %c0_157 = arith.constant 0 : index
    %c0_158 = arith.constant 0 : index
    %137 = vector.load %arg5[%c19, %c0_157, %c0_158] : memref<27x4x128xbf16, #tpu.memory_space<vmem>>, vector<1x4x128xbf16>
    %138 = vector.shape_cast %137 : vector<1x4x128xbf16> to vector<4x128xbf16>
    %cst_159 = arith.constant dense<0.000000e+00> : vector<64x128xf32>
    %139 = tpu.matmul %136, %138, %cst_159 {dimension_numbers = #tpu.dot_dimension_numbers<[1], [0], [0], [1], [0, 0, 1, 1], [], []>} : vector<64x4xbf16>, vector<4x128xbf16>, vector<64x128xf32> -> vector<64x128xf32>
    %140 = arith.addf %133, %139 : vector<64x128xf32>
    %c0_160 = arith.constant 0 : index
    %c0_161 = arith.constant 0 : index
    %c0_162 = arith.constant 0 : index
    %c2_163 = arith.constant 2 : index
    %c0_164 = arith.constant 0 : index
    %141 = vector.load %arg4[%c0_160, %c0_161, %c0_162, %c2_163, %c0_164] : memref<1x1x10x10x4xbf16, #tpu.memory_space<vmem>>, vector<1x1x8x8x4xbf16>
    %142 = vector.shape_cast %141 : vector<1x1x8x8x4xbf16> to vector<8x8x4xbf16>
    %143 = vector.shape_cast %142 : vector<8x8x4xbf16> to vector<64x4xbf16>
    %c20 = arith.constant 20 : index
    %c0_165 = arith.constant 0 : index
    %c0_166 = arith.constant 0 : index
    %144 = vector.load %arg5[%c20, %c0_165, %c0_166] : memref<27x4x128xbf16, #tpu.memory_space<vmem>>, vector<1x4x128xbf16>
    %145 = vector.shape_cast %144 : vector<1x4x128xbf16> to vector<4x128xbf16>
    %cst_167 = arith.constant dense<0.000000e+00> : vector<64x128xf32>
    %146 = tpu.matmul %143, %145, %cst_167 {dimension_numbers = #tpu.dot_dimension_numbers<[1], [0], [0], [1], [0, 0, 1, 1], [], []>} : vector<64x4xbf16>, vector<4x128xbf16>, vector<64x128xf32> -> vector<64x128xf32>
    %147 = arith.addf %140, %146 : vector<64x128xf32>
    %c0_168 = arith.constant 0 : index
    %c0_169 = arith.constant 0 : index
    %c1_170 = arith.constant 1 : index
    %c0_171 = arith.constant 0 : index
    %c0_172 = arith.constant 0 : index
    %148 = vector.load %arg4[%c0_168, %c0_169, %c1_170, %c0_171, %c0_172] : memref<1x1x10x10x4xbf16, #tpu.memory_space<vmem>>, vector<1x1x8x8x4xbf16>
    %149 = vector.shape_cast %148 : vector<1x1x8x8x4xbf16> to vector<8x8x4xbf16>
    %150 = vector.shape_cast %149 : vector<8x8x4xbf16> to vector<64x4xbf16>
    %c21 = arith.constant 21 : index
    %c0_173 = arith.constant 0 : index
    %c0_174 = arith.constant 0 : index
    %151 = vector.load %arg5[%c21, %c0_173, %c0_174] : memref<27x4x128xbf16, #tpu.memory_space<vmem>>, vector<1x4x128xbf16>
    %152 = vector.shape_cast %151 : vector<1x4x128xbf16> to vector<4x128xbf16>
    %cst_175 = arith.constant dense<0.000000e+00> : vector<64x128xf32>
    %153 = tpu.matmul %150, %152, %cst_175 {dimension_numbers = #tpu.dot_dimension_numbers<[1], [0], [0], [1], [0, 0, 1, 1], [], []>} : vector<64x4xbf16>, vector<4x128xbf16>, vector<64x128xf32> -> vector<64x128xf32>
    %154 = arith.addf %147, %153 : vector<64x128xf32>
    %c0_176 = arith.constant 0 : index
    %c0_177 = arith.constant 0 : index
    %c1_178 = arith.constant 1 : index
    %c1_179 = arith.constant 1 : index
    %c0_180 = arith.constant 0 : index
    %155 = vector.load %arg4[%c0_176, %c0_177, %c1_178, %c1_179, %c0_180] : memref<1x1x10x10x4xbf16, #tpu.memory_space<vmem>>, vector<1x1x8x8x4xbf16>
    %156 = vector.shape_cast %155 : vector<1x1x8x8x4xbf16> to vector<8x8x4xbf16>
    %157 = vector.shape_cast %156 : vector<8x8x4xbf16> to vector<64x4xbf16>
    %c22 = arith.constant 22 : index
    %c0_181 = arith.constant 0 : index
    %c0_182 = arith.constant 0 : index
    %158 = vector.load %arg5[%c22, %c0_181, %c0_182] : memref<27x4x128xbf16, #tpu.memory_space<vmem>>, vector<1x4x128xbf16>
    %159 = vector.shape_cast %158 : vector<1x4x128xbf16> to vector<4x128xbf16>
    %cst_183 = arith.constant dense<0.000000e+00> : vector<64x128xf32>
    %160 = tpu.matmul %157, %159, %cst_183 {dimension_numbers = #tpu.dot_dimension_numbers<[1], [0], [0], [1], [0, 0, 1, 1], [], []>} : vector<64x4xbf16>, vector<4x128xbf16>, vector<64x128xf32> -> vector<64x128xf32>
    %161 = arith.addf %154, %160 : vector<64x128xf32>
    %c0_184 = arith.constant 0 : index
    %c0_185 = arith.constant 0 : index
    %c1_186 = arith.constant 1 : index
    %c2_187 = arith.constant 2 : index
    %c0_188 = arith.constant 0 : index
    %162 = vector.load %arg4[%c0_184, %c0_185, %c1_186, %c2_187, %c0_188] : memref<1x1x10x10x4xbf16, #tpu.memory_space<vmem>>, vector<1x1x8x8x4xbf16>
    %163 = vector.shape_cast %162 : vector<1x1x8x8x4xbf16> to vector<8x8x4xbf16>
    %164 = vector.shape_cast %163 : vector<8x8x4xbf16> to vector<64x4xbf16>
    %c23 = arith.constant 23 : index
    %c0_189 = arith.constant 0 : index
    %c0_190 = arith.constant 0 : index
    %165 = vector.load %arg5[%c23, %c0_189, %c0_190] : memref<27x4x128xbf16, #tpu.memory_space<vmem>>, vector<1x4x128xbf16>
    %166 = vector.shape_cast %165 : vector<1x4x128xbf16> to vector<4x128xbf16>
    %cst_191 = arith.constant dense<0.000000e+00> : vector<64x128xf32>
    %167 = tpu.matmul %164, %166, %cst_191 {dimension_numbers = #tpu.dot_dimension_numbers<[1], [0], [0], [1], [0, 0, 1, 1], [], []>} : vector<64x4xbf16>, vector<4x128xbf16>, vector<64x128xf32> -> vector<64x128xf32>
    %168 = arith.addf %161, %167 : vector<64x128xf32>
    %c0_192 = arith.constant 0 : index
    %c0_193 = arith.constant 0 : index
    %c2_194 = arith.constant 2 : index
    %c0_195 = arith.constant 0 : index
    %c0_196 = arith.constant 0 : index
    %169 = vector.load %arg4[%c0_192, %c0_193, %c2_194, %c0_195, %c0_196] : memref<1x1x10x10x4xbf16, #tpu.memory_space<vmem>>, vector<1x1x8x8x4xbf16>
    %170 = vector.shape_cast %169 : vector<1x1x8x8x4xbf16> to vector<8x8x4xbf16>
    %171 = vector.shape_cast %170 : vector<8x8x4xbf16> to vector<64x4xbf16>
    %c24 = arith.constant 24 : index
    %c0_197 = arith.constant 0 : index
    %c0_198 = arith.constant 0 : index
    %172 = vector.load %arg5[%c24, %c0_197, %c0_198] : memref<27x4x128xbf16, #tpu.memory_space<vmem>>, vector<1x4x128xbf16>
    %173 = vector.shape_cast %172 : vector<1x4x128xbf16> to vector<4x128xbf16>
    %cst_199 = arith.constant dense<0.000000e+00> : vector<64x128xf32>
    %174 = tpu.matmul %171, %173, %cst_199 {dimension_numbers = #tpu.dot_dimension_numbers<[1], [0], [0], [1], [0, 0, 1, 1], [], []>} : vector<64x4xbf16>, vector<4x128xbf16>, vector<64x128xf32> -> vector<64x128xf32>
    %175 = arith.addf %168, %174 : vector<64x128xf32>
    %c0_200 = arith.constant 0 : index
    %c0_201 = arith.constant 0 : index
    %c2_202 = arith.constant 2 : index
    %c1_203 = arith.constant 1 : index
    %c0_204 = arith.constant 0 : index
    %176 = vector.load %arg4[%c0_200, %c0_201, %c2_202, %c1_203, %c0_204] : memref<1x1x10x10x4xbf16, #tpu.memory_space<vmem>>, vector<1x1x8x8x4xbf16>
    %177 = vector.shape_cast %176 : vector<1x1x8x8x4xbf16> to vector<8x8x4xbf16>
    %178 = vector.shape_cast %177 : vector<8x8x4xbf16> to vector<64x4xbf16>
    %c25 = arith.constant 25 : index
    %c0_205 = arith.constant 0 : index
    %c0_206 = arith.constant 0 : index
    %179 = vector.load %arg5[%c25, %c0_205, %c0_206] : memref<27x4x128xbf16, #tpu.memory_space<vmem>>, vector<1x4x128xbf16>
    %180 = vector.shape_cast %179 : vector<1x4x128xbf16> to vector<4x128xbf16>
    %cst_207 = arith.constant dense<0.000000e+00> : vector<64x128xf32>
    %181 = tpu.matmul %178, %180, %cst_207 {dimension_numbers = #tpu.dot_dimension_numbers<[1], [0], [0], [1], [0, 0, 1, 1], [], []>} : vector<64x4xbf16>, vector<4x128xbf16>, vector<64x128xf32> -> vector<64x128xf32>
    %182 = arith.addf %175, %181 : vector<64x128xf32>
    %c0_208 = arith.constant 0 : index
    %c0_209 = arith.constant 0 : index
    %c2_210 = arith.constant 2 : index
    %c2_211 = arith.constant 2 : index
    %c0_212 = arith.constant 0 : index
    %183 = vector.load %arg4[%c0_208, %c0_209, %c2_210, %c2_211, %c0_212] : memref<1x1x10x10x4xbf16, #tpu.memory_space<vmem>>, vector<1x1x8x8x4xbf16>
    %184 = vector.shape_cast %183 : vector<1x1x8x8x4xbf16> to vector<8x8x4xbf16>
    %185 = vector.shape_cast %184 : vector<8x8x4xbf16> to vector<64x4xbf16>
    %c26 = arith.constant 26 : index
    %c0_213 = arith.constant 0 : index
    %c0_214 = arith.constant 0 : index
    %186 = vector.load %arg5[%c26, %c0_213, %c0_214] : memref<27x4x128xbf16, #tpu.memory_space<vmem>>, vector<1x4x128xbf16>
    %187 = vector.shape_cast %186 : vector<1x4x128xbf16> to vector<4x128xbf16>
    %cst_215 = arith.constant dense<0.000000e+00> : vector<64x128xf32>
    %188 = tpu.matmul %185, %187, %cst_215 {dimension_numbers = #tpu.dot_dimension_numbers<[1], [0], [0], [1], [0, 0, 1, 1], [], []>} : vector<64x4xbf16>, vector<4x128xbf16>, vector<64x128xf32> -> vector<64x128xf32>
    %189 = arith.addf %182, %188 : vector<64x128xf32>
    %cst_216 = arith.constant dense<0.000000e+00> : vector<128xf32>
    %190 = vector.multi_reduction <add>, %189, %cst_216 [0] : vector<64x128xf32> to vector<128xf32>
    %191 = vector.shape_cast %190 : vector<128xf32> to vector<1x128xf32>
    %c0_217 = arith.constant 0 : index
    %c0_218 = arith.constant 0 : index
    %c0_219 = arith.constant 0 : index
    %c0_220 = arith.constant 0 : index
    %192 = vector.load %arg7[%c0_217, %c0_218, %c0_219, %c0_220] : memref<1x1x2x128xf32, #tpu.memory_space<vmem>>, vector<1x1x1x128xf32>
    %193 = vector.shape_cast %192 : vector<1x1x1x128xf32> to vector<1x128xf32>
    %194 = vector.shape_cast %191 : vector<1x128xf32> to vector<1x1x1x128xf32>
    tpu.vector_store %arg7[%c0_217, %c0_218, %c0_219, %c0_220], %194 {strides = array<i32>} : memref<1x1x2x128xf32, #tpu.memory_space<vmem>>, vector<1x1x1x128xf32>,
    %195 = arith.mulf %189, %189 : vector<64x128xf32>
    %cst_221 = arith.constant dense<0.000000e+00> : vector<128xf32>
    %196 = vector.multi_reduction <add>, %195, %cst_221 [0] : vector<64x128xf32> to vector<128xf32>
    %197 = vector.shape_cast %196 : vector<128xf32> to vector<1x128xf32>
    %c0_222 = arith.constant 0 : index
    %c0_223 = arith.constant 0 : index
    %c1_224 = arith.constant 1 : index
    %c0_225 = arith.constant 0 : index
    %198 = vector.load %arg7[%c0_222, %c0_223, %c1_224, %c0_225] : memref<1x1x2x128xf32, #tpu.memory_space<vmem>>, vector<1x1x1x128xf32>
    %199 = vector.shape_cast %198 : vector<1x1x1x128xf32> to vector<1x128xf32>
    %200 = vector.shape_cast %197 : vector<1x128xf32> to vector<1x1x1x128xf32>
    tpu.vector_store %arg7[%c0_222, %c0_223, %c1_224, %c0_225], %200 {strides = array<i32>} : memref<1x1x2x128xf32, #tpu.memory_space<vmem>>, vector<1x1x1x128xf32>,
    %201 = vector.extract_strided_slice %189 {offsets = [0, 0], sizes = [64, 8], strides = [1, 1]} : vector<64x128xf32> to vector<64x8xf32>
    %202 = arith.truncf %201 : vector<64x8xf32> to vector<64x8xbf16>
    %c0_226 = arith.constant 0 : index
    %c0_227 = arith.constant 0 : index
    %c0_228 = arith.constant 0 : index
    %c0_229 = arith.constant 0 : index
    %203 = vector.load %arg6[%c0_226, %c0_227, %c0_228, %c0_229] : memref<1x1x64x8xbf16, #tpu.memory_space<vmem>>, vector<1x1x64x8xbf16>
    %204 = vector.shape_cast %203 : vector<1x1x64x8xbf16> to vector<64x8xbf16>
    %205 = vector.shape_cast %202 : vector<64x8xbf16> to vector<1x1x64x8xbf16>
    tpu.vector_store %arg6[%c0_226, %c0_227, %c0_228, %c0_229], %205 {strides = array<i32>} : memref<1x1x64x8xbf16, #tpu.memory_space<vmem>>, vector<1x1x64x8xbf16>,
    return
  }
  func.func @transform_0(%arg0: i32, %arg1: i32) -> (i32, i32, i32, i32, i32) {
    %c0_i32 = arith.constant 0 : i32
    %0 = arith.addi %arg1, %c0_i32 : i32
    %c0_i32_0 = arith.constant 0 : i32
    %c0_i32_1 = arith.constant 0 : i32
    %c0_i32_2 = arith.constant 0 : i32
    %c0_i32_3 = arith.constant 0 : i32
    return %arg0, %0, %c0_i32_0, %c0_i32_1, %c0_i32_2 : i32, i32, i32, i32, i32
  }
  func.func @transform_1(%arg0: i32, %arg1: i32) -> (i32, i32, i32, i32, i32) {
    %c1_i32 = arith.constant 1 : i32
    %0 = arith.addi %arg1, %c1_i32 : i32
    %c0_i32 = arith.constant 0 : i32
    %c0_i32_0 = arith.constant 0 : i32
    %c0_i32_1 = arith.constant 0 : i32
    %c0_i32_2 = arith.constant 0 : i32
    return %arg0, %0, %c0_i32, %c0_i32_0, %c0_i32_1 : i32, i32, i32, i32, i32
  }
  func.func @transform_2(%arg0: i32, %arg1: i32) -> (i32, i32, i32, i32, i32) {
    %c2_i32 = arith.constant 2 : i32
    %0 = arith.addi %arg1, %c2_i32 : i32
    %c0_i32 = arith.constant 0 : i32
    %c0_i32_0 = arith.constant 0 : i32
    %c0_i32_1 = arith.constant 0 : i32
    %c0_i32_2 = arith.constant 0 : i32
    return %arg0, %0, %c0_i32, %c0_i32_0, %c0_i32_1 : i32, i32, i32, i32, i32
  }
  func.func @transform_3(%arg0: i32, %arg1: i32) -> (i32, i32, i32) {
    %c0_i32 = arith.constant 0 : i32
    %c0_i32_0 = arith.constant 0 : i32
    %c0_i32_1 = arith.constant 0 : i32
    %c0_i32_2 = arith.constant 0 : i32
    return %c0_i32, %c0_i32_0, %c0_i32_1 : i32, i32, i32
  }
  func.func @transform_4(%arg0: i32, %arg1: i32) -> (i32, i32, i32, i32) {
    %c0_i32 = arith.constant 0 : i32
    %c0_i32_0 = arith.constant 0 : i32
    %c0_i32_1 = arith.constant 0 : i32
    return %arg0, %arg1, %c0_i32, %c0_i32_0 : i32, i32, i32, i32
  }
  func.func @transform_5(%arg0: i32, %arg1: i32) -> (i32, i32, i32, i32) {
    %c0_i32 = arith.constant 0 : i32
    %c0_i32_0 = arith.constant 0 : i32
    %c0_i32_1 = arith.constant 0 : i32
    return %arg0, %arg1, %c0_i32, %c0_i32_0 : i32, i32, i32, i32
  }
}

module attributes {stable_mosaic.version = 11 : i64} {
  func.func @_bn_relu_kernel(%arg0: i32, %arg1: i32, %arg2: memref<1x1x64x8xbf16, #tpu.memory_space<vmem>>, %arg3: memref<1x8xf32, #tpu.memory_space<vmem>>, %arg4: memref<1x8xf32, #tpu.memory_space<vmem>>, %arg5: memref<1x1x8x8x8xbf16, #tpu.memory_space<vmem>>) attributes {dimension_semantics = [#tpu.dimension_semantics<parallel>, #tpu.dimension_semantics<parallel>], iteration_bounds = array<i64: 2, 8>, scalar_prefetch = 0 : i64, scratch_operands = 0 : i64, tpu.core_type = #tpu.core_type<tc>, window_params = [{transform_indices = @transform_0, window_bounds = array<i64: 1, 1, 64, 8>}, {pipeline_mode = #tpu.pipeline_mode<synchronous>, transform_indices = @transform_1, window_bounds = array<i64: 1, 8>}, {pipeline_mode = #tpu.pipeline_mode<synchronous>, transform_indices = @transform_2, window_bounds = array<i64: 1, 8>}, {transform_indices = @transform_3, window_bounds = array<i64: 1, 1, 8, 8, 8>}]} {
    %c0 = arith.constant 0 : index
    %c0_0 = arith.constant 0 : index
    %c0_1 = arith.constant 0 : index
    %c0_2 = arith.constant 0 : index
    %0 = vector.load %arg2[%c0, %c0_0, %c0_1, %c0_2] : memref<1x1x64x8xbf16, #tpu.memory_space<vmem>>, vector<1x1x64x8xbf16>
    %1 = vector.shape_cast %0 : vector<1x1x64x8xbf16> to vector<64x8xbf16>
    %2 = arith.extf %1 : vector<64x8xbf16> to vector<64x8xf32>
    %c0_3 = arith.constant 0 : index
    %c0_4 = arith.constant 0 : index
    %3 = vector.load %arg3[%c0_3, %c0_4] : memref<1x8xf32, #tpu.memory_space<vmem>>, vector<1x8xf32>
    %4 = vector.broadcast %3 : vector<1x8xf32> to vector<64x8xf32>
    %5 = arith.mulf %2, %4 : vector<64x8xf32>
    %c0_5 = arith.constant 0 : index
    %c0_6 = arith.constant 0 : index
    %6 = vector.load %arg4[%c0_5, %c0_6] : memref<1x8xf32, #tpu.memory_space<vmem>>, vector<1x8xf32>
    %7 = vector.broadcast %6 : vector<1x8xf32> to vector<64x8xf32>
    %8 = arith.addf %5, %7 : vector<64x8xf32>
    %cst = arith.constant 0.000000e+00 : f32
    %9 = vector.broadcast %cst : f32 to vector<64x8xf32>
    %10 = arith.maximumf %8, %9 : vector<64x8xf32>
    %11 = vector.shape_cast %10 : vector<64x8xf32> to vector<8x8x8xf32>
    %12 = arith.truncf %11 : vector<8x8x8xf32> to vector<8x8x8xbf16>
    %c0_7 = arith.constant 0 : index
    %c0_8 = arith.constant 0 : index
    %c0_9 = arith.constant 0 : index
    %c0_10 = arith.constant 0 : index
    %c0_11 = arith.constant 0 : index
    %13 = vector.load %arg5[%c0_7, %c0_8, %c0_9, %c0_10, %c0_11] : memref<1x1x8x8x8xbf16, #tpu.memory_space<vmem>>, vector<1x1x8x8x8xbf16>
    %14 = vector.shape_cast %13 : vector<1x1x8x8x8xbf16> to vector<8x8x8xbf16>
    %15 = vector.shape_cast %12 : vector<8x8x8xbf16> to vector<1x1x8x8x8xbf16>
    tpu.vector_store %arg5[%c0_7, %c0_8, %c0_9, %c0_10, %c0_11], %15 {strides = array<i32>} : memref<1x1x8x8x8xbf16, #tpu.memory_space<vmem>>, vector<1x1x8x8x8xbf16>,
    return
  }
  func.func @transform_0(%arg0: i32, %arg1: i32) -> (i32, i32, i32, i32) {
    %c0_i32 = arith.constant 0 : i32
    %c0_i32_0 = arith.constant 0 : i32
    %c0_i32_1 = arith.constant 0 : i32
    return %arg0, %arg1, %c0_i32, %c0_i32_0 : i32, i32, i32, i32
  }
  func.func @transform_1(%arg0: i32, %arg1: i32) -> (i32, i32) {
    %c0_i32 = arith.constant 0 : i32
    %c0_i32_0 = arith.constant 0 : i32
    %c0_i32_1 = arith.constant 0 : i32
    return %c0_i32, %c0_i32_0 : i32, i32
  }
  func.func @transform_2(%arg0: i32, %arg1: i32) -> (i32, i32) {
    %c0_i32 = arith.constant 0 : i32
    %c0_i32_0 = arith.constant 0 : i32
    %c0_i32_1 = arith.constant 0 : i32
    return %c0_i32, %c0_i32_0 : i32, i32
  }
  func.func @transform_3(%arg0: i32, %arg1: i32) -> (i32, i32, i32, i32, i32) {
    %c0_i32 = arith.constant 0 : i32
    %c0_i32_0 = arith.constant 0 : i32
    %c0_i32_1 = arith.constant 0 : i32
    %c0_i32_2 = arith.constant 0 : i32
    return %arg0, %arg1, %c0_i32, %c0_i32_0, %c0_i32_1 : i32, i32, i32, i32, i32
  }
}

module attributes {stable_mosaic.version = 11 : i64} {
  func.func @_conv_stats_kernel(%arg0: i32, %arg1: i32, %arg2: memref<1x1x10x10x8xbf16, #tpu.memory_space<vmem>>, %arg3: memref<1x1x10x10x8xbf16, #tpu.memory_space<vmem>>, %arg4: memref<1x1x10x10x8xbf16, #tpu.memory_space<vmem>>, %arg5: memref<27x8x128xbf16, #tpu.memory_space<vmem>>, %arg6: memref<1x1x64x8xbf16, #tpu.memory_space<vmem>>, %arg7: memref<1x1x2x128xf32, #tpu.memory_space<vmem>>) attributes {dimension_semantics = [#tpu.dimension_semantics<parallel>, #tpu.dimension_semantics<parallel>], iteration_bounds = array<i64: 2, 8>, scalar_prefetch = 0 : i64, scratch_operands = 0 : i64, tpu.core_type = #tpu.core_type<tc>, window_params = [{transform_indices = @transform_0, window_bounds = array<i64: 1, 1, 10, 10, 8>}, {transform_indices = @transform_1, window_bounds = array<i64: 1, 1, 10, 10, 8>}, {transform_indices = @transform_2, window_bounds = array<i64: 1, 1, 10, 10, 8>}, {pipeline_mode = #tpu.pipeline_mode<synchronous>, transform_indices = @transform_3, window_bounds = array<i64: 27, 8, 128>}, {transform_indices = @transform_4, window_bounds = array<i64: 1, 1, 64, 8>}, {transform_indices = @transform_5, window_bounds = array<i64: 1, 1, 2, 128>}]} {
    %cst = arith.constant 0.000000e+00 : f32
    %0 = vector.broadcast %cst : f32 to vector<64x128xf32>
    %c0 = arith.constant 0 : index
    %c0_0 = arith.constant 0 : index
    %c0_1 = arith.constant 0 : index
    %c0_2 = arith.constant 0 : index
    %c0_3 = arith.constant 0 : index
    %1 = vector.load %arg2[%c0, %c0_0, %c0_1, %c0_2, %c0_3] : memref<1x1x10x10x8xbf16, #tpu.memory_space<vmem>>, vector<1x1x8x8x8xbf16>
    %2 = vector.shape_cast %1 : vector<1x1x8x8x8xbf16> to vector<8x8x8xbf16>
    %3 = vector.shape_cast %2 : vector<8x8x8xbf16> to vector<64x8xbf16>
    %c0_4 = arith.constant 0 : index
    %c0_5 = arith.constant 0 : index
    %c0_6 = arith.constant 0 : index
    %4 = vector.load %arg5[%c0_4, %c0_5, %c0_6] : memref<27x8x128xbf16, #tpu.memory_space<vmem>>, vector<1x8x128xbf16>
    %5 = vector.shape_cast %4 : vector<1x8x128xbf16> to vector<8x128xbf16>
    %cst_7 = arith.constant dense<0.000000e+00> : vector<64x128xf32>
    %6 = tpu.matmul %3, %5, %cst_7 {dimension_numbers = #tpu.dot_dimension_numbers<[1], [0], [0], [1], [0, 0, 1, 1], [], []>} : vector<64x8xbf16>, vector<8x128xbf16>, vector<64x128xf32> -> vector<64x128xf32>
    %7 = arith.addf %0, %6 : vector<64x128xf32>
    %c0_8 = arith.constant 0 : index
    %c0_9 = arith.constant 0 : index
    %c0_10 = arith.constant 0 : index
    %c1 = arith.constant 1 : index
    %c0_11 = arith.constant 0 : index
    %8 = vector.load %arg2[%c0_8, %c0_9, %c0_10, %c1, %c0_11] : memref<1x1x10x10x8xbf16, #tpu.memory_space<vmem>>, vector<1x1x8x8x8xbf16>
    %9 = vector.shape_cast %8 : vector<1x1x8x8x8xbf16> to vector<8x8x8xbf16>
    %10 = vector.shape_cast %9 : vector<8x8x8xbf16> to vector<64x8xbf16>
    %c1_12 = arith.constant 1 : index
    %c0_13 = arith.constant 0 : index
    %c0_14 = arith.constant 0 : index
    %11 = vector.load %arg5[%c1_12, %c0_13, %c0_14] : memref<27x8x128xbf16, #tpu.memory_space<vmem>>, vector<1x8x128xbf16>
    %12 = vector.shape_cast %11 : vector<1x8x128xbf16> to vector<8x128xbf16>
    %cst_15 = arith.constant dense<0.000000e+00> : vector<64x128xf32>
    %13 = tpu.matmul %10, %12, %cst_15 {dimension_numbers = #tpu.dot_dimension_numbers<[1], [0], [0], [1], [0, 0, 1, 1], [], []>} : vector<64x8xbf16>, vector<8x128xbf16>, vector<64x128xf32> -> vector<64x128xf32>
    %14 = arith.addf %7, %13 : vector<64x128xf32>
    %c0_16 = arith.constant 0 : index
    %c0_17 = arith.constant 0 : index
    %c0_18 = arith.constant 0 : index
    %c2 = arith.constant 2 : index
    %c0_19 = arith.constant 0 : index
    %15 = vector.load %arg2[%c0_16, %c0_17, %c0_18, %c2, %c0_19] : memref<1x1x10x10x8xbf16, #tpu.memory_space<vmem>>, vector<1x1x8x8x8xbf16>
    %16 = vector.shape_cast %15 : vector<1x1x8x8x8xbf16> to vector<8x8x8xbf16>
    %17 = vector.shape_cast %16 : vector<8x8x8xbf16> to vector<64x8xbf16>
    %c2_20 = arith.constant 2 : index
    %c0_21 = arith.constant 0 : index
    %c0_22 = arith.constant 0 : index
    %18 = vector.load %arg5[%c2_20, %c0_21, %c0_22] : memref<27x8x128xbf16, #tpu.memory_space<vmem>>, vector<1x8x128xbf16>
    %19 = vector.shape_cast %18 : vector<1x8x128xbf16> to vector<8x128xbf16>
    %cst_23 = arith.constant dense<0.000000e+00> : vector<64x128xf32>
    %20 = tpu.matmul %17, %19, %cst_23 {dimension_numbers = #tpu.dot_dimension_numbers<[1], [0], [0], [1], [0, 0, 1, 1], [], []>} : vector<64x8xbf16>, vector<8x128xbf16>, vector<64x128xf32> -> vector<64x128xf32>
    %21 = arith.addf %14, %20 : vector<64x128xf32>
    %c0_24 = arith.constant 0 : index
    %c0_25 = arith.constant 0 : index
    %c1_26 = arith.constant 1 : index
    %c0_27 = arith.constant 0 : index
    %c0_28 = arith.constant 0 : index
    %22 = vector.load %arg2[%c0_24, %c0_25, %c1_26, %c0_27, %c0_28] : memref<1x1x10x10x8xbf16, #tpu.memory_space<vmem>>, vector<1x1x8x8x8xbf16>
    %23 = vector.shape_cast %22 : vector<1x1x8x8x8xbf16> to vector<8x8x8xbf16>
    %24 = vector.shape_cast %23 : vector<8x8x8xbf16> to vector<64x8xbf16>
    %c3 = arith.constant 3 : index
    %c0_29 = arith.constant 0 : index
    %c0_30 = arith.constant 0 : index
    %25 = vector.load %arg5[%c3, %c0_29, %c0_30] : memref<27x8x128xbf16, #tpu.memory_space<vmem>>, vector<1x8x128xbf16>
    %26 = vector.shape_cast %25 : vector<1x8x128xbf16> to vector<8x128xbf16>
    %cst_31 = arith.constant dense<0.000000e+00> : vector<64x128xf32>
    %27 = tpu.matmul %24, %26, %cst_31 {dimension_numbers = #tpu.dot_dimension_numbers<[1], [0], [0], [1], [0, 0, 1, 1], [], []>} : vector<64x8xbf16>, vector<8x128xbf16>, vector<64x128xf32> -> vector<64x128xf32>
    %28 = arith.addf %21, %27 : vector<64x128xf32>
    %c0_32 = arith.constant 0 : index
    %c0_33 = arith.constant 0 : index
    %c1_34 = arith.constant 1 : index
    %c1_35 = arith.constant 1 : index
    %c0_36 = arith.constant 0 : index
    %29 = vector.load %arg2[%c0_32, %c0_33, %c1_34, %c1_35, %c0_36] : memref<1x1x10x10x8xbf16, #tpu.memory_space<vmem>>, vector<1x1x8x8x8xbf16>
    %30 = vector.shape_cast %29 : vector<1x1x8x8x8xbf16> to vector<8x8x8xbf16>
    %31 = vector.shape_cast %30 : vector<8x8x8xbf16> to vector<64x8xbf16>
    %c4 = arith.constant 4 : index
    %c0_37 = arith.constant 0 : index
    %c0_38 = arith.constant 0 : index
    %32 = vector.load %arg5[%c4, %c0_37, %c0_38] : memref<27x8x128xbf16, #tpu.memory_space<vmem>>, vector<1x8x128xbf16>
    %33 = vector.shape_cast %32 : vector<1x8x128xbf16> to vector<8x128xbf16>
    %cst_39 = arith.constant dense<0.000000e+00> : vector<64x128xf32>
    %34 = tpu.matmul %31, %33, %cst_39 {dimension_numbers = #tpu.dot_dimension_numbers<[1], [0], [0], [1], [0, 0, 1, 1], [], []>} : vector<64x8xbf16>, vector<8x128xbf16>, vector<64x128xf32> -> vector<64x128xf32>
    %35 = arith.addf %28, %34 : vector<64x128xf32>
    %c0_40 = arith.constant 0 : index
    %c0_41 = arith.constant 0 : index
    %c1_42 = arith.constant 1 : index
    %c2_43 = arith.constant 2 : index
    %c0_44 = arith.constant 0 : index
    %36 = vector.load %arg2[%c0_40, %c0_41, %c1_42, %c2_43, %c0_44] : memref<1x1x10x10x8xbf16, #tpu.memory_space<vmem>>, vector<1x1x8x8x8xbf16>
    %37 = vector.shape_cast %36 : vector<1x1x8x8x8xbf16> to vector<8x8x8xbf16>
    %38 = vector.shape_cast %37 : vector<8x8x8xbf16> to vector<64x8xbf16>
    %c5 = arith.constant 5 : index
    %c0_45 = arith.constant 0 : index
    %c0_46 = arith.constant 0 : index
    %39 = vector.load %arg5[%c5, %c0_45, %c0_46] : memref<27x8x128xbf16, #tpu.memory_space<vmem>>, vector<1x8x128xbf16>
    %40 = vector.shape_cast %39 : vector<1x8x128xbf16> to vector<8x128xbf16>
    %cst_47 = arith.constant dense<0.000000e+00> : vector<64x128xf32>
    %41 = tpu.matmul %38, %40, %cst_47 {dimension_numbers = #tpu.dot_dimension_numbers<[1], [0], [0], [1], [0, 0, 1, 1], [], []>} : vector<64x8xbf16>, vector<8x128xbf16>, vector<64x128xf32> -> vector<64x128xf32>
    %42 = arith.addf %35, %41 : vector<64x128xf32>
    %c0_48 = arith.constant 0 : index
    %c0_49 = arith.constant 0 : index
    %c2_50 = arith.constant 2 : index
    %c0_51 = arith.constant 0 : index
    %c0_52 = arith.constant 0 : index
    %43 = vector.load %arg2[%c0_48, %c0_49, %c2_50, %c0_51, %c0_52] : memref<1x1x10x10x8xbf16, #tpu.memory_space<vmem>>, vector<1x1x8x8x8xbf16>
    %44 = vector.shape_cast %43 : vector<1x1x8x8x8xbf16> to vector<8x8x8xbf16>
    %45 = vector.shape_cast %44 : vector<8x8x8xbf16> to vector<64x8xbf16>
    %c6 = arith.constant 6 : index
    %c0_53 = arith.constant 0 : index
    %c0_54 = arith.constant 0 : index
    %46 = vector.load %arg5[%c6, %c0_53, %c0_54] : memref<27x8x128xbf16, #tpu.memory_space<vmem>>, vector<1x8x128xbf16>
    %47 = vector.shape_cast %46 : vector<1x8x128xbf16> to vector<8x128xbf16>
    %cst_55 = arith.constant dense<0.000000e+00> : vector<64x128xf32>
    %48 = tpu.matmul %45, %47, %cst_55 {dimension_numbers = #tpu.dot_dimension_numbers<[1], [0], [0], [1], [0, 0, 1, 1], [], []>} : vector<64x8xbf16>, vector<8x128xbf16>, vector<64x128xf32> -> vector<64x128xf32>
    %49 = arith.addf %42, %48 : vector<64x128xf32>
    %c0_56 = arith.constant 0 : index
    %c0_57 = arith.constant 0 : index
    %c2_58 = arith.constant 2 : index
    %c1_59 = arith.constant 1 : index
    %c0_60 = arith.constant 0 : index
    %50 = vector.load %arg2[%c0_56, %c0_57, %c2_58, %c1_59, %c0_60] : memref<1x1x10x10x8xbf16, #tpu.memory_space<vmem>>, vector<1x1x8x8x8xbf16>
    %51 = vector.shape_cast %50 : vector<1x1x8x8x8xbf16> to vector<8x8x8xbf16>
    %52 = vector.shape_cast %51 : vector<8x8x8xbf16> to vector<64x8xbf16>
    %c7 = arith.constant 7 : index
    %c0_61 = arith.constant 0 : index
    %c0_62 = arith.constant 0 : index
    %53 = vector.load %arg5[%c7, %c0_61, %c0_62] : memref<27x8x128xbf16, #tpu.memory_space<vmem>>, vector<1x8x128xbf16>
    %54 = vector.shape_cast %53 : vector<1x8x128xbf16> to vector<8x128xbf16>
    %cst_63 = arith.constant dense<0.000000e+00> : vector<64x128xf32>
    %55 = tpu.matmul %52, %54, %cst_63 {dimension_numbers = #tpu.dot_dimension_numbers<[1], [0], [0], [1], [0, 0, 1, 1], [], []>} : vector<64x8xbf16>, vector<8x128xbf16>, vector<64x128xf32> -> vector<64x128xf32>
    %56 = arith.addf %49, %55 : vector<64x128xf32>
    %c0_64 = arith.constant 0 : index
    %c0_65 = arith.constant 0 : index
    %c2_66 = arith.constant 2 : index
    %c2_67 = arith.constant 2 : index
    %c0_68 = arith.constant 0 : index
    %57 = vector.load %arg2[%c0_64, %c0_65, %c2_66, %c2_67, %c0_68] : memref<1x1x10x10x8xbf16, #tpu.memory_space<vmem>>, vector<1x1x8x8x8xbf16>
    %58 = vector.shape_cast %57 : vector<1x1x8x8x8xbf16> to vector<8x8x8xbf16>
    %59 = vector.shape_cast %58 : vector<8x8x8xbf16> to vector<64x8xbf16>
    %c8 = arith.constant 8 : index
    %c0_69 = arith.constant 0 : index
    %c0_70 = arith.constant 0 : index
    %60 = vector.load %arg5[%c8, %c0_69, %c0_70] : memref<27x8x128xbf16, #tpu.memory_space<vmem>>, vector<1x8x128xbf16>
    %61 = vector.shape_cast %60 : vector<1x8x128xbf16> to vector<8x128xbf16>
    %cst_71 = arith.constant dense<0.000000e+00> : vector<64x128xf32>
    %62 = tpu.matmul %59, %61, %cst_71 {dimension_numbers = #tpu.dot_dimension_numbers<[1], [0], [0], [1], [0, 0, 1, 1], [], []>} : vector<64x8xbf16>, vector<8x128xbf16>, vector<64x128xf32> -> vector<64x128xf32>
    %63 = arith.addf %56, %62 : vector<64x128xf32>
    %c0_72 = arith.constant 0 : index
    %c0_73 = arith.constant 0 : index
    %c0_74 = arith.constant 0 : index
    %c0_75 = arith.constant 0 : index
    %c0_76 = arith.constant 0 : index
    %64 = vector.load %arg3[%c0_72, %c0_73, %c0_74, %c0_75, %c0_76] : memref<1x1x10x10x8xbf16, #tpu.memory_space<vmem>>, vector<1x1x8x8x8xbf16>
    %65 = vector.shape_cast %64 : vector<1x1x8x8x8xbf16> to vector<8x8x8xbf16>
    %66 = vector.shape_cast %65 : vector<8x8x8xbf16> to vector<64x8xbf16>
    %c9 = arith.constant 9 : index
    %c0_77 = arith.constant 0 : index
    %c0_78 = arith.constant 0 : index
    %67 = vector.load %arg5[%c9, %c0_77, %c0_78] : memref<27x8x128xbf16, #tpu.memory_space<vmem>>, vector<1x8x128xbf16>
    %68 = vector.shape_cast %67 : vector<1x8x128xbf16> to vector<8x128xbf16>
    %cst_79 = arith.constant dense<0.000000e+00> : vector<64x128xf32>
    %69 = tpu.matmul %66, %68, %cst_79 {dimension_numbers = #tpu.dot_dimension_numbers<[1], [0], [0], [1], [0, 0, 1, 1], [], []>} : vector<64x8xbf16>, vector<8x128xbf16>, vector<64x128xf32> -> vector<64x128xf32>
    %70 = arith.addf %63, %69 : vector<64x128xf32>
    %c0_80 = arith.constant 0 : index
    %c0_81 = arith.constant 0 : index
    %c0_82 = arith.constant 0 : index
    %c1_83 = arith.constant 1 : index
    %c0_84 = arith.constant 0 : index
    %71 = vector.load %arg3[%c0_80, %c0_81, %c0_82, %c1_83, %c0_84] : memref<1x1x10x10x8xbf16, #tpu.memory_space<vmem>>, vector<1x1x8x8x8xbf16>
    %72 = vector.shape_cast %71 : vector<1x1x8x8x8xbf16> to vector<8x8x8xbf16>
    %73 = vector.shape_cast %72 : vector<8x8x8xbf16> to vector<64x8xbf16>
    %c10 = arith.constant 10 : index
    %c0_85 = arith.constant 0 : index
    %c0_86 = arith.constant 0 : index
    %74 = vector.load %arg5[%c10, %c0_85, %c0_86] : memref<27x8x128xbf16, #tpu.memory_space<vmem>>, vector<1x8x128xbf16>
    %75 = vector.shape_cast %74 : vector<1x8x128xbf16> to vector<8x128xbf16>
    %cst_87 = arith.constant dense<0.000000e+00> : vector<64x128xf32>
    %76 = tpu.matmul %73, %75, %cst_87 {dimension_numbers = #tpu.dot_dimension_numbers<[1], [0], [0], [1], [0, 0, 1, 1], [], []>} : vector<64x8xbf16>, vector<8x128xbf16>, vector<64x128xf32> -> vector<64x128xf32>
    %77 = arith.addf %70, %76 : vector<64x128xf32>
    %c0_88 = arith.constant 0 : index
    %c0_89 = arith.constant 0 : index
    %c0_90 = arith.constant 0 : index
    %c2_91 = arith.constant 2 : index
    %c0_92 = arith.constant 0 : index
    %78 = vector.load %arg3[%c0_88, %c0_89, %c0_90, %c2_91, %c0_92] : memref<1x1x10x10x8xbf16, #tpu.memory_space<vmem>>, vector<1x1x8x8x8xbf16>
    %79 = vector.shape_cast %78 : vector<1x1x8x8x8xbf16> to vector<8x8x8xbf16>
    %80 = vector.shape_cast %79 : vector<8x8x8xbf16> to vector<64x8xbf16>
    %c11 = arith.constant 11 : index
    %c0_93 = arith.constant 0 : index
    %c0_94 = arith.constant 0 : index
    %81 = vector.load %arg5[%c11, %c0_93, %c0_94] : memref<27x8x128xbf16, #tpu.memory_space<vmem>>, vector<1x8x128xbf16>
    %82 = vector.shape_cast %81 : vector<1x8x128xbf16> to vector<8x128xbf16>
    %cst_95 = arith.constant dense<0.000000e+00> : vector<64x128xf32>
    %83 = tpu.matmul %80, %82, %cst_95 {dimension_numbers = #tpu.dot_dimension_numbers<[1], [0], [0], [1], [0, 0, 1, 1], [], []>} : vector<64x8xbf16>, vector<8x128xbf16>, vector<64x128xf32> -> vector<64x128xf32>
    %84 = arith.addf %77, %83 : vector<64x128xf32>
    %c0_96 = arith.constant 0 : index
    %c0_97 = arith.constant 0 : index
    %c1_98 = arith.constant 1 : index
    %c0_99 = arith.constant 0 : index
    %c0_100 = arith.constant 0 : index
    %85 = vector.load %arg3[%c0_96, %c0_97, %c1_98, %c0_99, %c0_100] : memref<1x1x10x10x8xbf16, #tpu.memory_space<vmem>>, vector<1x1x8x8x8xbf16>
    %86 = vector.shape_cast %85 : vector<1x1x8x8x8xbf16> to vector<8x8x8xbf16>
    %87 = vector.shape_cast %86 : vector<8x8x8xbf16> to vector<64x8xbf16>
    %c12 = arith.constant 12 : index
    %c0_101 = arith.constant 0 : index
    %c0_102 = arith.constant 0 : index
    %88 = vector.load %arg5[%c12, %c0_101, %c0_102] : memref<27x8x128xbf16, #tpu.memory_space<vmem>>, vector<1x8x128xbf16>
    %89 = vector.shape_cast %88 : vector<1x8x128xbf16> to vector<8x128xbf16>
    %cst_103 = arith.constant dense<0.000000e+00> : vector<64x128xf32>
    %90 = tpu.matmul %87, %89, %cst_103 {dimension_numbers = #tpu.dot_dimension_numbers<[1], [0], [0], [1], [0, 0, 1, 1], [], []>} : vector<64x8xbf16>, vector<8x128xbf16>, vector<64x128xf32> -> vector<64x128xf32>
    %91 = arith.addf %84, %90 : vector<64x128xf32>
    %c0_104 = arith.constant 0 : index
    %c0_105 = arith.constant 0 : index
    %c1_106 = arith.constant 1 : index
    %c1_107 = arith.constant 1 : index
    %c0_108 = arith.constant 0 : index
    %92 = vector.load %arg3[%c0_104, %c0_105, %c1_106, %c1_107, %c0_108] : memref<1x1x10x10x8xbf16, #tpu.memory_space<vmem>>, vector<1x1x8x8x8xbf16>
    %93 = vector.shape_cast %92 : vector<1x1x8x8x8xbf16> to vector<8x8x8xbf16>
    %94 = vector.shape_cast %93 : vector<8x8x8xbf16> to vector<64x8xbf16>
    %c13 = arith.constant 13 : index
    %c0_109 = arith.constant 0 : index
    %c0_110 = arith.constant 0 : index
    %95 = vector.load %arg5[%c13, %c0_109, %c0_110] : memref<27x8x128xbf16, #tpu.memory_space<vmem>>, vector<1x8x128xbf16>
    %96 = vector.shape_cast %95 : vector<1x8x128xbf16> to vector<8x128xbf16>
    %cst_111 = arith.constant dense<0.000000e+00> : vector<64x128xf32>
    %97 = tpu.matmul %94, %96, %cst_111 {dimension_numbers = #tpu.dot_dimension_numbers<[1], [0], [0], [1], [0, 0, 1, 1], [], []>} : vector<64x8xbf16>, vector<8x128xbf16>, vector<64x128xf32> -> vector<64x128xf32>
    %98 = arith.addf %91, %97 : vector<64x128xf32>
    %c0_112 = arith.constant 0 : index
    %c0_113 = arith.constant 0 : index
    %c1_114 = arith.constant 1 : index
    %c2_115 = arith.constant 2 : index
    %c0_116 = arith.constant 0 : index
    %99 = vector.load %arg3[%c0_112, %c0_113, %c1_114, %c2_115, %c0_116] : memref<1x1x10x10x8xbf16, #tpu.memory_space<vmem>>, vector<1x1x8x8x8xbf16>
    %100 = vector.shape_cast %99 : vector<1x1x8x8x8xbf16> to vector<8x8x8xbf16>
    %101 = vector.shape_cast %100 : vector<8x8x8xbf16> to vector<64x8xbf16>
    %c14 = arith.constant 14 : index
    %c0_117 = arith.constant 0 : index
    %c0_118 = arith.constant 0 : index
    %102 = vector.load %arg5[%c14, %c0_117, %c0_118] : memref<27x8x128xbf16, #tpu.memory_space<vmem>>, vector<1x8x128xbf16>
    %103 = vector.shape_cast %102 : vector<1x8x128xbf16> to vector<8x128xbf16>
    %cst_119 = arith.constant dense<0.000000e+00> : vector<64x128xf32>
    %104 = tpu.matmul %101, %103, %cst_119 {dimension_numbers = #tpu.dot_dimension_numbers<[1], [0], [0], [1], [0, 0, 1, 1], [], []>} : vector<64x8xbf16>, vector<8x128xbf16>, vector<64x128xf32> -> vector<64x128xf32>
    %105 = arith.addf %98, %104 : vector<64x128xf32>
    %c0_120 = arith.constant 0 : index
    %c0_121 = arith.constant 0 : index
    %c2_122 = arith.constant 2 : index
    %c0_123 = arith.constant 0 : index
    %c0_124 = arith.constant 0 : index
    %106 = vector.load %arg3[%c0_120, %c0_121, %c2_122, %c0_123, %c0_124] : memref<1x1x10x10x8xbf16, #tpu.memory_space<vmem>>, vector<1x1x8x8x8xbf16>
    %107 = vector.shape_cast %106 : vector<1x1x8x8x8xbf16> to vector<8x8x8xbf16>
    %108 = vector.shape_cast %107 : vector<8x8x8xbf16> to vector<64x8xbf16>
    %c15 = arith.constant 15 : index
    %c0_125 = arith.constant 0 : index
    %c0_126 = arith.constant 0 : index
    %109 = vector.load %arg5[%c15, %c0_125, %c0_126] : memref<27x8x128xbf16, #tpu.memory_space<vmem>>, vector<1x8x128xbf16>
    %110 = vector.shape_cast %109 : vector<1x8x128xbf16> to vector<8x128xbf16>
    %cst_127 = arith.constant dense<0.000000e+00> : vector<64x128xf32>
    %111 = tpu.matmul %108, %110, %cst_127 {dimension_numbers = #tpu.dot_dimension_numbers<[1], [0], [0], [1], [0, 0, 1, 1], [], []>} : vector<64x8xbf16>, vector<8x128xbf16>, vector<64x128xf32> -> vector<64x128xf32>
    %112 = arith.addf %105, %111 : vector<64x128xf32>
    %c0_128 = arith.constant 0 : index
    %c0_129 = arith.constant 0 : index
    %c2_130 = arith.constant 2 : index
    %c1_131 = arith.constant 1 : index
    %c0_132 = arith.constant 0 : index
    %113 = vector.load %arg3[%c0_128, %c0_129, %c2_130, %c1_131, %c0_132] : memref<1x1x10x10x8xbf16, #tpu.memory_space<vmem>>, vector<1x1x8x8x8xbf16>
    %114 = vector.shape_cast %113 : vector<1x1x8x8x8xbf16> to vector<8x8x8xbf16>
    %115 = vector.shape_cast %114 : vector<8x8x8xbf16> to vector<64x8xbf16>
    %c16 = arith.constant 16 : index
    %c0_133 = arith.constant 0 : index
    %c0_134 = arith.constant 0 : index
    %116 = vector.load %arg5[%c16, %c0_133, %c0_134] : memref<27x8x128xbf16, #tpu.memory_space<vmem>>, vector<1x8x128xbf16>
    %117 = vector.shape_cast %116 : vector<1x8x128xbf16> to vector<8x128xbf16>
    %cst_135 = arith.constant dense<0.000000e+00> : vector<64x128xf32>
    %118 = tpu.matmul %115, %117, %cst_135 {dimension_numbers = #tpu.dot_dimension_numbers<[1], [0], [0], [1], [0, 0, 1, 1], [], []>} : vector<64x8xbf16>, vector<8x128xbf16>, vector<64x128xf32> -> vector<64x128xf32>
    %119 = arith.addf %112, %118 : vector<64x128xf32>
    %c0_136 = arith.constant 0 : index
    %c0_137 = arith.constant 0 : index
    %c2_138 = arith.constant 2 : index
    %c2_139 = arith.constant 2 : index
    %c0_140 = arith.constant 0 : index
    %120 = vector.load %arg3[%c0_136, %c0_137, %c2_138, %c2_139, %c0_140] : memref<1x1x10x10x8xbf16, #tpu.memory_space<vmem>>, vector<1x1x8x8x8xbf16>
    %121 = vector.shape_cast %120 : vector<1x1x8x8x8xbf16> to vector<8x8x8xbf16>
    %122 = vector.shape_cast %121 : vector<8x8x8xbf16> to vector<64x8xbf16>
    %c17 = arith.constant 17 : index
    %c0_141 = arith.constant 0 : index
    %c0_142 = arith.constant 0 : index
    %123 = vector.load %arg5[%c17, %c0_141, %c0_142] : memref<27x8x128xbf16, #tpu.memory_space<vmem>>, vector<1x8x128xbf16>
    %124 = vector.shape_cast %123 : vector<1x8x128xbf16> to vector<8x128xbf16>
    %cst_143 = arith.constant dense<0.000000e+00> : vector<64x128xf32>
    %125 = tpu.matmul %122, %124, %cst_143 {dimension_numbers = #tpu.dot_dimension_numbers<[1], [0], [0], [1], [0, 0, 1, 1], [], []>} : vector<64x8xbf16>, vector<8x128xbf16>, vector<64x128xf32> -> vector<64x128xf32>
    %126 = arith.addf %119, %125 : vector<64x128xf32>
    %c0_144 = arith.constant 0 : index
    %c0_145 = arith.constant 0 : index
    %c0_146 = arith.constant 0 : index
    %c0_147 = arith.constant 0 : index
    %c0_148 = arith.constant 0 : index
    %127 = vector.load %arg4[%c0_144, %c0_145, %c0_146, %c0_147, %c0_148] : memref<1x1x10x10x8xbf16, #tpu.memory_space<vmem>>, vector<1x1x8x8x8xbf16>
    %128 = vector.shape_cast %127 : vector<1x1x8x8x8xbf16> to vector<8x8x8xbf16>
    %129 = vector.shape_cast %128 : vector<8x8x8xbf16> to vector<64x8xbf16>
    %c18 = arith.constant 18 : index
    %c0_149 = arith.constant 0 : index
    %c0_150 = arith.constant 0 : index
    %130 = vector.load %arg5[%c18, %c0_149, %c0_150] : memref<27x8x128xbf16, #tpu.memory_space<vmem>>, vector<1x8x128xbf16>
    %131 = vector.shape_cast %130 : vector<1x8x128xbf16> to vector<8x128xbf16>
    %cst_151 = arith.constant dense<0.000000e+00> : vector<64x128xf32>
    %132 = tpu.matmul %129, %131, %cst_151 {dimension_numbers = #tpu.dot_dimension_numbers<[1], [0], [0], [1], [0, 0, 1, 1], [], []>} : vector<64x8xbf16>, vector<8x128xbf16>, vector<64x128xf32> -> vector<64x128xf32>
    %133 = arith.addf %126, %132 : vector<64x128xf32>
    %c0_152 = arith.constant 0 : index
    %c0_153 = arith.constant 0 : index
    %c0_154 = arith.constant 0 : index
    %c1_155 = arith.constant 1 : index
    %c0_156 = arith.constant 0 : index
    %134 = vector.load %arg4[%c0_152, %c0_153, %c0_154, %c1_155, %c0_156] : memref<1x1x10x10x8xbf16, #tpu.memory_space<vmem>>, vector<1x1x8x8x8xbf16>
    %135 = vector.shape_cast %134 : vector<1x1x8x8x8xbf16> to vector<8x8x8xbf16>
    %136 = vector.shape_cast %135 : vector<8x8x8xbf16> to vector<64x8xbf16>
    %c19 = arith.constant 19 : index
    %c0_157 = arith.constant 0 : index
    %c0_158 = arith.constant 0 : index
    %137 = vector.load %arg5[%c19, %c0_157, %c0_158] : memref<27x8x128xbf16, #tpu.memory_space<vmem>>, vector<1x8x128xbf16>
    %138 = vector.shape_cast %137 : vector<1x8x128xbf16> to vector<8x128xbf16>
    %cst_159 = arith.constant dense<0.000000e+00> : vector<64x128xf32>
    %139 = tpu.matmul %136, %138, %cst_159 {dimension_numbers = #tpu.dot_dimension_numbers<[1], [0], [0], [1], [0, 0, 1, 1], [], []>} : vector<64x8xbf16>, vector<8x128xbf16>, vector<64x128xf32> -> vector<64x128xf32>
    %140 = arith.addf %133, %139 : vector<64x128xf32>
    %c0_160 = arith.constant 0 : index
    %c0_161 = arith.constant 0 : index
    %c0_162 = arith.constant 0 : index
    %c2_163 = arith.constant 2 : index
    %c0_164 = arith.constant 0 : index
    %141 = vector.load %arg4[%c0_160, %c0_161, %c0_162, %c2_163, %c0_164] : memref<1x1x10x10x8xbf16, #tpu.memory_space<vmem>>, vector<1x1x8x8x8xbf16>
    %142 = vector.shape_cast %141 : vector<1x1x8x8x8xbf16> to vector<8x8x8xbf16>
    %143 = vector.shape_cast %142 : vector<8x8x8xbf16> to vector<64x8xbf16>
    %c20 = arith.constant 20 : index
    %c0_165 = arith.constant 0 : index
    %c0_166 = arith.constant 0 : index
    %144 = vector.load %arg5[%c20, %c0_165, %c0_166] : memref<27x8x128xbf16, #tpu.memory_space<vmem>>, vector<1x8x128xbf16>
    %145 = vector.shape_cast %144 : vector<1x8x128xbf16> to vector<8x128xbf16>
    %cst_167 = arith.constant dense<0.000000e+00> : vector<64x128xf32>
    %146 = tpu.matmul %143, %145, %cst_167 {dimension_numbers = #tpu.dot_dimension_numbers<[1], [0], [0], [1], [0, 0, 1, 1], [], []>} : vector<64x8xbf16>, vector<8x128xbf16>, vector<64x128xf32> -> vector<64x128xf32>
    %147 = arith.addf %140, %146 : vector<64x128xf32>
    %c0_168 = arith.constant 0 : index
    %c0_169 = arith.constant 0 : index
    %c1_170 = arith.constant 1 : index
    %c0_171 = arith.constant 0 : index
    %c0_172 = arith.constant 0 : index
    %148 = vector.load %arg4[%c0_168, %c0_169, %c1_170, %c0_171, %c0_172] : memref<1x1x10x10x8xbf16, #tpu.memory_space<vmem>>, vector<1x1x8x8x8xbf16>
    %149 = vector.shape_cast %148 : vector<1x1x8x8x8xbf16> to vector<8x8x8xbf16>
    %150 = vector.shape_cast %149 : vector<8x8x8xbf16> to vector<64x8xbf16>
    %c21 = arith.constant 21 : index
    %c0_173 = arith.constant 0 : index
    %c0_174 = arith.constant 0 : index
    %151 = vector.load %arg5[%c21, %c0_173, %c0_174] : memref<27x8x128xbf16, #tpu.memory_space<vmem>>, vector<1x8x128xbf16>
    %152 = vector.shape_cast %151 : vector<1x8x128xbf16> to vector<8x128xbf16>
    %cst_175 = arith.constant dense<0.000000e+00> : vector<64x128xf32>
    %153 = tpu.matmul %150, %152, %cst_175 {dimension_numbers = #tpu.dot_dimension_numbers<[1], [0], [0], [1], [0, 0, 1, 1], [], []>} : vector<64x8xbf16>, vector<8x128xbf16>, vector<64x128xf32> -> vector<64x128xf32>
    %154 = arith.addf %147, %153 : vector<64x128xf32>
    %c0_176 = arith.constant 0 : index
    %c0_177 = arith.constant 0 : index
    %c1_178 = arith.constant 1 : index
    %c1_179 = arith.constant 1 : index
    %c0_180 = arith.constant 0 : index
    %155 = vector.load %arg4[%c0_176, %c0_177, %c1_178, %c1_179, %c0_180] : memref<1x1x10x10x8xbf16, #tpu.memory_space<vmem>>, vector<1x1x8x8x8xbf16>
    %156 = vector.shape_cast %155 : vector<1x1x8x8x8xbf16> to vector<8x8x8xbf16>
    %157 = vector.shape_cast %156 : vector<8x8x8xbf16> to vector<64x8xbf16>
    %c22 = arith.constant 22 : index
    %c0_181 = arith.constant 0 : index
    %c0_182 = arith.constant 0 : index
    %158 = vector.load %arg5[%c22, %c0_181, %c0_182] : memref<27x8x128xbf16, #tpu.memory_space<vmem>>, vector<1x8x128xbf16>
    %159 = vector.shape_cast %158 : vector<1x8x128xbf16> to vector<8x128xbf16>
    %cst_183 = arith.constant dense<0.000000e+00> : vector<64x128xf32>
    %160 = tpu.matmul %157, %159, %cst_183 {dimension_numbers = #tpu.dot_dimension_numbers<[1], [0], [0], [1], [0, 0, 1, 1], [], []>} : vector<64x8xbf16>, vector<8x128xbf16>, vector<64x128xf32> -> vector<64x128xf32>
    %161 = arith.addf %154, %160 : vector<64x128xf32>
    %c0_184 = arith.constant 0 : index
    %c0_185 = arith.constant 0 : index
    %c1_186 = arith.constant 1 : index
    %c2_187 = arith.constant 2 : index
    %c0_188 = arith.constant 0 : index
    %162 = vector.load %arg4[%c0_184, %c0_185, %c1_186, %c2_187, %c0_188] : memref<1x1x10x10x8xbf16, #tpu.memory_space<vmem>>, vector<1x1x8x8x8xbf16>
    %163 = vector.shape_cast %162 : vector<1x1x8x8x8xbf16> to vector<8x8x8xbf16>
    %164 = vector.shape_cast %163 : vector<8x8x8xbf16> to vector<64x8xbf16>
    %c23 = arith.constant 23 : index
    %c0_189 = arith.constant 0 : index
    %c0_190 = arith.constant 0 : index
    %165 = vector.load %arg5[%c23, %c0_189, %c0_190] : memref<27x8x128xbf16, #tpu.memory_space<vmem>>, vector<1x8x128xbf16>
    %166 = vector.shape_cast %165 : vector<1x8x128xbf16> to vector<8x128xbf16>
    %cst_191 = arith.constant dense<0.000000e+00> : vector<64x128xf32>
    %167 = tpu.matmul %164, %166, %cst_191 {dimension_numbers = #tpu.dot_dimension_numbers<[1], [0], [0], [1], [0, 0, 1, 1], [], []>} : vector<64x8xbf16>, vector<8x128xbf16>, vector<64x128xf32> -> vector<64x128xf32>
    %168 = arith.addf %161, %167 : vector<64x128xf32>
    %c0_192 = arith.constant 0 : index
    %c0_193 = arith.constant 0 : index
    %c2_194 = arith.constant 2 : index
    %c0_195 = arith.constant 0 : index
    %c0_196 = arith.constant 0 : index
    %169 = vector.load %arg4[%c0_192, %c0_193, %c2_194, %c0_195, %c0_196] : memref<1x1x10x10x8xbf16, #tpu.memory_space<vmem>>, vector<1x1x8x8x8xbf16>
    %170 = vector.shape_cast %169 : vector<1x1x8x8x8xbf16> to vector<8x8x8xbf16>
    %171 = vector.shape_cast %170 : vector<8x8x8xbf16> to vector<64x8xbf16>
    %c24 = arith.constant 24 : index
    %c0_197 = arith.constant 0 : index
    %c0_198 = arith.constant 0 : index
    %172 = vector.load %arg5[%c24, %c0_197, %c0_198] : memref<27x8x128xbf16, #tpu.memory_space<vmem>>, vector<1x8x128xbf16>
    %173 = vector.shape_cast %172 : vector<1x8x128xbf16> to vector<8x128xbf16>
    %cst_199 = arith.constant dense<0.000000e+00> : vector<64x128xf32>
    %174 = tpu.matmul %171, %173, %cst_199 {dimension_numbers = #tpu.dot_dimension_numbers<[1], [0], [0], [1], [0, 0, 1, 1], [], []>} : vector<64x8xbf16>, vector<8x128xbf16>, vector<64x128xf32> -> vector<64x128xf32>
    %175 = arith.addf %168, %174 : vector<64x128xf32>
    %c0_200 = arith.constant 0 : index
    %c0_201 = arith.constant 0 : index
    %c2_202 = arith.constant 2 : index
    %c1_203 = arith.constant 1 : index
    %c0_204 = arith.constant 0 : index
    %176 = vector.load %arg4[%c0_200, %c0_201, %c2_202, %c1_203, %c0_204] : memref<1x1x10x10x8xbf16, #tpu.memory_space<vmem>>, vector<1x1x8x8x8xbf16>
    %177 = vector.shape_cast %176 : vector<1x1x8x8x8xbf16> to vector<8x8x8xbf16>
    %178 = vector.shape_cast %177 : vector<8x8x8xbf16> to vector<64x8xbf16>
    %c25 = arith.constant 25 : index
    %c0_205 = arith.constant 0 : index
    %c0_206 = arith.constant 0 : index
    %179 = vector.load %arg5[%c25, %c0_205, %c0_206] : memref<27x8x128xbf16, #tpu.memory_space<vmem>>, vector<1x8x128xbf16>
    %180 = vector.shape_cast %179 : vector<1x8x128xbf16> to vector<8x128xbf16>
    %cst_207 = arith.constant dense<0.000000e+00> : vector<64x128xf32>
    %181 = tpu.matmul %178, %180, %cst_207 {dimension_numbers = #tpu.dot_dimension_numbers<[1], [0], [0], [1], [0, 0, 1, 1], [], []>} : vector<64x8xbf16>, vector<8x128xbf16>, vector<64x128xf32> -> vector<64x128xf32>
    %182 = arith.addf %175, %181 : vector<64x128xf32>
    %c0_208 = arith.constant 0 : index
    %c0_209 = arith.constant 0 : index
    %c2_210 = arith.constant 2 : index
    %c2_211 = arith.constant 2 : index
    %c0_212 = arith.constant 0 : index
    %183 = vector.load %arg4[%c0_208, %c0_209, %c2_210, %c2_211, %c0_212] : memref<1x1x10x10x8xbf16, #tpu.memory_space<vmem>>, vector<1x1x8x8x8xbf16>
    %184 = vector.shape_cast %183 : vector<1x1x8x8x8xbf16> to vector<8x8x8xbf16>
    %185 = vector.shape_cast %184 : vector<8x8x8xbf16> to vector<64x8xbf16>
    %c26 = arith.constant 26 : index
    %c0_213 = arith.constant 0 : index
    %c0_214 = arith.constant 0 : index
    %186 = vector.load %arg5[%c26, %c0_213, %c0_214] : memref<27x8x128xbf16, #tpu.memory_space<vmem>>, vector<1x8x128xbf16>
    %187 = vector.shape_cast %186 : vector<1x8x128xbf16> to vector<8x128xbf16>
    %cst_215 = arith.constant dense<0.000000e+00> : vector<64x128xf32>
    %188 = tpu.matmul %185, %187, %cst_215 {dimension_numbers = #tpu.dot_dimension_numbers<[1], [0], [0], [1], [0, 0, 1, 1], [], []>} : vector<64x8xbf16>, vector<8x128xbf16>, vector<64x128xf32> -> vector<64x128xf32>
    %189 = arith.addf %182, %188 : vector<64x128xf32>
    %cst_216 = arith.constant dense<0.000000e+00> : vector<128xf32>
    %190 = vector.multi_reduction <add>, %189, %cst_216 [0] : vector<64x128xf32> to vector<128xf32>
    %191 = vector.shape_cast %190 : vector<128xf32> to vector<1x128xf32>
    %c0_217 = arith.constant 0 : index
    %c0_218 = arith.constant 0 : index
    %c0_219 = arith.constant 0 : index
    %c0_220 = arith.constant 0 : index
    %192 = vector.load %arg7[%c0_217, %c0_218, %c0_219, %c0_220] : memref<1x1x2x128xf32, #tpu.memory_space<vmem>>, vector<1x1x1x128xf32>
    %193 = vector.shape_cast %192 : vector<1x1x1x128xf32> to vector<1x128xf32>
    %194 = vector.shape_cast %191 : vector<1x128xf32> to vector<1x1x1x128xf32>
    tpu.vector_store %arg7[%c0_217, %c0_218, %c0_219, %c0_220], %194 {strides = array<i32>} : memref<1x1x2x128xf32, #tpu.memory_space<vmem>>, vector<1x1x1x128xf32>,
    %195 = arith.mulf %189, %189 : vector<64x128xf32>
    %cst_221 = arith.constant dense<0.000000e+00> : vector<128xf32>
    %196 = vector.multi_reduction <add>, %195, %cst_221 [0] : vector<64x128xf32> to vector<128xf32>
    %197 = vector.shape_cast %196 : vector<128xf32> to vector<1x128xf32>
    %c0_222 = arith.constant 0 : index
    %c0_223 = arith.constant 0 : index
    %c1_224 = arith.constant 1 : index
    %c0_225 = arith.constant 0 : index
    %198 = vector.load %arg7[%c0_222, %c0_223, %c1_224, %c0_225] : memref<1x1x2x128xf32, #tpu.memory_space<vmem>>, vector<1x1x1x128xf32>
    %199 = vector.shape_cast %198 : vector<1x1x1x128xf32> to vector<1x128xf32>
    %200 = vector.shape_cast %197 : vector<1x128xf32> to vector<1x1x1x128xf32>
    tpu.vector_store %arg7[%c0_222, %c0_223, %c1_224, %c0_225], %200 {strides = array<i32>} : memref<1x1x2x128xf32, #tpu.memory_space<vmem>>, vector<1x1x1x128xf32>,
    %201 = vector.extract_strided_slice %189 {offsets = [0, 0], sizes = [64, 8], strides = [1, 1]} : vector<64x128xf32> to vector<64x8xf32>
    %202 = arith.truncf %201 : vector<64x8xf32> to vector<64x8xbf16>
    %c0_226 = arith.constant 0 : index
    %c0_227 = arith.constant 0 : index
    %c0_228 = arith.constant 0 : index
    %c0_229 = arith.constant 0 : index
    %203 = vector.load %arg6[%c0_226, %c0_227, %c0_228, %c0_229] : memref<1x1x64x8xbf16, #tpu.memory_space<vmem>>, vector<1x1x64x8xbf16>
    %204 = vector.shape_cast %203 : vector<1x1x64x8xbf16> to vector<64x8xbf16>
    %205 = vector.shape_cast %202 : vector<64x8xbf16> to vector<1x1x64x8xbf16>
    tpu.vector_store %arg6[%c0_226, %c0_227, %c0_228, %c0_229], %205 {strides = array<i32>} : memref<1x1x64x8xbf16, #tpu.memory_space<vmem>>, vector<1x1x64x8xbf16>,
    return
  }
  func.func @transform_0(%arg0: i32, %arg1: i32) -> (i32, i32, i32, i32, i32) {
    %c0_i32 = arith.constant 0 : i32
    %0 = arith.addi %arg1, %c0_i32 : i32
    %c0_i32_0 = arith.constant 0 : i32
    %c0_i32_1 = arith.constant 0 : i32
    %c0_i32_2 = arith.constant 0 : i32
    %c0_i32_3 = arith.constant 0 : i32
    return %arg0, %0, %c0_i32_0, %c0_i32_1, %c0_i32_2 : i32, i32, i32, i32, i32
  }
  func.func @transform_1(%arg0: i32, %arg1: i32) -> (i32, i32, i32, i32, i32) {
    %c1_i32 = arith.constant 1 : i32
    %0 = arith.addi %arg1, %c1_i32 : i32
    %c0_i32 = arith.constant 0 : i32
    %c0_i32_0 = arith.constant 0 : i32
    %c0_i32_1 = arith.constant 0 : i32
    %c0_i32_2 = arith.constant 0 : i32
    return %arg0, %0, %c0_i32, %c0_i32_0, %c0_i32_1 : i32, i32, i32, i32, i32
  }
  func.func @transform_2(%arg0: i32, %arg1: i32) -> (i32, i32, i32, i32, i32) {
    %c2_i32 = arith.constant 2 : i32
    %0 = arith.addi %arg1, %c2_i32 : i32
    %c0_i32 = arith.constant 0 : i32
    %c0_i32_0 = arith.constant 0 : i32
    %c0_i32_1 = arith.constant 0 : i32
    %c0_i32_2 = arith.constant 0 : i32
    return %arg0, %0, %c0_i32, %c0_i32_0, %c0_i32_1 : i32, i32, i32, i32, i32
  }
  func.func @transform_3(%arg0: i32, %arg1: i32) -> (i32, i32, i32) {
    %c0_i32 = arith.constant 0 : i32
    %c0_i32_0 = arith.constant 0 : i32
    %c0_i32_1 = arith.constant 0 : i32
    %c0_i32_2 = arith.constant 0 : i32
    return %c0_i32, %c0_i32_0, %c0_i32_1 : i32, i32, i32
  }
  func.func @transform_4(%arg0: i32, %arg1: i32) -> (i32, i32, i32, i32) {
    %c0_i32 = arith.constant 0 : i32
    %c0_i32_0 = arith.constant 0 : i32
    %c0_i32_1 = arith.constant 0 : i32
    return %arg0, %arg1, %c0_i32, %c0_i32_0 : i32, i32, i32, i32
  }
  func.func @transform_5(%arg0: i32, %arg1: i32) -> (i32, i32, i32, i32) {
    %c0_i32 = arith.constant 0 : i32
    %c0_i32_0 = arith.constant 0 : i32
    %c0_i32_1 = arith.constant 0 : i32
    return %arg0, %arg1, %c0_i32, %c0_i32_0 : i32, i32, i32, i32
  }
}

module attributes {stable_mosaic.version = 11 : i64} {
  func.func @_bn_relu_kernel(%arg0: i32, %arg1: i32, %arg2: memref<1x1x64x8xbf16, #tpu.memory_space<vmem>>, %arg3: memref<1x8xf32, #tpu.memory_space<vmem>>, %arg4: memref<1x8xf32, #tpu.memory_space<vmem>>, %arg5: memref<1x1x8x8x8xf32, #tpu.memory_space<vmem>>) attributes {dimension_semantics = [#tpu.dimension_semantics<parallel>, #tpu.dimension_semantics<parallel>], iteration_bounds = array<i64: 2, 8>, scalar_prefetch = 0 : i64, scratch_operands = 0 : i64, tpu.core_type = #tpu.core_type<tc>, window_params = [{transform_indices = @transform_0, window_bounds = array<i64: 1, 1, 64, 8>}, {pipeline_mode = #tpu.pipeline_mode<synchronous>, transform_indices = @transform_1, window_bounds = array<i64: 1, 8>}, {pipeline_mode = #tpu.pipeline_mode<synchronous>, transform_indices = @transform_2, window_bounds = array<i64: 1, 8>}, {transform_indices = @transform_3, window_bounds = array<i64: 1, 1, 8, 8, 8>}]} {
    %c0 = arith.constant 0 : index
    %c0_0 = arith.constant 0 : index
    %c0_1 = arith.constant 0 : index
    %c0_2 = arith.constant 0 : index
    %0 = vector.load %arg2[%c0, %c0_0, %c0_1, %c0_2] : memref<1x1x64x8xbf16, #tpu.memory_space<vmem>>, vector<1x1x64x8xbf16>
    %1 = vector.shape_cast %0 : vector<1x1x64x8xbf16> to vector<64x8xbf16>
    %2 = arith.extf %1 : vector<64x8xbf16> to vector<64x8xf32>
    %c0_3 = arith.constant 0 : index
    %c0_4 = arith.constant 0 : index
    %3 = vector.load %arg3[%c0_3, %c0_4] : memref<1x8xf32, #tpu.memory_space<vmem>>, vector<1x8xf32>
    %4 = vector.broadcast %3 : vector<1x8xf32> to vector<64x8xf32>
    %5 = arith.mulf %2, %4 : vector<64x8xf32>
    %c0_5 = arith.constant 0 : index
    %c0_6 = arith.constant 0 : index
    %6 = vector.load %arg4[%c0_5, %c0_6] : memref<1x8xf32, #tpu.memory_space<vmem>>, vector<1x8xf32>
    %7 = vector.broadcast %6 : vector<1x8xf32> to vector<64x8xf32>
    %8 = arith.addf %5, %7 : vector<64x8xf32>
    %cst = arith.constant 0.000000e+00 : f32
    %9 = vector.broadcast %cst : f32 to vector<64x8xf32>
    %10 = arith.maximumf %8, %9 : vector<64x8xf32>
    %11 = vector.shape_cast %10 : vector<64x8xf32> to vector<8x8x8xf32>
    %c0_7 = arith.constant 0 : index
    %c0_8 = arith.constant 0 : index
    %c0_9 = arith.constant 0 : index
    %c0_10 = arith.constant 0 : index
    %c0_11 = arith.constant 0 : index
    %12 = vector.load %arg5[%c0_7, %c0_8, %c0_9, %c0_10, %c0_11] : memref<1x1x8x8x8xf32, #tpu.memory_space<vmem>>, vector<1x1x8x8x8xf32>
    %13 = vector.shape_cast %12 : vector<1x1x8x8x8xf32> to vector<8x8x8xf32>
    %14 = vector.shape_cast %11 : vector<8x8x8xf32> to vector<1x1x8x8x8xf32>
    tpu.vector_store %arg5[%c0_7, %c0_8, %c0_9, %c0_10, %c0_11], %14 {strides = array<i32>} : memref<1x1x8x8x8xf32, #tpu.memory_space<vmem>>, vector<1x1x8x8x8xf32>,
    return
  }
  func.func @transform_0(%arg0: i32, %arg1: i32) -> (i32, i32, i32, i32) {
    %c0_i32 = arith.constant 0 : i32
    %c0_i32_0 = arith.constant 0 : i32
    %c0_i32_1 = arith.constant 0 : i32
    return %arg0, %arg1, %c0_i32, %c0_i32_0 : i32, i32, i32, i32
  }
  func.func @transform_1(%arg0: i32, %arg1: i32) -> (i32, i32) {
    %c0_i32 = arith.constant 0 : i32
    %c0_i32_0 = arith.constant 0 : i32
    %c0_i32_1 = arith.constant 0 : i32
    return %c0_i32, %c0_i32_0 : i32, i32
  }
  func.func @transform_2(%arg0: i32, %arg1: i32) -> (i32, i32) {
    %c0_i32 = arith.constant 0 : i32
    %c0_i32_0 = arith.constant 0 : i32
    %c0_i32_1 = arith.constant 0 : i32
    return %c0_i32, %c0_i32_0 : i32, i32
  }
  func.func @transform_3(%arg0: i32, %arg1: i32) -> (i32, i32, i32, i32, i32) {
    %c0_i32 = arith.constant 0 : i32
    %c0_i32_0 = arith.constant 0 : i32
    %c0_i32_1 = arith.constant 0 : i32
    %c0_i32_2 = arith.constant 0 : i32
    return %arg0, %arg1, %c0_i32, %c0_i32_0, %c0_i32_1 : i32, i32, i32, i32, i32
  }
}

</mosaic_0001>

<bundles_post_ra>
// kernel: conv_block_up.5
= control target key start
LH: loop header
LB: loop body
LE: loop exit
PB: predicated region body
PF: predicated region fallthrough
CT: control target
= control target key end

     0   :  { %s507_s12 = smov 0   ;;  %s509_s13 = smov 0   ;;  %s579_s0 = inlined_call_operand.vmem [shape: bf16[2,8,64,8], index: 0, kind: input, shape index: {}]   ;;  %s580_s1 = inlined_call_operand.vmem [shape: f32[1,8], index: 1, kind: input, shape index: {}]   ;;  %s581_s2 = inlined_call_operand.vmem [shape: f32[1,8], index: 2, kind: input, shape index: {}]   ;;  %s582_s3 = inlined_call_operand.vmem [shape: bf16[2,8,8,8,8], index: 3, kind: output, shape index: {}]  }
   0x1   :  { %s511_s14 = smov 0   ;;  %s513_s15 = smov 0  }
   0x2   :  { %s515_s16 = smov 0  }
   0x3 LB: > { %s22_s17 = sadd.s32 1, %s477_s14  ;;  %s25_s18 = sadd.s32 1, %s481_s15  ;;  %s485_s16 = sphi %s515_s16, %s13_s16   ;;  %s481_s15 = sphi %s513_s15, %s586_s15   ;;  %s477_s14 = sphi %s511_s14, %s585_s14   ;;  %s473_s13 = sphi %s509_s13, %s584_s13   ;;  %s469_s12 = sphi %s507_s12, %s583_s12  }
   0x4   : > { %p23_p0 = scmp.ge.s32.totalorder %s22_s17, 8  ;;  %p377_p1 = scmp.ge.s32.totalorder %s485_s16, 1 }
   0x5   : > { %p157_p2 = scmp.lt.s32.totalorder %s485_s16, 17 }
   0x6   : > { %s588_s17 = smov (%p23_p0, %s22_s17), 0  ;;  %s590_s18 = smov (!%p23_p0, %s25_s18), %s481_s15 }
   0x7   : > { %p158_p3 = pnand %p377_p1, %p157_p2  ;;  %p27_p4 = scmp.ge.s32.totalorder %s590_s18, 2 }
   0x8   : > { %p189_p5 = scmp.lt.s32.totalorder (!%p158_p3), %s473_s13, 1  ;;  %p191_p6 = scmp.lt.s32.totalorder (!%p158_p3), %s469_s12, 7  ;;  %v384_v0 = vld [vmem:[%s580_s1] ss:$0 sm:$0xff] (!%p158_p3)  ;;  %vm269_vm0 = vcmask (!%p158_p3), 60416  }
   0x9   : > { %s592_s18 = smov (%p27_p4, %s590_s18), 0  ;;  %161 = sbr.rel (%p158_p3) target bundleno = 36 (0x24), region = 32 }
   0xa   : > { %v385_v9 = vld [vmem:[%s581_s2] ss:$0 sm:$0xff] (!%p158_p3) }
  0x10   : > { %s594_s13 = smov (!%p189_p5, %s473_s13), 1  ;;  %s596_s12 = smov (!%p191_p6, %s469_s12), 7 }
  0x11   : > { %s379_s19 = sshll.u32 %s594_s13, 6  ;;  %s378_s20 = sshll.u32 %s596_s12, 3 }
  0x12   : > { %s537_s21 = sadd.s32 %s379_s19, %s378_s20 }
  0x13   : > { %s380_s22 = sshll.u32 %s537_s21, 2 }
  0x14   : > { %s197_s25 = scalar_lea.vmem %s579_s0, %s380_s22  ;;  %s206_s5 = scalar_lea.vmem %s582_s3, %s380_s22 }
  0x15   : > { %v389_v1 = vld [vmem:[%s197_s25] sm:$0xff]   ;;  %v404_v2 = vld [vmem:[%s197_s25 + $0x8] sm:$0xff]   ;;  %v405_v3 = vld [vmem:[%s197_s25 + $0x10] sm:$0xff]  }
  0x16   : > { %v390_v4 = vunpack.c.l.bf16 %v389_v1  ;;  %v391_v5 = vunpack.c.h.bf16 %v389_v1  ;;  %v394_v6 = vunpack.c.l.bf16 %v404_v2  ;;  %v395_v7 = vunpack.c.h.bf16 %v404_v2  ;;  %v406_v8 = vld [vmem:[%s197_s25 + $0x18] sm:$0xff]  }
  0x17   : > { %v398_v10 = vunpack.c.l.bf16 %v405_v3  ;;  %v399_v11 = vunpack.c.h.bf16 %v405_v3  ;;  %v402_v12 = vunpack.c.l.bf16 %v406_v8  ;;  %v403_v13 = vunpack.c.h.bf16 %v406_v8 }
  0x18   : > { %v230_v14 = vmul.f32 %v390_v4, %v384_v0  ;;  %v231_v15 = vmul.f32 %v391_v5, %v384_v0  ;;  %v232_v16 = vmul.f32 %v394_v6, %v384_v0  ;;  %v233_v17 = vmul.f32 %v395_v7, %v384_v0 }
  0x19   : > { %v234_v18 = vmul.f32 %v398_v10, %v384_v0  ;;  %v235_v19 = vmul.f32 %v399_v11, %v384_v0  ;;  %v236_v20 = vmul.f32 %v402_v12, %v384_v0  ;;  %v237_v21 = vmul.f32 %v403_v13, %v384_v0 }
  0x1a   : > { %v245_v22 = vadd.f32 %v385_v9, %v230_v14  ;;  %v246_v23 = vadd.f32 %v385_v9, %v231_v15  ;;  %v247_v24 = vadd.f32 %v385_v9, %v232_v16  ;;  %v248_v25 = vadd.f32 %v385_v9, %v233_v17 }
  0x1b   : > { %v249_v26 = vadd.f32 %v385_v9, %v234_v18  ;;  %v250_v27 = vadd.f32 %v385_v9, %v235_v19  ;;  %v251_v28 = vadd.f32 %v385_v9, %v236_v20  ;;  %v252_v29 = vadd.f32 %v385_v9, %v237_v21 }
  0x1c   : > { %v253_v30 = vmax.f32 %v245_v22, 0.0  ;;  %v254_v31 = vmax.f32 %v246_v23, 0.0  ;;  %v255_v32 = vmax.f32 %v247_v24, 0.0  ;;  %v256_v33 = vmax.f32 %v248_v25, 0.0 }
  0x1d   : > { %v257_v34 = vmax.f32 %v249_v26, 0.0  ;;  %v258_v35 = vmax.f32 %v250_v27, 0.0  ;;  %v259_v36 = vmax.f32 %v251_v28, 0.0  ;;  %v260_v37 = vmax.f32 %v252_v29, 0.0 }
  0x1e   : > { %v261_v38 = vpack.c.bf16 %v253_v30, %v253_v30  ;;  %v262_v39 = vpack.c.bf16 %v254_v31, %v254_v31  ;;  %v263_v40 = vpack.c.bf16 %v255_v32, %v255_v32  ;;  %v264_v41 = vpack.c.bf16 %v256_v33, %v256_v33 }
  0x1f   : > { %v265_v42 = vpack.c.bf16 %v257_v34, %v257_v34  ;;  %v266_v43 = vpack.c.bf16 %v258_v35, %v258_v35  ;;  %v267_v44 = vpack.c.bf16 %v259_v36, %v259_v36  ;;  %v268_v45 = vpack.c.bf16 %v260_v37, %v260_v37 }
  0x20   : > { %270 = vst.msk [vmem:[%s206_s5] sm:$0xf] %vm269_vm0, %v261_v38  ;;  %271 = vst.msk [vmem:[%s206_s5 + $0x4] sm:$0xf] %vm269_vm0, %v262_v39 }
  0x21   : > { %272 = vst.msk [vmem:[%s206_s5 + $0x8] sm:$0xf] %vm269_vm0, %v263_v40  ;;  %273 = vst.msk [vmem:[%s206_s5 + $0xc] sm:$0xf] %vm269_vm0, %v264_v41 }
  0x22   : > { %274 = vst.msk [vmem:[%s206_s5 + $0x10] sm:$0xf] %vm269_vm0, %v265_v42  ;;  %275 = vst.msk [vmem:[%s206_s5 + $0x14] sm:$0xf] %vm269_vm0, %v266_v43 }
  0x23   : > { %276 = vst.msk [vmem:[%s206_s5 + $0x18] sm:$0xf] %vm269_vm0, %v267_v44  ;;  %277 = vst.msk [vmem:[%s206_s5 + $0x1c] sm:$0xf] %vm269_vm0, %v268_v45 }
  0x24 PF: > { %s13_s16 = sadd.s32 1, %s485_s16   ;;  %s583_s12 = smov %s477_s14 }
  0x25   : > { %p10_p7 = scmp.ge.s32.totalorder %s13_s16, 18   ;;  %s584_s13 = smov %s481_s15 }
  0x26   : > { %s585_s14 = smov %s588_s17  ;;  %s586_s15 = smov %s592_s18 }
  0x27   :  { %12 = sbr.rel (!%p10_p7) target bundleno = 3 (0x3), region = 62 }

// kernel: conv_block_up.7
= control target key start
LH: loop header
LB: loop body
LE: loop exit
PB: predicated region body
PF: predicated region fallthrough
CT: control target
= control target key end

     0   :  { %s499_s12 = smov 0   ;;  %s501_s13 = smov 0   ;;  %s568_s0 = inlined_call_operand.vmem [shape: bf16[2,8,64,8], index: 0, kind: input, shape index: {}]   ;;  %s569_s1 = inlined_call_operand.vmem [shape: f32[1,8], index: 1, kind: input, shape index: {}]   ;;  %s570_s2 = inlined_call_operand.vmem [shape: f32[1,8], index: 2, kind: input, shape index: {}]   ;;  %s571_s3 = inlined_call_operand.vmem [shape: f32[2,8,8,8,8], index: 3, kind: output, shape index: {}]  }
   0x1   :  { %s503_s14 = smov 0   ;;  %s505_s15 = smov 0  }
   0x2   :  { %s507_s16 = smov 0  }
   0x3 LB: > { %s22_s17 = sadd.s32 1, %s469_s14  ;;  %s25_s18 = sadd.s32 1, %s473_s15  ;;  %s477_s16 = sphi %s507_s16, %s13_s16   ;;  %s473_s15 = sphi %s505_s15, %s575_s15   ;;  %s469_s14 = sphi %s503_s14, %s574_s14   ;;  %s465_s13 = sphi %s501_s13, %s573_s13   ;;  %s461_s12 = sphi %s499_s12, %s572_s12  }
   0x4   : > { %p23_p0 = scmp.ge.s32.totalorder %s22_s17, 8  ;;  %p369_p1 = scmp.ge.s32.totalorder %s477_s16, 1 }
   0x5   : > { %p157_p2 = scmp.lt.s32.totalorder %s477_s16, 17 }
   0x6   : > { %s577_s17 = smov (%p23_p0, %s22_s17), 0  ;;  %s579_s18 = smov (!%p23_p0, %s25_s18), %s473_s15 }
   0x7   : > { %p158_p3 = pnand %p369_p1, %p157_p2  ;;  %p27_p4 = scmp.ge.s32.totalorder %s579_s18, 2 }
   0x8   : > { %p189_p5 = scmp.lt.s32.totalorder (!%p158_p3), %s465_s13, 1  ;;  %p191_p6 = scmp.lt.s32.totalorder (!%p158_p3), %s461_s12, 7  ;;  %v376_v0 = vld [vmem:[%s569_s1] ss:$0 sm:$0xff] (!%p158_p3)  ;;  %vm261_vm0 = vcmask (!%p158_p3), 64512  }
   0x9   : > { %s581_s18 = smov (%p27_p4, %s579_s18), 0  ;;  %161 = sbr.rel (%p158_p3) target bundleno = 34 (0x22), region = 32 }
   0xa   : > { %v377_v9 = vld [vmem:[%s570_s2] ss:$0 sm:$0xff] (!%p158_p3) }
  0x10   : > { %s583_s13 = smov (!%p189_p5, %s465_s13), 1  ;;  %s585_s12 = smov (!%p191_p6, %s461_s12), 7 }
  0x11   : > { %s371_s19 = sshll.u32 %s583_s13, 6  ;;  %s370_s20 = sshll.u32 %s585_s12, 3 }
  0x12   : > { %s529_s21 = sadd.s32 %s371_s19, %s370_s20 }
  0x13   : > { %s372_s22 = sshll.u32 %s529_s21, 2  ;;  %s375_s30 = sshll.u32 %s529_s21, 3 }
  0x14   : > { %s197_s25 = scalar_lea.vmem %s568_s0, %s372_s22  ;;  %s206_s6 = scalar_lea.vmem %s571_s3, %s375_s30 }
  0x15   : > { %v381_v1 = vld [vmem:[%s197_s25] sm:$0xff]   ;;  %v396_v2 = vld [vmem:[%s197_s25 + $0x8] sm:$0xff]   ;;  %v397_v3 = vld [vmem:[%s197_s25 + $0x10] sm:$0xff]  }
  0x16   : > { %v382_v4 = vunpack.c.l.bf16 %v381_v1  ;;  %v383_v5 = vunpack.c.h.bf16 %v381_v1  ;;  %v386_v6 = vunpack.c.l.bf16 %v396_v2  ;;  %v387_v7 = vunpack.c.h.bf16 %v396_v2  ;;  %v398_v8 = vld [vmem:[%s197_s25 + $0x18] sm:$0xff]  }
  0x17   : > { %v390_v10 = vunpack.c.l.bf16 %v397_v3  ;;  %v391_v11 = vunpack.c.h.bf16 %v397_v3  ;;  %v394_v12 = vunpack.c.l.bf16 %v398_v8  ;;  %v395_v13 = vunpack.c.h.bf16 %v398_v8 }
  0x18   : > { %v230_v14 = vmul.f32 %v382_v4, %v376_v0  ;;  %v231_v15 = vmul.f32 %v383_v5, %v376_v0  ;;  %v232_v16 = vmul.f32 %v386_v6, %v376_v0  ;;  %v233_v17 = vmul.f32 %v387_v7, %v376_v0 }
  0x19   : > { %v234_v18 = vmul.f32 %v390_v10, %v376_v0  ;;  %v235_v19 = vmul.f32 %v391_v11, %v376_v0  ;;  %v236_v20 = vmul.f32 %v394_v12, %v376_v0  ;;  %v237_v21 = vmul.f32 %v395_v13, %v376_v0 }
  0x1a   : > { %v245_v22 = vadd.f32 %v377_v9, %v230_v14  ;;  %v246_v23 = vadd.f32 %v377_v9, %v231_v15  ;;  %v247_v24 = vadd.f32 %v377_v9, %v232_v16  ;;  %v248_v25 = vadd.f32 %v377_v9, %v233_v17 }
  0x1b   : > { %v249_v26 = vadd.f32 %v377_v9, %v234_v18  ;;  %v250_v27 = vadd.f32 %v377_v9, %v235_v19  ;;  %v251_v28 = vadd.f32 %v377_v9, %v236_v20  ;;  %v252_v29 = vadd.f32 %v377_v9, %v237_v21 }
  0x1c   : > { %v253_v30 = vmax.f32 %v245_v22, 0.0  ;;  %v254_v31 = vmax.f32 %v246_v23, 0.0  ;;  %v255_v32 = vmax.f32 %v247_v24, 0.0  ;;  %v256_v33 = vmax.f32 %v248_v25, 0.0 }
  0x1d   : > { %v257_v34 = vmax.f32 %v249_v26, 0.0  ;;  %v258_v35 = vmax.f32 %v250_v27, 0.0  ;;  %v259_v36 = vmax.f32 %v251_v28, 0.0  ;;  %v260_v37 = vmax.f32 %v252_v29, 0.0 }
  0x1e   : > { %262 = vst.msk [vmem:[%s206_s6] sm:$0xff] %vm261_vm0, %v253_v30  ;;  %263 = vst.msk [vmem:[%s206_s6 + $0x8] sm:$0xff] %vm261_vm0, %v254_v31 }
  0x1f   : > { %264 = vst.msk [vmem:[%s206_s6 + $0x10] sm:$0xff] %vm261_vm0, %v255_v32  ;;  %265 = vst.msk [vmem:[%s206_s6 + $0x18] sm:$0xff] %vm261_vm0, %v256_v33 }
  0x20   : > { %266 = vst.msk [vmem:[%s206_s6 + $0x20] sm:$0xff] %vm261_vm0, %v257_v34  ;;  %267 = vst.msk [vmem:[%s206_s6 + $0x28] sm:$0xff] %vm261_vm0, %v258_v35 }
  0x21   : > { %268 = vst.msk [vmem:[%s206_s6 + $0x30] sm:$0xff] %vm261_vm0, %v259_v36  ;;  %269 = vst.msk [vmem:[%s206_s6 + $0x38] sm:$0xff] %vm261_vm0, %v260_v37 }
  0x22 PF: > { %s13_s16 = sadd.s32 1, %s477_s16   ;;  %s572_s12 = smov %s469_s14 }
  0x23   : > { %p10_p7 = scmp.ge.s32.totalorder %s13_s16, 18   ;;  %s573_s13 = smov %s473_s15 }
  0x24   : > { %s574_s14 = smov %s577_s17  ;;  %s575_s15 = smov %s581_s18 }
  0x25   :  { %12 = sbr.rel (!%p10_p7) target bundleno = 3 (0x3), region = 62 }

// kernel: conv_block_up.4
= control target key start
LH: loop header
LB: loop body
LE: loop exit
PB: predicated region body
PF: predicated region fallthrough
CT: control target
= control target key end

     0   :  { %s6502_s18 = smov 0   ;;  %s6504_s19 = smov 0   ;;  %s7962_s0 = inlined_call_operand.vmem [shape: bf16[2,10,10,10,4], index: 0, kind: input, shape index: {}, may-alias: {0,1,2}]   ;;  %s7963_s1 = inlined_call_operand.vmem [shape: bf16[2,10,10,10,4], index: 1, kind: input, shape index: {}, may-alias: {0,1,2}]   ;;  %s7964_s2 = inlined_call_operand.vmem [shape: bf16[2,10,10,10,4], index: 2, kind: input, shape index: {}, may-alias: {0,1,2}]   ;;  %s7965_s3 = inlined_call_operand.vmem [shape: bf16[27,4,128], index: 3, kind: input, shape index: {}]   ;;  %s7966_s4 = inlined_call_operand.vmem [shape: bf16[2,8,64,8], index: 4, kind: output, shape index: {0}]   ;;  %s7967_s5 = inlined_call_operand.vmem [shape: f32[2,8,2,128], index: 5, kind: output, shape index: {1}]  }
   0x1   :  { %s6506_s20 = smov 0   ;;  %s6508_s21 = smov 0  }
   0x2   :  { %s6510_s22 = smov 0  }
   0x3 LB: > { %s25_s23 = sadd.s32 1, %s6462_s20  ;;  %s28_s24 = sadd.s32 1, %s6466_s21  ;;  %s6470_s22 = sphi %s6510_s22, %s16_s22   ;;  %s6466_s21 = sphi %s6508_s21, %s7979_s21   ;;  %s6462_s20 = sphi %s6506_s20, %s7978_s20   ;;  %s6458_s19 = sphi %s6504_s19, %s7977_s19   ;;  %s6454_s18 = sphi %s6502_s18, %s7976_s18  }
   0x4   : > { %p26_p0 = scmp.ge.s32.totalorder %s25_s23, 8  ;;  %p5173_p1 = scmp.ge.s32.totalorder %s6470_s22, 1 }
   0x5   : > { %p252_p2 = scmp.lt.s32.totalorder %s6470_s22, 17 }
   0x6   : > { %s7981_s23 = smov (%p26_p0, %s25_s23), 0  ;;  %s7983_s24 = smov (!%p26_p0, %s28_s24), %s6466_s21 }
   0x7   : > { %p253_p3 = pnand %p5173_p1, %p252_p2  ;;  %p30_p4 = scmp.ge.s32.totalorder %s7983_s24, 2 }
   0x8   : > { %v5182_v0 = vld [vmem:[%s7965_s3 + $0x2] sm:$0x3] (!%p253_p3)  ;;  %vm524_vm0 = vcmask (!%p253_p3), 1041408   ;;  %v5418_v1 = vld [vmem:[%s7965_s3 + $0x1a] sm:$0x3] (!%p253_p3)  ;;  %p316_p5 = scmp.lt.s32.totalorder (!%p253_p3), %s6458_s19, 1 }
   0x9   : > { %s7985_s24 = smov (%p30_p4, %s7983_s24), 0  ;;  %256 = sbr.rel (%p253_p3) target bundleno = 511 (0x1ff), region = 36 }
   0xa   : > { %6321 = vmatprep.subr.msk.bf16.mxu1 (!%p253_p3), %vm524_vm0, %v5182_v0  ;;  %6334 = vmatprep.subr.msk.bf16.mxu0 (!%p253_p3), %vm524_vm0, %v5418_v1  ;;  %v526_v2 = vsel (!%p253_p3), %vm524_vm0, %v5182_v0, 0  ;;  %v6544_v3 = vsel (!%p253_p3), %vm524_vm0, %v5418_v1, 0  ;;  %p318_p6 = scmp.lt.s32.totalorder (!%p253_p3), %s6454_s18, 9  ;;  %s325_s29 = sadd.s32 (!%p253_p3), 1, %s6454_s18  ;;  %v373_v4 = vld [vmem:[%s7965_s3] sm:$0x3] (!%p253_p3) }
   0xb   : > { %5842 = vmatpush3.bf16.msra.mxu1 (!%p253_p3), %v526_v2  ;;  %5972 = vmatpush3.bf16.msra.mxu0 (!%p253_p3), %v6544_v3  ;;  %v5443_v5 = vld [vmem:[%s7965_s3 + $0x1c] sm:$0x3] (!%p253_p3)  ;;  %p328_p7 = scmp.lt.s32.totalorder (!%p253_p3), %s325_s29, 9  ;;  %v6566_v6 = vld [vmem:[%s7965_s3 + $0x1e] sm:$0x3] (!%p253_p3)  ;;  %v6580_v9 = vsel (!%p253_p3), %vm524_vm0, %v373_v4, 0 }
   0xc   : > { %6322 = vmatprep.subr.msk.bf16.mxu1 (!%p253_p3), %vm524_vm0, %v373_v4  ;;  %6336 = vmatprep.subr.msk.bf16.mxu0 (!%p253_p3), %vm524_vm0, %v5443_v5  ;;  %v6571_v7 = vld [vmem:[%s7965_s3 + $0x4] sm:$0x3] (!%p253_p3)  ;;  %v6576_v8 = vld [vmem:[%s7965_s3 + $0x20] sm:$0x3] (!%p253_p3)  ;;  %vm382_vm1 = vsmask.f32 (!%p253_p3), 3328 }
   0xd   : > { %vm383_vm2 = vsmask.f32 (!%p253_p3), 7440  ;;  %v6583_v10 = vsel (!%p253_p3), %vm524_vm0, %v5443_v5, 0  ;;  %v6587_v11 = vsel (!%p253_p3), %vm524_vm0, %v6566_v6, 0  ;;  %v6592_v12 = vld [vmem:[%s7965_s3 + $0x6] sm:$0x3] (!%p253_p3) }
   0xe   : > { %v6601_v13 = vsel (!%p253_p3), %vm524_vm0, %v6571_v7, 0  ;;  %v6605_v14 = vsel (!%p253_p3), %vm524_vm0, %v6576_v8, 0  ;;  %v6610_v15 = vld [vmem:[%s7965_s3 + $0x22] sm:$0x3] (!%p253_p3)  ;;  %v6615_v16 = vld [vmem:[%s7965_s3 + $0x8] sm:$0x3] (!%p253_p3)  ;;  %vm6669_vm4 = vmor (!%p253_p3), %vm382_vm1, %vm383_vm2 }
   0xf   : > { %vm511_vm3 = vcmask (!%p253_p3), 31744   ;;  %v6641_v28 = vsel (!%p253_p3), %vm524_vm0, %v6592_v12, 0  ;;  %v6645_v31 = vsel (!%p253_p3), %vm524_vm0, %v6610_v15, 0  ;;  %v6649_v32 = vsel (!%p253_p3), %vm524_vm0, %v6615_v16, 0  ;;  %p349_p9 = scmp.lt.s32.totalorder (!%p253_p3), %s6454_s18, 7 }
  0x10   : > { %s7987_s19 = smov (!%p316_p5, %s6458_s19), 1  ;;  %s7989_s29 = smov (!%p328_p7, %s325_s29), 9  ;;  %vm717_vm5 = vcmask 1042432   ;;  %vm718_vm6 = vcmask 1046532   ;;  %vm4976_vm8 = vcmask 60416  }
  0x11   : > { %s319_s7 = scalar_select %p318_p6, %s6454_s18, 9  ;;  %vm6769_vm7 = vmor %vm717_vm5, %vm718_vm6 }
  0x12   : > { %s6560_s10 = smul.u32 200, %s7987_s19 }
  0x13   : > { %s6349_s11 = smul.u32 20, %s319_s7 }
  0x14   : > { %s6351_s27 = smul.u32 20, %s7989_s29 }
  0x15   : > { %s322_s25 = sadd.s32 %s6560_s10, %s6349_s11 }
  0x16   : > { %s5174_s26 = sshll.u32 %s322_s25, 2  ;;  %s332_s13 = sadd.s32 %s6351_s27, %s6560_s10 }
  0x17   : > { %s6597_s8 = scalar_lea.vmem %s7962_s0, %s5174_s26  ;;  %s5175_s14 = sshll.u32 %s332_s13, 2 }
  0x18   : > { %v6619_v17 = vld [vmem:[%s6597_s8] sm:$0xf]  ;;  %v6622_v18 = vld [vmem:[%s6597_s8 + $0x8] sm:$0xf]  ;;  %v6625_v19 = vld [vmem:[%s6597_s8 + $0x4] sm:$0x1]  ;;  %s6654_s17 = scalar_lea.vmem %s7963_s1, %s5175_s14 }
  0x19   : > { %v6628_v20 = vld [vmem:[%s6597_s8 + $0xc] sm:$0x1]  ;;  %v386_v21 = vshrl.u32 %v6619_v17, 16  ;;  %v389_v22 = vshll.u32 %v6619_v17, 16  ;;  %v395_v23 = vshll.u32 %v6625_v19, 16  ;;  %v400_v24 = vshrl.u32 %v6622_v18, 16 }
  0x1a   : > { %v403_v25 = vshll.u32 %v6622_v18, 16  ;;  %v409_v26 = vshll.u32 %v6628_v20, 16  ;;  %v6637_v27 = vld [vmem:[%s6597_s8 + $0x10] sm:$0xf]  ;;  %v6657_v36 = vld [vmem:[%s6597_s8 + $0x18] sm:$0xf] }
  0x1b   : > { %v388_v29 = vrot.slane %v386_v21, 4  ;;  %v391_v30 = vrot.slane %v389_v22, 5  ;;  %v397_v33 = vrot.slane %v395_v23, 5  ;;  %v402_v34 = vrot.slane %v400_v24, 4  ;;  %v6661_v40 = vld [vmem:[%s6597_s8 + $0x14] sm:$0x1] }
  0x1c   : > { %v405_v35 = vrot.slane %v403_v25, 5  ;;  %v414_v37 = vshrl.u32 %v6637_v27, 16  ;;  %v411_v39 = vrot.slane %v409_v26, 5  ;;  %v6664_v41 = vld [vmem:[%s6597_s8 + $0x1c] sm:$0x1]  ;;  %v417_v42 = vshll.u32 %v6637_v27, 16 }
  0x1d   : > { %v392_v38 = vor.u32 %v391_v30, %v388_v29  ;;  %v423_v46 = vshll.u32 %v6661_v40, 16  ;;  %v428_v47 = vshrl.u32 %v6657_v36, 16  ;;  %v431_v50 = vshll.u32 %v6657_v36, 16  ;;  %v5402_v52 = vld [vmem:[%s6654_s17 + $0x8] sm:$0xf]  ;;  %s336_s25 = sadd.s32 2, %s6454_s18 }
  0x1e   : > { %v406_v44 = vor.u32 %v405_v35, %v402_v34  ;;  %v416_v45 = vrot.slane %v414_v37, 4  ;;  %v419_v49 = vrot.slane %v417_v42, 5  ;;  %v437_v51 = vshll.u32 %v6664_v41, 16  ;;  %v6681_v57 = vld [vmem:[%s6654_s17 + $0xc] sm:$0x1]  ;;  %p6949_p8 = scmp.lt.s32.totalorder %s336_s25, 9 }
  0x1f   : > { %v393_v48 = vrot.slane %v392_v38, 4  ;;  %v430_v56 = vrot.slane %v428_v47, 4  ;;  %v425_v60 = vrot.slane %v423_v46, 5  ;;  %v433_v61 = vrot.slane %v431_v50, 5  ;;  %v5404_v62 = vld [vmem:[%s6654_s17 + $0x10] sm:$0xf] }
  0x20   : > { %v407_v53 = vrot.slane %v406_v44, 4  ;;  %v420_v59 = vor.u32 %v419_v49, %v416_v45  ;;  %v439_v0 = vrot.slane %v437_v51, 5  ;;  %v6689_v1 = vld [vmem:[%s6654_s17 + $0x14] sm:$0x1]  ;;  %v2510_v2 = vshrl.u32 %v5402_v52, 16  ;;  %s7991_s25 = smov (!%p6949_p8, %s336_s25), 9 }
  0x21   : > { %v398_v58 = vsel %vm6669_vm4, %v393_v48, %v397_v33  ;;  %v2513_v4 = vshll.u32 %v5402_v52, 16  ;;  %v434_v22 = vor.u32 %v433_v61, %v430_v56  ;;  %v2519_v23 = vshll.u32 %v6681_v57, 16  ;;  %v5406_v30 = vld [vmem:[%s6654_s17 + $0x18] sm:$0xf]  ;;  %v6698_v38 = vld [vmem:[%s6654_s17 + $0x1c] sm:$0x1] }
  0x22   : > { %v412_v63 = vsel %vm6669_vm4, %v407_v53, %v411_v39  ;;  %v421_v21 = vrot.slane %v420_v59, 4  ;;  %v2512_v24 = vrot.slane %v2510_v2, 4  ;;  %v2524_v26 = vshrl.u32 %v5404_v62, 16  ;;  %v5408_v46 = vld [vmem:[%s6654_s17 + $0x20] sm:$0xf]  ;;  %s6352_s27 = smul.u32 20, %s7991_s25 }
  0x23   : > { %v5183_v5 = vcombine.low %v398_v58, %v412_v63  ;;  %v2515_v25 = vrot.slane %v2513_v4, 5  ;;  %v2527_v29 = vshll.u32 %v5404_v62, 16  ;;  %v435_v34 = vrot.slane %v434_v22, 4  ;;  %v6706_v50 = vld [vmem:[%s6654_s17 + $0x24] sm:$0x1]  ;;  %s7993_s18 = smov (!%p349_p9, %s6454_s18), 7 }
  0x24   : > { %v426_v33 = vsel %vm6669_vm4, %v421_v21, %v425_v60  ;;  %v2521_v35 = vrot.slane %v2519_v23, 5  ;;  %v2533_v37 = vshll.u32 %v6689_v1, 16  ;;  %v2526_v42 = vrot.slane %v2524_v26, 4  ;;  %v6710_v63 = vld [vmem:[%s6597_s8 + $0x20] sm:$0xf]  ;;  %s7064_s6 = sadd.s32 %s6352_s27, %s6560_s10  ;;  %s5180_s26 = sshll.u32 %s7987_s19, 3 }
  0x25   : > { %5843 = vmatprep.mubr.msk.bf16.mxu1 %vm511_vm3, %v5183_v5  ;;  %v2516_v39 = vor.u32 %v2515_v25, %v2512_v24  ;;  %v2529_v44 = vrot.slane %v2527_v29, 5  ;;  %v2749_v45 = vrot.slane %v6681_v57, 5  ;;  %v440_v47 = vsel %vm6669_vm4, %v435_v34, %v439_v0  ;;  %v6717_v21 = vld [vmem:[%s6597_s8 + $0x28] sm:$0xf]  ;;  %v6722_v26 = vld [vmem:[%s6597_s8 + $0x24] sm:$0x1]  ;;  %s361_s27 = sadd.s32 %s5180_s26, %s7993_s18 }
  0x26   : > { %v2535_v48 = vrot.slane %v2533_v37, 5  ;;  %v2753_v49 = vrot.slane %v6689_v1, 5  ;;  %v2538_v51 = vshrl.u32 %v5406_v30, 16  ;;  %v5184_v52 = vcombine.low %v426_v33, %v440_v47  ;;  %v5413_v54 = vld [vmem:[%s6654_s17 + $0x34] sm:$0x1]  ;;  %s5176_s29 = sshll.u32 %s7064_s6, 2 }
  0x27   : > { %v2517_v53 = vrot.slane %v2516_v39, 4  ;;  %v2530_v56 = vor.u32 %v2529_v44, %v2526_v42  ;;  %v2541_v58 = vshll.u32 %v5406_v30, 16  ;;  %v2547_v60 = vshll.u32 %v6698_v38, 16  ;;  %s7101_s12 = scalar_lea.vmem %s7964_s2, %s5176_s29  ;;  %s5181_s28 = sshll.u32 %s361_s27, 1 }
  0x28   : > { %v2540_v59 = vrot.slane %v2538_v51, 4  ;;  %v2552_v61 = vshrl.u32 %v5408_v46, 16  ;;  %v2555_v62 = vshll.u32 %v5408_v46, 16  ;;  %5844 = vmatmul.mubr.msk.bf16.vlgmr.msra.gmra.mrb[0].mxu1 %vm511_vm3, %v5184_v52  ;;  %v2561_v5 = vshll.u32 %v6706_v50, 16  ;;  %v6738_v51 = vld [vmem:[%s6597_s8 + $0x30] sm:$0xf]  ;;  %s363_s10 = scalar_lea.vmem %s7967_s5, %s5181_s28 }
  0x29   : > { %v2522_v0 = vsel %vm6669_vm4, %v2517_v53, %v2521_v35  ;;  %v2531_v2 = vrot.slane %v2530_v56, 4  ;;  %v2543_v4 = vrot.slane %v2541_v58, 5  ;;  %5852 = vmatpush3.bf16.msra.mxu1 %v6580_v9  ;;  %v2549_v22 = vrot.slane %v2547_v60, 5  ;;  %v6728_v35 = vld [vmem:[%s6597_s8 + $0x2c] sm:$0x1] }
  0x2a   : > { %v2554_v23 = vrot.slane %v2552_v61, 4  ;;  %v2557_v24 = vrot.slane %v2555_v62, 5  ;;  %v2757_v25 = vrot.slane %v6698_v38, 5  ;;  %v2563_v33 = vrot.slane %v2561_v5, 5  ;;  %6323 = vmatprep.subr.msk.bf16.mxu1 %vm524_vm0, %v6571_v7  ;;  %v6743_v58 = vld [vmem:[%s6597_s8 + $0x34] sm:$0x1] }
  0x2b   : > { %v2536_v29 = vsel %vm6669_vm4, %v2531_v2, %v2535_v48  ;;  %v2544_v30 = vor.u32 %v2543_v4, %v2540_v59  ;;  %v442_v39 = vshrl.u32 %v6710_v63, 16  ;;  %v445_v42 = vshll.u32 %v6710_v63, 16 }
  0x2c   : > { %v5419_v9 = vcombine.low %v2522_v0, %v2536_v29  ;;  %v2558_v37 = vor.u32 %v2557_v24, %v2554_v23  ;;  %v451_v46 = vshll.u32 %v6722_v26, 16  ;;  %v456_v47 = vshrl.u32 %v6717_v21, 16  ;;  %v6748_v0 = vld [vmem:[%s6597_s8 + $0x38] sm:$0xf]  ;;  %v6753_v23 = vld [vmem:[%s6597_s8 + $0x3c] sm:$0x1] }
  0x2d   : > { %v2545_v44 = vrot.slane %v2544_v30, 4  ;;  %v459_v48 = vshll.u32 %v6717_v21, 16  ;;  %v444_v52 = vrot.slane %v442_v39, 4  ;;  %v447_v53 = vrot.slane %v445_v42, 5  ;;  %v5427_v29 = vld [vmem:[%s6654_s17 + $0x8] sm:$0xe] }
  0x2e   : > { %5973 = vmatprep.mubr.msk.bf16.mxu0 %vm511_vm3, %v5419_v9  ;;  %v2559_v7 = vrot.slane %v2558_v37, 4  ;;  %v465_v56 = vshll.u32 %v6728_v35, 16  ;;  %v453_v60 = vrot.slane %v451_v46, 5  ;;  %v458_v61 = vrot.slane %v456_v47, 4  ;;  %v5428_v39 = vld [vmem:[%s6654_s17 + $0x10] sm:$0xe] }
  0x2f   : > { %v2550_v59 = vsel %vm6669_vm4, %v2545_v44, %v2549_v22  ;;  %v461_v62 = vrot.slane %v459_v48, 5  ;;  %v448_v4 = vor.u32 %v447_v53, %v444_v52  ;;  %v470_v24 = vshrl.u32 %v6738_v51, 16  ;;  %v5429_v42 = vld [vmem:[%s6654_s17 + $0x18] sm:$0xe]  ;;  %v5430_v48 = vld [vmem:[%s6654_s17 + $0x20] sm:$0xe] }
  0x30   : > { %v2564_v2 = vsel %vm6669_vm4, %v2559_v7, %v2563_v33  ;;  %v467_v5 = vrot.slane %v465_v56, 5  ;;  %v473_v9 = vshll.u32 %v6738_v51, 16  ;;  %v479_v37 = vshll.u32 %v6743_v58, 16  ;;  %v5431_v7 = vld [vmem:[%s6654_s17 + $0x28] sm:$0xe] }
  0x31   : > { %v5420_v30 = vcombine.low %v2550_v59, %v2564_v2  ;;  %v462_v22 = vor.u32 %v461_v62, %v458_v61  ;;  %v449_v44 = vrot.slane %v448_v4, 4  ;;  %v472_v33 = vrot.slane %v470_v24, 4  ;;  %v5411_v62 = vld [vmem:[%s6654_s17 + $0x2c] sm:$0x1] }
  0x32   : > { %v484_v46 = vshrl.u32 %v6748_v0, 16  ;;  %v487_v47 = vshll.u32 %v6748_v0, 16  ;;  %v475_v53 = vrot.slane %v473_v9, 5  ;;  %v481_v56 = vrot.slane %v479_v37, 5 }
  0x33   : > { %5974 = vmatmul.mubr.msk.bf16.vlgmr.msra.gmra.mrb[0].mxu0 %vm511_vm3, %v5420_v30  ;;  %v463_v52 = vrot.slane %v462_v22, 4  ;;  %v493_v59 = vshll.u32 %v6753_v23, 16  ;;  %v454_v2 = vsel %vm6669_vm4, %v449_v44, %v453_v60  ;;  %v5435_v30 = vrot.slane %v5427_v29, 9  ;;  %v5432_v44 = vld [vmem:[%s6654_s17 + $0x30] sm:$0xe] }
  0x34   : > { %5982 = vmatpush3.bf16.msra.mxu0 %v6583_v10  ;;  %v486_v4 = vrot.slane %v484_v46, 4  ;;  %v489_v24 = vrot.slane %v487_v47, 5  ;;  %v476_v9 = vor.u32 %v475_v53, %v472_v33  ;;  %v5436_v55 = vrot.slane %v5428_v39, 9  ;;  %v6792_v46 = vld [vmem:[%s6654_s17 + $0x3c] sm:$0x1] }
  0x35   : > { %v468_v22 = vsel %vm6669_vm4, %v463_v52, %v467_v5  ;;  %v495_v37 = vrot.slane %v493_v59, 5  ;;  %6337 = vmatprep.subr.msk.bf16.mxu0 %vm524_vm0, %v6566_v6  ;;  %v2750_v60 = vsel %vm6769_vm7, %v5435_v30, %v2749_v45  ;;  %v5437_v29 = vrot.slane %v5429_v42, 9  ;;  %v6800_v42 = vld [vmem:[%s6654_s17 + $0x44] sm:$0x1]  ;;  %v693_v53 = vld [vmem:[%s6597_s8] sm:$0xe] }
  0x36   : > { %v5185_v34 = vcombine.low %v454_v2, %v468_v22  ;;  %v490_v10 = vor.u32 %v489_v24, %v486_v4  ;;  %v477_v5 = vrot.slane %v476_v9, 4  ;;  %v2754_v39 = vsel %vm6769_vm7, %v5436_v55, %v2753_v49  ;;  %v5433_v55 = vld [vmem:[%s6654_s17 + $0x38] sm:$0xe]  ;;  %v5434_v49 = vld [vmem:[%s6654_s17 + $0x40] sm:$0xe] }
  0x37   : > { %v5438_v6 = vrot.slane %v5430_v48, 9  ;;  %v5439_v33 = vrot.slane %v5431_v7, 9  ;;  %v5444_v47 = vcombine.low %v2750_v60, %v2754_v39  ;;  %v2758_v45 = vsel %vm6769_vm7, %v5437_v29, %v2757_v25  ;;  %v695_v2 = vld [vmem:[%s6597_s8 + $0x10] sm:$0xe]  ;;  %v697_v29 = vld [vmem:[%s6597_s8 + $0x20] sm:$0xe] }
  0x38   : > { %5847 = vmatprep.mubr.msk.bf16.mxu1 %vm511_vm3, %v5185_v34  ;;  %v491_v57 = vrot.slane %v490_v10, 4  ;;  %v2765_v1 = vrot.slane %v5411_v62, 5  ;;  %v482_v48 = vsel %vm6669_vm4, %v477_v5, %v481_v56  ;;  %v7972_v7 = vrot.slane %v6706_v50, 5  ;;  %v694_v62 = vld [vmem:[%s6597_s8 + $0x8] sm:$0xe] }
  0x39   : > { %v5440_v52 = vrot.slane %v5432_v44, 9  ;;  %v2769_v38 = vrot.slane %v5413_v54, 5  ;;  %5983 = vmatprep.mubr.msk.bf16.mxu0 %vm511_vm3, %v5444_v47  ;;  %v5191_v59 = vcombine.low %v6619_v17, %v6622_v18  ;;  %v5192_v56 = vcombine.low %v6637_v27, %v6657_v36  ;;  %v696_v27 = vld [vmem:[%s6597_s8 + $0x18] sm:$0xe]  ;;  %v698_v39 = vld [vmem:[%s6597_s8 + $0x28] sm:$0xe] }
  0x3a   : > { %v2762_v34 = vsel %vm6769_vm7, %v5438_v6, %v7972_v7  ;;  %v496_v25 = vsel %vm6669_vm4, %v491_v57, %v495_v37  ;;  %v2766_v50 = vsel %vm6769_vm7, %v5439_v33, %v2765_v1  ;;  %v5441_v30 = vrot.slane %v5433_v55, 9  ;;  %v700_v7 = vld [vmem:[%s6597_s8 + $0x38] sm:$0xe] }
  0x3b   : > { %v5186_v54 = vcombine.low %v482_v48, %v496_v25  ;;  %v5445_v4 = vcombine.low %v2758_v45, %v2762_v34  ;;  %v2770_v24 = vsel %vm6769_vm7, %v5440_v52, %v2769_v38  ;;  %v730_v22 = vrot.slane %v6661_v40, 5  ;;  %v699_v45 = vld [vmem:[%s6597_s8 + $0x30] sm:$0xe]  ;;  %v6873_v38 = vld [vmem:[%s6654_s17 + $0x14] sm:$0x1] }
  0x3c   : > { %v5446_v9 = vcombine.low %v2766_v50, %v2770_v24  ;;  %v2773_v17 = vrot.slane %v6792_v46, 5  ;;  %v5442_v18 = vrot.slane %v5434_v49, 9  ;;  %v734_v36 = vrot.slane %v6664_v41, 5 }
  0x3d   : > { %5848 = vmatmul.mubr.msk.bf16.gmra.mrb[4].mxu1 %vm511_vm3, %v5186_v54  ;;  %v2603_v37 = vshll.u32 %v6792_v46, 16  ;;  %v2617_v10 = vshll.u32 %v6800_v42, 16  ;;  %v2777_v60 = vrot.slane %v6800_v42, 5  ;;  %v5199_v44 = vrot.slane %v693_v53, 9  ;;  %v5471_v53 = vld [vmem:[%s6654_s17 + $0x18] sm:$0xf] }
  0x3e   : > { %5853 = vmatprep.mubr.msk.bf16.mxu1 %vm511_vm3, %v5191_v59  ;;  %v2774_v40 = vsel %vm6769_vm7, %v5441_v30, %v2773_v17  ;;  %v5200_v5 = vrot.slane %v694_v62, 9  ;;  %v5201_v41 = vrot.slane %v695_v2, 9  ;;  %v5193_v33 = vcombine.low %v6710_v63, %v6717_v21  ;;  %v6882_v62 = vld [vmem:[%s6654_s17 + $0x1c] sm:$0x1]  ;;  %v5473_v30 = vld [vmem:[%s6654_s17 + $0x20] sm:$0xf] }
  0x3f   : > { %5984 = vmatmul.mubr.msk.bf16.vlgmr.msra.gmra.mrb[0].mxu0 %vm511_vm3, %v5445_v4  ;;  %v2778_v6 = vsel %vm6769_vm7, %v5442_v18, %v2777_v60  ;;  %v5194_v57 = vcombine.low %v6738_v51, %v6748_v0  ;;  %v5202_v47 = vrot.slane %v696_v27, 9  ;;  %v7973_v1 = vrot.slane %v6625_v19, 5  ;;  %v5475_v60 = vld [vmem:[%s6654_s17 + $0x28] sm:$0xf] }
  0x40   : > { %5992 = vmatpush3.bf16.msra.mxu0 %v6587_v11  ;;  %5987 = vmatprep.mubr.msk.bf16.mxu0 %vm511_vm3, %v5446_v9  ;;  %v7974_v63 = vrot.slane %v6628_v20, 5  ;;  %v5203_v49 = vrot.slane %v697_v29, 9  ;;  %v738_v48 = vrot.slane %v6722_v26, 5  ;;  %v5469_v11 = vld [vmem:[%s6654_s17 + $0x10] sm:$0xf]  ;;  %v5447_v34 = vcombine.low %v2774_v40, %v2778_v6 }
  0x41   : > { %v6851_v55 = vsel %vm6769_vm7, %v5199_v44, %v7973_v1  ;;  %6338 = vmatprep.subr.msk.bf16.mxu0 %vm524_vm0, %v6576_v8  ;;  %v6866_v19 = vsel %vm6769_vm7, %v5201_v41, %v730_v22  ;;  %v6870_v20 = vsel %vm6769_vm7, %v5202_v47, %v734_v36  ;;  %v5204_v52 = vrot.slane %v698_v39, 9  ;;  %v6397_v26 = vld [vmem:[%s6654_s17 + $0x10] ss:$8 sps:$4 sm:$0xff]  }
  0x42   : > { %v6857_v21 = vsel %vm6769_vm7, %v5200_v5, %v7974_v63  ;;  %v742_v8 = vrot.slane %v6728_v35, 5  ;;  %v5205_v59 = vrot.slane %v699_v45, 9  ;;  %v746_v50 = vrot.slane %v6743_v58, 5  ;;  %v6894_v58 = vld [vmem:[%s6654_s17 + $0x24] sm:$0x1] }
  0x43   : > { %v5208_v25 = vcombine.low %v6851_v55, %v6857_v21  ;;  %v5206_v2 = vrot.slane %v700_v7, 9  ;;  %v750_v54 = vrot.slane %v6753_v23, 5  ;;  %v3017_v4 = vshrl.u32 %v5469_v11, 16  ;;  %v6398_v63 = vld [vmem:[%s6654_s17 + $0x20] ss:$8 sps:$4 sm:$0xff]  }
  0x44   : > { %v3020_v24 = vshll.u32 %v5469_v11, 16  ;;  %v5209_v22 = vcombine.low %v6866_v19, %v6870_v20  ;;  %v6890_v9 = vsel %vm6769_vm7, %v5203_v49, %v738_v48  ;;  %v3026_v35 = vshll.u32 %v6873_v38, 16  ;;  %v5477_v11 = vld [vmem:[%s6654_s17 + $0x30] sm:$0xf]  ;;  %v5497_v19 = vld [vmem:[%s6654_s17 + $0x28] sm:$0xe] }
  0x45   : > { %v3031_v17 = vshrl.u32 %v5471_v53, 16  ;;  %5854 = vmatmul.mubr.msk.bf16.vlgmr.msra.gmra.mrb[0].mxu1 %vm511_vm3, %v5192_v56  ;;  %v6899_v23 = vsel %vm6769_vm7, %v5204_v52, %v742_v8  ;;  %v6903_v18 = vsel %vm6769_vm7, %v5205_v59, %v746_v50  ;;  %v3019_v27 = vrot.slane %v3017_v4, 4  ;;  %v6927_v8 = vld [vmem:[%s6654_s17 + $0x34] sm:$0x1]  ;;  %v6399_v59 = vld [vmem:[%s6654_s17 + $0x30] ss:$8 sps:$4 sm:$0xff]  }
  0x46   : > { %v3022_v36 = vrot.slane %v3020_v24, 5  ;;  %5862 = vmatpush3.bf16.msra.mxu1 %v6601_v13  ;;  %5857 = vmatprep.mubr.msk.bf16.mxu1 %vm511_vm3, %v5193_v33  ;;  %v6910_v29 = vsel %vm6769_vm7, %v5206_v2, %v750_v54  ;;  %v3028_v56 = vrot.slane %v3026_v35, 5  ;;  %v3034_v44 = vshll.u32 %v5471_v53, 16  ;;  %v6918_v33 = vld [vmem:[%s6654_s17 + $0x2c] sm:$0x1] }
  0x47   : > { %v3033_v40 = vrot.slane %v3031_v17, 4  ;;  %5988 = vmatmul.mubr.msk.bf16.gmra.mrb[4].mxu0 %vm511_vm3, %v5447_v34  ;;  %6324 = vmatprep.subr.msk.bf16.mxu1 %vm524_vm0, %v6592_v12  ;;  %v3040_v13 = vshll.u32 %v6882_v62, 16  ;;  %v3045_v41 = vshrl.u32 %v5473_v30, 16  ;;  %v3048_v39 = vshll.u32 %v5473_v30, 16  ;;  %v5479_v4 = vld [vmem:[%s6654_s17 + $0x38] sm:$0xf] }
  0x48   : > { %v3023_v5 = vor.u32 %v3022_v36, %v3019_v27  ;;  %5993 = vmatprep.mubr.msk.bf16.mxu0 %vm511_vm3, %v6397_v26  ;;  %v3036_v6 = vrot.slane %v3034_v44, 5  ;;  %v3054_v47 = vshll.u32 %v6894_v58, 16  ;;  %v3059_v45 = vshrl.u32 %v5475_v60, 16  ;;  %v6935_v17 = vld [vmem:[%s6654_s17 + $0x3c] sm:$0x1] }
  0x49   : > { %v3062_v1 = vshll.u32 %v5475_v60, 16  ;;  %v3042_v49 = vrot.slane %v3040_v13, 5  ;;  %v3047_v48 = vrot.slane %v3045_v41, 4  ;;  %v3050_v7 = vrot.slane %v3048_v39, 5  ;;  %v6962_v41 = vld [vmem:[%s6654_s17 + $0x44] sm:$0x1] }
  0x4a   : > { %v3024_v12 = vrot.slane %v3023_v5, 4  ;;  %v3037_v34 = vor.u32 %v3036_v6, %v3033_v40  ;;  %v6924_v52 = vrot.slane %v3054_v47, 5  ;;  %v3061_v53 = vrot.slane %v3059_v45, 4  ;;  %v5481_v5 = vld [vmem:[%s6654_s17 + $0x40] sm:$0xf] }
  0x4b   : > { %v3064_v26 = vrot.slane %v3062_v1, 5  ;;  %v3051_v2 = vor.u32 %v3050_v7, %v3047_v48  ;;  %v3068_v54 = vshll.u32 %v6918_v33, 16  ;;  %v3073_v24 = vshrl.u32 %v5477_v11, 16  ;;  %v5483_v6 = vld [vmem:[%s6654_s17 + $0x48] sm:$0xf] }
  0x4c   : > { %v3029_v50 = vsel %vm6669_vm4, %v3024_v12, %v3028_v56  ;;  %v3038_v30 = vrot.slane %v3037_v34, 4  ;;  %v3076_v27 = vshll.u32 %v5477_v11, 16  ;;  %v3082_v36 = vshll.u32 %v6927_v8, 16 }
  0x4d   : > { %v3065_v35 = vor.u32 %v3064_v26, %v3061_v53  ;;  %5858 = vmatmul.mubr.msk.bf16.gmra.mrb[4].mxu1 %vm511_vm3, %v5194_v57  ;;  %v6942_v60 = vrot.slane %v3051_v2, 4  ;;  %v6944_v56 = vrot.slane %v3068_v54, 5  ;;  %v3075_v40 = vrot.slane %v3073_v24, 4  ;;  %v5494_v24 = vld [vmem:[%s6654_s17 + $0x10] sm:$0xe] }
  0x4e   : > { %v3087_v44 = vshrl.u32 %v5479_v4, 16  ;;  %5863 = vmatprep.mubr.msk.bf16.mxu1 %vm511_vm3, %v5208_v25  ;;  %v3043_v51 = vsel %vm6669_vm4, %v3038_v30, %v3042_v49  ;;  %v3078_v57 = vrot.slane %v3076_v27, 5  ;;  %v6959_v13 = vrot.slane %v3082_v36, 5  ;;  %v5495_v30 = vld [vmem:[%s6654_s17 + $0x18] sm:$0xe] }
  0x4f   : > { %v3066_v0 = vrot.slane %v3065_v35, 4  ;;  %5994 = vmatmul.mubr.msk.bf16.vlgmr.msra.gmra.mrb[0].mxu0 %vm511_vm3, %v6398_v63  ;;  %v5210_v39 = vcombine.low %v6890_v9, %v6899_v23  ;;  %v5211_v55 = vcombine.low %v6903_v18, %v6910_v29  ;;  %v3090_v25 = vshll.u32 %v5479_v4, 16  ;;  %v6974_v63 = vld [vmem:[%s6654_s17 + $0x4c] sm:$0x1]  ;;  %v5274_v29 = vld [vmem:[%s7965_s3 + $0xa] sm:$0x3] }
  0x50   : > { %v3089_v21 = vrot.slane %v3087_v44, 4  ;;  %6002 = vmatpush3.bf16.msra.mxu0 %v6605_v14  ;;  %5997 = vmatprep.mubr.msk.bf16.mxu0 %vm511_vm3, %v6399_v59  ;;  %v5486_v47 = vcombine.low %v3029_v50, %v3043_v51  ;;  %v3079_v45 = vor.u32 %v3078_v57, %v3075_v40  ;;  %v3096_v1 = vshll.u32 %v6935_v17, 16  ;;  %v5233_v57 = vld [vmem:[%s6597_s8 + $0x8] sm:$0xf] }
  0x51   : > { %v3101_v9 = vshrl.u32 %v5481_v5, 16  ;;  %6339 = vmatprep.subr.msk.bf16.mxu0 %vm524_vm0, %v6610_v15  ;;  %v3057_v14 = vsel %vm6669_vm4, %v6942_v60, %v6924_v52  ;;  %v3092_v23 = vrot.slane %v3090_v25, 5  ;;  %v3104_v12 = vshll.u32 %v5481_v5, 16  ;;  %v6400_v15 = vld [vmem:[%s6654_s17 + $0x40] ss:$8 sps:$4 sm:$0xff]  }
  0x52   : > { %v3110_v49 = vshll.u32 %v6962_v41, 16  ;;  %v3080_v48 = vrot.slane %v3079_v45, 4  ;;  %v3098_v7 = vrot.slane %v3096_v1, 5  ;;  %v3115_v34 = vshrl.u32 %v5483_v6, 16  ;;  %v6401_v25 = vld [vmem:[%s6597_s8 + $0x8] ss:$8 sps:$4 sm:$0xff]  }
  0x53   : > { %v3103_v11 = vrot.slane %v3101_v9, 4  ;;  %v3093_v53 = vor.u32 %v3092_v23, %v3089_v21  ;;  %v3106_v26 = vrot.slane %v3104_v12, 5  ;;  %v3118_v52 = vshll.u32 %v5483_v6, 16  ;;  %v5235_v21 = vld [vmem:[%s6597_s8 + $0x10] sm:$0xf] }
  0x54   : > { %v3112_v59 = vrot.slane %v3110_v49, 5  ;;  %v3071_v50 = vsel %vm6669_vm4, %v3066_v0, %v6944_v56  ;;  %v3085_v2 = vsel %vm6669_vm4, %v3080_v48, %v6959_v13  ;;  %v3117_v54 = vrot.slane %v3115_v34, 4  ;;  %v5496_v56 = vld [vmem:[%s6654_s17 + $0x20] sm:$0xe]  ;;  %v5519_v13 = vld [vmem:[%s7965_s3 + $0x24] sm:$0x3] }
  0x55   : > { %v3124_v4 = vshll.u32 %v6974_v63, 16  ;;  %5864 = vmatmul.mubr.msk.bf16.vlgmr.msra.gmra.mrb[0].mxu1 %vm511_vm3, %v5209_v22  ;;  %v3094_v35 = vrot.slane %v3093_v53, 4  ;;  %v3107_v27 = vor.u32 %v3106_v26, %v3103_v11  ;;  %v3120_v36 = vrot.slane %v3118_v52, 5  ;;  %v7034_v9 = vld [vmem:[%s6597_s8 + $0xc] sm:$0x1] }
  0x56   : > { %v5502_v60 = vrot.slane %v5494_v24, 9  ;;  %5872 = vmatpush3.bf16.msra.mxu1 %v6641_v28  ;;  %5867 = vmatprep.mubr.msk.bf16.mxu1 %vm511_vm3, %v5210_v39  ;;  %v3256_v44 = vrot.slane %v6873_v38, 5  ;;  %v5503_v5 = vrot.slane %v5495_v30, 9  ;;  %v3260_v51 = vrot.slane %v6882_v62, 5  ;;  %v7044_v12 = vld [vmem:[%s6597_s8 + $0x14] sm:$0x1] }
  0x57   : > { %v3126_v40 = vrot.slane %v3124_v4, 5  ;;  %5998 = vmatmul.mubr.msk.bf16.gmra.mrb[4].mxu0 %vm511_vm3, %v6400_v15  ;;  %6325 = vmatprep.subr.msk.bf16.mxu1 %vm524_vm0, %v6615_v16  ;;  %v3099_v20 = vsel %vm6669_vm4, %v3094_v35, %v3098_v7  ;;  %v3108_v28 = vrot.slane %v3107_v27, 4  ;;  %v3121_v22 = vor.u32 %v3120_v36, %v3117_v54  ;;  %v5237_v48 = vld [vmem:[%s6597_s8 + $0x18] sm:$0xf]  ;;  %v7053_v53 = vld [vmem:[%s6597_s8 + $0x1c] sm:$0x1] }
  0x58   : > { %v5504_v0 = vrot.slane %v5496_v56, 9  ;;  %6003 = vmatprep.mubr.msk.bf16.mxu0 %vm511_vm3, %v5486_v47  ;;  %v5487_v38 = vcombine.low %v3057_v14, %v3071_v50  ;;  %v7019_v62 = vsel %vm6769_vm7, %v5502_v60, %v3256_v44  ;;  %v7023_v16 = vsel %vm6769_vm7, %v5503_v5, %v3260_v51  ;;  %v5239_v50 = vld [vmem:[%s6597_s8 + $0x20] sm:$0xf]  ;;  %v7075_v27 = vld [vmem:[%s6597_s8 + $0x24] sm:$0x1] }
  0x59   : > { %v3264_v39 = vrot.slane %v6894_v58, 5  ;;  %v5488_v6 = vcombine.low %v3085_v2, %v3099_v20  ;;  %v3113_v47 = vsel %vm6669_vm4, %v3108_v28, %v3112_v59  ;;  %v3122_v45 = vrot.slane %v3121_v22, 4  ;;  %v5498_v5 = vld [vmem:[%s6654_s17 + $0x30] sm:$0xe] }
  0x5a   : > { %v5505_v1 = vrot.slane %v5497_v19, 9  ;;  %v5511_v14 = vcombine.low %v7019_v62, %v7023_v16  ;;  %v3268_v23 = vrot.slane %v6918_v33, 5  ;;  %v990_v49 = vshrl.u32 %v5233_v57, 16  ;;  %v6403_v51 = vld [vmem:[%s6597_s8 + $0x28] ss:$8 sps:$4 sm:$0xff]  }
  0x5b   : > { %v7040_v58 = vsel %vm6769_vm7, %v5504_v0, %v3264_v39  ;;  %v3127_v7 = vsel %vm6669_vm4, %v3122_v45, %v3126_v40  ;;  %v7050_v11 = vsel %vm524_vm0, %v5519_v13, 0  ;;  %v993_v34 = vshll.u32 %v5233_v57, 16  ;;  %v5499_v0 = vld [vmem:[%s6654_s17 + $0x38] sm:$0xe]  ;;  %v7150_v62 = vld [vmem:[%s6597_s8 + $0x3c] sm:$0x1] }
  0x5c   : > { %v1004_v15 = vshrl.u32 %v5235_v21, 16  ;;  %v7057_v26 = vsel %vm6769_vm7, %v5505_v1, %v3268_v23  ;;  %v992_v33 = vrot.slane %v990_v49, 4  ;;  %v999_v59 = vshll.u32 %v7034_v9, 16  ;;  %v5501_v1 = vld [vmem:[%s6654_s17 + $0x48] sm:$0xe] }
  0x5d   : > { %v1007_v52 = vshll.u32 %v5235_v21, 16  ;;  %5868 = vmatmul.mubr.msk.bf16.gmra.mrb[4].mxu1 %vm511_vm3, %v5211_v55  ;;  %v5489_v2 = vcombine.low %v3113_v47, %v3127_v7  ;;  %v5512_v54 = vcombine.low %v7040_v58, %v7057_v26  ;;  %v995_v4 = vrot.slane %v993_v34, 5  ;;  %v6402_v55 = vld [vmem:[%s6597_s8 + $0x18] ss:$8 sps:$4 sm:$0xff]   ;;  %v5241_v7 = vld [vmem:[%s6597_s8 + $0x28] sm:$0xf] }
  0x5e   : > { %v1006_v24 = vrot.slane %v1004_v15, 4  ;;  %5873 = vmatprep.mubr.msk.bf16.mxu1 %vm511_vm3, %v6401_v25  ;;  %v1013_v35 = vshll.u32 %v7044_v12, 16  ;;  %v1018_v36 = vshrl.u32 %v5237_v48, 16  ;;  %v1021_v18 = vshll.u32 %v5237_v48, 16  ;;  %v5500_v25 = vld [vmem:[%s6654_s17 + $0x40] sm:$0xe] }
  0x5f   : > { %v1009_v30 = vrot.slane %v1007_v52, 5  ;;  %6004 = vmatmul.mubr.msk.bf16.vlgmr.msra.gmra.mrb[0].mxu0 %vm511_vm3, %v5487_v38  ;;  %v996_v60 = vor.u32 %v995_v4, %v992_v33  ;;  %v1027_v56 = vshll.u32 %v7053_v53, 16  ;;  %v1032_v40 = vshrl.u32 %v5239_v50, 16  ;;  %v7106_v52 = vld [vmem:[%s6597_s8 + $0x2c] sm:$0x1] }
  0x60   : > { %v1035_v44 = vshll.u32 %v5239_v50, 16  ;;  %6012 = vmatpush3.bf16.msra.mxu0 %v6645_v31  ;;  %6007 = vmatprep.mubr.msk.bf16.mxu0 %vm511_vm3, %v5488_v6  ;;  %v1001_v19 = vrot.slane %v999_v59, 5  ;;  %v1020_v28 = vrot.slane %v1018_v36, 4  ;;  %v1023_v22 = vrot.slane %v1021_v18, 5 }
  0x61   : > { %v1010_v20 = vor.u32 %v1009_v30, %v1006_v24  ;;  %6340 = vmatprep.subr.msk.bf16.mxu0 %vm524_vm0, %v5519_v13  ;;  %v997_v57 = vrot.slane %v996_v60, 4  ;;  %v1015_v38 = vrot.slane %v1013_v35, 5  ;;  %v1034_v39 = vrot.slane %v1032_v40, 4  ;;  %v5243_v30 = vld [vmem:[%s6597_s8 + $0x30] sm:$0xf] }
  0x62   : > { %v1037_v21 = vrot.slane %v1035_v44, 5  ;;  %v1024_v31 = vor.u32 %v1023_v22, %v1020_v28  ;;  %v1029_v45 = vrot.slane %v1027_v56, 5  ;;  %v1041_v6 = vshll.u32 %v7075_v27, 16  ;;  %v6404_v60 = vld [vmem:[%s6597_s8 + $0x38] ss:$8 sps:$4 sm:$0xff]  }
  0x63   : > { %v1011_v47 = vrot.slane %v1010_v20, 4  ;;  %v7094_v49 = vsel %vm524_vm0, %v5274_v29, 0  ;;  %v5506_v48 = vrot.slane %v5498_v5, 9  ;;  %v3272_v13 = vrot.slane %v6927_v8, 5  ;;  %v7131_v40 = vld [vmem:[%s6597_s8 + $0x34] sm:$0x1] }
  0x64   : > { %v1038_v23 = vor.u32 %v1037_v21, %v1034_v39  ;;  %v1002_v34 = vsel %vm6669_vm4, %v997_v57, %v1001_v19  ;;  %v1025_v15 = vrot.slane %v1024_v31, 4  ;;  %v1043_v33 = vrot.slane %v1041_v6, 5  ;;  %v5247_v57 = vld [vmem:[%s6597_s8 + $0x40] sm:$0xf]  ;;  %v7158_v21 = vld [vmem:[%s6597_s8 + $0x44] sm:$0x1] }
  0x65   : > { %v5507_v59 = vrot.slane %v5499_v0, 9  ;;  %5874 = vmatmul.mubr.msk.bf16.vlgmr.msra.gmra.mrb[0].mxu1 %vm511_vm3, %v6402_v55  ;;  %v1016_v8 = vsel %vm6669_vm4, %v1011_v47, %v1015_v38  ;;  %v7113_v4 = vsel %vm6769_vm7, %v5506_v48, %v3272_v13  ;;  %v3276_v24 = vrot.slane %v6935_v17, 5  ;;  %v5258_v48 = vld [vmem:[%s6597_s8 + $0x8] sm:$0xe] }
  0x66   : > { %v1039_v50 = vrot.slane %v1038_v23, 4  ;;  %5882 = vmatpush3.bf16.msra.mxu1 %v6649_v32  ;;  %5877 = vmatprep.mubr.msk.bf16.mxu1 %vm511_vm3, %v6403_v51  ;;  %v1030_v35 = vsel %vm6669_vm4, %v1025_v15, %v1029_v45  ;;  %v5508_v36 = vrot.slane %v5500_v25, 9  ;;  %v3280_v18 = vrot.slane %v6962_v41, 5  ;;  %v5245_v41 = vld [vmem:[%s6597_s8 + $0x38] sm:$0xf] }
  0x67   : > { %v5509_v55 = vrot.slane %v5501_v1, 9  ;;  %6008 = vmatmul.mubr.msk.bf16.gmra.mrb[4].mxu0 %vm511_vm3, %v5489_v2  ;;  %6326 = vmatprep.subr.msk.bf16.mxu1 %vm524_vm0, %v5274_v29  ;;  %v3277_v32 = vsel %vm6769_vm7, %v5507_v59, %v3276_v24  ;;  %v3284_v17 = vrot.slane %v6974_v63, 5  ;;  %v1046_v44 = vshrl.u32 %v5241_v7, 16  ;;  %v5528_v23 = vld [vmem:[%s7965_s3 + $0x26] sm:$0x3] }
  0x68   : > { %v1044_v56 = vsel %vm6669_vm4, %v1039_v50, %v1043_v33  ;;  %6013 = vmatprep.mubr.msk.bf16.mxu0 %vm511_vm3, %v5511_v14  ;;  %v5250_v2 = vcombine.low %v1002_v34, %v1016_v8  ;;  %v7142_v29 = vsel %vm6769_vm7, %v5508_v36, %v3280_v18  ;;  %v1049_v51 = vshll.u32 %v5241_v7, 16  ;;  %v5259_v33 = vld [vmem:[%s6597_s8 + $0x10] sm:$0xe]  ;;  %v5260_v24 = vld [vmem:[%s6597_s8 + $0x18] sm:$0xe] }
  0x69   : > { %v7138_v5 = vcombine.low %v1030_v35, %v1044_v56  ;;  %v7146_v63 = vsel %vm6769_vm7, %v5509_v55, %v3284_v17  ;;  %v1048_v19 = vrot.slane %v1046_v44, 4  ;;  %v1055_v20 = vshll.u32 %v7106_v52, 16  ;;  %v5261_v55 = vld [vmem:[%s6597_s8 + $0x20] sm:$0xe] }
  0x6a   : > { %v1060_v28 = vshrl.u32 %v5243_v30, 16  ;;  %v5513_v16 = vcombine.low %v7113_v4, %v3277_v32  ;;  %v1051_v14 = vrot.slane %v1049_v51, 5  ;;  %v1063_v22 = vshll.u32 %v5243_v30, 16 }
  0x6b   : > { %v1069_v0 = vshll.u32 %v7131_v40, 16  ;;  %v5514_v38 = vcombine.low %v7142_v29, %v7146_v63  ;;  %v1074_v25 = vshrl.u32 %v5245_v41, 16  ;;  %v1077_v47 = vshll.u32 %v5245_v41, 16 }
  0x6c   : > { %v1062_v39 = vrot.slane %v1060_v28, 4  ;;  %v1052_v31 = vor.u32 %v1051_v14, %v1048_v19  ;;  %v1057_v45 = vrot.slane %v1055_v20, 5  ;;  %v1065_v6 = vrot.slane %v1063_v22, 5 }
  0x6d   : > { %v1083_v1 = vshll.u32 %v7150_v62, 16  ;;  %5878 = vmatmul.mubr.msk.bf16.gmra.mrb[4].mxu1 %vm511_vm3, %v6404_v60  ;;  %v1076_v13 = vrot.slane %v1074_v25, 4  ;;  %v1079_v7 = vrot.slane %v1077_v47, 5  ;;  %v1088_v34 = vshrl.u32 %v5247_v57, 16 }
  0x6e   : > { %v1091_v15 = vshll.u32 %v5247_v57, 16  ;;  %5883 = vmatprep.mubr.msk.bf16.mxu1 %vm511_vm3, %v5250_v2  ;;  %v1053_v59 = vrot.slane %v1052_v31, 4  ;;  %v1066_v8 = vor.u32 %v1065_v6, %v1062_v39  ;;  %v1071_v50 = vrot.slane %v1069_v0, 5  ;;  %v5262_v57 = vld [vmem:[%s6597_s8 + $0x28] sm:$0xe] }
  0x6f   : > { %v1097_v4 = vshll.u32 %v7158_v21, 16  ;;  %6014 = vmatmul.mubr.msk.bf16.vlgmr.msra.gmra.mrb[0].mxu0 %vm511_vm3, %v5512_v54  ;;  %v1080_v30 = vor.u32 %v1079_v7, %v1076_v13  ;;  %v1085_v35 = vrot.slane %v1083_v1, 5  ;;  %v1090_v36 = vrot.slane %v1088_v34, 4  ;;  %v7219_v13 = vld [vmem:[%s7101_s12 + $0x4] sm:$0x1] }
  0x70   : > { %v1093_v18 = vrot.slane %v1091_v15, 5  ;;  %6022 = vmatpush3.bf16.msra.mxu0 %v7050_v11  ;;  %6017 = vmatprep.mubr.msk.bf16.mxu0 %vm511_vm3, %v5513_v16  ;;  %v1058_v60 = vsel %vm6669_vm4, %v1053_v59, %v1057_v45  ;;  %v1067_v56 = vrot.slane %v1066_v8, 4  ;;  %v5266_v17 = vrot.slane %v5258_v48, 9  ;;  %v5291_v11 = vld [vmem:[%s7965_s3 + $0xc] sm:$0x3] }
  0x71   : > { %v1099_v32 = vrot.slane %v1097_v4, 5  ;;  %v1081_v44 = vrot.slane %v1080_v30, 4  ;;  %6341 = vmatprep.subr.msk.bf16.mxu0 %vm524_vm0, %v5528_v23  ;;  %v1229_v26 = vrot.slane %v7034_v9, 5  ;;  %v5267_v54 = vrot.slane %v5259_v33, 9  ;;  %v6405_v16 = vld [vmem:[%s7101_s12] ss:$8 sps:$4 sm:$0xff]  }
  0x72   : > { %v1094_v58 = vor.u32 %v1093_v18, %v1090_v36  ;;  %v1072_v41 = vsel %vm6669_vm4, %v1067_v56, %v1071_v50  ;;  %v1233_v2 = vrot.slane %v7044_v12, 5  ;;  %v5268_v51 = vrot.slane %v5260_v24, 9  ;;  %v5264_v45 = vld [vmem:[%s6597_s8 + $0x38] sm:$0xe]  ;;  %v3506_v48 = vld [vmem:[%s7101_s12] sm:$0xf] }
  0x73   : > { %v1237_v19 = vrot.slane %v7053_v53, 5  ;;  %v5252_v20 = vcombine.low %v1058_v60, %v1072_v41  ;;  %v7190_v9 = vsel %vm524_vm0, %v5528_v23, 0  ;;  %v1230_v14 = vsel %vm6769_vm7, %v5266_v17, %v1229_v26  ;;  %v5263_v53 = vld [vmem:[%s6597_s8 + $0x30] sm:$0xe]  ;;  %v3508_v15 = vld [vmem:[%s7101_s12 + $0x8] sm:$0xf] }
  0x74   : > { %v1095_v28 = vrot.slane %v1094_v58, 4  ;;  %v1234_v22 = vsel %vm6769_vm7, %v5267_v54, %v1233_v2  ;;  %v5269_v0 = vrot.slane %v5261_v55, 9  ;;  %v1241_v12 = vrot.slane %v7075_v27, 5  ;;  %v5265_v27 = vld [vmem:[%s6597_s8 + $0x40] sm:$0xe] }
  0x75   : > { %5884 = vmatmul.mubr.msk.bf16.vlgmr.msra.gmra.mrb[0].mxu1 %vm511_vm3, %v7138_v5  ;;  %v1086_v39 = vsel %vm6669_vm4, %v1081_v44, %v1085_v35  ;;  %v7205_v25 = vsel %vm6769_vm7, %v5268_v51, %v1237_v19  ;;  %v7208_v47 = vsel %vm524_vm0, %v5291_v11, 0  ;;  %v5270_v31 = vrot.slane %v5262_v57, 9  ;;  %v6406_v8 = vld [vmem:[%s7101_s12 + $0x10] ss:$8 sps:$4 sm:$0xff]   ;;  %v6407_v35 = vld [vmem:[%s7101_s12 + $0x20] ss:$8 sps:$4 sm:$0xff]  }
  0x76   : > { %5892 = vmatpush3.bf16.msra.mxu1 %v7094_v49  ;;  %5887 = vmatprep.mubr.msk.bf16.mxu1 %vm511_vm3, %v5252_v20  ;;  %v1100_v5 = vsel %vm6669_vm4, %v1095_v28, %v1099_v32  ;;  %v5275_v6 = vcombine.low %v1230_v14, %v1234_v22  ;;  %v1245_v1 = vrot.slane %v7106_v52, 5  ;;  %v5271_v23 = vrot.slane %v5263_v53, 9  ;;  %v3510_v24 = vld [vmem:[%s7101_s12 + $0x10] sm:$0xf]  ;;  %v7257_v55 = vld [vmem:[%s7101_s12 + $0x14] sm:$0x1] }
  0x77   : > { %6018 = vmatmul.mubr.msk.bf16.gmra.mrb[4].mxu0 %vm511_vm3, %v5514_v38  ;;  %v7227_v49 = vsel %vm6769_vm7, %v5269_v0, %v1241_v12  ;;  %6327 = vmatprep.subr.msk.bf16.mxu1 %vm524_vm0, %v5291_v11  ;;  %v1249_v52 = vrot.slane %v7131_v40, 5  ;;  %v5272_v7 = vrot.slane %v5264_v45, 9  ;;  %v1253_v34 = vrot.slane %v7150_v62, 5  ;;  %v7245_v62 = vld [vmem:[%s7101_s12 + $0xc] sm:$0x1] }
  0x78   : > { %6023 = vmatprep.mubr.msk.bf16.mxu0 %vm511_vm3, %v6405_v16  ;;  %v7236_v29 = vsel %vm6769_vm7, %v5270_v31, %v1245_v1  ;;  %v5273_v63 = vrot.slane %v5265_v27, 9  ;;  %v1257_v38 = vrot.slane %v7158_v21, 5  ;;  %v3523_v33 = vshrl.u32 %v3506_v48, 16  ;;  %v3512_v60 = vld [vmem:[%s7101_s12 + $0x18] sm:$0xf] }
  0x79   : > { %v5253_v59 = vcombine.low %v1086_v39, %v1100_v5  ;;  %v7242_v40 = vsel %vm6769_vm7, %v5271_v23, %v1249_v52  ;;  %v3526_v50 = vshll.u32 %v3506_v48, 16  ;;  %v3532_v4 = vshll.u32 %v7219_v13, 16  ;;  %v7263_v58 = vld [vmem:[%s7101_s12 + $0x1c] sm:$0x1]  ;;  %v5545_v16 = vld [vmem:[%s7965_s3 + $0x28] sm:$0x3] }
  0x7a   : > { %v5276_v30 = vcombine.low %v7205_v25, %v7227_v49  ;;  %v7254_v21 = vsel %vm6769_vm7, %v5272_v7, %v1253_v34  ;;  %v3525_v36 = vrot.slane %v3523_v33, 4  ;;  %v3537_v18 = vshrl.u32 %v3508_v15, 16  ;;  %v6408_v5 = vld [vmem:[%s7101_s12 + $0x30] ss:$8 sps:$4 sm:$0xff]   ;;  %v5316_v23 = vld [vmem:[%s7965_s3 + $0xe] sm:$0x3] }
  0x7b   : > { %v5277_v56 = vcombine.low %v7236_v29, %v7242_v40  ;;  %v3528_v32 = vrot.slane %v3526_v50, 5  ;;  %v3534_v17 = vrot.slane %v3532_v4, 5  ;;  %v3540_v44 = vshll.u32 %v3508_v15, 16  ;;  %v3514_v15 = vld [vmem:[%s7101_s12 + $0x20] sm:$0xf] }
  0x7c   : > { %v3539_v26 = vrot.slane %v3537_v18, 4  ;;  %v3546_v54 = vshll.u32 %v7245_v62, 16  ;;  %v3551_v11 = vshrl.u32 %v3510_v24, 16  ;;  %v3554_v41 = vshll.u32 %v3510_v24, 16  ;;  %v7302_v33 = vld [vmem:[%s7101_s12 + $0x2c] sm:$0x1] }
  0x7d   : > { %5888 = vmatmul.mubr.msk.bf16.gmra.mrb[4].mxu1 %vm511_vm3, %v5253_v59  ;;  %v3529_v2 = vor.u32 %v3528_v32, %v3525_v36  ;;  %v3542_v51 = vrot.slane %v3540_v44, 5  ;;  %v3560_v19 = vshll.u32 %v7257_v55, 16  ;;  %v3565_v20 = vshrl.u32 %v3512_v60, 16  ;;  %v3518_v4 = vld [vmem:[%s7101_s12 + $0x30] sm:$0xf] }
  0x7e   : > { %5893 = vmatprep.mubr.msk.bf16.mxu1 %vm511_vm3, %v5275_v6  ;;  %v7271_v28 = vsel %vm6769_vm7, %v5273_v63, %v1257_v38  ;;  %v3553_v14 = vrot.slane %v3551_v11, 4  ;;  %v3556_v22 = vrot.slane %v3554_v41, 5  ;;  %v3568_v0 = vshll.u32 %v3512_v60, 16  ;;  %v7298_v63 = vld [vmem:[%s7101_s12 + $0x24] sm:$0x1] }
  0x7f   : > { %6024 = vmatmul.mubr.msk.bf16.vlgmr.msra.gmra.mrb[0].mxu0 %vm511_vm3, %v6406_v8  ;;  %v3530_v12 = vrot.slane %v3529_v2, 4  ;;  %v3543_v57 = vor.u32 %v3542_v51, %v3539_v26  ;;  %v3548_v53 = vrot.slane %v3546_v54, 5  ;;  %v3567_v39 = vrot.slane %v3565_v20, 4  ;;  %v3516_v38 = vld [vmem:[%s7101_s12 + $0x28] sm:$0xf] }
  0x80   : > { %6032 = vmatpush3.bf16.msra.mxu0 %v7190_v9  ;;  %6027 = vmatprep.mubr.msk.bf16.mxu0 %vm511_vm3, %v6407_v35  ;;  %v3557_v25 = vor.u32 %v3556_v22, %v3553_v14  ;;  %v3562_v31 = vrot.slane %v3560_v19, 5  ;;  %v3570_v45 = vrot.slane %v3568_v0, 5  ;;  %v3574_v27 = vshll.u32 %v7263_v58, 16  ;;  %v7308_v24 = vld [vmem:[%s7101_s12 + $0x34] sm:$0x1] }
  0x81   : > { %v3535_v6 = vsel %vm6669_vm4, %v3530_v12, %v3534_v17  ;;  %v3544_v1 = vrot.slane %v3543_v57, 4  ;;  %6342 = vmatprep.subr.msk.bf16.mxu0 %vm524_vm0, %v5545_v16  ;;  %v7285_v9 = vsel %vm524_vm0, %v5545_v16, 0  ;;  %v3762_v48 = vrot.slane %v7219_v13, 5  ;;  %v3520_v32 = vld [vmem:[%s7101_s12 + $0x38] sm:$0xf] }
  0x82   : > { %v3558_v49 = vrot.slane %v3557_v25, 4  ;;  %v3571_v52 = vor.u32 %v3570_v45, %v3567_v39  ;;  %v3576_v7 = vrot.slane %v3574_v27, 5  ;;  %v7292_v34 = vsel %vm524_vm0, %v5316_v23, 0  ;;  %v7319_v26 = vld [vmem:[%s7101_s12 + $0x3c] sm:$0x1] }
  0x83   : > { %v3549_v29 = vsel %vm6669_vm4, %v3544_v1, %v3548_v53  ;;  %v5278_v59 = vcombine.low %v7254_v21, %v7271_v28  ;;  %v3579_v50 = vshrl.u32 %v3514_v15, 16  ;;  %v3582_v35 = vshll.u32 %v3514_v15, 16  ;;  %v6409_v20 = vld [vmem:[%s6597_s8 + $0x10] ss:$8 sps:$4 sm:$0xff]   ;;  %v3736_v1 = vld [vmem:[%s7101_s12] sm:$0xe] }
  0x84   : > { %v5529_v8 = vcombine.low %v3535_v6, %v3549_v29  ;;  %v3572_v40 = vrot.slane %v3571_v52, 4  ;;  %v3588_v36 = vshll.u32 %v7298_v63, 16  ;;  %v3593_v18 = vshrl.u32 %v3516_v38, 16  ;;  %v5562_v29 = vld [vmem:[%s7965_s3 + $0x2a] sm:$0x3] }
  0x85   : > { %5894 = vmatmul.mubr.msk.bf16.vlgmr.msra.gmra.mrb[0].mxu1 %vm511_vm3, %v5276_v30  ;;  %v3596_v60 = vshll.u32 %v3516_v38, 16  ;;  %v3563_v21 = vsel %vm6669_vm4, %v3558_v49, %v3562_v31  ;;  %v3581_v17 = vrot.slane %v3579_v50, 4  ;;  %v3602_v44 = vshll.u32 %v7302_v33, 16  ;;  %v3738_v38 = vld [vmem:[%s7101_s12 + $0x10] sm:$0xe] }
  0x86   : > { %5902 = vmatpush3.bf16.msra.mxu1 %v7208_v47  ;;  %5897 = vmatprep.mubr.msk.bf16.mxu1 %vm511_vm3, %v5277_v56  ;;  %v3607_v30 = vshrl.u32 %v3518_v4, 16  ;;  %v3577_v54 = vsel %vm6669_vm4, %v3572_v40, %v3576_v7  ;;  %v3584_v47 = vrot.slane %v3582_v35, 5  ;;  %v3590_v11 = vrot.slane %v3588_v36, 5  ;;  %v3739_v50 = vld [vmem:[%s7101_s12 + $0x18] sm:$0xe] }
  0x87   : > { %6028 = vmatmul.mubr.msk.bf16.gmra.mrb[4].mxu0 %vm511_vm3, %v6408_v5  ;;  %6328 = vmatprep.subr.msk.bf16.mxu1 %vm524_vm0, %v5316_v23  ;;  %v3595_v56 = vrot.slane %v3593_v18, 4  ;;  %v3598_v41 = vrot.slane %v3596_v60, 5  ;;  %v3604_v2 = vrot.slane %v3602_v44, 5  ;;  %v3610_v19 = vshll.u32 %v3518_v4, 16  ;;  %v3737_v23 = vld [vmem:[%s7101_s12 + $0x8] sm:$0xe] }
  0x88   : > { %6033 = vmatprep.mubr.msk.bf16.mxu0 %vm511_vm3, %v5529_v8  ;;  %v3609_v51 = vrot.slane %v3607_v30, 4  ;;  %v3585_v28 = vor.u32 %v3584_v47, %v3581_v17  ;;  %v3616_v16 = vshll.u32 %v7308_v24, 16  ;;  %v3621_v14 = vshrl.u32 %v3520_v32, 16  ;;  %v6410_v35 = vld [vmem:[%s6597_s8 + $0x20] ss:$8 sps:$4 sm:$0xff]  }
  0x89   : > { %v3624_v22 = vshll.u32 %v3520_v32, 16  ;;  %v5530_v0 = vcombine.low %v3563_v21, %v3577_v54  ;;  %v3599_v12 = vor.u32 %v3598_v41, %v3595_v56  ;;  %v3612_v57 = vrot.slane %v3610_v19, 5  ;;  %v5300_v21 = vld [vmem:[%s6597_s8 + $0x10] sm:$0xf]  ;;  %v7358_v30 = vld [vmem:[%s6597_s8 + $0x14] sm:$0x1] }
  0x8a   : > { %v3630_v53 = vshll.u32 %v7319_v26, 16  ;;  %v3586_v39 = vrot.slane %v3585_v28, 4  ;;  %v3618_v25 = vrot.slane %v3616_v16, 5  ;;  %v3623_v31 = vrot.slane %v3621_v14, 4  ;;  %v6411_v41 = vld [vmem:[%s6597_s8 + $0x30] ss:$8 sps:$4 sm:$0xff]  }
  0x8b   : > { %v3626_v45 = vrot.slane %v3624_v22, 5  ;;  %v3600_v27 = vrot.slane %v3599_v12, 4  ;;  %v3613_v5 = vor.u32 %v3612_v57, %v3609_v51  ;;  %v5537_v7 = vrot.slane %v3736_v1, 9 }
  0x8c   : > { %v3632_v6 = vrot.slane %v3630_v53, 5  ;;  %v3591_v49 = vsel %vm6669_vm4, %v3586_v39, %v3590_v11  ;;  %v5538_v15 = vrot.slane %v3737_v23, 9  ;;  %v5539_v4 = vrot.slane %v3738_v38, 9  ;;  %v5304_v11 = vld [vmem:[%s6597_s8 + $0x20] sm:$0xf] }
  0x8d   : > { %5898 = vmatmul.mubr.msk.bf16.gmra.mrb[4].mxu1 %vm511_vm3, %v5278_v59  ;;  %v3627_v52 = vor.u32 %v3626_v45, %v3623_v31  ;;  %v3605_v8 = vsel %vm6669_vm4, %v3600_v27, %v3604_v2  ;;  %v3614_v40 = vrot.slane %v3613_v5, 4  ;;  %v3766_v59 = vrot.slane %v7245_v62, 5  ;;  %v7394_v5 = vld [vmem:[%s6597_s8 + $0x2c] sm:$0x1] }
  0x8e   : > { %5903 = vmatprep.mubr.msk.bf16.mxu1 %vm511_vm3, %v6409_v20  ;;  %v5531_v36 = vcombine.low %v3591_v49, %v3605_v8  ;;  %v3763_v60 = vsel %vm6769_vm7, %v5537_v7, %v3762_v48  ;;  %v3770_v32 = vrot.slane %v7257_v55, 5  ;;  %v5540_v44 = vrot.slane %v3739_v50, 9  ;;  %v5302_v48 = vld [vmem:[%s6597_s8 + $0x18] sm:$0xf]  ;;  %v7382_v20 = vld [vmem:[%s6597_s8 + $0x24] sm:$0x1] }
  0x8f   : > { %6034 = vmatmul.mubr.msk.bf16.vlgmr.msra.gmra.mrb[0].mxu0 %vm511_vm3, %v5530_v0  ;;  %v3628_v18 = vrot.slane %v3627_v52, 4  ;;  %v3619_v62 = vsel %vm6669_vm4, %v3614_v40, %v3618_v25  ;;  %v3767_v17 = vsel %vm6769_vm7, %v5538_v15, %v3766_v59  ;;  %v3774_v13 = vrot.slane %v7263_v58, 5  ;;  %v7373_v58 = vld [vmem:[%s6597_s8 + $0x1c] sm:$0x1]  ;;  %v5306_v0 = vld [vmem:[%s6597_s8 + $0x28] sm:$0xf] }
  0x90   : > { %6042 = vmatpush3.bf16.msra.mxu0 %v7285_v9  ;;  %6037 = vmatprep.mubr.msk.bf16.mxu0 %vm511_vm3, %v5531_v36  ;;  %v5546_v9 = vcombine.low %v3763_v60, %v3767_v17  ;;  %v7367_v54 = vsel %vm6769_vm7, %v5539_v4, %v3770_v32  ;;  %v7370_v47 = vsel %vm524_vm0, %v5562_v29, 0  ;;  %v1497_v51 = vshrl.u32 %v5300_v21, 16  ;;  %v5341_v25 = vld [vmem:[%s7965_s3 + $0x10] sm:$0x3]  ;;  %v6412_v7 = vld [vmem:[%s6597_s8 + $0x40] ss:$8 sps:$4 sm:$0xff]  }
  0x91   : > { %v3633_v55 = vsel %vm6669_vm4, %v3628_v18, %v3632_v6  ;;  %6343 = vmatprep.subr.msk.bf16.mxu0 %vm524_vm0, %v5562_v29  ;;  %v7379_v2 = vsel %vm6769_vm7, %v5540_v44, %v3774_v13  ;;  %v1500_v19 = vshll.u32 %v5300_v21, 16  ;;  %v1506_v16 = vshll.u32 %v7358_v30, 16  ;;  %v3740_v40 = vld [vmem:[%s7101_s12 + $0x20] sm:$0xe]  ;;  %v3742_v21 = vld [vmem:[%s7101_s12 + $0x30] sm:$0xe] }
  0x92   : > { %v5532_v56 = vcombine.low %v3619_v62, %v3633_v55  ;;  %v5547_v28 = vcombine.low %v7367_v54, %v7379_v2  ;;  %v1511_v14 = vshrl.u32 %v5302_v48, 16  ;;  %v1514_v22 = vshll.u32 %v5302_v48, 16  ;;  %v3743_v48 = vld [vmem:[%s7101_s12 + $0x38] sm:$0xe] }
  0x93   : > { %v1499_v12 = vrot.slane %v1497_v51, 4  ;;  %v1502_v57 = vrot.slane %v1500_v19, 5  ;;  %v1520_v53 = vshll.u32 %v7373_v58, 16  ;;  %v1525_v39 = vshrl.u32 %v5304_v11, 16 }
  0x94   : > { %v1508_v31 = vrot.slane %v1506_v16, 5  ;;  %v1513_v45 = vrot.slane %v1511_v14, 4  ;;  %v1516_v27 = vrot.slane %v1514_v22, 5  ;;  %v1528_v6 = vshll.u32 %v5304_v11, 16  ;;  %v7421_v22 = vld [vmem:[%s6597_s8 + $0x34] sm:$0x1] }
  0x95   : > { %5904 = vmatmul.mubr.msk.bf16.vlgmr.msra.gmra.mrb[0].mxu1 %vm511_vm3, %v6410_v35  ;;  %v1503_v1 = vor.u32 %v1502_v57, %v1499_v12  ;;  %v1522_v23 = vrot.slane %v1520_v53, 5  ;;  %v1527_v49 = vrot.slane %v1525_v39, 4  ;;  %v1534_v52 = vshll.u32 %v7382_v20, 16  ;;  %v3741_v35 = vld [vmem:[%s7101_s12 + $0x28] sm:$0xe] }
  0x96   : > { %5912 = vmatpush3.bf16.msra.mxu1 %v7292_v34  ;;  %5907 = vmatprep.mubr.msk.bf16.mxu1 %vm511_vm3, %v6411_v41  ;;  %v1517_v15 = vor.u32 %v1516_v27, %v1513_v45  ;;  %v1530_v29 = vrot.slane %v1528_v6, 5  ;;  %v1539_v38 = vshrl.u32 %v5306_v0, 16  ;;  %v1542_v8 = vshll.u32 %v5306_v0, 16  ;;  %v5308_v41 = vld [vmem:[%s6597_s8 + $0x30] sm:$0xf] }
  0x97   : > { %6038 = vmatmul.mubr.msk.bf16.gmra.mrb[4].mxu0 %vm511_vm3, %v5532_v56  ;;  %6329 = vmatprep.subr.msk.bf16.mxu1 %vm524_vm0, %v5341_v25  ;;  %v1504_v34 = vrot.slane %v1503_v1, 4  ;;  %v1536_v59 = vrot.slane %v1534_v52, 5  ;;  %v1548_v50 = vshll.u32 %v7394_v5, 16  ;;  %v7406_v4 = vsel %vm524_vm0, %v5341_v25, 0  ;;  %v7429_v39 = vld [vmem:[%s6597_s8 + $0x3c] sm:$0x1] }
  0x98   : > { %6043 = vmatprep.mubr.msk.bf16.mxu0 %vm511_vm3, %v5546_v9  ;;  %v1518_v36 = vrot.slane %v1517_v15, 4  ;;  %v1531_v18 = vor.u32 %v1530_v29, %v1527_v49  ;;  %v1541_v60 = vrot.slane %v1539_v38, 4  ;;  %v1544_v32 = vrot.slane %v1542_v8, 5  ;;  %v5312_v25 = vld [vmem:[%s6597_s8 + $0x40] sm:$0xf] }
  0x99   : > { %v1509_v62 = vsel %vm6669_vm4, %v1504_v34, %v1508_v31  ;;  %v1550_v17 = vrot.slane %v1548_v50, 5  ;;  %v5541_v44 = vrot.slane %v3740_v40, 9  ;;  %v3778_v13 = vrot.slane %v7298_v63, 5  ;;  %v5310_v63 = vld [vmem:[%s6597_s8 + $0x38] sm:$0xf] }
  0x9a   : > { %v1523_v55 = vsel %vm6669_vm4, %v1518_v36, %v1522_v23  ;;  %v1532_v9 = vrot.slane %v1531_v18, 4  ;;  %v1545_v11 = vor.u32 %v1544_v32, %v1541_v60  ;;  %v5542_v56 = vrot.slane %v3741_v35, 9  ;;  %v7437_v6 = vld [vmem:[%s6597_s8 + $0x44] sm:$0x1]  ;;  %v7459_v34 = vld [vmem:[%s6597_s8 + $0x4c] sm:$0x1] }
  0x9b   : > { %v5317_v51 = vcombine.low %v1509_v62, %v1523_v55  ;;  %v3779_v19 = vsel %vm6769_vm7, %v5541_v44, %v3778_v13  ;;  %v3782_v16 = vrot.slane %v7302_v33, 5  ;;  %v5543_v14 = vrot.slane %v3742_v21, 9  ;;  %v6413_v32 = vld [vmem:[%s7101_s12 + $0x8] ss:$8 sps:$4 sm:$0xff]  }
  0x9c   : > { %v1537_v0 = vsel %vm6669_vm4, %v1532_v9, %v1536_v59  ;;  %v1546_v12 = vrot.slane %v1545_v11, 4  ;;  %v3786_v57 = vrot.slane %v7308_v24, 5  ;;  %v5544_v53 = vrot.slane %v3743_v48, 9  ;;  %v5325_v13 = vld [vmem:[%s6597_s8 + $0x10] sm:$0xe] }
  0x9d   : > { %5908 = vmatmul.mubr.msk.bf16.gmra.mrb[4].mxu1 %vm511_vm3, %v6412_v7  ;;  %v3783_v33 = vsel %vm6769_vm7, %v5542_v56, %v3782_v16  ;;  %v3790_v31 = vrot.slane %v7319_v26, 5  ;;  %v1553_v45 = vshrl.u32 %v5308_v41, 16  ;;  %v1556_v27 = vshll.u32 %v5308_v41, 16  ;;  %v5314_v26 = vld [vmem:[%s6597_s8 + $0x48] sm:$0xf] }
  0x9e   : > { %5913 = vmatprep.mubr.msk.bf16.mxu1 %vm511_vm3, %v5317_v51  ;;  %v1551_v24 = vsel %vm6669_vm4, %v1546_v12, %v1550_v17  ;;  %v5548_v1 = vcombine.low %v3779_v19, %v3783_v33  ;;  %v3787_v23 = vsel %vm6769_vm7, %v5543_v14, %v3786_v57  ;;  %v1562_v49 = vshll.u32 %v7421_v22, 16  ;;  %v5326_v11 = vld [vmem:[%s6597_s8 + $0x18] sm:$0xe]  ;;  %v5327_v56 = vld [vmem:[%s6597_s8 + $0x20] sm:$0xe] }
  0x9f   : > { %6044 = vmatmul.mubr.msk.bf16.vlgmr.msra.gmra.mrb[0].mxu0 %vm511_vm3, %v5547_v28  ;;  %v5318_v52 = vcombine.low %v1537_v0, %v1551_v24  ;;  %v3791_v7 = vsel %vm6769_vm7, %v5544_v53, %v3790_v31  ;;  %v1555_v54 = vrot.slane %v1553_v45, 4  ;;  %v1558_v2 = vrot.slane %v1556_v27, 5  ;;  %v5587_v28 = vld [vmem:[%s7965_s3 + $0x2c] sm:$0x3]  ;;  %v5328_v14 = vld [vmem:[%s6597_s8 + $0x28] sm:$0xe] }
  0xa0   : > { %6052 = vmatpush3.bf16.msra.mxu0 %v7370_v47  ;;  %6047 = vmatprep.mubr.msk.bf16.mxu0 %vm511_vm3, %v5548_v1  ;;  %v5549_v15 = vcombine.low %v3787_v23, %v3791_v7  ;;  %v1564_v29 = vrot.slane %v1562_v49, 5  ;;  %v1567_v38 = vshrl.u32 %v5310_v63, 16  ;;  %v1570_v8 = vshll.u32 %v5310_v63, 16  ;;  %v5350_v63 = vld [vmem:[%s7965_s3 + $0x12] sm:$0x3] }
  0xa1   : > { %6344 = vmatprep.subr.msk.bf16.mxu0 %vm524_vm0, %v5587_v28  ;;  %v1559_v47 = vor.u32 %v1558_v2, %v1555_v54  ;;  %v1576_v40 = vshll.u32 %v7429_v39, 16  ;;  %v1581_v59 = vshrl.u32 %v5312_v25, 16  ;;  %v1584_v50 = vshll.u32 %v5312_v25, 16  ;;  %v6414_v23 = vld [vmem:[%s7101_s12 + $0x18] ss:$8 sps:$4 sm:$0xff]  }
  0xa2   : > { %v1569_v35 = vrot.slane %v1567_v38, 4  ;;  %v1572_v36 = vrot.slane %v1570_v8, 5  ;;  %v1590_v18 = vshll.u32 %v7437_v6, 16  ;;  %v1595_v60 = vshrl.u32 %v5314_v26, 16  ;;  %v5330_v38 = vld [vmem:[%s6597_s8 + $0x38] sm:$0xe] }
  0xa3   : > { %v1560_v21 = vrot.slane %v1559_v47, 4  ;;  %v1578_v62 = vrot.slane %v1576_v40, 5  ;;  %v1583_v17 = vrot.slane %v1581_v59, 4  ;;  %v1586_v44 = vrot.slane %v1584_v50, 5  ;;  %v5331_v50 = vld [vmem:[%s6597_s8 + $0x40] sm:$0xe] }
  0xa4   : > { %v1573_v48 = vor.u32 %v1572_v36, %v1569_v35  ;;  %v1597_v55 = vrot.slane %v1595_v60, 4  ;;  %v1598_v9 = vshll.u32 %v5314_v26, 16  ;;  %v1592_v19 = vrot.slane %v1590_v18, 5  ;;  %v5332_v35 = vld [vmem:[%s6597_s8 + $0x48] sm:$0xe] }
  0xa5   : > { %5914 = vmatmul.mubr.msk.bf16.vlgmr.msra.gmra.mrb[0].mxu1 %vm511_vm3, %v5318_v52  ;;  %v1565_v41 = vsel %vm6669_vm4, %v1560_v21, %v1564_v29  ;;  %v1587_v51 = vor.u32 %v1586_v44, %v1583_v17  ;;  %v1604_v16 = vshll.u32 %v7459_v34, 16  ;;  %v5333_v57 = vrot.slane %v5325_v13, 9  ;;  %v7511_v21 = vld [vmem:[%s7101_s12 + $0xc] sm:$0x1]  ;;  %v5573_v13 = vld [vmem:[%s7101_s12 + $0x10] sm:$0xf] }
  0xa6   : > { %5922 = vmatpush3.bf16.msra.mxu1 %v7406_v4  ;;  %v1574_v0 = vrot.slane %v1573_v48, 4  ;;  %v1600_v12 = vrot.slane %v1598_v9, 5  ;;  %v1736_v4 = vrot.slane %v7358_v30, 5  ;;  %v5334_v33 = vrot.slane %v5326_v11, 9 }
  0xa7   : > { %6048 = vmatmul.mubr.msk.bf16.gmra.mrb[4].mxu0 %vm511_vm3, %v5549_v15  ;;  %6330 = vmatprep.subr.msk.bf16.mxu1 %vm524_vm0, %v5350_v63  ;;  %v1588_v53 = vrot.slane %v1587_v51, 4  ;;  %v1606_v25 = vrot.slane %v1604_v16, 5  ;;  %v1740_v31 = vrot.slane %v7373_v58, 5  ;;  %v5335_v30 = vrot.slane %v5327_v56, 9  ;;  %v5329_v15 = vld [vmem:[%s6597_s8 + $0x30] sm:$0xe] }
  0xa8   : > { %6053 = vmatprep.mubr.msk.bf16.mxu0 %vm511_vm3, %v6413_v32  ;;  %v1579_v45 = vsel %vm6669_vm4, %v1574_v0, %v1578_v62  ;;  %v1601_v27 = vor.u32 %v1600_v12, %v1597_v55  ;;  %v1737_v24 = vsel %vm6769_vm7, %v5333_v57, %v1736_v4  ;;  %v4168_v49 = vsel %vm524_vm0, %v5587_v28, 0  ;;  %v6415_v28 = vld [vmem:[%s7101_s12 + $0x28] ss:$8 sps:$4 sm:$0xff]   ;;  %v7521_v55 = vld [vmem:[%s7101_s12 + $0x14] sm:$0x1] }
  0xa9   : > { %v5319_v1 = vcombine.low %v1565_v41, %v1579_v45  ;;  %v1741_v26 = vsel %vm6769_vm7, %v5334_v33, %v1740_v31  ;;  %v1744_v52 = vrot.slane %v7382_v20, 5  ;;  %v1593_v58 = vsel %vm6669_vm4, %v1588_v53, %v1592_v19  ;;  %v5571_v32 = vld [vmem:[%s7101_s12 + $0x8] sm:$0xf]  ;;  %v5575_v16 = vld [vmem:[%s7101_s12 + $0x18] sm:$0xf] }
  0xaa   : > { %v1602_v7 = vrot.slane %v1601_v27, 4  ;;  %v5336_v54 = vrot.slane %v5328_v14, 9  ;;  %v1748_v2 = vrot.slane %v7394_v5, 5  ;;  %v5342_v29 = vcombine.low %v1737_v24, %v1741_v26  ;;  %v7533_v57 = vld [vmem:[%s7101_s12 + $0x1c] sm:$0x1] }
  0xab   : > { %5917 = vmatprep.mubr.msk.bf16.mxu1 %vm511_vm3, %v5319_v1  ;;  %v5337_v8 = vrot.slane %v5329_v15, 9  ;;  %v1752_v20 = vrot.slane %v7421_v22, 5  ;;  %v1745_v40 = vsel %vm6769_vm7, %v5335_v30, %v1744_v52  ;;  %v5338_v59 = vrot.slane %v5330_v38, 9  ;;  %v5577_v33 = vld [vmem:[%s7101_s12 + $0x20] sm:$0xf] }
  0xac   : > { %v1607_v47 = vsel %vm6669_vm4, %v1602_v7, %v1606_v25  ;;  %v1756_v5 = vrot.slane %v7429_v39, 5  ;;  %v1749_v18 = vsel %vm6769_vm7, %v5336_v54, %v1748_v2  ;;  %v1911_v60 = vsel %vm524_vm0, %v5350_v63, 0  ;;  %v7538_v27 = vld [vmem:[%s7101_s12 + $0x24] sm:$0x1] }
  0xad   : > { %v5320_v36 = vcombine.low %v1593_v58, %v1607_v47  ;;  %v1753_v22 = vsel %vm6769_vm7, %v5337_v8, %v1752_v20  ;;  %v5339_v62 = vrot.slane %v5331_v50, 9  ;;  %v1760_v17 = vrot.slane %v7437_v6, 5  ;;  %v6416_v6 = vld [vmem:[%s7101_s12 + $0x38] ss:$8 sps:$4 sm:$0xff]  }
  0xae   : > { %v1757_v39 = vsel %vm6769_vm7, %v5338_v59, %v1756_v5  ;;  %v5340_v44 = vrot.slane %v5332_v35, 9  ;;  %v1764_v48 = vrot.slane %v7459_v34, 5  ;;  %v4030_v9 = vshrl.u32 %v5571_v32, 16  ;;  %v5612_v34 = vld [vmem:[%s7965_s3 + $0x2e] sm:$0x3] }
  0xaf   : > { %6054 = vmatmul.mubr.msk.bf16.vlgmr.msra.gmra.mrb[0].mxu0 %vm511_vm3, %v6414_v23  ;;  %5918 = vmatmul.mubr.msk.bf16.gmra.mrb[4].mxu1 %vm511_vm3, %v5320_v36  ;;  %v4033_v11 = vshll.u32 %v5571_v32, 16  ;;  %v4039_v56 = vshll.u32 %v7511_v21, 16  ;;  %v5343_v41 = vcombine.low %v1745_v40, %v1749_v18  ;;  %v4044_v51 = vshrl.u32 %v5573_v13, 16  ;;  %v5359_v35 = vld [vmem:[%s7965_s3 + $0x14] sm:$0x3] }
  0xb0   : > { %6062 = vmatpush3.bf16.msra.mxu0 %v4168_v49  ;;  %5923 = vmatprep.mubr.msk.bf16.mxu1 %vm511_vm3, %v5342_v29  ;;  %v4047_v19 = vshll.u32 %v5573_v13, 16  ;;  %v5344_v14 = vcombine.low %v1753_v22, %v1757_v39  ;;  %v4032_v63 = vrot.slane %v4030_v9, 4  ;;  %v4053_v25 = vshll.u32 %v7521_v55, 16  ;;  %v5579_v36 = vld [vmem:[%s7101_s12 + $0x28] sm:$0xf] }
  0xb1   : > { %6057 = vmatprep.mubr.msk.bf16.mxu0 %vm511_vm3, %v6415_v28  ;;  %v4035_v0 = vrot.slane %v4033_v11, 5  ;;  %v4041_v12 = vrot.slane %v4039_v56, 5  ;;  %6345 = vmatprep.subr.msk.bf16.mxu0 %vm524_vm0, %v5612_v34  ;;  %v4046_v4 = vrot.slane %v4044_v51, 4  ;;  %v4058_v31 = vshrl.u32 %v5575_v16, 16  ;;  %v6417_v13 = vld [vmem:[%s6654_s17] ss:$8 sps:$4 sm:$0xff]  }
  0xb2   : > { %v4049_v53 = vrot.slane %v4047_v19, 5  ;;  %v4061_v24 = vshll.u32 %v5575_v16, 16  ;;  %v4067_v30 = vshll.u32 %v7533_v57, 16  ;;  %v4072_v1 = vshrl.u32 %v5577_v33, 16 }
  0xb3   : > { %v4036_v45 = vor.u32 %v4035_v0, %v4032_v63  ;;  %v4055_v49 = vrot.slane %v4053_v25, 5  ;;  %v4060_v26 = vrot.slane %v4058_v31, 4  ;;  %v4075_v52 = vshll.u32 %v5577_v33, 16  ;;  %v5585_v31 = vld [vmem:[%s7101_s12 + $0x40] sm:$0xf] }
  0xb4   : > { %v4050_v23 = vor.u32 %v4049_v53, %v4046_v4  ;;  %v1761_v58 = vsel %vm6769_vm7, %v5339_v62, %v1760_v17  ;;  %v4063_v54 = vrot.slane %v4061_v24, 5  ;;  %v4074_v2 = vrot.slane %v4072_v1, 4  ;;  %v7564_v62 = vld [vmem:[%s7101_s12 + $0x2c] sm:$0x1]  ;;  %v5581_v17 = vld [vmem:[%s7101_s12 + $0x30] sm:$0xf] }
  0xb5   : > { %v4037_v7 = vrot.slane %v4036_v45, 4  ;;  %v1765_v15 = vsel %vm6769_vm7, %v5340_v44, %v1764_v48  ;;  %v4077_v28 = vrot.slane %v4075_v52, 5  ;;  %v4081_v38 = vshll.u32 %v7538_v27, 16  ;;  %v7569_v48 = vld [vmem:[%s7101_s12 + $0x34] sm:$0x1] }
  0xb6   : > { %v4051_v29 = vrot.slane %v4050_v23, 4  ;;  %v4064_v20 = vor.u32 %v4063_v54, %v4060_v26  ;;  %v4069_v47 = vrot.slane %v4067_v30, 5  ;;  %v4326_v40 = vsel %vm524_vm0, %v5612_v34, 0  ;;  %v5583_v34 = vld [vmem:[%s7101_s12 + $0x38] sm:$0xf] }
  0xb7   : > { %6058 = vmatmul.mubr.msk.bf16.gmra.mrb[4].mxu0 %vm511_vm3, %v6416_v6  ;;  %5924 = vmatmul.mubr.msk.bf16.vlgmr.msra.gmra.mrb[0].mxu1 %vm511_vm3, %v5343_v41  ;;  %v4042_v8 = vsel %vm6669_vm4, %v4037_v7, %v4041_v12  ;;  %v4078_v5 = vor.u32 %v4077_v28, %v4074_v2  ;;  %v4083_v50 = vrot.slane %v4081_v38, 5  ;;  %v4269_v18 = vrot.slane %v7511_v21, 5  ;;  %v7580_v12 = vld [vmem:[%s7101_s12 + $0x3c] sm:$0x1]  ;;  %v7584_v24 = vld [vmem:[%s7101_s12 + $0x44] sm:$0x1] }
  0xb8   : > { %5932 = vmatpush3.bf16.msra.mxu1 %v1911_v60  ;;  %5927 = vmatprep.mubr.msk.bf16.mxu1 %vm511_vm3, %v5344_v14  ;;  %v4056_v59 = vsel %vm6669_vm4, %v4051_v29, %v4055_v49  ;;  %v5345_v22 = vcombine.low %v1761_v58, %v1765_v15  ;;  %v4065_v39 = vrot.slane %v4064_v20, 4  ;;  %v7561_v60 = vsel %vm524_vm0, %v5359_v35, 0  ;;  %v6418_v29 = vld [vmem:[%s6654_s17 + $0x10] ss:$8 sps:$4 sm:$0xff]  }
  0xb9   : > { %v5588_v32 = vcombine.low %v4042_v8, %v4056_v59  ;;  %6331 = vmatprep.subr.msk.bf16.mxu1 %vm524_vm0, %v5359_v35  ;;  %v4079_v44 = vrot.slane %v4078_v5, 4  ;;  %v4086_v9 = vshrl.u32 %v5579_v36, 16  ;;  %v4089_v11 = vshll.u32 %v5579_v36, 16  ;;  %v5596_v35 = vld [vmem:[%s7101_s12 + $0x8] sm:$0xe] }
  0xba   : > { %v4095_v56 = vshll.u32 %v7564_v62, 16  ;;  %v4070_v41 = vsel %vm6669_vm4, %v4065_v39, %v4069_v47  ;;  %v4100_v6 = vshrl.u32 %v5581_v17, 16  ;;  %v4103_v51 = vshll.u32 %v5581_v17, 16  ;;  %v5597_v36 = vld [vmem:[%s7101_s12 + $0x10] sm:$0xe] }
  0xbb   : > { %6063 = vmatprep.mubr.msk.bf16.mxu0 %vm511_vm3, %v5588_v32  ;;  %v4109_v19 = vshll.u32 %v7569_v48, 16  ;;  %v4084_v16 = vsel %vm6669_vm4, %v4079_v44, %v4083_v50  ;;  %v4088_v14 = vrot.slane %v4086_v9, 4  ;;  %v4091_v63 = vrot.slane %v4089_v11, 5  ;;  %v5629_v9 = vld [vmem:[%s7965_s3 + $0x30] sm:$0x3] }
  0xbc   : > { %v4097_v0 = vrot.slane %v4095_v56, 5  ;;  %v5589_v4 = vcombine.low %v4070_v41, %v4084_v16  ;;  %v4102_v53 = vrot.slane %v4100_v6, 4  ;;  %v4105_v25 = vrot.slane %v4103_v51, 5  ;;  %v5598_v56 = vld [vmem:[%s7101_s12 + $0x18] sm:$0xe] }
  0xbd   : > { %v4111_v33 = vrot.slane %v4109_v19, 5  ;;  %v4092_v45 = vor.u32 %v4091_v63, %v4088_v14  ;;  %v4114_v30 = vshrl.u32 %v5583_v34, 16  ;;  %v4117_v1 = vshll.u32 %v5583_v34, 16  ;;  %v5599_v41 = vld [vmem:[%s7101_s12 + $0x20] sm:$0xe] }
  0xbe   : > { %v4123_v23 = vshll.u32 %v7580_v12, 16  ;;  %v4106_v49 = vor.u32 %v4105_v25, %v4102_v53  ;;  %v4128_v26 = vshrl.u32 %v5585_v31, 16  ;;  %v4131_v52 = vshll.u32 %v5585_v31, 16  ;;  %v1986_v34 = vld [vmem:[%s6654_s17] sm:$0xf] }
  0xbf   : > { %5928 = vmatmul.mubr.msk.bf16.gmra.mrb[4].mxu1 %vm511_vm3, %v5345_v22  ;;  %6064 = vmatmul.mubr.msk.bf16.vlgmr.msra.gmra.mrb[0].mxu0 %vm511_vm3, %v5589_v4  ;;  %v4137_v58 = vshll.u32 %v7584_v24, 16  ;;  %v4093_v7 = vrot.slane %v4092_v45, 4  ;;  %v4116_v54 = vrot.slane %v4114_v30, 4  ;;  %v4119_v2 = vrot.slane %v4117_v1, 5  ;;  %v7619_v16 = vld [vmem:[%s6654_s17 + $0x4] sm:$0x1] }
  0xc0   : > { %6072 = vmatpush3.bf16.msra.mxu0 %v4326_v40  ;;  %5933 = vmatprep.mubr.msk.bf16.mxu1 %vm511_vm3, %v6417_v13  ;;  %v4125_v15 = vrot.slane %v4123_v23, 5  ;;  %v4107_v28 = vrot.slane %v4106_v49, 4  ;;  %v4130_v38 = vrot.slane %v4128_v26, 4  ;;  %v4133_v8 = vrot.slane %v4131_v52, 5  ;;  %v6419_v40 = vld [vmem:[%s6654_s17 + $0x20] ss:$8 sps:$4 sm:$0xff]  }
  0xc1   : > { %v4139_v20 = vrot.slane %v4137_v58, 5  ;;  %v4098_v47 = vsel %vm6669_vm4, %v4093_v7, %v4097_v0  ;;  %v4120_v59 = vor.u32 %v4119_v2, %v4116_v54  ;;  %v4273_v22 = vrot.slane %v7521_v55, 5  ;;  %6346 = vmatprep.subr.msk.bf16.mxu0 %vm524_vm0, %v5629_v9  ;;  %v7629_v0 = vld [vmem:[%s6654_s17 + $0xc] sm:$0x1]  ;;  %v1990_v31 = vld [vmem:[%s6654_s17 + $0x10] sm:$0xf] }
  0xc2   : > { %v4112_v5 = vsel %vm6669_vm4, %v4107_v28, %v4111_v33  ;;  %v4134_v50 = vor.u32 %v4133_v8, %v4130_v38  ;;  %v4277_v32 = vrot.slane %v7533_v57, 5  ;;  %v5604_v44 = vrot.slane %v5596_v35, 9  ;;  %v7637_v45 = vld [vmem:[%s6654_s17 + $0x14] sm:$0x1]  ;;  %v6420_v30 = vld [vmem:[%s6654_s17 + $0x30] ss:$8 sps:$4 sm:$0xff]  }
  0xc3   : > { %v5590_v39 = vcombine.low %v4098_v47, %v4112_v5  ;;  %v4121_v17 = vrot.slane %v4120_v59, 4  ;;  %v5605_v13 = vrot.slane %v5597_v36, 9  ;;  %v4281_v55 = vrot.slane %v7538_v27, 5  ;;  %v1992_v26 = vld [vmem:[%s6654_s17 + $0x18] sm:$0xf] }
  0xc4   : > { %v4135_v11 = vrot.slane %v4134_v50, 4  ;;  %v4270_v6 = vsel %vm6769_vm7, %v5604_v44, %v4269_v18  ;;  %v5606_v19 = vrot.slane %v5598_v56, 9  ;;  %v5607_v21 = vrot.slane %v5599_v41, 9  ;;  %v1988_v18 = vld [vmem:[%s6654_s17 + $0x8] sm:$0xf] }
  0xc5   : > { %6067 = vmatprep.mubr.msk.bf16.mxu0 %vm511_vm3, %v5590_v39  ;;  %v4126_v57 = vsel %vm6669_vm4, %v4121_v17, %v4125_v15  ;;  %v4274_v51 = vsel %vm6769_vm7, %v5605_v13, %v4273_v22  ;;  %v7625_v63 = vsel %vm524_vm0, %v5629_v9, 0  ;;  %v2003_v25 = vshrl.u32 %v1986_v34, 16  ;;  %v7647_v2 = vld [vmem:[%s6654_s17 + $0x1c] sm:$0x1]  ;;  %v5376_v8 = vld [vmem:[%s7965_s3 + $0x16] sm:$0x3] }
  0xc6   : > { %v4140_v27 = vsel %vm6669_vm4, %v4135_v11, %v4139_v20  ;;  %v5613_v14 = vcombine.low %v4270_v6, %v4274_v51  ;;  %v4278_v53 = vsel %vm6769_vm7, %v5606_v19, %v4277_v32  ;;  %v2006_v33 = vshll.u32 %v1986_v34, 16  ;;  %v5600_v22 = vld [vmem:[%s7101_s12 + $0x28] sm:$0xe]  ;;  %v5601_v13 = vld [vmem:[%s7101_s12 + $0x30] sm:$0xe] }
  0xc7   : > { %5934 = vmatmul.mubr.msk.bf16.vlgmr.msra.gmra.mrb[0].mxu1 %vm511_vm3, %v6418_v29  ;;  %v5591_v4 = vcombine.low %v4126_v57, %v4140_v27  ;;  %v4282_v1 = vsel %vm6769_vm7, %v5607_v21, %v4281_v55  ;;  %v2012_v23 = vshll.u32 %v7619_v16, 16  ;;  %v2017_v49 = vshrl.u32 %v1988_v18, 16  ;;  %v5602_v55 = vld [vmem:[%s7101_s12 + $0x38] sm:$0xe]  ;;  %v5603_v34 = vld [vmem:[%s7101_s12 + $0x40] sm:$0xe] }
  0xc8   : > { %5942 = vmatpush3.bf16.msra.mxu1 %v7561_v60  ;;  %5937 = vmatprep.mubr.msk.bf16.mxu1 %vm511_vm3, %v6419_v40  ;;  %v2020_v60 = vshll.u32 %v1988_v18, 16  ;;  %v5614_v52 = vcombine.low %v4278_v53, %v4282_v1  ;;  %v2005_v58 = vrot.slane %v2003_v25, 4  ;;  %v2008_v7 = vrot.slane %v2006_v33, 5  ;;  %v7669_v53 = vld [vmem:[%s6654_s17 + $0x24] sm:$0x1] }
  0xc9   : > { %6068 = vmatmul.mubr.msk.bf16.gmra.mrb[4].mxu0 %vm511_vm3, %v5591_v4  ;;  %v2026_v54 = vshll.u32 %v7629_v0, 16  ;;  %v2014_v15 = vrot.slane %v2012_v23, 5  ;;  %v2019_v29 = vrot.slane %v2017_v49, 4  ;;  %v2031_v38 = vshrl.u32 %v1990_v31, 16  ;;  %6332 = vmatprep.subr.msk.bf16.mxu1 %vm524_vm0, %v5376_v8  ;;  %v1994_v4 = vld [vmem:[%s6654_s17 + $0x20] sm:$0xf] }
  0xca   : > { %6073 = vmatprep.mubr.msk.bf16.mxu0 %vm511_vm3, %v5613_v14  ;;  %v2022_v28 = vrot.slane %v2020_v60, 5  ;;  %v2009_v20 = vor.u32 %v2008_v7, %v2005_v58  ;;  %v2034_v59 = vshll.u32 %v1990_v31, 16  ;;  %v2040_v40 = vshll.u32 %v7637_v45, 16  ;;  %v1996_v1 = vld [vmem:[%s6654_s17 + $0x28] sm:$0xf] }
  0xcb   : > { %v2028_v47 = vrot.slane %v2026_v54, 5  ;;  %v2033_v50 = vrot.slane %v2031_v38, 4  ;;  %v2045_v35 = vshrl.u32 %v1992_v26, 16  ;;  %v2048_v36 = vshll.u32 %v1992_v26, 16  ;;  %v7679_v26 = vld [vmem:[%s6654_s17 + $0x2c] sm:$0x1] }
  0xcc   : > { %v2023_v5 = vor.u32 %v2022_v28, %v2019_v29  ;;  %v2010_v32 = vrot.slane %v2009_v20, 4  ;;  %v2036_v39 = vrot.slane %v2034_v59, 5  ;;  %v2042_v17 = vrot.slane %v2040_v40, 5  ;;  %v1998_v7 = vld [vmem:[%s6654_s17 + $0x30] sm:$0xf] }
  0xcd   : > { %v2054_v44 = vshll.u32 %v7647_v2, 16  ;;  %v2047_v11 = vrot.slane %v2045_v35, 4  ;;  %v2050_v56 = vrot.slane %v2048_v36, 5  ;;  %v2299_v41 = vsel %vm524_vm0, %v5376_v8, 0  ;;  %v7689_v54 = vld [vmem:[%s6654_s17 + $0x34] sm:$0x1] }
  0xce   : > { %v2024_v9 = vrot.slane %v2023_v5, 4  ;;  %v2015_v57 = vsel %vm6669_vm4, %v2010_v32, %v2014_v15  ;;  %v2037_v6 = vor.u32 %v2036_v39, %v2033_v50  ;;  %v5608_v19 = vrot.slane %v5600_v22, 9  ;;  %v2000_v38 = vld [vmem:[%s6654_s17 + $0x38] sm:$0xf]  ;;  %v5654_v40 = vld [vmem:[%s7965_s3 + $0x32] sm:$0x3] }
  0xcf   : > { %5938 = vmatmul.mubr.msk.bf16.gmra.mrb[4].mxu1 %vm511_vm3, %v6420_v30  ;;  %v2056_v51 = vrot.slane %v2054_v44, 5  ;;  %v2051_v14 = vor.u32 %v2050_v56, %v2047_v11  ;;  %v4285_v21 = vrot.slane %v7564_v62, 5  ;;  %v5609_v18 = vrot.slane %v5601_v13, 9  ;;  %v6421_v59 = vld [vmem:[%s7101_s12 + $0x10] ss:$8 sps:$4 sm:$0xff]  }
  0xd0   : > { %v2029_v27 = vsel %vm6669_vm4, %v2024_v9, %v2028_v47  ;;  %v2038_v33 = vrot.slane %v2037_v6, 4  ;;  %v4289_v31 = vrot.slane %v7569_v48, 5  ;;  %v5610_v30 = vrot.slane %v5602_v55, 9  ;;  %v7708_v11 = vld [vmem:[%s6654_s17 + $0x3c] sm:$0x1] }
  0xd1   : > { %6074 = vmatmul.mubr.msk.bf16.vlgmr.msra.gmra.mrb[0].mxu0 %vm511_vm3, %v5614_v52  ;;  %v5360_v25 = vcombine.low %v2015_v57, %v2029_v27  ;;  %v2052_v23 = vrot.slane %v2051_v14, 4  ;;  %v4286_v62 = vsel %vm6769_vm7, %v5608_v19, %v4285_v21  ;;  %v4293_v49 = vrot.slane %v7580_v12, 5  ;;  %v2216_v19 = vld [vmem:[%s6654_s17] sm:$0xe]  ;;  %v2217_v21 = vld [vmem:[%s6654_s17 + $0x8] sm:$0xe] }
  0xd2   : > { %6082 = vmatpush3.bf16.msra.mxu0 %v7625_v63  ;;  %v5611_v60 = vrot.slane %v5603_v34, 9  ;;  %v2043_v48 = vsel %vm6669_vm4, %v2038_v33, %v2042_v17  ;;  %v4290_v52 = vsel %vm6769_vm7, %v5609_v18, %v4289_v31  ;;  %v4297_v63 = vrot.slane %v7584_v24, 5  ;;  %v6422_v33 = vld [vmem:[%s7101_s12 + $0x20] ss:$8 sps:$4 sm:$0xff]  }
  0xd3   : > { %5943 = vmatprep.mubr.msk.bf16.mxu1 %vm511_vm3, %v5360_v25  ;;  %v2059_v58 = vshrl.u32 %v1994_v4, 16  ;;  %v2057_v12 = vsel %vm6669_vm4, %v2052_v23, %v2056_v51  ;;  %v5615_v15 = vcombine.low %v4286_v62, %v4290_v52  ;;  %v4294_v29 = vsel %vm6769_vm7, %v5610_v30, %v4293_v49  ;;  %6347 = vmatprep.subr.msk.bf16.mxu0 %vm524_vm0, %v5654_v40  ;;  %v2218_v30 = vld [vmem:[%s6654_s17 + $0x10] sm:$0xe] }
  0xd4   : > { %v2062_v28 = vshll.u32 %v1994_v4, 16  ;;  %v5361_v8 = vcombine.low %v2043_v48, %v2057_v12  ;;  %v4298_v20 = vsel %vm6769_vm7, %v5611_v60, %v4297_v63  ;;  %v2068_v24 = vshll.u32 %v7669_v53, 16  ;;  %v2219_v60 = vld [vmem:[%s6654_s17 + $0x18] sm:$0xe] }
  0xd5   : > { %v2061_v47 = vrot.slane %v2059_v58, 4  ;;  %6077 = vmatprep.mubr.msk.bf16.mxu0 %vm511_vm3, %v5615_v15  ;;  %v5616_v5 = vcombine.low %v4294_v29, %v4298_v20  ;;  %v2073_v35 = vshrl.u32 %v1996_v1, 16  ;;  %v2076_v36 = vshll.u32 %v1996_v1, 16 }
  0xd6   : > { %v2064_v50 = vrot.slane %v2062_v28, 5  ;;  %v2070_v22 = vrot.slane %v2068_v24, 5  ;;  %v2082_v32 = vshll.u32 %v7679_v26, 16  ;;  %v2087_v39 = vshrl.u32 %v1998_v7, 16 }
  0xd7   : > { %5944 = vmatmul.mubr.msk.bf16.vlgmr.msra.gmra.mrb[0].mxu1 %vm511_vm3, %v5361_v8  ;;  %v2090_v17 = vshll.u32 %v1998_v7, 16  ;;  %v2075_v13 = vrot.slane %v2073_v35, 4  ;;  %v2078_v9 = vrot.slane %v2076_v36, 5  ;;  %v2096_v56 = vshll.u32 %v7689_v54, 16  ;;  %v5393_v7 = vld [vmem:[%s7965_s3 + $0x18] sm:$0x3] }
  0xd8   : > { %5952 = vmatpush3.bf16.msra.mxu1 %v2299_v41  ;;  %v2065_v44 = vor.u32 %v2064_v50, %v2061_v47  ;;  %v2084_v55 = vrot.slane %v2082_v32, 5  ;;  %v2089_v57 = vrot.slane %v2087_v39, 4  ;;  %v2101_v51 = vshrl.u32 %v2000_v38, 16  ;;  %v6423_v47 = vld [vmem:[%s7101_s12 + $0x30] ss:$8 sps:$4 sm:$0xff]  }
  0xd9   : > { %6078 = vmatmul.mubr.msk.bf16.gmra.mrb[4].mxu0 %vm511_vm3, %v5616_v5  ;;  %v2092_v6 = vrot.slane %v2090_v17, 5  ;;  %v2079_v41 = vor.u32 %v2078_v9, %v2075_v13  ;;  %v2098_v27 = vrot.slane %v2096_v56, 5  ;;  %v2104_v14 = vshll.u32 %v2000_v38, 16  ;;  %6333 = vmatprep.subr.msk.bf16.mxu1 %vm524_vm0, %v5393_v7  ;;  %v2220_v35 = vld [vmem:[%s6654_s17 + $0x20] sm:$0xe] }
  0xda   : > { %v2066_v34 = vrot.slane %v2065_v44, 4  ;;  %6083 = vmatprep.mubr.msk.bf16.mxu0 %vm511_vm3, %v6421_v59  ;;  %v2103_v4 = vrot.slane %v2101_v51, 4  ;;  %v2110_v25 = vshll.u32 %v7708_v11, 16  ;;  %v4675_v31 = vsel %vm524_vm0, %v5654_v40, 0  ;;  %v6424_v17 = vld [vmem:[%s7101_s12 + $0x40] ss:$8 sps:$4 sm:$0xff]  }
  0xdb   : > { %v2093_v18 = vor.u32 %v2092_v6, %v2089_v57  ;;  %v2080_v23 = vrot.slane %v2079_v41, 4  ;;  %v2106_v62 = vrot.slane %v2104_v14, 5  ;;  %v5368_v49 = vrot.slane %v2216_v19, 9  ;;  %v2223_v13 = vld [vmem:[%s6654_s17 + $0x38] sm:$0xe] }
  0xdc   : > { %v2071_v1 = vsel %vm6669_vm4, %v2066_v34, %v2070_v22  ;;  %v2112_v52 = vrot.slane %v2110_v25, 5  ;;  %v2242_v63 = vrot.slane %v7619_v16, 5  ;;  %v5369_v58 = vrot.slane %v2217_v21, 9  ;;  %v2222_v22 = vld [vmem:[%s6654_s17 + $0x30] sm:$0xe] }
  0xdd   : > { %v2094_v48 = vrot.slane %v2093_v18, 4  ;;  %v2085_v12 = vsel %vm6669_vm4, %v2080_v23, %v2084_v55  ;;  %v2107_v15 = vor.u32 %v2106_v62, %v2103_v4  ;;  %v2246_v29 = vrot.slane %v7629_v0, 5  ;;  %v5638_v9 = vld [vmem:[%s7101_s12 + $0x10] sm:$0xf]  ;;  %v7769_v6 = vld [vmem:[%s7101_s12 + $0x14] sm:$0x1] }
  0xde   : > { %v5370_v28 = vrot.slane %v2218_v30, 9  ;;  %v5362_v38 = vcombine.low %v2071_v1, %v2085_v12  ;;  %v2243_v16 = vsel %vm6769_vm7, %v5368_v49, %v2242_v63  ;;  %v2250_v20 = vrot.slane %v7637_v45, 5  ;;  %v5640_v19 = vld [vmem:[%s7101_s12 + $0x18] sm:$0xf]  ;;  %v7776_v34 = vld [vmem:[%s7101_s12 + $0x1c] sm:$0x1] }
  0xdf   : > { %v2099_v8 = vsel %vm6669_vm4, %v2094_v48, %v2098_v27  ;;  %v2108_v24 = vrot.slane %v2107_v15, 4  ;;  %v2247_v59 = vsel %vm6769_vm7, %v5369_v58, %v2246_v29  ;;  %v5371_v0 = vrot.slane %v2219_v60, 9  ;;  %v5679_v18 = vld [vmem:[%s7965_s3 + $0x34] sm:$0x3]  ;;  %v5642_v4 = vld [vmem:[%s7101_s12 + $0x20] sm:$0xf] }
  0xe0   : > { %v2254_v40 = vrot.slane %v7647_v2, 5  ;;  %v7741_v5 = vrot.slane %v2603_v37, 5  ;;  %v7745_v50 = vrot.slane %v2617_v10, 5  ;;  %5947 = vmatprep.mubr.msk.bf16.mxu1 %vm511_vm3, %v5362_v38  ;;  %v5377_v45 = vcombine.low %v2243_v16, %v2247_v59  ;;  %v2221_v37 = vld [vmem:[%s6654_s17 + $0x28] sm:$0xe] }
  0xe1   : > { %6084 = vmatmul.mubr.msk.bf16.vlgmr.msra.gmra.mrb[0].mxu0 %vm511_vm3, %v6422_v33  ;;  %v2258_v36 = vrot.slane %v7669_v53, 5  ;;  %v2113_v46 = vsel %vm6669_vm4, %v2108_v24, %v2112_v52  ;;  %v2251_v42 = vsel %vm6769_vm7, %v5370_v28, %v2250_v20  ;;  %v5372_v10 = vrot.slane %v2220_v35, 9  ;;  %v7787_v1 = vld [vmem:[%s7101_s12 + $0x24] sm:$0x1]  ;;  %v5644_v49 = vld [vmem:[%s7101_s12 + $0x28] sm:$0xf] }
  0xe2   : > { %6092 = vmatpush3.bf16.msra.mxu0 %v4675_v31  ;;  %6087 = vmatprep.mubr.msk.bf16.mxu0 %vm511_vm3, %v6423_v47  ;;  %v2262_v2 = vrot.slane %v7679_v26, 5  ;;  %v5363_v32 = vcombine.low %v2099_v8, %v2113_v46  ;;  %v2255_v53 = vsel %vm6769_vm7, %v5371_v0, %v2254_v40  ;;  %v2418_v39 = vsel %vm524_vm0, %v5393_v7, 0  ;;  %v7797_v63 = vld [vmem:[%s7101_s12 + $0x2c] sm:$0x1] }
  0xe3   : > { %v5373_v44 = vrot.slane %v2221_v37, 9  ;;  %v2259_v56 = vsel %vm6769_vm7, %v5372_v10, %v2258_v36  ;;  %v5374_v55 = vrot.slane %v2222_v22, 9  ;;  %v2266_v26 = vrot.slane %v7689_v54, 5  ;;  %6348 = vmatprep.subr.msk.bf16.mxu0 %vm524_vm0, %v5679_v18  ;;  %v5646_v10 = vld [vmem:[%s7101_s12 + $0x30] sm:$0xf] }
  0xe4   : > { %v5375_v57 = vrot.slane %v2223_v13, 9  ;;  %5948 = vmatmul.mubr.msk.bf16.gmra.mrb[4].mxu1 %vm511_vm3, %v5363_v32  ;;  %v4537_v41 = vshrl.u32 %v5638_v9, 16  ;;  %v4540_v27 = vshll.u32 %v5638_v9, 16  ;;  %v5378_v14 = vcombine.low %v2251_v42, %v2255_v53  ;;  %v6429_v53 = vld [vmem:[%s7965_s3 + $0x1a] sm:$0x3] }
  0xe5   : > { %v2263_v51 = vsel %vm6769_vm7, %v5373_v44, %v2262_v2  ;;  %5953 = vmatprep.mubr.msk.bf16.mxu1 %vm511_vm3, %v5377_v45  ;;  %v2270_v54 = vrot.slane %v7708_v11, 5  ;;  %v4546_v21 = vshll.u32 %v7769_v6, 16  ;;  %v4551_v30 = vshrl.u32 %v5640_v19, 16  ;;  %v6425_v9 = vld [vmem:[%s6654_s17 + $0x8] ss:$8 sps:$4 sm:$0xff]  }
  0xe6   : > { %v5379_v25 = vcombine.low %v2259_v56, %v2263_v51  ;;  %v4539_v33 = vrot.slane %v4537_v41, 4  ;;  %v4542_v31 = vrot.slane %v4540_v27, 5  ;;  %v7791_v23 = vsel %vm6769_vm7, %v5374_v55, %v2266_v26  ;;  %v7822_v56 = vld [vmem:[%s7101_s12 + $0x3c] sm:$0x1] }
  0xe7   : > { %v4554_v11 = vshll.u32 %v5640_v19, 16  ;;  %v4560_v62 = vshll.u32 %v7776_v34, 16  ;;  %v4565_v60 = vshrl.u32 %v5642_v4, 16  ;;  %v4553_v52 = vrot.slane %v4551_v30, 4 }
  0xe8   : > { %v4543_v48 = vor.u32 %v4542_v31, %v4539_v33  ;;  %v4568_v58 = vshll.u32 %v5642_v4, 16  ;;  %v4574_v7 = vshll.u32 %v7787_v1, 16  ;;  %v4548_v12 = vrot.slane %v4546_v21, 5  ;;  %v5652_v33 = vld [vmem:[%s7101_s12 + $0x48] sm:$0xf] }
  0xe9   : > { %6088 = vmatmul.mubr.msk.bf16.gmra.mrb[4].mxu0 %vm511_vm3, %v6424_v17  ;;  %v4556_v15 = vrot.slane %v4554_v11, 5  ;;  %v4567_v29 = vrot.slane %v4565_v60, 4  ;;  %v4579_v28 = vshrl.u32 %v5644_v49, 16  ;;  %v2271_v38 = vsel %vm6769_vm7, %v5375_v57, %v2270_v54  ;;  %v5648_v17 = vld [vmem:[%s7101_s12 + $0x38] sm:$0xf] }
  0xea   : > { %v4544_v8 = vrot.slane %v4543_v48, 4  ;;  %v4570_v16 = vrot.slane %v4568_v58, 5  ;;  %v4582_v20 = vshll.u32 %v5644_v49, 16  ;;  %v4562_v24 = vrot.slane %v4560_v62, 5  ;;  %v7829_v54 = vld [vmem:[%s7101_s12 + $0x44] sm:$0x1] }
  0xeb   : > { %v4557_v47 = vor.u32 %v4556_v15, %v4553_v52  ;;  %v4581_v59 = vrot.slane %v4579_v28, 4  ;;  %v4588_v0 = vshll.u32 %v7797_v63, 16  ;;  %v4576_v45 = vrot.slane %v4574_v7, 5 }
  0xec   : > { %5954 = vmatmul.mubr.msk.bf16.vlgmr.msra.gmra.mrb[0].mxu1 %vm511_vm3, %v5378_v14  ;;  %v4571_v40 = vor.u32 %v4570_v16, %v4567_v29  ;;  %v4584_v35 = vrot.slane %v4582_v20, 5  ;;  %v4549_v36 = vsel %vm6669_vm4, %v4544_v8, %v4548_v12  ;;  %v4833_v37 = vsel %vm524_vm0, %v5679_v18, 0  ;;  %v5650_v14 = vld [vmem:[%s7101_s12 + $0x40] sm:$0xf] }
  0xed   : > { %5962 = vmatpush3.bf16.msra.mxu1 %v2418_v39  ;;  %5957 = vmatprep.mubr.msk.bf16.mxu1 %vm511_vm3, %v5379_v25  ;;  %v4558_v46 = vrot.slane %v4557_v47, 4  ;;  %v4590_v42 = vrot.slane %v4588_v0, 5  ;;  %v5380_v2 = vcombine.low %v7791_v23, %v2271_v38  ;;  %v7815_v39 = vld [vmem:[%s7101_s12 + $0x34] sm:$0x1]  ;;  %v4593_v44 = vshrl.u32 %v5646_v10, 16 }
  0xee   : > { %v4572_v22 = vrot.slane %v4571_v40, 4  ;;  %v4585_v32 = vor.u32 %v4584_v35, %v4581_v59  ;;  %6335 = vmatprep.subr.msk.bf16.mxu1 %vm524_vm0, %v6429_v53  ;;  %v4596_v55 = vshll.u32 %v5646_v10, 16  ;;  %v4602_v26 = vshll.u32 %v7815_v39, 16  ;;  %v7837_v23 = vld [vmem:[%s7101_s12 + $0x4c] sm:$0x1] }
  0xef   : > { %v4563_v13 = vsel %vm6669_vm4, %v4558_v46, %v4562_v24  ;;  %v4607_v57 = vshrl.u32 %v5648_v17, 16  ;;  %v4595_v27 = vrot.slane %v4593_v44, 4  ;;  %v4610_v25 = vshll.u32 %v5648_v17, 16  ;;  %v6426_v16 = vld [vmem:[%s6654_s17 + $0x18] ss:$8 sps:$4 sm:$0xff]  }
  0xf0   : > { %v5655_v51 = vcombine.low %v4549_v36, %v4563_v13  ;;  %v4577_v19 = vsel %vm6669_vm4, %v4572_v22, %v4576_v45  ;;  %v4586_v41 = vrot.slane %v4585_v32, 4  ;;  %v4598_v21 = vrot.slane %v4596_v55, 5  ;;  %v6427_v45 = vld [vmem:[%s6654_s17 + $0x28] ss:$8 sps:$4 sm:$0xff]   ;;  %v5664_v36 = vld [vmem:[%s7101_s12 + $0x18] sm:$0xe] }
  0xf1   : > { %v4604_v18 = vrot.slane %v4602_v26, 5  ;;  %v4609_v4 = vrot.slane %v4607_v57, 4  ;;  %v4616_v30 = vshll.u32 %v7822_v56, 16  ;;  %v4621_v11 = vshrl.u32 %v5650_v14, 16  ;;  %v5663_v35 = vld [vmem:[%s7101_s12 + $0x10] sm:$0xe] }
  0xf2   : > { %6093 = vmatprep.mubr.msk.bf16.mxu0 %vm511_vm3, %v5655_v51  ;;  %v4591_v31 = vsel %vm6669_vm4, %v4586_v41, %v4590_v42  ;;  %v4624_v62 = vshll.u32 %v5650_v14, 16  ;;  %v4599_v60 = vor.u32 %v4598_v21, %v4595_v27  ;;  %v4612_v48 = vrot.slane %v4610_v25, 5  ;;  %v5666_v17 = vld [vmem:[%s7101_s12 + $0x28] sm:$0xe]  ;;  %v5412_v51 = vld [vmem:[%s6654_s17 + $0x30] sm:$0xf] }
  0xf3   : > { %v5656_v49 = vcombine.low %v4577_v19, %v4591_v31  ;;  %v4630_v52 = vshll.u32 %v7829_v54, 16  ;;  %v4623_v58 = vrot.slane %v4621_v11, 4  ;;  %v4635_v12 = vshrl.u32 %v5652_v33, 16  ;;  %v5410_v13 = vld [vmem:[%s6654_s17 + $0x28] sm:$0xf] }
  0xf4   : > { %5958 = vmatmul.mubr.msk.bf16.gmra.mrb[4].mxu1 %vm511_vm3, %v5380_v2  ;;  %v4626_v7 = vrot.slane %v4624_v62, 5  ;;  %v4776_v15 = vrot.slane %v7769_v6, 5  ;;  %v4600_v29 = vrot.slane %v4599_v60, 4  ;;  %v4613_v28 = vor.u32 %v4612_v48, %v4609_v4  ;;  %v5665_v2 = vld [vmem:[%s7101_s12 + $0x20] sm:$0xe] }
  0xf5   : > { %6094 = vmatmul.mubr.msk.bf16.vlgmr.msra.gmra.mrb[0].mxu0 %vm511_vm3, %v5656_v49  ;;  %5963 = vmatprep.mubr.msk.bf16.mxu1 %vm511_vm3, %v6425_v9  ;;  %v4618_v38 = vrot.slane %v4616_v30, 5  ;;  %v4638_v8 = vshll.u32 %v5652_v33, 16  ;;  %v4632_v47 = vrot.slane %v4630_v52, 5  ;;  %v4637_v24 = vrot.slane %v4635_v12, 4  ;;  %v6430_v25 = vld [vmem:[%s6654_s17 + $0x2c] sm:$0x1] }
  0xf6   : > { %6102 = vmatpush3.bf16.msra.mxu0 %v4833_v37  ;;  %v4627_v20 = vor.u32 %v4626_v7, %v4623_v58  ;;  %v4644_v6 = vshll.u32 %v7837_v23, 16  ;;  %v4605_v59 = vsel %vm6669_vm4, %v4600_v29, %v4604_v18  ;;  %v4614_v0 = vrot.slane %v4613_v28, 4  ;;  %v5414_v30 = vld [vmem:[%s6654_s17 + $0x38] sm:$0xf]  ;;  %v5416_v11 = vld [vmem:[%s6654_s17 + $0x40] sm:$0xf] }
  0xf7   : > { %v4640_v40 = vrot.slane %v4638_v8, 5  ;;  %v5671_v37 = vrot.slane %v5663_v35, 9  ;;  %v5672_v10 = vrot.slane %v5664_v36, 9  ;;  %v4780_v53 = vrot.slane %v7776_v34, 5  ;;  %v6428_v52 = vld [vmem:[%s6654_s17 + $0x38] ss:$8 sps:$4 sm:$0xff]  }
  0xf8   : > { %v4628_v46 = vrot.slane %v4627_v20, 4  ;;  %v4646_v42 = vrot.slane %v4644_v6, 5  ;;  %v4619_v22 = vsel %vm6669_vm4, %v4614_v0, %v4618_v38  ;;  %v5673_v44 = vrot.slane %v5665_v2, 9  ;;  %v5668_v20 = vld [vmem:[%s7101_s12 + $0x38] sm:$0xe] }
  0xf9   : > { %v4641_v32 = vor.u32 %v4640_v40, %v4637_v24  ;;  %v5657_v9 = vcombine.low %v4605_v59, %v4619_v22  ;;  %v4777_v26 = vsel %vm6769_vm7, %v5671_v37, %v4776_v15  ;;  %v4784_v57 = vrot.slane %v7787_v1, 5  ;;  %v6431_v15 = vld [vmem:[%s6654_s17 + $0x34] sm:$0x1]  ;;  %v5669_v0 = vld [vmem:[%s7101_s12 + $0x40] sm:$0xe]  ;;  %s5177_s17 = sshll.u32 %s7993_s18, 3 }
  0xfa   : > { %v4633_v55 = vsel %vm6669_vm4, %v4628_v46, %v4632_v47  ;;  %v4781_v41 = vsel %vm6769_vm7, %v5672_v10, %v4780_v53  ;;  %v5674_v34 = vrot.slane %v5666_v17, 9  ;;  %v4788_v27 = vrot.slane %v7797_v63, 5  ;;  %v5670_v2 = vld [vmem:[%s7101_s12 + $0x48] sm:$0xe] }
  0xfb   : > { %v4642_v19 = vrot.slane %v4641_v32, 4  ;;  %6097 = vmatprep.mubr.msk.bf16.mxu0 %vm511_vm3, %v5657_v9  ;;  %v5680_v14 = vcombine.low %v4777_v26, %v4781_v41  ;;  %v4785_v21 = vsel %vm6769_vm7, %v5673_v44, %v4784_v57  ;;  %v2566_v1 = vshrl.u32 %v5410_v13, 16 }
  0xfc   : > { %5964 = vmatmul.mubr.msk.bf16.vlgmr.msra.gmra.mrb[0].mxu1 %vm511_vm3, %v6426_v16  ;;  %v2569_v18 = vshll.u32 %v5410_v13, 16  ;;  %v4789_v63 = vsel %vm6769_vm7, %v5674_v34, %v4788_v27  ;;  %v2575_v33 = vshll.u32 %v6430_v25, 16  ;;  %v2580_v31 = vshrl.u32 %v5412_v51, 16 }
  0xfd   : > { %6112 = vmatpush3.bf16.msra.mxu1 %v6544_v3  ;;  %v4647_v4 = vsel %vm6669_vm4, %v4642_v19, %v4646_v42  ;;  %5967 = vmatprep.mubr.msk.bf16.mxu1 %vm511_vm3, %v6427_v45  ;;  %v5681_v49 = vcombine.low %v4785_v21, %v4789_v63  ;;  %v2568_v60 = vrot.slane %v2566_v1, 4  ;;  %v5667_v3 = vld [vmem:[%s7101_s12 + $0x30] sm:$0xe]  ;;  %v2583_v12 = vshll.u32 %v5412_v51, 16  ;;  %s5178_s12 = sshll.u32 %s7987_s19, 6 }
  0xfe   : > { %v5658_v62 = vcombine.low %v4633_v55, %v4647_v4  ;;  %v2571_v48 = vrot.slane %v2569_v18, 5  ;;  %v2577_v58 = vrot.slane %v2575_v33, 5  ;;  %v2582_v7 = vrot.slane %v2580_v31, 4  ;;  %s353_s8 = sadd.s32 %s5178_s12, %s5177_s17 }
  0xff   : > { %v2589_v29 = vshll.u32 %v6431_v15, 16  ;;  %v2594_v38 = vshrl.u32 %v5414_v30, 16  ;;  %v2597_v8 = vshll.u32 %v5414_v30, 16  ;;  %v2608_v16 = vshrl.u32 %v5416_v11, 16  ;;  %s5179_s14 = sshll.u32 %s353_s8, 2 }
 0x100   : > { %6098 = vmatmul.mubr.msk.bf16.gmra.mrb[4].mxu0 %vm511_vm3, %v5658_v62  ;;  %v2572_v28 = vor.u32 %v2571_v48, %v2568_v60  ;;  %v2585_v47 = vrot.slane %v2583_v12, 5  ;;  %v2611_v6 = vshll.u32 %v5416_v11, 16  ;;  %v5675_v59 = vrot.slane %v5667_v3, 9  ;;  %s7924_s25 = scalar_lea.vmem %s7966_s4, %s5179_s14 }
 0x101   : > { %6103 = vmatprep.mubr.msk.bf16.mxu0 %vm511_vm3, %v5680_v14  ;;  %v2591_v24 = vrot.slane %v2589_v29, 5  ;;  %v2596_v45 = vrot.slane %v2594_v38, 4  ;;  %v2599_v35 = vrot.slane %v2597_v8, 5  ;;  %v2610_v36 = vrot.slane %v2608_v16, 4 }
 0x102   : > { %v2573_v40 = vrot.slane %v2572_v28, 4  ;;  %v2586_v46 = vor.u32 %v2585_v47, %v2582_v7  ;;  %v2613_v42 = vrot.slane %v2611_v6, 5  ;;  %v4792_v37 = vrot.slane %v7815_v39, 5 }
 0x103   : > { %v5676_v10 = vrot.slane %v5668_v20, 9  ;;  %v2600_v32 = vor.u32 %v2599_v35, %v2596_v45  ;;  %v4796_v53 = vrot.slane %v7822_v56, 5  ;;  %v5677_v17 = vrot.slane %v5669_v0, 9 }
 0x104   : > { %5968 = vmatmul.mubr.msk.bf16.gmra.mrb[4].mxu1 %vm511_vm3, %v6428_v52  ;;  %v2578_v22 = vsel %vm6669_vm4, %v2573_v40, %v2577_v58  ;;  %v2587_v44 = vrot.slane %v2586_v46, 4  ;;  %v2614_v13 = vor.u32 %v2613_v42, %v2610_v36  ;;  %v4793_v9 = vsel %vm6769_vm7, %v5675_v59, %v4792_v37 }
 0x105   : > { %v4800_v55 = vrot.slane %v7829_v54, 5  ;;  %v2601_v26 = vrot.slane %v2600_v32, 4  ;;  %v4797_v39 = vsel %vm6769_vm7, %v5676_v10, %v4796_v53  ;;  %v5678_v57 = vrot.slane %v5670_v2, 9 }
 0x106   : > { %v4804_v51 = vrot.slane %v7837_v23, 5  ;;  %v2592_v19 = vsel %vm6669_vm4, %v2587_v44, %v2591_v24  ;;  %v2615_v56 = vrot.slane %v2614_v13, 4  ;;  %v5682_v41 = vcombine.low %v4793_v9, %v4797_v39 }
 0x107   : > { %v5421_v34 = vcombine.low %v2578_v22, %v2592_v19  ;;  %v2606_v54 = vsel %vm6669_vm4, %v2601_v26, %v7741_v5  ;;  %v4801_v23 = vsel %vm6769_vm7, %v5677_v17, %v4800_v55 }
 0x108   : > { %6104 = vmatmul.mubr.msk.bf16.vlgmr.msra.gmra.mrb[0].mxu0 %vm511_vm3, %v5681_v49  ;;  %v2620_v27 = vsel %vm6669_vm4, %v2615_v56, %v7745_v50  ;;  %v4805_v14 = vsel %vm6769_vm7, %v5678_v57, %v4804_v51 }
 0x109   : > { %6107 = vmatprep.mubr.msk.bf16.mxu0 %vm511_vm3, %v5682_v41  ;;  %5977 = vmatprep.mubr.msk.bf16.mxu1 %vm511_vm3, %v5421_v34  ;;  %v5422_v21 = vcombine.low %v2606_v54, %v2620_v27  ;;  %v5683_v1 = vcombine.low %v4801_v23, %v4805_v14 }
 0x110   : > { %5978 = vmatmul.mubr.msk.bf16.vlgmr.msra.gmra.mrb[4].mxu1 %vm511_vm3, %v5422_v21  ;;  %6108 = vmatmul.mubr.msk.bf16.gmra.mrb[4].mxu0 %vm511_vm3, %v5683_v1 }
 0x1cf   : > { %v5965_v43 = vpop.f32.mrb[0].mxu1 }
 0x1d0   : > { %v2454_v5 = vpop.f32.mrb[1].mxu1 }
 0x1d1   : > { %v5966_v50 = vpop.f32.mrb[2].mxu1 }
 0x1d2   : > { %v2457_v18 = vpop.f32.mrb[3].mxu1 }
 0x1db   : > { %v6105_v61 = vpop.f32.mrb[0].mxu0 }
 0x1dc   : > { %v6113_v4 = vadd.f32 %v6105_v61, %v5965_v43  ;;  %v4869_v63 = vpop.f32.mrb[1].mxu0 }
 0x1dd   : > { %v6114_v25 = vadd.f32 %v4869_v63, %v2454_v5  ;;  %v6106_v33 = vpop.f32.mrb[2].mxu0 }
 0x1de   : > { %v5700_v31 = vpack.c.bf16 %v6113_v4, %v6113_v4  ;;  %v6115_v30 = vadd.f32 %v6106_v33, %v5966_v50  ;;  %v4872_v11 = vpop.f32.mrb[3].mxu0  ;;  %v4924_v7 = vmul.f32 %v6113_v4, %v6113_v4 }
 0x1df   : > { %v5698_v62 = vpack.c.bf16 %v6114_v25, %v6114_v25  ;;  %v6116_v49 = vadd.f32 %v4872_v11, %v2457_v18  ;;  %v4922_v48 = vmul.f32 %v6114_v25, %v6114_v25 }
 0x1e0   : > { %4979 = vst.msk [vmem:[%s7924_s25 + $0x8] sm:$0xf] %vm4976_vm8, %v5700_v31  ;;  %v5701_v60 = vpack.c.bf16 %v6115_v30, %v6115_v30  ;;  %v4925_v20 = vmul.f32 %v6115_v30, %v6115_v30 }
 0x1e1   : > { %4977 = vst.msk [vmem:[%s7924_s25] sm:$0xf] %vm4976_vm8, %v5698_v62  ;;  %v4908_v3 = vadd.f32 %v6116_v49, %v6114_v25  ;;  %v4923_v52 = vmul.f32 %v6116_v49, %v6116_v49  ;;  %v5699_v58 = vpack.c.bf16 %v6116_v49, %v6116_v49 }
 0x1e2   : > { %4980 = vst.msk [vmem:[%s7924_s25 + $0xc] sm:$0xf] %vm4976_vm8, %v5701_v60 }
 0x1e3   : > { %v4909_v12 = vadd.f32 %v6113_v4, %v4908_v3  ;;  %v4930_v15 = vadd.f32 %v4923_v52, %v4922_v48  ;;  %4978 = vst.msk [vmem:[%s7924_s25 + $0x4] sm:$0xf] %vm4976_vm8, %v5699_v58  ;;  %v5979_v29 = vpop.f32.mrb[4].mxu1  ;;  %v6109_v28 = vpop.f32.mrb[4].mxu0 }
 0x1e4   : > { %v2700_v38 = vpop.f32.mrb[5].mxu1  ;;  %v6117_v8 = vadd.f32 %v6109_v28, %v5979_v29  ;;  %v4885_v16 = vpop.f32.mrb[5].mxu0 }
 0x1e5   : > { %v4931_v47 = vadd.f32 %v4930_v15, %v4924_v7  ;;  %v5980_v24 = vpop.f32.mrb[6].mxu1  ;;  %v6118_v6 = vadd.f32 %v4885_v16, %v2700_v38  ;;  %v4910_v59 = vadd.f32 %v6115_v30, %v4909_v12  ;;  %v6110_v0 = vpop.f32.mrb[6].mxu0 }
 0x1e6   : > { %v5704_v40 = vpack.c.bf16 %v6117_v8, %v6117_v8  ;;  %v2703_v45 = vpop.f32.mrb[7].mxu1  ;;  %v6119_v35 = vadd.f32 %v6110_v0, %v5980_v24  ;;  %v4888_v36 = vpop.f32.mrb[7].mxu0  ;;  %v4928_v13 = vmul.f32 %v6117_v8, %v6117_v8 }
 0x1e7   : > { %v4911_v46 = vadd.f32 %v6118_v6, %v4910_v59  ;;  %v4926_v42 = vmul.f32 %v6118_v6, %v6118_v6  ;;  %v4932_v37 = vadd.f32 %v4931_v47, %v4925_v20  ;;  %v5702_v10 = vpack.c.bf16 %v6118_v6, %v6118_v6 }
 0x1e8   : > { %4983 = vst.msk [vmem:[%s7924_s25 + $0x18] sm:$0xf] %vm4976_vm8, %v5704_v40  ;;  %v5705_v2 = vpack.c.bf16 %v6119_v35, %v6119_v35  ;;  %v6120_v22 = vadd.f32 %v4888_v36, %v2703_v45  ;;  %v4929_v26 = vmul.f32 %v6119_v35, %v6119_v35 }
 0x1e9   : > { %v4933_v32 = vadd.f32 %v4932_v37, %v4926_v42  ;;  %4981 = vst.msk [vmem:[%s7924_s25 + $0x10] sm:$0xf] %vm4976_vm8, %v5702_v10 }
 0x1ea   : > { %4984 = vst.msk [vmem:[%s7924_s25 + $0x1c] sm:$0xf] %vm4976_vm8, %v5705_v2  ;;  %v4912_v53 = vadd.f32 %v6120_v22, %v4911_v46  ;;  %v4927_v17 = vmul.f32 %v6120_v22, %v6120_v22  ;;  %v5703_v44 = vpack.c.bf16 %v6120_v22, %v6120_v22 }
 0x1ec   : > { %v4913_v9 = vadd.f32 %v6117_v8, %v4912_v53  ;;  %v4934_v55 = vadd.f32 %v4933_v32, %v4927_v17  ;;  %4982 = vst.msk [vmem:[%s7924_s25 + $0x14] sm:$0xf] %vm4976_vm8, %v5703_v44 }
 0x1ee   : > { %v4914_v39 = vadd.f32 %v6119_v35, %v4913_v9  ;;  %v4935_v57 = vadd.f32 %v4934_v55, %v4928_v13 }
 0x1f0   : > { %v4915_v51 = vrot.slane %v4914_v39, 4  ;;  %v4936_v19 = vadd.f32 %v4935_v57, %v4929_v26 }
 0x1f2   : > { %v4916_v56 = vadd.f32 %v4915_v51, %v4914_v39  ;;  %v4937_v41 = vrot.slane %v4936_v19, 4 }
 0x1f4   : > { %v4917_v34 = vrot.slane %v4916_v56, 2  ;;  %v4938_v54 = vadd.f32 %v4937_v41, %v4936_v19 }
 0x1f6   : > { %v4918_v27 = vadd.f32 %v4917_v34, %v4916_v56  ;;  %v4939_v23 = vrot.slane %v4938_v54, 2 }
 0x1f8   : > { %v4919_v14 = vrot.slane %v4918_v27, 1  ;;  %v4940_v21 = vadd.f32 %v4939_v23, %v4938_v54 }
 0x1fa   : > { %v4920_v1 = vadd.f32 %v4919_v14, %v4918_v27  ;;  %v4941_v43 = vrot.slane %v4940_v21, 1 }
 0x1fc   : > { %4921 = vst [vmem:[%s363_s10] sm:$0x1] %v4920_v1  ;;  %v4942_v5 = vadd.f32 %v4941_v43, %v4940_v21 }
 0x1fe   : > { %4943 = vst [vmem:[%s363_s10 + $0x1] sm:$0x1] %v4942_v5 }
 0x1ff PF: > { %s16_s22 = sadd.s32 1, %s6470_s22   ;;  %s7976_s18 = smov %s6462_s20 }
 0x200   : > { %p13_p10 = scmp.ge.s32.totalorder %s16_s22, 18   ;;  %s7977_s19 = smov %s6466_s21 }
 0x201   : > { %s7978_s20 = smov %s7981_s23  ;;  %s7979_s21 = smov %s7985_s24 }
 0x202   :  { %15 = sbr.rel (!%p13_p10) target bundleno = 3 (0x3), region = 116 }

// kernel: conv_block_up.6
= control target key start
LH: loop header
LB: loop body
LE: loop exit
PB: predicated region body
PF: predicated region fallthrough
CT: control target
= control target key end

     0   :  { %s6502_s18 = smov 0   ;;  %s6504_s19 = smov 0   ;;  %s7962_s0 = inlined_call_operand.vmem [shape: bf16[2,10,10,10,8], index: 0, kind: input, shape index: {}, may-alias: {0,1,2}]   ;;  %s7963_s1 = inlined_call_operand.vmem [shape: bf16[2,10,10,10,8], index: 1, kind: input, shape index: {}, may-alias: {0,1,2}]   ;;  %s7964_s2 = inlined_call_operand.vmem [shape: bf16[2,10,10,10,8], index: 2, kind: input, shape index: {}, may-alias: {0,1,2}]   ;;  %s7965_s3 = inlined_call_operand.vmem [shape: bf16[27,8,128], index: 3, kind: input, shape index: {}]   ;;  %s7966_s4 = inlined_call_operand.vmem [shape: bf16[2,8,64,8], index: 4, kind: output, shape index: {0}]   ;;  %s7967_s5 = inlined_call_operand.vmem [shape: f32[2,8,2,128], index: 5, kind: output, shape index: {1}]  }
   0x1   :  { %s6506_s20 = smov 0   ;;  %s6508_s21 = smov 0  }
   0x2   :  { %s6510_s22 = smov 0  }
   0x3 LB: > { %s25_s23 = sadd.s32 1, %s6462_s20  ;;  %s28_s24 = sadd.s32 1, %s6466_s21  ;;  %s6470_s22 = sphi %s6510_s22, %s16_s22   ;;  %s6466_s21 = sphi %s6508_s21, %s7979_s21   ;;  %s6462_s20 = sphi %s6506_s20, %s7978_s20   ;;  %s6458_s19 = sphi %s6504_s19, %s7977_s19   ;;  %s6454_s18 = sphi %s6502_s18, %s7976_s18  }
   0x4   : > { %p26_p0 = scmp.ge.s32.totalorder %s25_s23, 8  ;;  %p5173_p1 = scmp.ge.s32.totalorder %s6470_s22, 1 }
   0x5   : > { %p252_p2 = scmp.lt.s32.totalorder %s6470_s22, 17 }
   0x6   : > { %s7981_s23 = smov (%p26_p0, %s25_s23), 0  ;;  %s7983_s24 = smov (!%p26_p0, %s28_s24), %s6466_s21 }
   0x7   : > { %p253_p3 = pnand %p5173_p1, %p252_p2  ;;  %p30_p4 = scmp.ge.s32.totalorder %s7983_s24, 2 }
   0x8   : > { %v5182_v0 = vld [vmem:[%s7965_s3 + $0x4] sm:$0xf] (!%p253_p3)  ;;  %vm524_vm0 = vcmask (!%p253_p3), 1043456   ;;  %v5418_v1 = vld [vmem:[%s7965_s3 + $0x34] sm:$0xf] (!%p253_p3)  ;;  %p316_p5 = scmp.lt.s32.totalorder (!%p253_p3), %s6458_s19, 1 }
   0x9   : > { %s7985_s24 = smov (%p30_p4, %s7983_s24), 0  ;;  %256 = sbr.rel (%p253_p3) target bundleno = 511 (0x1ff), region = 36 }
   0xa   : > { %6321 = vmatprep.subr.msk.bf16.mxu1 (!%p253_p3), %vm524_vm0, %v5182_v0  ;;  %6334 = vmatprep.subr.msk.bf16.mxu0 (!%p253_p3), %vm524_vm0, %v5418_v1  ;;  %v526_v2 = vsel (!%p253_p3), %vm524_vm0, %v5182_v0, 0  ;;  %v6544_v3 = vsel (!%p253_p3), %vm524_vm0, %v5418_v1, 0  ;;  %p318_p6 = scmp.lt.s32.totalorder (!%p253_p3), %s6454_s18, 9  ;;  %s325_s29 = sadd.s32 (!%p253_p3), 1, %s6454_s18  ;;  %v373_v4 = vld [vmem:[%s7965_s3] sm:$0xf] (!%p253_p3) }
   0xb   : > { %5842 = vmatpush3.bf16.msra.mxu1 (!%p253_p3), %v526_v2  ;;  %5972 = vmatpush3.bf16.msra.mxu0 (!%p253_p3), %v6544_v3  ;;  %v5443_v5 = vld [vmem:[%s7965_s3 + $0x38] sm:$0xf] (!%p253_p3)  ;;  %p328_p7 = scmp.lt.s32.totalorder (!%p253_p3), %s325_s29, 9  ;;  %v6566_v6 = vld [vmem:[%s7965_s3 + $0x3c] sm:$0xf] (!%p253_p3)  ;;  %v6580_v9 = vsel (!%p253_p3), %vm524_vm0, %v373_v4, 0 }
   0xc   : > { %6322 = vmatprep.subr.msk.bf16.mxu1 (!%p253_p3), %vm524_vm0, %v373_v4  ;;  %6336 = vmatprep.subr.msk.bf16.mxu0 (!%p253_p3), %vm524_vm0, %v5443_v5  ;;  %v6571_v7 = vld [vmem:[%s7965_s3 + $0x8] sm:$0xf] (!%p253_p3)  ;;  %v6576_v8 = vld [vmem:[%s7965_s3 + $0x40] sm:$0xf] (!%p253_p3)  ;;  %vm382_vm1 = vsmask.f32 (!%p253_p3), 3328 }
   0xd   : > { %vm383_vm2 = vsmask.f32 (!%p253_p3), 7440  ;;  %v6583_v10 = vsel (!%p253_p3), %vm524_vm0, %v5443_v5, 0  ;;  %v6587_v11 = vsel (!%p253_p3), %vm524_vm0, %v6566_v6, 0  ;;  %v6592_v12 = vld [vmem:[%s7965_s3 + $0xc] sm:$0xf] (!%p253_p3) }
   0xe   : > { %v6601_v13 = vsel (!%p253_p3), %vm524_vm0, %v6571_v7, 0  ;;  %v6605_v14 = vsel (!%p253_p3), %vm524_vm0, %v6576_v8, 0  ;;  %v6610_v15 = vld [vmem:[%s7965_s3 + $0x44] sm:$0xf] (!%p253_p3)  ;;  %v6615_v16 = vld [vmem:[%s7965_s3 + $0x10] sm:$0xf] (!%p253_p3)  ;;  %vm6669_vm4 = vmor (!%p253_p3), %vm382_vm1, %vm383_vm2 }
   0xf   : > { %vm511_vm3 = vcmask (!%p253_p3), 64512   ;;  %v6641_v28 = vsel (!%p253_p3), %vm524_vm0, %v6592_v12, 0  ;;  %v6645_v31 = vsel (!%p253_p3), %vm524_vm0, %v6610_v15, 0  ;;  %v6649_v32 = vsel (!%p253_p3), %vm524_vm0, %v6615_v16, 0  ;;  %p349_p9 = scmp.lt.s32.totalorder (!%p253_p3), %s6454_s18, 7 }
  0x10   : > { %s7987_s19 = smov (!%p316_p5, %s6458_s19), 1  ;;  %s7989_s29 = smov (!%p328_p7, %s325_s29), 9  ;;  %vm717_vm5 = vcmask 1042432   ;;  %vm718_vm6 = vcmask 1046532   ;;  %vm4976_vm8 = vcmask 60416  }
  0x11   : > { %s319_s7 = scalar_select %p318_p6, %s6454_s18, 9  ;;  %vm6769_vm7 = vmor %vm717_vm5, %vm718_vm6 }
  0x12   : > { %s6560_s10 = smul.u32 200, %s7987_s19 }
  0x13   : > { %s6349_s11 = smul.u32 20, %s319_s7 }
  0x14   : > { %s6351_s27 = smul.u32 20, %s7989_s29 }
  0x15   : > { %s322_s25 = sadd.s32 %s6560_s10, %s6349_s11 }
  0x16   : > { %s5174_s26 = sshll.u32 %s322_s25, 2  ;;  %s332_s13 = sadd.s32 %s6351_s27, %s6560_s10 }
  0x17   : > { %s6597_s8 = scalar_lea.vmem %s7962_s0, %s5174_s26  ;;  %s5175_s14 = sshll.u32 %s332_s13, 2 }
  0x18   : > { %v6619_v17 = vld [vmem:[%s6597_s8] sm:$0xf]  ;;  %v6622_v18 = vld [vmem:[%s6597_s8 + $0x8] sm:$0xf]  ;;  %v6625_v19 = vld [vmem:[%s6597_s8 + $0x4] sm:$0x1]  ;;  %s6654_s17 = scalar_lea.vmem %s7963_s1, %s5175_s14 }
  0x19   : > { %v6628_v20 = vld [vmem:[%s6597_s8 + $0xc] sm:$0x1]  ;;  %v386_v21 = vshrl.u32 %v6619_v17, 16  ;;  %v389_v22 = vshll.u32 %v6619_v17, 16  ;;  %v395_v23 = vshll.u32 %v6625_v19, 16  ;;  %v400_v24 = vshrl.u32 %v6622_v18, 16 }
  0x1a   : > { %v403_v25 = vshll.u32 %v6622_v18, 16  ;;  %v409_v26 = vshll.u32 %v6628_v20, 16  ;;  %v6637_v27 = vld [vmem:[%s6597_s8 + $0x10] sm:$0xf]  ;;  %v6657_v36 = vld [vmem:[%s6597_s8 + $0x18] sm:$0xf] }
  0x1b   : > { %v388_v29 = vrot.slane %v386_v21, 4  ;;  %v391_v30 = vrot.slane %v389_v22, 5  ;;  %v397_v33 = vrot.slane %v395_v23, 5  ;;  %v402_v34 = vrot.slane %v400_v24, 4  ;;  %v6661_v40 = vld [vmem:[%s6597_s8 + $0x14] sm:$0x1] }
  0x1c   : > { %v405_v35 = vrot.slane %v403_v25, 5  ;;  %v414_v37 = vshrl.u32 %v6637_v27, 16  ;;  %v411_v39 = vrot.slane %v409_v26, 5  ;;  %v6664_v41 = vld [vmem:[%s6597_s8 + $0x1c] sm:$0x1]  ;;  %v417_v42 = vshll.u32 %v6637_v27, 16 }
  0x1d   : > { %v392_v38 = vor.u32 %v391_v30, %v388_v29  ;;  %v423_v46 = vshll.u32 %v6661_v40, 16  ;;  %v428_v47 = vshrl.u32 %v6657_v36, 16  ;;  %v431_v50 = vshll.u32 %v6657_v36, 16  ;;  %v5402_v52 = vld [vmem:[%s6654_s17 + $0x8] sm:$0xf]  ;;  %s336_s25 = sadd.s32 2, %s6454_s18 }
  0x1e   : > { %v406_v44 = vor.u32 %v405_v35, %v402_v34  ;;  %v416_v45 = vrot.slane %v414_v37, 4  ;;  %v419_v49 = vrot.slane %v417_v42, 5  ;;  %v437_v51 = vshll.u32 %v6664_v41, 16  ;;  %v6681_v57 = vld [vmem:[%s6654_s17 + $0xc] sm:$0x1]  ;;  %p6949_p8 = scmp.lt.s32.totalorder %s336_s25, 9 }
  0x1f   : > { %v393_v48 = vrot.slane %v392_v38, 4  ;;  %v430_v56 = vrot.slane %v428_v47, 4  ;;  %v425_v60 = vrot.slane %v423_v46, 5  ;;  %v433_v61 = vrot.slane %v431_v50, 5  ;;  %v5404_v62 = vld [vmem:[%s6654_s17 + $0x10] sm:$0xf] }
  0x20   : > { %v407_v53 = vrot.slane %v406_v44, 4  ;;  %v420_v59 = vor.u32 %v419_v49, %v416_v45  ;;  %v439_v0 = vrot.slane %v437_v51, 5  ;;  %v6689_v1 = vld [vmem:[%s6654_s17 + $0x14] sm:$0x1]  ;;  %v2510_v2 = vshrl.u32 %v5402_v52, 16  ;;  %s7991_s25 = smov (!%p6949_p8, %s336_s25), 9 }
  0x21   : > { %v398_v58 = vsel %vm6669_vm4, %v393_v48, %v397_v33  ;;  %v2513_v4 = vshll.u32 %v5402_v52, 16  ;;  %v434_v22 = vor.u32 %v433_v61, %v430_v56  ;;  %v2519_v23 = vshll.u32 %v6681_v57, 16  ;;  %v5406_v30 = vld [vmem:[%s6654_s17 + $0x18] sm:$0xf]  ;;  %v6698_v38 = vld [vmem:[%s6654_s17 + $0x1c] sm:$0x1] }
  0x22   : > { %v412_v63 = vsel %vm6669_vm4, %v407_v53, %v411_v39  ;;  %v421_v21 = vrot.slane %v420_v59, 4  ;;  %v2512_v24 = vrot.slane %v2510_v2, 4  ;;  %v2524_v26 = vshrl.u32 %v5404_v62, 16  ;;  %v5408_v46 = vld [vmem:[%s6654_s17 + $0x20] sm:$0xf]  ;;  %s6352_s27 = smul.u32 20, %s7991_s25 }
  0x23   : > { %v5183_v5 = vcombine.low %v398_v58, %v412_v63  ;;  %v2515_v25 = vrot.slane %v2513_v4, 5  ;;  %v2527_v29 = vshll.u32 %v5404_v62, 16  ;;  %v435_v34 = vrot.slane %v434_v22, 4  ;;  %v6706_v50 = vld [vmem:[%s6654_s17 + $0x24] sm:$0x1]  ;;  %s7993_s18 = smov (!%p349_p9, %s6454_s18), 7 }
  0x24   : > { %v426_v33 = vsel %vm6669_vm4, %v421_v21, %v425_v60  ;;  %v2521_v35 = vrot.slane %v2519_v23, 5  ;;  %v2533_v37 = vshll.u32 %v6689_v1, 16  ;;  %v2526_v42 = vrot.slane %v2524_v26, 4  ;;  %v6710_v63 = vld [vmem:[%s6597_s8 + $0x20] sm:$0xf]  ;;  %s7064_s6 = sadd.s32 %s6352_s27, %s6560_s10  ;;  %s5180_s26 = sshll.u32 %s7987_s19, 3 }
  0x25   : > { %5843 = vmatprep.mubr.msk.bf16.mxu1 %vm511_vm3, %v5183_v5  ;;  %v2516_v39 = vor.u32 %v2515_v25, %v2512_v24  ;;  %v2529_v44 = vrot.slane %v2527_v29, 5  ;;  %v2749_v45 = vrot.slane %v6681_v57, 5  ;;  %v440_v47 = vsel %vm6669_vm4, %v435_v34, %v439_v0  ;;  %v6717_v21 = vld [vmem:[%s6597_s8 + $0x28] sm:$0xf]  ;;  %v6722_v26 = vld [vmem:[%s6597_s8 + $0x24] sm:$0x1]  ;;  %s361_s27 = sadd.s32 %s5180_s26, %s7993_s18 }
  0x26   : > { %v2535_v48 = vrot.slane %v2533_v37, 5  ;;  %v2753_v49 = vrot.slane %v6689_v1, 5  ;;  %v2538_v51 = vshrl.u32 %v5406_v30, 16  ;;  %v5184_v52 = vcombine.low %v426_v33, %v440_v47  ;;  %v5413_v54 = vld [vmem:[%s6654_s17 + $0x34] sm:$0x1]  ;;  %s5176_s29 = sshll.u32 %s7064_s6, 2 }
  0x27   : > { %v2517_v53 = vrot.slane %v2516_v39, 4  ;;  %v2530_v56 = vor.u32 %v2529_v44, %v2526_v42  ;;  %v2541_v58 = vshll.u32 %v5406_v30, 16  ;;  %v2547_v60 = vshll.u32 %v6698_v38, 16  ;;  %s7101_s12 = scalar_lea.vmem %s7964_s2, %s5176_s29  ;;  %s5181_s28 = sshll.u32 %s361_s27, 1 }
  0x28   : > { %v2540_v59 = vrot.slane %v2538_v51, 4  ;;  %v2552_v61 = vshrl.u32 %v5408_v46, 16  ;;  %v2555_v62 = vshll.u32 %v5408_v46, 16  ;;  %5844 = vmatmul.mubr.msk.bf16.vlgmr.msra.gmra.mrb[0].mxu1 %vm511_vm3, %v5184_v52  ;;  %v2561_v5 = vshll.u32 %v6706_v50, 16  ;;  %v6738_v51 = vld [vmem:[%s6597_s8 + $0x30] sm:$0xf]  ;;  %s363_s10 = scalar_lea.vmem %s7967_s5, %s5181_s28 }
  0x29   : > { %v2522_v0 = vsel %vm6669_vm4, %v2517_v53, %v2521_v35  ;;  %v2531_v2 = vrot.slane %v2530_v56, 4  ;;  %v2543_v4 = vrot.slane %v2541_v58, 5  ;;  %5852 = vmatpush3.bf16.msra.mxu1 %v6580_v9  ;;  %v2549_v22 = vrot.slane %v2547_v60, 5  ;;  %v6728_v35 = vld [vmem:[%s6597_s8 + $0x2c] sm:$0x1] }
  0x2a   : > { %v2554_v23 = vrot.slane %v2552_v61, 4  ;;  %v2557_v24 = vrot.slane %v2555_v62, 5  ;;  %v2757_v25 = vrot.slane %v6698_v38, 5  ;;  %v2563_v33 = vrot.slane %v2561_v5, 5  ;;  %6323 = vmatprep.subr.msk.bf16.mxu1 %vm524_vm0, %v6571_v7  ;;  %v6743_v58 = vld [vmem:[%s6597_s8 + $0x34] sm:$0x1] }
  0x2b   : > { %v2536_v29 = vsel %vm6669_vm4, %v2531_v2, %v2535_v48  ;;  %v2544_v30 = vor.u32 %v2543_v4, %v2540_v59  ;;  %v442_v39 = vshrl.u32 %v6710_v63, 16  ;;  %v445_v42 = vshll.u32 %v6710_v63, 16 }
  0x2c   : > { %v5419_v9 = vcombine.low %v2522_v0, %v2536_v29  ;;  %v2558_v37 = vor.u32 %v2557_v24, %v2554_v23  ;;  %v451_v46 = vshll.u32 %v6722_v26, 16  ;;  %v456_v47 = vshrl.u32 %v6717_v21, 16  ;;  %v6748_v0 = vld [vmem:[%s6597_s8 + $0x38] sm:$0xf]  ;;  %v6753_v23 = vld [vmem:[%s6597_s8 + $0x3c] sm:$0x1] }
  0x2d   : > { %v2545_v44 = vrot.slane %v2544_v30, 4  ;;  %v459_v48 = vshll.u32 %v6717_v21, 16  ;;  %v444_v52 = vrot.slane %v442_v39, 4  ;;  %v447_v53 = vrot.slane %v445_v42, 5  ;;  %v5427_v29 = vld [vmem:[%s6654_s17 + $0x8] sm:$0xe] }
  0x2e   : > { %5973 = vmatprep.mubr.msk.bf16.mxu0 %vm511_vm3, %v5419_v9  ;;  %v2559_v7 = vrot.slane %v2558_v37, 4  ;;  %v465_v56 = vshll.u32 %v6728_v35, 16  ;;  %v453_v60 = vrot.slane %v451_v46, 5  ;;  %v458_v61 = vrot.slane %v456_v47, 4  ;;  %v5428_v39 = vld [vmem:[%s6654_s17 + $0x10] sm:$0xe] }
  0x2f   : > { %v2550_v59 = vsel %vm6669_vm4, %v2545_v44, %v2549_v22  ;;  %v461_v62 = vrot.slane %v459_v48, 5  ;;  %v448_v4 = vor.u32 %v447_v53, %v444_v52  ;;  %v470_v24 = vshrl.u32 %v6738_v51, 16  ;;  %v5429_v42 = vld [vmem:[%s6654_s17 + $0x18] sm:$0xe]  ;;  %v5430_v48 = vld [vmem:[%s6654_s17 + $0x20] sm:$0xe] }
  0x30   : > { %v2564_v2 = vsel %vm6669_vm4, %v2559_v7, %v2563_v33  ;;  %v467_v5 = vrot.slane %v465_v56, 5  ;;  %v473_v9 = vshll.u32 %v6738_v51, 16  ;;  %v479_v37 = vshll.u32 %v6743_v58, 16  ;;  %v5431_v7 = vld [vmem:[%s6654_s17 + $0x28] sm:$0xe] }
  0x31   : > { %v5420_v30 = vcombine.low %v2550_v59, %v2564_v2  ;;  %v462_v22 = vor.u32 %v461_v62, %v458_v61  ;;  %v449_v44 = vrot.slane %v448_v4, 4  ;;  %v472_v33 = vrot.slane %v470_v24, 4  ;;  %v5411_v62 = vld [vmem:[%s6654_s17 + $0x2c] sm:$0x1] }
  0x32   : > { %v484_v46 = vshrl.u32 %v6748_v0, 16  ;;  %v487_v47 = vshll.u32 %v6748_v0, 16  ;;  %v475_v53 = vrot.slane %v473_v9, 5  ;;  %v481_v56 = vrot.slane %v479_v37, 5 }
  0x33   : > { %5974 = vmatmul.mubr.msk.bf16.vlgmr.msra.gmra.mrb[0].mxu0 %vm511_vm3, %v5420_v30  ;;  %v463_v52 = vrot.slane %v462_v22, 4  ;;  %v493_v59 = vshll.u32 %v6753_v23, 16  ;;  %v454_v2 = vsel %vm6669_vm4, %v449_v44, %v453_v60  ;;  %v5435_v30 = vrot.slane %v5427_v29, 9  ;;  %v5432_v44 = vld [vmem:[%s6654_s17 + $0x30] sm:$0xe] }
  0x34   : > { %5982 = vmatpush3.bf16.msra.mxu0 %v6583_v10  ;;  %v486_v4 = vrot.slane %v484_v46, 4  ;;  %v489_v24 = vrot.slane %v487_v47, 5  ;;  %v476_v9 = vor.u32 %v475_v53, %v472_v33  ;;  %v5436_v55 = vrot.slane %v5428_v39, 9  ;;  %v6792_v46 = vld [vmem:[%s6654_s17 + $0x3c] sm:$0x1] }
  0x35   : > { %v468_v22 = vsel %vm6669_vm4, %v463_v52, %v467_v5  ;;  %v495_v37 = vrot.slane %v493_v59, 5  ;;  %6337 = vmatprep.subr.msk.bf16.mxu0 %vm524_vm0, %v6566_v6  ;;  %v2750_v60 = vsel %vm6769_vm7, %v5435_v30, %v2749_v45  ;;  %v5437_v29 = vrot.slane %v5429_v42, 9  ;;  %v6800_v42 = vld [vmem:[%s6654_s17 + $0x44] sm:$0x1]  ;;  %v693_v53 = vld [vmem:[%s6597_s8] sm:$0xe] }
  0x36   : > { %v5185_v34 = vcombine.low %v454_v2, %v468_v22  ;;  %v490_v10 = vor.u32 %v489_v24, %v486_v4  ;;  %v477_v5 = vrot.slane %v476_v9, 4  ;;  %v2754_v39 = vsel %vm6769_vm7, %v5436_v55, %v2753_v49  ;;  %v5433_v55 = vld [vmem:[%s6654_s17 + $0x38] sm:$0xe]  ;;  %v5434_v49 = vld [vmem:[%s6654_s17 + $0x40] sm:$0xe] }
  0x37   : > { %v5438_v6 = vrot.slane %v5430_v48, 9  ;;  %v5439_v33 = vrot.slane %v5431_v7, 9  ;;  %v5444_v47 = vcombine.low %v2750_v60, %v2754_v39  ;;  %v2758_v45 = vsel %vm6769_vm7, %v5437_v29, %v2757_v25  ;;  %v695_v2 = vld [vmem:[%s6597_s8 + $0x10] sm:$0xe]  ;;  %v697_v29 = vld [vmem:[%s6597_s8 + $0x20] sm:$0xe] }
  0x38   : > { %5847 = vmatprep.mubr.msk.bf16.mxu1 %vm511_vm3, %v5185_v34  ;;  %v491_v57 = vrot.slane %v490_v10, 4  ;;  %v2765_v1 = vrot.slane %v5411_v62, 5  ;;  %v482_v48 = vsel %vm6669_vm4, %v477_v5, %v481_v56  ;;  %v7972_v7 = vrot.slane %v6706_v50, 5  ;;  %v694_v62 = vld [vmem:[%s6597_s8 + $0x8] sm:$0xe] }
  0x39   : > { %v5440_v52 = vrot.slane %v5432_v44, 9  ;;  %v2769_v38 = vrot.slane %v5413_v54, 5  ;;  %5983 = vmatprep.mubr.msk.bf16.mxu0 %vm511_vm3, %v5444_v47  ;;  %v5191_v59 = vcombine.low %v6619_v17, %v6622_v18  ;;  %v5192_v56 = vcombine.low %v6637_v27, %v6657_v36  ;;  %v696_v27 = vld [vmem:[%s6597_s8 + $0x18] sm:$0xe]  ;;  %v698_v39 = vld [vmem:[%s6597_s8 + $0x28] sm:$0xe] }
  0x3a   : > { %v2762_v34 = vsel %vm6769_vm7, %v5438_v6, %v7972_v7  ;;  %v496_v25 = vsel %vm6669_vm4, %v491_v57, %v495_v37  ;;  %v2766_v50 = vsel %vm6769_vm7, %v5439_v33, %v2765_v1  ;;  %v5441_v30 = vrot.slane %v5433_v55, 9  ;;  %v700_v7 = vld [vmem:[%s6597_s8 + $0x38] sm:$0xe] }
  0x3b   : > { %v5186_v54 = vcombine.low %v482_v48, %v496_v25  ;;  %v5445_v4 = vcombine.low %v2758_v45, %v2762_v34  ;;  %v2770_v24 = vsel %vm6769_vm7, %v5440_v52, %v2769_v38  ;;  %v730_v22 = vrot.slane %v6661_v40, 5  ;;  %v699_v45 = vld [vmem:[%s6597_s8 + $0x30] sm:$0xe]  ;;  %v6873_v38 = vld [vmem:[%s6654_s17 + $0x14] sm:$0x1] }
  0x3c   : > { %v5446_v9 = vcombine.low %v2766_v50, %v2770_v24  ;;  %v2773_v17 = vrot.slane %v6792_v46, 5  ;;  %v5442_v18 = vrot.slane %v5434_v49, 9  ;;  %v734_v36 = vrot.slane %v6664_v41, 5 }
  0x3d   : > { %5848 = vmatmul.mubr.msk.bf16.gmra.mrb[4].mxu1 %vm511_vm3, %v5186_v54  ;;  %v2603_v37 = vshll.u32 %v6792_v46, 16  ;;  %v2617_v10 = vshll.u32 %v6800_v42, 16  ;;  %v2777_v60 = vrot.slane %v6800_v42, 5  ;;  %v5199_v44 = vrot.slane %v693_v53, 9  ;;  %v5471_v53 = vld [vmem:[%s6654_s17 + $0x18] sm:$0xf] }
  0x3e   : > { %5853 = vmatprep.mubr.msk.bf16.mxu1 %vm511_vm3, %v5191_v59  ;;  %v2774_v40 = vsel %vm6769_vm7, %v5441_v30, %v2773_v17  ;;  %v5200_v5 = vrot.slane %v694_v62, 9  ;;  %v5201_v41 = vrot.slane %v695_v2, 9  ;;  %v5193_v33 = vcombine.low %v6710_v63, %v6717_v21  ;;  %v6882_v62 = vld [vmem:[%s6654_s17 + $0x1c] sm:$0x1]  ;;  %v5473_v30 = vld [vmem:[%s6654_s17 + $0x20] sm:$0xf] }
  0x3f   : > { %5984 = vmatmul.mubr.msk.bf16.vlgmr.msra.gmra.mrb[0].mxu0 %vm511_vm3, %v5445_v4  ;;  %v2778_v6 = vsel %vm6769_vm7, %v5442_v18, %v2777_v60  ;;  %v5194_v57 = vcombine.low %v6738_v51, %v6748_v0  ;;  %v5202_v47 = vrot.slane %v696_v27, 9  ;;  %v7973_v1 = vrot.slane %v6625_v19, 5  ;;  %v5475_v60 = vld [vmem:[%s6654_s17 + $0x28] sm:$0xf] }
  0x40   : > { %5992 = vmatpush3.bf16.msra.mxu0 %v6587_v11  ;;  %5987 = vmatprep.mubr.msk.bf16.mxu0 %vm511_vm3, %v5446_v9  ;;  %v7974_v63 = vrot.slane %v6628_v20, 5  ;;  %v5203_v49 = vrot.slane %v697_v29, 9  ;;  %v738_v48 = vrot.slane %v6722_v26, 5  ;;  %v5469_v11 = vld [vmem:[%s6654_s17 + $0x10] sm:$0xf]  ;;  %v5447_v34 = vcombine.low %v2774_v40, %v2778_v6 }
  0x41   : > { %v6851_v55 = vsel %vm6769_vm7, %v5199_v44, %v7973_v1  ;;  %6338 = vmatprep.subr.msk.bf16.mxu0 %vm524_vm0, %v6576_v8  ;;  %v6866_v19 = vsel %vm6769_vm7, %v5201_v41, %v730_v22  ;;  %v6870_v20 = vsel %vm6769_vm7, %v5202_v47, %v734_v36  ;;  %v5204_v52 = vrot.slane %v698_v39, 9  ;;  %v6397_v26 = vld [vmem:[%s6654_s17 + $0x10] ss:$8 sps:$4 sm:$0xff]  }
  0x42   : > { %v6857_v21 = vsel %vm6769_vm7, %v5200_v5, %v7974_v63  ;;  %v742_v8 = vrot.slane %v6728_v35, 5  ;;  %v5205_v59 = vrot.slane %v699_v45, 9  ;;  %v746_v50 = vrot.slane %v6743_v58, 5  ;;  %v6894_v58 = vld [vmem:[%s6654_s17 + $0x24] sm:$0x1] }
  0x43   : > { %v5208_v25 = vcombine.low %v6851_v55, %v6857_v21  ;;  %v5206_v2 = vrot.slane %v700_v7, 9  ;;  %v750_v54 = vrot.slane %v6753_v23, 5  ;;  %v3017_v4 = vshrl.u32 %v5469_v11, 16  ;;  %v6398_v63 = vld [vmem:[%s6654_s17 + $0x20] ss:$8 sps:$4 sm:$0xff]  }
  0x44   : > { %v3020_v24 = vshll.u32 %v5469_v11, 16  ;;  %v5209_v22 = vcombine.low %v6866_v19, %v6870_v20  ;;  %v6890_v9 = vsel %vm6769_vm7, %v5203_v49, %v738_v48  ;;  %v3026_v35 = vshll.u32 %v6873_v38, 16  ;;  %v5477_v11 = vld [vmem:[%s6654_s17 + $0x30] sm:$0xf]  ;;  %v5497_v19 = vld [vmem:[%s6654_s17 + $0x28] sm:$0xe] }
  0x45   : > { %v3031_v17 = vshrl.u32 %v5471_v53, 16  ;;  %5854 = vmatmul.mubr.msk.bf16.vlgmr.msra.gmra.mrb[0].mxu1 %vm511_vm3, %v5192_v56  ;;  %v6899_v23 = vsel %vm6769_vm7, %v5204_v52, %v742_v8  ;;  %v6903_v18 = vsel %vm6769_vm7, %v5205_v59, %v746_v50  ;;  %v3019_v27 = vrot.slane %v3017_v4, 4  ;;  %v6927_v8 = vld [vmem:[%s6654_s17 + $0x34] sm:$0x1]  ;;  %v6399_v59 = vld [vmem:[%s6654_s17 + $0x30] ss:$8 sps:$4 sm:$0xff]  }
  0x46   : > { %v3022_v36 = vrot.slane %v3020_v24, 5  ;;  %5862 = vmatpush3.bf16.msra.mxu1 %v6601_v13  ;;  %5857 = vmatprep.mubr.msk.bf16.mxu1 %vm511_vm3, %v5193_v33  ;;  %v6910_v29 = vsel %vm6769_vm7, %v5206_v2, %v750_v54  ;;  %v3028_v56 = vrot.slane %v3026_v35, 5  ;;  %v3034_v44 = vshll.u32 %v5471_v53, 16  ;;  %v6918_v33 = vld [vmem:[%s6654_s17 + $0x2c] sm:$0x1] }
  0x47   : > { %v3033_v40 = vrot.slane %v3031_v17, 4  ;;  %5988 = vmatmul.mubr.msk.bf16.gmra.mrb[4].mxu0 %vm511_vm3, %v5447_v34  ;;  %6324 = vmatprep.subr.msk.bf16.mxu1 %vm524_vm0, %v6592_v12  ;;  %v3040_v13 = vshll.u32 %v6882_v62, 16  ;;  %v3045_v41 = vshrl.u32 %v5473_v30, 16  ;;  %v3048_v39 = vshll.u32 %v5473_v30, 16  ;;  %v5479_v4 = vld [vmem:[%s6654_s17 + $0x38] sm:$0xf] }
  0x48   : > { %v3023_v5 = vor.u32 %v3022_v36, %v3019_v27  ;;  %5993 = vmatprep.mubr.msk.bf16.mxu0 %vm511_vm3, %v6397_v26  ;;  %v3036_v6 = vrot.slane %v3034_v44, 5  ;;  %v3054_v47 = vshll.u32 %v6894_v58, 16  ;;  %v3059_v45 = vshrl.u32 %v5475_v60, 16  ;;  %v6935_v17 = vld [vmem:[%s6654_s17 + $0x3c] sm:$0x1] }
  0x49   : > { %v3062_v1 = vshll.u32 %v5475_v60, 16  ;;  %v3042_v49 = vrot.slane %v3040_v13, 5  ;;  %v3047_v48 = vrot.slane %v3045_v41, 4  ;;  %v3050_v7 = vrot.slane %v3048_v39, 5  ;;  %v6962_v41 = vld [vmem:[%s6654_s17 + $0x44] sm:$0x1] }
  0x4a   : > { %v3024_v12 = vrot.slane %v3023_v5, 4  ;;  %v3037_v34 = vor.u32 %v3036_v6, %v3033_v40  ;;  %v6924_v52 = vrot.slane %v3054_v47, 5  ;;  %v3061_v53 = vrot.slane %v3059_v45, 4  ;;  %v5481_v5 = vld [vmem:[%s6654_s17 + $0x40] sm:$0xf] }
  0x4b   : > { %v3064_v26 = vrot.slane %v3062_v1, 5  ;;  %v3051_v2 = vor.u32 %v3050_v7, %v3047_v48  ;;  %v3068_v54 = vshll.u32 %v6918_v33, 16  ;;  %v3073_v24 = vshrl.u32 %v5477_v11, 16  ;;  %v5483_v6 = vld [vmem:[%s6654_s17 + $0x48] sm:$0xf] }
  0x4c   : > { %v3029_v50 = vsel %vm6669_vm4, %v3024_v12, %v3028_v56  ;;  %v3038_v30 = vrot.slane %v3037_v34, 4  ;;  %v3076_v27 = vshll.u32 %v5477_v11, 16  ;;  %v3082_v36 = vshll.u32 %v6927_v8, 16 }
  0x4d   : > { %v3065_v35 = vor.u32 %v3064_v26, %v3061_v53  ;;  %5858 = vmatmul.mubr.msk.bf16.gmra.mrb[4].mxu1 %vm511_vm3, %v5194_v57  ;;  %v6942_v60 = vrot.slane %v3051_v2, 4  ;;  %v6944_v56 = vrot.slane %v3068_v54, 5  ;;  %v3075_v40 = vrot.slane %v3073_v24, 4  ;;  %v5494_v24 = vld [vmem:[%s6654_s17 + $0x10] sm:$0xe] }
  0x4e   : > { %v3087_v44 = vshrl.u32 %v5479_v4, 16  ;;  %5863 = vmatprep.mubr.msk.bf16.mxu1 %vm511_vm3, %v5208_v25  ;;  %v3043_v51 = vsel %vm6669_vm4, %v3038_v30, %v3042_v49  ;;  %v3078_v57 = vrot.slane %v3076_v27, 5  ;;  %v6959_v13 = vrot.slane %v3082_v36, 5  ;;  %v5495_v30 = vld [vmem:[%s6654_s17 + $0x18] sm:$0xe] }
  0x4f   : > { %v3066_v0 = vrot.slane %v3065_v35, 4  ;;  %5994 = vmatmul.mubr.msk.bf16.vlgmr.msra.gmra.mrb[0].mxu0 %vm511_vm3, %v6398_v63  ;;  %v5210_v39 = vcombine.low %v6890_v9, %v6899_v23  ;;  %v5211_v55 = vcombine.low %v6903_v18, %v6910_v29  ;;  %v3090_v25 = vshll.u32 %v5479_v4, 16  ;;  %v6974_v63 = vld [vmem:[%s6654_s17 + $0x4c] sm:$0x1]  ;;  %v5274_v29 = vld [vmem:[%s7965_s3 + $0x14] sm:$0xf] }
  0x50   : > { %v3089_v21 = vrot.slane %v3087_v44, 4  ;;  %6002 = vmatpush3.bf16.msra.mxu0 %v6605_v14  ;;  %5997 = vmatprep.mubr.msk.bf16.mxu0 %vm511_vm3, %v6399_v59  ;;  %v5486_v47 = vcombine.low %v3029_v50, %v3043_v51  ;;  %v3079_v45 = vor.u32 %v3078_v57, %v3075_v40  ;;  %v3096_v1 = vshll.u32 %v6935_v17, 16  ;;  %v5233_v57 = vld [vmem:[%s6597_s8 + $0x8] sm:$0xf] }
  0x51   : > { %v3101_v9 = vshrl.u32 %v5481_v5, 16  ;;  %6339 = vmatprep.subr.msk.bf16.mxu0 %vm524_vm0, %v6610_v15  ;;  %v3057_v14 = vsel %vm6669_vm4, %v6942_v60, %v6924_v52  ;;  %v3092_v23 = vrot.slane %v3090_v25, 5  ;;  %v3104_v12 = vshll.u32 %v5481_v5, 16  ;;  %v6400_v15 = vld [vmem:[%s6654_s17 + $0x40] ss:$8 sps:$4 sm:$0xff]  }
  0x52   : > { %v3110_v49 = vshll.u32 %v6962_v41, 16  ;;  %v3080_v48 = vrot.slane %v3079_v45, 4  ;;  %v3098_v7 = vrot.slane %v3096_v1, 5  ;;  %v3115_v34 = vshrl.u32 %v5483_v6, 16  ;;  %v6401_v25 = vld [vmem:[%s6597_s8 + $0x8] ss:$8 sps:$4 sm:$0xff]  }
  0x53   : > { %v3103_v11 = vrot.slane %v3101_v9, 4  ;;  %v3093_v53 = vor.u32 %v3092_v23, %v3089_v21  ;;  %v3106_v26 = vrot.slane %v3104_v12, 5  ;;  %v3118_v52 = vshll.u32 %v5483_v6, 16  ;;  %v5235_v21 = vld [vmem:[%s6597_s8 + $0x10] sm:$0xf] }
  0x54   : > { %v3112_v59 = vrot.slane %v3110_v49, 5  ;;  %v3071_v50 = vsel %vm6669_vm4, %v3066_v0, %v6944_v56  ;;  %v3085_v2 = vsel %vm6669_vm4, %v3080_v48, %v6959_v13  ;;  %v3117_v54 = vrot.slane %v3115_v34, 4  ;;  %v5496_v56 = vld [vmem:[%s6654_s17 + $0x20] sm:$0xe]  ;;  %v5519_v13 = vld [vmem:[%s7965_s3 + $0x48] sm:$0xf] }
  0x55   : > { %v3124_v4 = vshll.u32 %v6974_v63, 16  ;;  %5864 = vmatmul.mubr.msk.bf16.vlgmr.msra.gmra.mrb[0].mxu1 %vm511_vm3, %v5209_v22  ;;  %v3094_v35 = vrot.slane %v3093_v53, 4  ;;  %v3107_v27 = vor.u32 %v3106_v26, %v3103_v11  ;;  %v3120_v36 = vrot.slane %v3118_v52, 5  ;;  %v7034_v9 = vld [vmem:[%s6597_s8 + $0xc] sm:$0x1] }
  0x56   : > { %v5502_v60 = vrot.slane %v5494_v24, 9  ;;  %5872 = vmatpush3.bf16.msra.mxu1 %v6641_v28  ;;  %5867 = vmatprep.mubr.msk.bf16.mxu1 %vm511_vm3, %v5210_v39  ;;  %v3256_v44 = vrot.slane %v6873_v38, 5  ;;  %v5503_v5 = vrot.slane %v5495_v30, 9  ;;  %v3260_v51 = vrot.slane %v6882_v62, 5  ;;  %v7044_v12 = vld [vmem:[%s6597_s8 + $0x14] sm:$0x1] }
  0x57   : > { %v3126_v40 = vrot.slane %v3124_v4, 5  ;;  %5998 = vmatmul.mubr.msk.bf16.gmra.mrb[4].mxu0 %vm511_vm3, %v6400_v15  ;;  %6325 = vmatprep.subr.msk.bf16.mxu1 %vm524_vm0, %v6615_v16  ;;  %v3099_v20 = vsel %vm6669_vm4, %v3094_v35, %v3098_v7  ;;  %v3108_v28 = vrot.slane %v3107_v27, 4  ;;  %v3121_v22 = vor.u32 %v3120_v36, %v3117_v54  ;;  %v5237_v48 = vld [vmem:[%s6597_s8 + $0x18] sm:$0xf]  ;;  %v7053_v53 = vld [vmem:[%s6597_s8 + $0x1c] sm:$0x1] }
  0x58   : > { %v5504_v0 = vrot.slane %v5496_v56, 9  ;;  %6003 = vmatprep.mubr.msk.bf16.mxu0 %vm511_vm3, %v5486_v47  ;;  %v5487_v38 = vcombine.low %v3057_v14, %v3071_v50  ;;  %v7019_v62 = vsel %vm6769_vm7, %v5502_v60, %v3256_v44  ;;  %v7023_v16 = vsel %vm6769_vm7, %v5503_v5, %v3260_v51  ;;  %v5239_v50 = vld [vmem:[%s6597_s8 + $0x20] sm:$0xf]  ;;  %v7075_v27 = vld [vmem:[%s6597_s8 + $0x24] sm:$0x1] }
  0x59   : > { %v3264_v39 = vrot.slane %v6894_v58, 5  ;;  %v5488_v6 = vcombine.low %v3085_v2, %v3099_v20  ;;  %v3113_v47 = vsel %vm6669_vm4, %v3108_v28, %v3112_v59  ;;  %v3122_v45 = vrot.slane %v3121_v22, 4  ;;  %v5498_v5 = vld [vmem:[%s6654_s17 + $0x30] sm:$0xe] }
  0x5a   : > { %v5505_v1 = vrot.slane %v5497_v19, 9  ;;  %v5511_v14 = vcombine.low %v7019_v62, %v7023_v16  ;;  %v3268_v23 = vrot.slane %v6918_v33, 5  ;;  %v990_v49 = vshrl.u32 %v5233_v57, 16  ;;  %v6403_v51 = vld [vmem:[%s6597_s8 + $0x28] ss:$8 sps:$4 sm:$0xff]  }
  0x5b   : > { %v7040_v58 = vsel %vm6769_vm7, %v5504_v0, %v3264_v39  ;;  %v3127_v7 = vsel %vm6669_vm4, %v3122_v45, %v3126_v40  ;;  %v7050_v11 = vsel %vm524_vm0, %v5519_v13, 0  ;;  %v993_v34 = vshll.u32 %v5233_v57, 16  ;;  %v5499_v0 = vld [vmem:[%s6654_s17 + $0x38] sm:$0xe]  ;;  %v7150_v62 = vld [vmem:[%s6597_s8 + $0x3c] sm:$0x1] }
  0x5c   : > { %v1004_v15 = vshrl.u32 %v5235_v21, 16  ;;  %v7057_v26 = vsel %vm6769_vm7, %v5505_v1, %v3268_v23  ;;  %v992_v33 = vrot.slane %v990_v49, 4  ;;  %v999_v59 = vshll.u32 %v7034_v9, 16  ;;  %v5501_v1 = vld [vmem:[%s6654_s17 + $0x48] sm:$0xe] }
  0x5d   : > { %v1007_v52 = vshll.u32 %v5235_v21, 16  ;;  %5868 = vmatmul.mubr.msk.bf16.gmra.mrb[4].mxu1 %vm511_vm3, %v5211_v55  ;;  %v5489_v2 = vcombine.low %v3113_v47, %v3127_v7  ;;  %v5512_v54 = vcombine.low %v7040_v58, %v7057_v26  ;;  %v995_v4 = vrot.slane %v993_v34, 5  ;;  %v6402_v55 = vld [vmem:[%s6597_s8 + $0x18] ss:$8 sps:$4 sm:$0xff]   ;;  %v5241_v7 = vld [vmem:[%s6597_s8 + $0x28] sm:$0xf] }
  0x5e   : > { %v1006_v24 = vrot.slane %v1004_v15, 4  ;;  %5873 = vmatprep.mubr.msk.bf16.mxu1 %vm511_vm3, %v6401_v25  ;;  %v1013_v35 = vshll.u32 %v7044_v12, 16  ;;  %v1018_v36 = vshrl.u32 %v5237_v48, 16  ;;  %v1021_v18 = vshll.u32 %v5237_v48, 16  ;;  %v5500_v25 = vld [vmem:[%s6654_s17 + $0x40] sm:$0xe] }
  0x5f   : > { %v1009_v30 = vrot.slane %v1007_v52, 5  ;;  %6004 = vmatmul.mubr.msk.bf16.vlgmr.msra.gmra.mrb[0].mxu0 %vm511_vm3, %v5487_v38  ;;  %v996_v60 = vor.u32 %v995_v4, %v992_v33  ;;  %v1027_v56 = vshll.u32 %v7053_v53, 16  ;;  %v1032_v40 = vshrl.u32 %v5239_v50, 16  ;;  %v7106_v52 = vld [vmem:[%s6597_s8 + $0x2c] sm:$0x1] }
  0x60   : > { %v1035_v44 = vshll.u32 %v5239_v50, 16  ;;  %6012 = vmatpush3.bf16.msra.mxu0 %v6645_v31  ;;  %6007 = vmatprep.mubr.msk.bf16.mxu0 %vm511_vm3, %v5488_v6  ;;  %v1001_v19 = vrot.slane %v999_v59, 5  ;;  %v1020_v28 = vrot.slane %v1018_v36, 4  ;;  %v1023_v22 = vrot.slane %v1021_v18, 5 }
  0x61   : > { %v1010_v20 = vor.u32 %v1009_v30, %v1006_v24  ;;  %6340 = vmatprep.subr.msk.bf16.mxu0 %vm524_vm0, %v5519_v13  ;;  %v997_v57 = vrot.slane %v996_v60, 4  ;;  %v1015_v38 = vrot.slane %v1013_v35, 5  ;;  %v1034_v39 = vrot.slane %v1032_v40, 4  ;;  %v5243_v30 = vld [vmem:[%s6597_s8 + $0x30] sm:$0xf] }
  0x62   : > { %v1037_v21 = vrot.slane %v1035_v44, 5  ;;  %v1024_v31 = vor.u32 %v1023_v22, %v1020_v28  ;;  %v1029_v45 = vrot.slane %v1027_v56, 5  ;;  %v1041_v6 = vshll.u32 %v7075_v27, 16  ;;  %v6404_v60 = vld [vmem:[%s6597_s8 + $0x38] ss:$8 sps:$4 sm:$0xff]  }
  0x63   : > { %v1011_v47 = vrot.slane %v1010_v20, 4  ;;  %v7094_v49 = vsel %vm524_vm0, %v5274_v29, 0  ;;  %v5506_v48 = vrot.slane %v5498_v5, 9  ;;  %v3272_v13 = vrot.slane %v6927_v8, 5  ;;  %v7131_v40 = vld [vmem:[%s6597_s8 + $0x34] sm:$0x1] }
  0x64   : > { %v1038_v23 = vor.u32 %v1037_v21, %v1034_v39  ;;  %v1002_v34 = vsel %vm6669_vm4, %v997_v57, %v1001_v19  ;;  %v1025_v15 = vrot.slane %v1024_v31, 4  ;;  %v1043_v33 = vrot.slane %v1041_v6, 5  ;;  %v5247_v57 = vld [vmem:[%s6597_s8 + $0x40] sm:$0xf]  ;;  %v7158_v21 = vld [vmem:[%s6597_s8 + $0x44] sm:$0x1] }
  0x65   : > { %v5507_v59 = vrot.slane %v5499_v0, 9  ;;  %5874 = vmatmul.mubr.msk.bf16.vlgmr.msra.gmra.mrb[0].mxu1 %vm511_vm3, %v6402_v55  ;;  %v1016_v8 = vsel %vm6669_vm4, %v1011_v47, %v1015_v38  ;;  %v7113_v4 = vsel %vm6769_vm7, %v5506_v48, %v3272_v13  ;;  %v3276_v24 = vrot.slane %v6935_v17, 5  ;;  %v5258_v48 = vld [vmem:[%s6597_s8 + $0x8] sm:$0xe] }
  0x66   : > { %v1039_v50 = vrot.slane %v1038_v23, 4  ;;  %5882 = vmatpush3.bf16.msra.mxu1 %v6649_v32  ;;  %5877 = vmatprep.mubr.msk.bf16.mxu1 %vm511_vm3, %v6403_v51  ;;  %v1030_v35 = vsel %vm6669_vm4, %v1025_v15, %v1029_v45  ;;  %v5508_v36 = vrot.slane %v5500_v25, 9  ;;  %v3280_v18 = vrot.slane %v6962_v41, 5  ;;  %v5245_v41 = vld [vmem:[%s6597_s8 + $0x38] sm:$0xf] }
  0x67   : > { %v5509_v55 = vrot.slane %v5501_v1, 9  ;;  %6008 = vmatmul.mubr.msk.bf16.gmra.mrb[4].mxu0 %vm511_vm3, %v5489_v2  ;;  %6326 = vmatprep.subr.msk.bf16.mxu1 %vm524_vm0, %v5274_v29  ;;  %v3277_v32 = vsel %vm6769_vm7, %v5507_v59, %v3276_v24  ;;  %v3284_v17 = vrot.slane %v6974_v63, 5  ;;  %v1046_v44 = vshrl.u32 %v5241_v7, 16  ;;  %v5528_v23 = vld [vmem:[%s7965_s3 + $0x4c] sm:$0xf] }
  0x68   : > { %v1044_v56 = vsel %vm6669_vm4, %v1039_v50, %v1043_v33  ;;  %6013 = vmatprep.mubr.msk.bf16.mxu0 %vm511_vm3, %v5511_v14  ;;  %v5250_v2 = vcombine.low %v1002_v34, %v1016_v8  ;;  %v7142_v29 = vsel %vm6769_vm7, %v5508_v36, %v3280_v18  ;;  %v1049_v51 = vshll.u32 %v5241_v7, 16  ;;  %v5259_v33 = vld [vmem:[%s6597_s8 + $0x10] sm:$0xe]  ;;  %v5260_v24 = vld [vmem:[%s6597_s8 + $0x18] sm:$0xe] }
  0x69   : > { %v7138_v5 = vcombine.low %v1030_v35, %v1044_v56  ;;  %v7146_v63 = vsel %vm6769_vm7, %v5509_v55, %v3284_v17  ;;  %v1048_v19 = vrot.slane %v1046_v44, 4  ;;  %v1055_v20 = vshll.u32 %v7106_v52, 16  ;;  %v5261_v55 = vld [vmem:[%s6597_s8 + $0x20] sm:$0xe] }
  0x6a   : > { %v1060_v28 = vshrl.u32 %v5243_v30, 16  ;;  %v5513_v16 = vcombine.low %v7113_v4, %v3277_v32  ;;  %v1051_v14 = vrot.slane %v1049_v51, 5  ;;  %v1063_v22 = vshll.u32 %v5243_v30, 16 }
  0x6b   : > { %v1069_v0 = vshll.u32 %v7131_v40, 16  ;;  %v5514_v38 = vcombine.low %v7142_v29, %v7146_v63  ;;  %v1074_v25 = vshrl.u32 %v5245_v41, 16  ;;  %v1077_v47 = vshll.u32 %v5245_v41, 16 }
  0x6c   : > { %v1062_v39 = vrot.slane %v1060_v28, 4  ;;  %v1052_v31 = vor.u32 %v1051_v14, %v1048_v19  ;;  %v1057_v45 = vrot.slane %v1055_v20, 5  ;;  %v1065_v6 = vrot.slane %v1063_v22, 5 }
  0x6d   : > { %v1083_v1 = vshll.u32 %v7150_v62, 16  ;;  %5878 = vmatmul.mubr.msk.bf16.gmra.mrb[4].mxu1 %vm511_vm3, %v6404_v60  ;;  %v1076_v13 = vrot.slane %v1074_v25, 4  ;;  %v1079_v7 = vrot.slane %v1077_v47, 5  ;;  %v1088_v34 = vshrl.u32 %v5247_v57, 16 }
  0x6e   : > { %v1091_v15 = vshll.u32 %v5247_v57, 16  ;;  %5883 = vmatprep.mubr.msk.bf16.mxu1 %vm511_vm3, %v5250_v2  ;;  %v1053_v59 = vrot.slane %v1052_v31, 4  ;;  %v1066_v8 = vor.u32 %v1065_v6, %v1062_v39  ;;  %v1071_v50 = vrot.slane %v1069_v0, 5  ;;  %v5262_v57 = vld [vmem:[%s6597_s8 + $0x28] sm:$0xe] }
  0x6f   : > { %v1097_v4 = vshll.u32 %v7158_v21, 16  ;;  %6014 = vmatmul.mubr.msk.bf16.vlgmr.msra.gmra.mrb[0].mxu0 %vm511_vm3, %v5512_v54  ;;  %v1080_v30 = vor.u32 %v1079_v7, %v1076_v13  ;;  %v1085_v35 = vrot.slane %v1083_v1, 5  ;;  %v1090_v36 = vrot.slane %v1088_v34, 4  ;;  %v7219_v13 = vld [vmem:[%s7101_s12 + $0x4] sm:$0x1] }
  0x70   : > { %v1093_v18 = vrot.slane %v1091_v15, 5  ;;  %6022 = vmatpush3.bf16.msra.mxu0 %v7050_v11  ;;  %6017 = vmatprep.mubr.msk.bf16.mxu0 %vm511_vm3, %v5513_v16  ;;  %v1058_v60 = vsel %vm6669_vm4, %v1053_v59, %v1057_v45  ;;  %v1067_v56 = vrot.slane %v1066_v8, 4  ;;  %v5266_v17 = vrot.slane %v5258_v48, 9  ;;  %v5291_v11 = vld [vmem:[%s7965_s3 + $0x18] sm:$0xf] }
  0x71   : > { %v1099_v32 = vrot.slane %v1097_v4, 5  ;;  %v1081_v44 = vrot.slane %v1080_v30, 4  ;;  %6341 = vmatprep.subr.msk.bf16.mxu0 %vm524_vm0, %v5528_v23  ;;  %v1229_v26 = vrot.slane %v7034_v9, 5  ;;  %v5267_v54 = vrot.slane %v5259_v33, 9  ;;  %v6405_v16 = vld [vmem:[%s7101_s12] ss:$8 sps:$4 sm:$0xff]  }
  0x72   : > { %v1094_v58 = vor.u32 %v1093_v18, %v1090_v36  ;;  %v1072_v41 = vsel %vm6669_vm4, %v1067_v56, %v1071_v50  ;;  %v1233_v2 = vrot.slane %v7044_v12, 5  ;;  %v5268_v51 = vrot.slane %v5260_v24, 9  ;;  %v5264_v45 = vld [vmem:[%s6597_s8 + $0x38] sm:$0xe]  ;;  %v3506_v48 = vld [vmem:[%s7101_s12] sm:$0xf] }
  0x73   : > { %v1237_v19 = vrot.slane %v7053_v53, 5  ;;  %v5252_v20 = vcombine.low %v1058_v60, %v1072_v41  ;;  %v7190_v9 = vsel %vm524_vm0, %v5528_v23, 0  ;;  %v1230_v14 = vsel %vm6769_vm7, %v5266_v17, %v1229_v26  ;;  %v5263_v53 = vld [vmem:[%s6597_s8 + $0x30] sm:$0xe]  ;;  %v3508_v15 = vld [vmem:[%s7101_s12 + $0x8] sm:$0xf] }
  0x74   : > { %v1095_v28 = vrot.slane %v1094_v58, 4  ;;  %v1234_v22 = vsel %vm6769_vm7, %v5267_v54, %v1233_v2  ;;  %v5269_v0 = vrot.slane %v5261_v55, 9  ;;  %v1241_v12 = vrot.slane %v7075_v27, 5  ;;  %v5265_v27 = vld [vmem:[%s6597_s8 + $0x40] sm:$0xe] }
  0x75   : > { %5884 = vmatmul.mubr.msk.bf16.vlgmr.msra.gmra.mrb[0].mxu1 %vm511_vm3, %v7138_v5  ;;  %v1086_v39 = vsel %vm6669_vm4, %v1081_v44, %v1085_v35  ;;  %v7205_v25 = vsel %vm6769_vm7, %v5268_v51, %v1237_v19  ;;  %v7208_v47 = vsel %vm524_vm0, %v5291_v11, 0  ;;  %v5270_v31 = vrot.slane %v5262_v57, 9  ;;  %v6406_v8 = vld [vmem:[%s7101_s12 + $0x10] ss:$8 sps:$4 sm:$0xff]   ;;  %v6407_v35 = vld [vmem:[%s7101_s12 + $0x20] ss:$8 sps:$4 sm:$0xff]  }
  0x76   : > { %5892 = vmatpush3.bf16.msra.mxu1 %v7094_v49  ;;  %5887 = vmatprep.mubr.msk.bf16.mxu1 %vm511_vm3, %v5252_v20  ;;  %v1100_v5 = vsel %vm6669_vm4, %v1095_v28, %v1099_v32  ;;  %v5275_v6 = vcombine.low %v1230_v14, %v1234_v22  ;;  %v1245_v1 = vrot.slane %v7106_v52, 5  ;;  %v5271_v23 = vrot.slane %v5263_v53, 9  ;;  %v3510_v24 = vld [vmem:[%s7101_s12 + $0x10] sm:$0xf]  ;;  %v7257_v55 = vld [vmem:[%s7101_s12 + $0x14] sm:$0x1] }
  0x77   : > { %6018 = vmatmul.mubr.msk.bf16.gmra.mrb[4].mxu0 %vm511_vm3, %v5514_v38  ;;  %v7227_v49 = vsel %vm6769_vm7, %v5269_v0, %v1241_v12  ;;  %6327 = vmatprep.subr.msk.bf16.mxu1 %vm524_vm0, %v5291_v11  ;;  %v1249_v52 = vrot.slane %v7131_v40, 5  ;;  %v5272_v7 = vrot.slane %v5264_v45, 9  ;;  %v1253_v34 = vrot.slane %v7150_v62, 5  ;;  %v7245_v62 = vld [vmem:[%s7101_s12 + $0xc] sm:$0x1] }
  0x78   : > { %6023 = vmatprep.mubr.msk.bf16.mxu0 %vm511_vm3, %v6405_v16  ;;  %v7236_v29 = vsel %vm6769_vm7, %v5270_v31, %v1245_v1  ;;  %v5273_v63 = vrot.slane %v5265_v27, 9  ;;  %v1257_v38 = vrot.slane %v7158_v21, 5  ;;  %v3523_v33 = vshrl.u32 %v3506_v48, 16  ;;  %v3512_v60 = vld [vmem:[%s7101_s12 + $0x18] sm:$0xf] }
  0x79   : > { %v5253_v59 = vcombine.low %v1086_v39, %v1100_v5  ;;  %v7242_v40 = vsel %vm6769_vm7, %v5271_v23, %v1249_v52  ;;  %v3526_v50 = vshll.u32 %v3506_v48, 16  ;;  %v3532_v4 = vshll.u32 %v7219_v13, 16  ;;  %v7263_v58 = vld [vmem:[%s7101_s12 + $0x1c] sm:$0x1]  ;;  %v5545_v16 = vld [vmem:[%s7965_s3 + $0x50] sm:$0xf] }
  0x7a   : > { %v5276_v30 = vcombine.low %v7205_v25, %v7227_v49  ;;  %v7254_v21 = vsel %vm6769_vm7, %v5272_v7, %v1253_v34  ;;  %v3525_v36 = vrot.slane %v3523_v33, 4  ;;  %v3537_v18 = vshrl.u32 %v3508_v15, 16  ;;  %v6408_v5 = vld [vmem:[%s7101_s12 + $0x30] ss:$8 sps:$4 sm:$0xff]   ;;  %v5316_v23 = vld [vmem:[%s7965_s3 + $0x1c] sm:$0xf] }
  0x7b   : > { %v5277_v56 = vcombine.low %v7236_v29, %v7242_v40  ;;  %v3528_v32 = vrot.slane %v3526_v50, 5  ;;  %v3534_v17 = vrot.slane %v3532_v4, 5  ;;  %v3540_v44 = vshll.u32 %v3508_v15, 16  ;;  %v3514_v15 = vld [vmem:[%s7101_s12 + $0x20] sm:$0xf] }
  0x7c   : > { %v3539_v26 = vrot.slane %v3537_v18, 4  ;;  %v3546_v54 = vshll.u32 %v7245_v62, 16  ;;  %v3551_v11 = vshrl.u32 %v3510_v24, 16  ;;  %v3554_v41 = vshll.u32 %v3510_v24, 16  ;;  %v7302_v33 = vld [vmem:[%s7101_s12 + $0x2c] sm:$0x1] }
  0x7d   : > { %5888 = vmatmul.mubr.msk.bf16.gmra.mrb[4].mxu1 %vm511_vm3, %v5253_v59  ;;  %v3529_v2 = vor.u32 %v3528_v32, %v3525_v36  ;;  %v3542_v51 = vrot.slane %v3540_v44, 5  ;;  %v3560_v19 = vshll.u32 %v7257_v55, 16  ;;  %v3565_v20 = vshrl.u32 %v3512_v60, 16  ;;  %v3518_v4 = vld [vmem:[%s7101_s12 + $0x30] sm:$0xf] }
  0x7e   : > { %5893 = vmatprep.mubr.msk.bf16.mxu1 %vm511_vm3, %v5275_v6  ;;  %v7271_v28 = vsel %vm6769_vm7, %v5273_v63, %v1257_v38  ;;  %v3553_v14 = vrot.slane %v3551_v11, 4  ;;  %v3556_v22 = vrot.slane %v3554_v41, 5  ;;  %v3568_v0 = vshll.u32 %v3512_v60, 16  ;;  %v7298_v63 = vld [vmem:[%s7101_s12 + $0x24] sm:$0x1] }
  0x7f   : > { %6024 = vmatmul.mubr.msk.bf16.vlgmr.msra.gmra.mrb[0].mxu0 %vm511_vm3, %v6406_v8  ;;  %v3530_v12 = vrot.slane %v3529_v2, 4  ;;  %v3543_v57 = vor.u32 %v3542_v51, %v3539_v26  ;;  %v3548_v53 = vrot.slane %v3546_v54, 5  ;;  %v3567_v39 = vrot.slane %v3565_v20, 4  ;;  %v3516_v38 = vld [vmem:[%s7101_s12 + $0x28] sm:$0xf] }
  0x80   : > { %6032 = vmatpush3.bf16.msra.mxu0 %v7190_v9  ;;  %6027 = vmatprep.mubr.msk.bf16.mxu0 %vm511_vm3, %v6407_v35  ;;  %v3557_v25 = vor.u32 %v3556_v22, %v3553_v14  ;;  %v3562_v31 = vrot.slane %v3560_v19, 5  ;;  %v3570_v45 = vrot.slane %v3568_v0, 5  ;;  %v3574_v27 = vshll.u32 %v7263_v58, 16  ;;  %v7308_v24 = vld [vmem:[%s7101_s12 + $0x34] sm:$0x1] }
  0x81   : > { %v3535_v6 = vsel %vm6669_vm4, %v3530_v12, %v3534_v17  ;;  %v3544_v1 = vrot.slane %v3543_v57, 4  ;;  %6342 = vmatprep.subr.msk.bf16.mxu0 %vm524_vm0, %v5545_v16  ;;  %v7285_v9 = vsel %vm524_vm0, %v5545_v16, 0  ;;  %v3762_v48 = vrot.slane %v7219_v13, 5  ;;  %v3520_v32 = vld [vmem:[%s7101_s12 + $0x38] sm:$0xf] }
  0x82   : > { %v3558_v49 = vrot.slane %v3557_v25, 4  ;;  %v3571_v52 = vor.u32 %v3570_v45, %v3567_v39  ;;  %v3576_v7 = vrot.slane %v3574_v27, 5  ;;  %v7292_v34 = vsel %vm524_vm0, %v5316_v23, 0  ;;  %v7319_v26 = vld [vmem:[%s7101_s12 + $0x3c] sm:$0x1] }
  0x83   : > { %v3549_v29 = vsel %vm6669_vm4, %v3544_v1, %v3548_v53  ;;  %v5278_v59 = vcombine.low %v7254_v21, %v7271_v28  ;;  %v3579_v50 = vshrl.u32 %v3514_v15, 16  ;;  %v3582_v35 = vshll.u32 %v3514_v15, 16  ;;  %v6409_v20 = vld [vmem:[%s6597_s8 + $0x10] ss:$8 sps:$4 sm:$0xff]   ;;  %v3736_v1 = vld [vmem:[%s7101_s12] sm:$0xe] }
  0x84   : > { %v5529_v8 = vcombine.low %v3535_v6, %v3549_v29  ;;  %v3572_v40 = vrot.slane %v3571_v52, 4  ;;  %v3588_v36 = vshll.u32 %v7298_v63, 16  ;;  %v3593_v18 = vshrl.u32 %v3516_v38, 16  ;;  %v5562_v29 = vld [vmem:[%s7965_s3 + $0x54] sm:$0xf] }
  0x85   : > { %5894 = vmatmul.mubr.msk.bf16.vlgmr.msra.gmra.mrb[0].mxu1 %vm511_vm3, %v5276_v30  ;;  %v3596_v60 = vshll.u32 %v3516_v38, 16  ;;  %v3563_v21 = vsel %vm6669_vm4, %v3558_v49, %v3562_v31  ;;  %v3581_v17 = vrot.slane %v3579_v50, 4  ;;  %v3602_v44 = vshll.u32 %v7302_v33, 16  ;;  %v3738_v38 = vld [vmem:[%s7101_s12 + $0x10] sm:$0xe] }
  0x86   : > { %5902 = vmatpush3.bf16.msra.mxu1 %v7208_v47  ;;  %5897 = vmatprep.mubr.msk.bf16.mxu1 %vm511_vm3, %v5277_v56  ;;  %v3607_v30 = vshrl.u32 %v3518_v4, 16  ;;  %v3577_v54 = vsel %vm6669_vm4, %v3572_v40, %v3576_v7  ;;  %v3584_v47 = vrot.slane %v3582_v35, 5  ;;  %v3590_v11 = vrot.slane %v3588_v36, 5  ;;  %v3739_v50 = vld [vmem:[%s7101_s12 + $0x18] sm:$0xe] }
  0x87   : > { %6028 = vmatmul.mubr.msk.bf16.gmra.mrb[4].mxu0 %vm511_vm3, %v6408_v5  ;;  %6328 = vmatprep.subr.msk.bf16.mxu1 %vm524_vm0, %v5316_v23  ;;  %v3595_v56 = vrot.slane %v3593_v18, 4  ;;  %v3598_v41 = vrot.slane %v3596_v60, 5  ;;  %v3604_v2 = vrot.slane %v3602_v44, 5  ;;  %v3610_v19 = vshll.u32 %v3518_v4, 16  ;;  %v3737_v23 = vld [vmem:[%s7101_s12 + $0x8] sm:$0xe] }
  0x88   : > { %6033 = vmatprep.mubr.msk.bf16.mxu0 %vm511_vm3, %v5529_v8  ;;  %v3609_v51 = vrot.slane %v3607_v30, 4  ;;  %v3585_v28 = vor.u32 %v3584_v47, %v3581_v17  ;;  %v3616_v16 = vshll.u32 %v7308_v24, 16  ;;  %v3621_v14 = vshrl.u32 %v3520_v32, 16  ;;  %v6410_v35 = vld [vmem:[%s6597_s8 + $0x20] ss:$8 sps:$4 sm:$0xff]  }
  0x89   : > { %v3624_v22 = vshll.u32 %v3520_v32, 16  ;;  %v5530_v0 = vcombine.low %v3563_v21, %v3577_v54  ;;  %v3599_v12 = vor.u32 %v3598_v41, %v3595_v56  ;;  %v3612_v57 = vrot.slane %v3610_v19, 5  ;;  %v5300_v21 = vld [vmem:[%s6597_s8 + $0x10] sm:$0xf]  ;;  %v7358_v30 = vld [vmem:[%s6597_s8 + $0x14] sm:$0x1] }
  0x8a   : > { %v3630_v53 = vshll.u32 %v7319_v26, 16  ;;  %v3586_v39 = vrot.slane %v3585_v28, 4  ;;  %v3618_v25 = vrot.slane %v3616_v16, 5  ;;  %v3623_v31 = vrot.slane %v3621_v14, 4  ;;  %v6411_v41 = vld [vmem:[%s6597_s8 + $0x30] ss:$8 sps:$4 sm:$0xff]  }
  0x8b   : > { %v3626_v45 = vrot.slane %v3624_v22, 5  ;;  %v3600_v27 = vrot.slane %v3599_v12, 4  ;;  %v3613_v5 = vor.u32 %v3612_v57, %v3609_v51  ;;  %v5537_v7 = vrot.slane %v3736_v1, 9 }
  0x8c   : > { %v3632_v6 = vrot.slane %v3630_v53, 5  ;;  %v3591_v49 = vsel %vm6669_vm4, %v3586_v39, %v3590_v11  ;;  %v5538_v15 = vrot.slane %v3737_v23, 9  ;;  %v5539_v4 = vrot.slane %v3738_v38, 9  ;;  %v5304_v11 = vld [vmem:[%s6597_s8 + $0x20] sm:$0xf] }
  0x8d   : > { %5898 = vmatmul.mubr.msk.bf16.gmra.mrb[4].mxu1 %vm511_vm3, %v5278_v59  ;;  %v3627_v52 = vor.u32 %v3626_v45, %v3623_v31  ;;  %v3605_v8 = vsel %vm6669_vm4, %v3600_v27, %v3604_v2  ;;  %v3614_v40 = vrot.slane %v3613_v5, 4  ;;  %v3766_v59 = vrot.slane %v7245_v62, 5  ;;  %v7394_v5 = vld [vmem:[%s6597_s8 + $0x2c] sm:$0x1] }
  0x8e   : > { %5903 = vmatprep.mubr.msk.bf16.mxu1 %vm511_vm3, %v6409_v20  ;;  %v5531_v36 = vcombine.low %v3591_v49, %v3605_v8  ;;  %v3763_v60 = vsel %vm6769_vm7, %v5537_v7, %v3762_v48  ;;  %v3770_v32 = vrot.slane %v7257_v55, 5  ;;  %v5540_v44 = vrot.slane %v3739_v50, 9  ;;  %v5302_v48 = vld [vmem:[%s6597_s8 + $0x18] sm:$0xf]  ;;  %v7382_v20 = vld [vmem:[%s6597_s8 + $0x24] sm:$0x1] }
  0x8f   : > { %6034 = vmatmul.mubr.msk.bf16.vlgmr.msra.gmra.mrb[0].mxu0 %vm511_vm3, %v5530_v0  ;;  %v3628_v18 = vrot.slane %v3627_v52, 4  ;;  %v3619_v62 = vsel %vm6669_vm4, %v3614_v40, %v3618_v25  ;;  %v3767_v17 = vsel %vm6769_vm7, %v5538_v15, %v3766_v59  ;;  %v3774_v13 = vrot.slane %v7263_v58, 5  ;;  %v7373_v58 = vld [vmem:[%s6597_s8 + $0x1c] sm:$0x1]  ;;  %v5306_v0 = vld [vmem:[%s6597_s8 + $0x28] sm:$0xf] }
  0x90   : > { %6042 = vmatpush3.bf16.msra.mxu0 %v7285_v9  ;;  %6037 = vmatprep.mubr.msk.bf16.mxu0 %vm511_vm3, %v5531_v36  ;;  %v5546_v9 = vcombine.low %v3763_v60, %v3767_v17  ;;  %v7367_v54 = vsel %vm6769_vm7, %v5539_v4, %v3770_v32  ;;  %v7370_v47 = vsel %vm524_vm0, %v5562_v29, 0  ;;  %v1497_v51 = vshrl.u32 %v5300_v21, 16  ;;  %v5341_v25 = vld [vmem:[%s7965_s3 + $0x20] sm:$0xf] }
  0x91   : > { %v3633_v55 = vsel %vm6669_vm4, %v3628_v18, %v3632_v6  ;;  %6343 = vmatprep.subr.msk.bf16.mxu0 %vm524_vm0, %v5562_v29  ;;  %v7379_v2 = vsel %vm6769_vm7, %v5540_v44, %v3774_v13  ;;  %v1500_v19 = vshll.u32 %v5300_v21, 16  ;;  %v1506_v16 = vshll.u32 %v7358_v30, 16  ;;  %v6412_v7 = vld [vmem:[%s6597_s8 + $0x40] ss:$8 sps:$4 sm:$0xff]   ;;  %v3742_v21 = vld [vmem:[%s7101_s12 + $0x30] sm:$0xe] }
  0x92   : > { %v5532_v56 = vcombine.low %v3619_v62, %v3633_v55  ;;  %v5547_v28 = vcombine.low %v7367_v54, %v7379_v2  ;;  %v1511_v14 = vshrl.u32 %v5302_v48, 16  ;;  %v1514_v22 = vshll.u32 %v5302_v48, 16  ;;  %v3740_v40 = vld [vmem:[%s7101_s12 + $0x20] sm:$0xe]  ;;  %v3743_v48 = vld [vmem:[%s7101_s12 + $0x38] sm:$0xe] }
  0x93   : > { %v1499_v12 = vrot.slane %v1497_v51, 4  ;;  %v1502_v57 = vrot.slane %v1500_v19, 5  ;;  %v1520_v53 = vshll.u32 %v7373_v58, 16  ;;  %v1525_v39 = vshrl.u32 %v5304_v11, 16 }
  0x94   : > { %v1508_v31 = vrot.slane %v1506_v16, 5  ;;  %v1513_v45 = vrot.slane %v1511_v14, 4  ;;  %v1516_v27 = vrot.slane %v1514_v22, 5  ;;  %v1528_v6 = vshll.u32 %v5304_v11, 16  ;;  %v7421_v22 = vld [vmem:[%s6597_s8 + $0x34] sm:$0x1] }
  0x95   : > { %5904 = vmatmul.mubr.msk.bf16.vlgmr.msra.gmra.mrb[0].mxu1 %vm511_vm3, %v6410_v35  ;;  %v1503_v1 = vor.u32 %v1502_v57, %v1499_v12  ;;  %v1522_v23 = vrot.slane %v1520_v53, 5  ;;  %v1527_v49 = vrot.slane %v1525_v39, 4  ;;  %v1534_v52 = vshll.u32 %v7382_v20, 16  ;;  %v3741_v35 = vld [vmem:[%s7101_s12 + $0x28] sm:$0xe] }
  0x96   : > { %5912 = vmatpush3.bf16.msra.mxu1 %v7292_v34  ;;  %5907 = vmatprep.mubr.msk.bf16.mxu1 %vm511_vm3, %v6411_v41  ;;  %v1517_v15 = vor.u32 %v1516_v27, %v1513_v45  ;;  %v1530_v29 = vrot.slane %v1528_v6, 5  ;;  %v1539_v38 = vshrl.u32 %v5306_v0, 16  ;;  %v1542_v8 = vshll.u32 %v5306_v0, 16  ;;  %v5308_v41 = vld [vmem:[%s6597_s8 + $0x30] sm:$0xf] }
  0x97   : > { %6038 = vmatmul.mubr.msk.bf16.gmra.mrb[4].mxu0 %vm511_vm3, %v5532_v56  ;;  %6329 = vmatprep.subr.msk.bf16.mxu1 %vm524_vm0, %v5341_v25  ;;  %v1504_v34 = vrot.slane %v1503_v1, 4  ;;  %v1536_v59 = vrot.slane %v1534_v52, 5  ;;  %v1548_v50 = vshll.u32 %v7394_v5, 16  ;;  %v7406_v4 = vsel %vm524_vm0, %v5341_v25, 0  ;;  %v7429_v39 = vld [vmem:[%s6597_s8 + $0x3c] sm:$0x1] }
  0x98   : > { %6043 = vmatprep.mubr.msk.bf16.mxu0 %vm511_vm3, %v5546_v9  ;;  %v1518_v36 = vrot.slane %v1517_v15, 4  ;;  %v1531_v18 = vor.u32 %v1530_v29, %v1527_v49  ;;  %v1541_v60 = vrot.slane %v1539_v38, 4  ;;  %v1544_v32 = vrot.slane %v1542_v8, 5  ;;  %v5312_v25 = vld [vmem:[%s6597_s8 + $0x40] sm:$0xf] }
  0x99   : > { %v1509_v62 = vsel %vm6669_vm4, %v1504_v34, %v1508_v31  ;;  %v1550_v17 = vrot.slane %v1548_v50, 5  ;;  %v5541_v44 = vrot.slane %v3740_v40, 9  ;;  %v3778_v13 = vrot.slane %v7298_v63, 5  ;;  %v5310_v63 = vld [vmem:[%s6597_s8 + $0x38] sm:$0xf] }
  0x9a   : > { %v1523_v55 = vsel %vm6669_vm4, %v1518_v36, %v1522_v23  ;;  %v1532_v9 = vrot.slane %v1531_v18, 4  ;;  %v1545_v11 = vor.u32 %v1544_v32, %v1541_v60  ;;  %v5542_v56 = vrot.slane %v3741_v35, 9  ;;  %v7437_v6 = vld [vmem:[%s6597_s8 + $0x44] sm:$0x1]  ;;  %v7459_v34 = vld [vmem:[%s6597_s8 + $0x4c] sm:$0x1] }
  0x9b   : > { %v5317_v51 = vcombine.low %v1509_v62, %v1523_v55  ;;  %v3779_v19 = vsel %vm6769_vm7, %v5541_v44, %v3778_v13  ;;  %v3782_v16 = vrot.slane %v7302_v33, 5  ;;  %v5543_v14 = vrot.slane %v3742_v21, 9  ;;  %v6413_v32 = vld [vmem:[%s7101_s12 + $0x8] ss:$8 sps:$4 sm:$0xff]  }
  0x9c   : > { %v1537_v0 = vsel %vm6669_vm4, %v1532_v9, %v1536_v59  ;;  %v1546_v12 = vrot.slane %v1545_v11, 4  ;;  %v3786_v57 = vrot.slane %v7308_v24, 5  ;;  %v5544_v53 = vrot.slane %v3743_v48, 9  ;;  %v5325_v13 = vld [vmem:[%s6597_s8 + $0x10] sm:$0xe] }
  0x9d   : > { %5908 = vmatmul.mubr.msk.bf16.gmra.mrb[4].mxu1 %vm511_vm3, %v6412_v7  ;;  %v3783_v33 = vsel %vm6769_vm7, %v5542_v56, %v3782_v16  ;;  %v3790_v31 = vrot.slane %v7319_v26, 5  ;;  %v1553_v45 = vshrl.u32 %v5308_v41, 16  ;;  %v1556_v27 = vshll.u32 %v5308_v41, 16  ;;  %v5314_v26 = vld [vmem:[%s6597_s8 + $0x48] sm:$0xf] }
  0x9e   : > { %5913 = vmatprep.mubr.msk.bf16.mxu1 %vm511_vm3, %v5317_v51  ;;  %v1551_v24 = vsel %vm6669_vm4, %v1546_v12, %v1550_v17  ;;  %v5548_v1 = vcombine.low %v3779_v19, %v3783_v33  ;;  %v3787_v23 = vsel %vm6769_vm7, %v5543_v14, %v3786_v57  ;;  %v1562_v49 = vshll.u32 %v7421_v22, 16  ;;  %v5326_v11 = vld [vmem:[%s6597_s8 + $0x18] sm:$0xe]  ;;  %v5327_v56 = vld [vmem:[%s6597_s8 + $0x20] sm:$0xe] }
  0x9f   : > { %6044 = vmatmul.mubr.msk.bf16.vlgmr.msra.gmra.mrb[0].mxu0 %vm511_vm3, %v5547_v28  ;;  %v5318_v52 = vcombine.low %v1537_v0, %v1551_v24  ;;  %v3791_v7 = vsel %vm6769_vm7, %v5544_v53, %v3790_v31  ;;  %v1555_v54 = vrot.slane %v1553_v45, 4  ;;  %v1558_v2 = vrot.slane %v1556_v27, 5  ;;  %v5587_v28 = vld [vmem:[%s7965_s3 + $0x58] sm:$0xf]  ;;  %v5328_v14 = vld [vmem:[%s6597_s8 + $0x28] sm:$0xe] }
  0xa0   : > { %6052 = vmatpush3.bf16.msra.mxu0 %v7370_v47  ;;  %6047 = vmatprep.mubr.msk.bf16.mxu0 %vm511_vm3, %v5548_v1  ;;  %v5549_v15 = vcombine.low %v3787_v23, %v3791_v7  ;;  %v1564_v29 = vrot.slane %v1562_v49, 5  ;;  %v1567_v38 = vshrl.u32 %v5310_v63, 16  ;;  %v1570_v8 = vshll.u32 %v5310_v63, 16  ;;  %v5350_v63 = vld [vmem:[%s7965_s3 + $0x24] sm:$0xf] }
  0xa1   : > { %6344 = vmatprep.subr.msk.bf16.mxu0 %vm524_vm0, %v5587_v28  ;;  %v1559_v47 = vor.u32 %v1558_v2, %v1555_v54  ;;  %v1576_v40 = vshll.u32 %v7429_v39, 16  ;;  %v1581_v59 = vshrl.u32 %v5312_v25, 16  ;;  %v1584_v50 = vshll.u32 %v5312_v25, 16  ;;  %v6414_v23 = vld [vmem:[%s7101_s12 + $0x18] ss:$8 sps:$4 sm:$0xff]  }
  0xa2   : > { %v1569_v35 = vrot.slane %v1567_v38, 4  ;;  %v1572_v36 = vrot.slane %v1570_v8, 5  ;;  %v1590_v18 = vshll.u32 %v7437_v6, 16  ;;  %v1595_v60 = vshrl.u32 %v5314_v26, 16  ;;  %v5330_v38 = vld [vmem:[%s6597_s8 + $0x38] sm:$0xe] }
  0xa3   : > { %v1560_v21 = vrot.slane %v1559_v47, 4  ;;  %v1578_v62 = vrot.slane %v1576_v40, 5  ;;  %v1583_v17 = vrot.slane %v1581_v59, 4  ;;  %v1586_v44 = vrot.slane %v1584_v50, 5  ;;  %v5331_v50 = vld [vmem:[%s6597_s8 + $0x40] sm:$0xe] }
  0xa4   : > { %v1573_v48 = vor.u32 %v1572_v36, %v1569_v35  ;;  %v1597_v55 = vrot.slane %v1595_v60, 4  ;;  %v1598_v9 = vshll.u32 %v5314_v26, 16  ;;  %v1592_v19 = vrot.slane %v1590_v18, 5  ;;  %v5332_v35 = vld [vmem:[%s6597_s8 + $0x48] sm:$0xe] }
  0xa5   : > { %5914 = vmatmul.mubr.msk.bf16.vlgmr.msra.gmra.mrb[0].mxu1 %vm511_vm3, %v5318_v52  ;;  %v1565_v41 = vsel %vm6669_vm4, %v1560_v21, %v1564_v29  ;;  %v1587_v51 = vor.u32 %v1586_v44, %v1583_v17  ;;  %v1604_v16 = vshll.u32 %v7459_v34, 16  ;;  %v5333_v57 = vrot.slane %v5325_v13, 9  ;;  %v7511_v21 = vld [vmem:[%s7101_s12 + $0xc] sm:$0x1]  ;;  %v5573_v13 = vld [vmem:[%s7101_s12 + $0x10] sm:$0xf] }
  0xa6   : > { %5922 = vmatpush3.bf16.msra.mxu1 %v7406_v4  ;;  %v1574_v0 = vrot.slane %v1573_v48, 4  ;;  %v1600_v12 = vrot.slane %v1598_v9, 5  ;;  %v1736_v4 = vrot.slane %v7358_v30, 5  ;;  %v5334_v33 = vrot.slane %v5326_v11, 9 }
  0xa7   : > { %6048 = vmatmul.mubr.msk.bf16.gmra.mrb[4].mxu0 %vm511_vm3, %v5549_v15  ;;  %6330 = vmatprep.subr.msk.bf16.mxu1 %vm524_vm0, %v5350_v63  ;;  %v1588_v53 = vrot.slane %v1587_v51, 4  ;;  %v1606_v25 = vrot.slane %v1604_v16, 5  ;;  %v1740_v31 = vrot.slane %v7373_v58, 5  ;;  %v5335_v30 = vrot.slane %v5327_v56, 9  ;;  %v5329_v15 = vld [vmem:[%s6597_s8 + $0x30] sm:$0xe] }
  0xa8   : > { %6053 = vmatprep.mubr.msk.bf16.mxu0 %vm511_vm3, %v6413_v32  ;;  %v1579_v45 = vsel %vm6669_vm4, %v1574_v0, %v1578_v62  ;;  %v1601_v27 = vor.u32 %v1600_v12, %v1597_v55  ;;  %v1737_v24 = vsel %vm6769_vm7, %v5333_v57, %v1736_v4  ;;  %v4168_v49 = vsel %vm524_vm0, %v5587_v28, 0  ;;  %v6415_v28 = vld [vmem:[%s7101_s12 + $0x28] ss:$8 sps:$4 sm:$0xff]   ;;  %v7521_v55 = vld [vmem:[%s7101_s12 + $0x14] sm:$0x1] }
  0xa9   : > { %v5319_v1 = vcombine.low %v1565_v41, %v1579_v45  ;;  %v1741_v26 = vsel %vm6769_vm7, %v5334_v33, %v1740_v31  ;;  %v1744_v52 = vrot.slane %v7382_v20, 5  ;;  %v1593_v58 = vsel %vm6669_vm4, %v1588_v53, %v1592_v19  ;;  %v5571_v32 = vld [vmem:[%s7101_s12 + $0x8] sm:$0xf]  ;;  %v5575_v16 = vld [vmem:[%s7101_s12 + $0x18] sm:$0xf] }
  0xaa   : > { %v1602_v7 = vrot.slane %v1601_v27, 4  ;;  %v5336_v54 = vrot.slane %v5328_v14, 9  ;;  %v1748_v2 = vrot.slane %v7394_v5, 5  ;;  %v5342_v29 = vcombine.low %v1737_v24, %v1741_v26  ;;  %v7533_v57 = vld [vmem:[%s7101_s12 + $0x1c] sm:$0x1] }
  0xab   : > { %5917 = vmatprep.mubr.msk.bf16.mxu1 %vm511_vm3, %v5319_v1  ;;  %v5337_v8 = vrot.slane %v5329_v15, 9  ;;  %v1752_v20 = vrot.slane %v7421_v22, 5  ;;  %v1745_v40 = vsel %vm6769_vm7, %v5335_v30, %v1744_v52  ;;  %v5338_v59 = vrot.slane %v5330_v38, 9  ;;  %v5577_v33 = vld [vmem:[%s7101_s12 + $0x20] sm:$0xf] }
  0xac   : > { %v1607_v47 = vsel %vm6669_vm4, %v1602_v7, %v1606_v25  ;;  %v1756_v5 = vrot.slane %v7429_v39, 5  ;;  %v1749_v18 = vsel %vm6769_vm7, %v5336_v54, %v1748_v2  ;;  %v1911_v60 = vsel %vm524_vm0, %v5350_v63, 0  ;;  %v7538_v27 = vld [vmem:[%s7101_s12 + $0x24] sm:$0x1] }
  0xad   : > { %v5320_v36 = vcombine.low %v1593_v58, %v1607_v47  ;;  %v1753_v22 = vsel %vm6769_vm7, %v5337_v8, %v1752_v20  ;;  %v5339_v62 = vrot.slane %v5331_v50, 9  ;;  %v1760_v17 = vrot.slane %v7437_v6, 5  ;;  %v6416_v6 = vld [vmem:[%s7101_s12 + $0x38] ss:$8 sps:$4 sm:$0xff]  }
  0xae   : > { %v1757_v39 = vsel %vm6769_vm7, %v5338_v59, %v1756_v5  ;;  %v5340_v44 = vrot.slane %v5332_v35, 9  ;;  %v1764_v48 = vrot.slane %v7459_v34, 5  ;;  %v4030_v9 = vshrl.u32 %v5571_v32, 16  ;;  %v5612_v34 = vld [vmem:[%s7965_s3 + $0x5c] sm:$0xf] }
  0xaf   : > { %6054 = vmatmul.mubr.msk.bf16.vlgmr.msra.gmra.mrb[0].mxu0 %vm511_vm3, %v6414_v23  ;;  %5918 = vmatmul.mubr.msk.bf16.gmra.mrb[4].mxu1 %vm511_vm3, %v5320_v36  ;;  %v4033_v11 = vshll.u32 %v5571_v32, 16  ;;  %v4039_v56 = vshll.u32 %v7511_v21, 16  ;;  %v5343_v41 = vcombine.low %v1745_v40, %v1749_v18  ;;  %v4044_v51 = vshrl.u32 %v5573_v13, 16  ;;  %v5359_v35 = vld [vmem:[%s7965_s3 + $0x28] sm:$0xf] }
  0xb0   : > { %6062 = vmatpush3.bf16.msra.mxu0 %v4168_v49  ;;  %5923 = vmatprep.mubr.msk.bf16.mxu1 %vm511_vm3, %v5342_v29  ;;  %v4047_v19 = vshll.u32 %v5573_v13, 16  ;;  %v5344_v14 = vcombine.low %v1753_v22, %v1757_v39  ;;  %v4032_v63 = vrot.slane %v4030_v9, 4  ;;  %v4053_v25 = vshll.u32 %v7521_v55, 16  ;;  %v5579_v36 = vld [vmem:[%s7101_s12 + $0x28] sm:$0xf] }
  0xb1   : > { %6057 = vmatprep.mubr.msk.bf16.mxu0 %vm511_vm3, %v6415_v28  ;;  %v4035_v0 = vrot.slane %v4033_v11, 5  ;;  %v4041_v12 = vrot.slane %v4039_v56, 5  ;;  %6345 = vmatprep.subr.msk.bf16.mxu0 %vm524_vm0, %v5612_v34  ;;  %v4046_v4 = vrot.slane %v4044_v51, 4  ;;  %v4058_v31 = vshrl.u32 %v5575_v16, 16  ;;  %v6417_v13 = vld [vmem:[%s6654_s17] ss:$8 sps:$4 sm:$0xff]  }
  0xb2   : > { %v4049_v53 = vrot.slane %v4047_v19, 5  ;;  %v4061_v24 = vshll.u32 %v5575_v16, 16  ;;  %v4067_v30 = vshll.u32 %v7533_v57, 16  ;;  %v4072_v1 = vshrl.u32 %v5577_v33, 16 }
  0xb3   : > { %v4036_v45 = vor.u32 %v4035_v0, %v4032_v63  ;;  %v4055_v49 = vrot.slane %v4053_v25, 5  ;;  %v4060_v26 = vrot.slane %v4058_v31, 4  ;;  %v4075_v52 = vshll.u32 %v5577_v33, 16  ;;  %v5585_v31 = vld [vmem:[%s7101_s12 + $0x40] sm:$0xf] }
  0xb4   : > { %v4050_v23 = vor.u32 %v4049_v53, %v4046_v4  ;;  %v1761_v58 = vsel %vm6769_vm7, %v5339_v62, %v1760_v17  ;;  %v4063_v54 = vrot.slane %v4061_v24, 5  ;;  %v4074_v2 = vrot.slane %v4072_v1, 4  ;;  %v7564_v62 = vld [vmem:[%s7101_s12 + $0x2c] sm:$0x1]  ;;  %v5581_v17 = vld [vmem:[%s7101_s12 + $0x30] sm:$0xf] }
  0xb5   : > { %v4037_v7 = vrot.slane %v4036_v45, 4  ;;  %v1765_v15 = vsel %vm6769_vm7, %v5340_v44, %v1764_v48  ;;  %v4077_v28 = vrot.slane %v4075_v52, 5  ;;  %v4081_v38 = vshll.u32 %v7538_v27, 16  ;;  %v7569_v48 = vld [vmem:[%s7101_s12 + $0x34] sm:$0x1] }
  0xb6   : > { %v4051_v29 = vrot.slane %v4050_v23, 4  ;;  %v4064_v20 = vor.u32 %v4063_v54, %v4060_v26  ;;  %v4069_v47 = vrot.slane %v4067_v30, 5  ;;  %v4326_v40 = vsel %vm524_vm0, %v5612_v34, 0  ;;  %v5583_v34 = vld [vmem:[%s7101_s12 + $0x38] sm:$0xf] }
  0xb7   : > { %6058 = vmatmul.mubr.msk.bf16.gmra.mrb[4].mxu0 %vm511_vm3, %v6416_v6  ;;  %5924 = vmatmul.mubr.msk.bf16.vlgmr.msra.gmra.mrb[0].mxu1 %vm511_vm3, %v5343_v41  ;;  %v4042_v8 = vsel %vm6669_vm4, %v4037_v7, %v4041_v12  ;;  %v4078_v5 = vor.u32 %v4077_v28, %v4074_v2  ;;  %v4083_v50 = vrot.slane %v4081_v38, 5  ;;  %v4269_v18 = vrot.slane %v7511_v21, 5  ;;  %v7580_v12 = vld [vmem:[%s7101_s12 + $0x3c] sm:$0x1]  ;;  %v7584_v24 = vld [vmem:[%s7101_s12 + $0x44] sm:$0x1] }
  0xb8   : > { %5932 = vmatpush3.bf16.msra.mxu1 %v1911_v60  ;;  %5927 = vmatprep.mubr.msk.bf16.mxu1 %vm511_vm3, %v5344_v14  ;;  %v4056_v59 = vsel %vm6669_vm4, %v4051_v29, %v4055_v49  ;;  %v5345_v22 = vcombine.low %v1761_v58, %v1765_v15  ;;  %v4065_v39 = vrot.slane %v4064_v20, 4  ;;  %v7561_v60 = vsel %vm524_vm0, %v5359_v35, 0  ;;  %v6418_v29 = vld [vmem:[%s6654_s17 + $0x10] ss:$8 sps:$4 sm:$0xff]  }
  0xb9   : > { %v5588_v32 = vcombine.low %v4042_v8, %v4056_v59  ;;  %6331 = vmatprep.subr.msk.bf16.mxu1 %vm524_vm0, %v5359_v35  ;;  %v4079_v44 = vrot.slane %v4078_v5, 4  ;;  %v4086_v9 = vshrl.u32 %v5579_v36, 16  ;;  %v4089_v11 = vshll.u32 %v5579_v36, 16  ;;  %v5596_v35 = vld [vmem:[%s7101_s12 + $0x8] sm:$0xe] }
  0xba   : > { %v4095_v56 = vshll.u32 %v7564_v62, 16  ;;  %v4070_v41 = vsel %vm6669_vm4, %v4065_v39, %v4069_v47  ;;  %v4100_v6 = vshrl.u32 %v5581_v17, 16  ;;  %v4103_v51 = vshll.u32 %v5581_v17, 16  ;;  %v5597_v36 = vld [vmem:[%s7101_s12 + $0x10] sm:$0xe] }
  0xbb   : > { %6063 = vmatprep.mubr.msk.bf16.mxu0 %vm511_vm3, %v5588_v32  ;;  %v4109_v19 = vshll.u32 %v7569_v48, 16  ;;  %v4084_v16 = vsel %vm6669_vm4, %v4079_v44, %v4083_v50  ;;  %v4088_v14 = vrot.slane %v4086_v9, 4  ;;  %v4091_v63 = vrot.slane %v4089_v11, 5  ;;  %v5629_v9 = vld [vmem:[%s7965_s3 + $0x60] sm:$0xf] }
  0xbc   : > { %v4097_v0 = vrot.slane %v4095_v56, 5  ;;  %v5589_v4 = vcombine.low %v4070_v41, %v4084_v16  ;;  %v4102_v53 = vrot.slane %v4100_v6, 4  ;;  %v4105_v25 = vrot.slane %v4103_v51, 5  ;;  %v5598_v56 = vld [vmem:[%s7101_s12 + $0x18] sm:$0xe] }
  0xbd   : > { %v4111_v33 = vrot.slane %v4109_v19, 5  ;;  %v4092_v45 = vor.u32 %v4091_v63, %v4088_v14  ;;  %v4114_v30 = vshrl.u32 %v5583_v34, 16  ;;  %v4117_v1 = vshll.u32 %v5583_v34, 16  ;;  %v5599_v41 = vld [vmem:[%s7101_s12 + $0x20] sm:$0xe] }
  0xbe   : > { %v4123_v23 = vshll.u32 %v7580_v12, 16  ;;  %v4106_v49 = vor.u32 %v4105_v25, %v4102_v53  ;;  %v4128_v26 = vshrl.u32 %v5585_v31, 16  ;;  %v4131_v52 = vshll.u32 %v5585_v31, 16  ;;  %v1986_v34 = vld [vmem:[%s6654_s17] sm:$0xf] }
  0xbf   : > { %5928 = vmatmul.mubr.msk.bf16.gmra.mrb[4].mxu1 %vm511_vm3, %v5345_v22  ;;  %6064 = vmatmul.mubr.msk.bf16.vlgmr.msra.gmra.mrb[0].mxu0 %vm511_vm3, %v5589_v4  ;;  %v4137_v58 = vshll.u32 %v7584_v24, 16  ;;  %v4093_v7 = vrot.slane %v4092_v45, 4  ;;  %v4116_v54 = vrot.slane %v4114_v30, 4  ;;  %v4119_v2 = vrot.slane %v4117_v1, 5  ;;  %v7619_v16 = vld [vmem:[%s6654_s17 + $0x4] sm:$0x1] }
  0xc0   : > { %6072 = vmatpush3.bf16.msra.mxu0 %v4326_v40  ;;  %5933 = vmatprep.mubr.msk.bf16.mxu1 %vm511_vm3, %v6417_v13  ;;  %v4125_v15 = vrot.slane %v4123_v23, 5  ;;  %v4107_v28 = vrot.slane %v4106_v49, 4  ;;  %v4130_v38 = vrot.slane %v4128_v26, 4  ;;  %v4133_v8 = vrot.slane %v4131_v52, 5  ;;  %v6419_v40 = vld [vmem:[%s6654_s17 + $0x20] ss:$8 sps:$4 sm:$0xff]  }
  0xc1   : > { %v4139_v20 = vrot.slane %v4137_v58, 5  ;;  %v4098_v47 = vsel %vm6669_vm4, %v4093_v7, %v4097_v0  ;;  %v4120_v59 = vor.u32 %v4119_v2, %v4116_v54  ;;  %v4273_v22 = vrot.slane %v7521_v55, 5  ;;  %6346 = vmatprep.subr.msk.bf16.mxu0 %vm524_vm0, %v5629_v9  ;;  %v7629_v0 = vld [vmem:[%s6654_s17 + $0xc] sm:$0x1]  ;;  %v1990_v31 = vld [vmem:[%s6654_s17 + $0x10] sm:$0xf] }
  0xc2   : > { %v4112_v5 = vsel %vm6669_vm4, %v4107_v28, %v4111_v33  ;;  %v4134_v50 = vor.u32 %v4133_v8, %v4130_v38  ;;  %v4277_v32 = vrot.slane %v7533_v57, 5  ;;  %v5604_v44 = vrot.slane %v5596_v35, 9  ;;  %v7637_v45 = vld [vmem:[%s6654_s17 + $0x14] sm:$0x1]  ;;  %v6420_v30 = vld [vmem:[%s6654_s17 + $0x30] ss:$8 sps:$4 sm:$0xff]  }
  0xc3   : > { %v5590_v39 = vcombine.low %v4098_v47, %v4112_v5  ;;  %v4121_v17 = vrot.slane %v4120_v59, 4  ;;  %v5605_v13 = vrot.slane %v5597_v36, 9  ;;  %v4281_v55 = vrot.slane %v7538_v27, 5  ;;  %v1992_v26 = vld [vmem:[%s6654_s17 + $0x18] sm:$0xf] }
  0xc4   : > { %v4135_v11 = vrot.slane %v4134_v50, 4  ;;  %v4270_v6 = vsel %vm6769_vm7, %v5604_v44, %v4269_v18  ;;  %v5606_v19 = vrot.slane %v5598_v56, 9  ;;  %v5607_v21 = vrot.slane %v5599_v41, 9  ;;  %v1988_v18 = vld [vmem:[%s6654_s17 + $0x8] sm:$0xf] }
  0xc5   : > { %6067 = vmatprep.mubr.msk.bf16.mxu0 %vm511_vm3, %v5590_v39  ;;  %v4126_v57 = vsel %vm6669_vm4, %v4121_v17, %v4125_v15  ;;  %v4274_v51 = vsel %vm6769_vm7, %v5605_v13, %v4273_v22  ;;  %v7625_v63 = vsel %vm524_vm0, %v5629_v9, 0  ;;  %v2003_v25 = vshrl.u32 %v1986_v34, 16  ;;  %v7647_v2 = vld [vmem:[%s6654_s17 + $0x1c] sm:$0x1]  ;;  %v5376_v8 = vld [vmem:[%s7965_s3 + $0x2c] sm:$0xf] }
  0xc6   : > { %v4140_v27 = vsel %vm6669_vm4, %v4135_v11, %v4139_v20  ;;  %v5613_v14 = vcombine.low %v4270_v6, %v4274_v51  ;;  %v4278_v53 = vsel %vm6769_vm7, %v5606_v19, %v4277_v32  ;;  %v2006_v33 = vshll.u32 %v1986_v34, 16  ;;  %v5600_v22 = vld [vmem:[%s7101_s12 + $0x28] sm:$0xe]  ;;  %v5601_v13 = vld [vmem:[%s7101_s12 + $0x30] sm:$0xe] }
  0xc7   : > { %5934 = vmatmul.mubr.msk.bf16.vlgmr.msra.gmra.mrb[0].mxu1 %vm511_vm3, %v6418_v29  ;;  %v5591_v4 = vcombine.low %v4126_v57, %v4140_v27  ;;  %v4282_v1 = vsel %vm6769_vm7, %v5607_v21, %v4281_v55  ;;  %v2012_v23 = vshll.u32 %v7619_v16, 16  ;;  %v2017_v49 = vshrl.u32 %v1988_v18, 16  ;;  %v5602_v55 = vld [vmem:[%s7101_s12 + $0x38] sm:$0xe]  ;;  %v5603_v34 = vld [vmem:[%s7101_s12 + $0x40] sm:$0xe] }
  0xc8   : > { %5942 = vmatpush3.bf16.msra.mxu1 %v7561_v60  ;;  %5937 = vmatprep.mubr.msk.bf16.mxu1 %vm511_vm3, %v6419_v40  ;;  %v2020_v60 = vshll.u32 %v1988_v18, 16  ;;  %v5614_v52 = vcombine.low %v4278_v53, %v4282_v1  ;;  %v2005_v58 = vrot.slane %v2003_v25, 4  ;;  %v2008_v7 = vrot.slane %v2006_v33, 5  ;;  %v7669_v53 = vld [vmem:[%s6654_s17 + $0x24] sm:$0x1] }
  0xc9   : > { %6068 = vmatmul.mubr.msk.bf16.gmra.mrb[4].mxu0 %vm511_vm3, %v5591_v4  ;;  %v2026_v54 = vshll.u32 %v7629_v0, 16  ;;  %v2014_v15 = vrot.slane %v2012_v23, 5  ;;  %v2019_v29 = vrot.slane %v2017_v49, 4  ;;  %v2031_v38 = vshrl.u32 %v1990_v31, 16  ;;  %6332 = vmatprep.subr.msk.bf16.mxu1 %vm524_vm0, %v5376_v8  ;;  %v1994_v4 = vld [vmem:[%s6654_s17 + $0x20] sm:$0xf] }
  0xca   : > { %6073 = vmatprep.mubr.msk.bf16.mxu0 %vm511_vm3, %v5613_v14  ;;  %v2022_v28 = vrot.slane %v2020_v60, 5  ;;  %v2009_v20 = vor.u32 %v2008_v7, %v2005_v58  ;;  %v2034_v59 = vshll.u32 %v1990_v31, 16  ;;  %v2040_v40 = vshll.u32 %v7637_v45, 16  ;;  %v1996_v1 = vld [vmem:[%s6654_s17 + $0x28] sm:$0xf] }
  0xcb   : > { %v2028_v47 = vrot.slane %v2026_v54, 5  ;;  %v2033_v50 = vrot.slane %v2031_v38, 4  ;;  %v2045_v35 = vshrl.u32 %v1992_v26, 16  ;;  %v2048_v36 = vshll.u32 %v1992_v26, 16  ;;  %v7679_v26 = vld [vmem:[%s6654_s17 + $0x2c] sm:$0x1] }
  0xcc   : > { %v2023_v5 = vor.u32 %v2022_v28, %v2019_v29  ;;  %v2010_v32 = vrot.slane %v2009_v20, 4  ;;  %v2036_v39 = vrot.slane %v2034_v59, 5  ;;  %v2042_v17 = vrot.slane %v2040_v40, 5  ;;  %v1998_v7 = vld [vmem:[%s6654_s17 + $0x30] sm:$0xf] }
  0xcd   : > { %v2054_v44 = vshll.u32 %v7647_v2, 16  ;;  %v2047_v11 = vrot.slane %v2045_v35, 4  ;;  %v2050_v56 = vrot.slane %v2048_v36, 5  ;;  %v2299_v41 = vsel %vm524_vm0, %v5376_v8, 0  ;;  %v7689_v54 = vld [vmem:[%s6654_s17 + $0x34] sm:$0x1] }
  0xce   : > { %v2024_v9 = vrot.slane %v2023_v5, 4  ;;  %v2015_v57 = vsel %vm6669_vm4, %v2010_v32, %v2014_v15  ;;  %v2037_v6 = vor.u32 %v2036_v39, %v2033_v50  ;;  %v5608_v19 = vrot.slane %v5600_v22, 9  ;;  %v2000_v38 = vld [vmem:[%s6654_s17 + $0x38] sm:$0xf]  ;;  %v5654_v40 = vld [vmem:[%s7965_s3 + $0x64] sm:$0xf] }
  0xcf   : > { %5938 = vmatmul.mubr.msk.bf16.gmra.mrb[4].mxu1 %vm511_vm3, %v6420_v30  ;;  %v2056_v51 = vrot.slane %v2054_v44, 5  ;;  %v2051_v14 = vor.u32 %v2050_v56, %v2047_v11  ;;  %v4285_v21 = vrot.slane %v7564_v62, 5  ;;  %v5609_v18 = vrot.slane %v5601_v13, 9  ;;  %v6421_v59 = vld [vmem:[%s7101_s12 + $0x10] ss:$8 sps:$4 sm:$0xff]  }
  0xd0   : > { %v2029_v27 = vsel %vm6669_vm4, %v2024_v9, %v2028_v47  ;;  %v2038_v33 = vrot.slane %v2037_v6, 4  ;;  %v4289_v31 = vrot.slane %v7569_v48, 5  ;;  %v5610_v30 = vrot.slane %v5602_v55, 9  ;;  %v7708_v11 = vld [vmem:[%s6654_s17 + $0x3c] sm:$0x1] }
  0xd1   : > { %6074 = vmatmul.mubr.msk.bf16.vlgmr.msra.gmra.mrb[0].mxu0 %vm511_vm3, %v5614_v52  ;;  %v5360_v25 = vcombine.low %v2015_v57, %v2029_v27  ;;  %v2052_v23 = vrot.slane %v2051_v14, 4  ;;  %v4286_v62 = vsel %vm6769_vm7, %v5608_v19, %v4285_v21  ;;  %v4293_v49 = vrot.slane %v7580_v12, 5  ;;  %v2216_v19 = vld [vmem:[%s6654_s17] sm:$0xe]  ;;  %v2217_v21 = vld [vmem:[%s6654_s17 + $0x8] sm:$0xe] }
  0xd2   : > { %6082 = vmatpush3.bf16.msra.mxu0 %v7625_v63  ;;  %v5611_v60 = vrot.slane %v5603_v34, 9  ;;  %v2043_v48 = vsel %vm6669_vm4, %v2038_v33, %v2042_v17  ;;  %v4290_v52 = vsel %vm6769_vm7, %v5609_v18, %v4289_v31  ;;  %v4297_v63 = vrot.slane %v7584_v24, 5  ;;  %v6422_v33 = vld [vmem:[%s7101_s12 + $0x20] ss:$8 sps:$4 sm:$0xff]  }
  0xd3   : > { %5943 = vmatprep.mubr.msk.bf16.mxu1 %vm511_vm3, %v5360_v25  ;;  %v2059_v58 = vshrl.u32 %v1994_v4, 16  ;;  %v2057_v12 = vsel %vm6669_vm4, %v2052_v23, %v2056_v51  ;;  %v5615_v15 = vcombine.low %v4286_v62, %v4290_v52  ;;  %v4294_v29 = vsel %vm6769_vm7, %v5610_v30, %v4293_v49  ;;  %6347 = vmatprep.subr.msk.bf16.mxu0 %vm524_vm0, %v5654_v40  ;;  %v2218_v30 = vld [vmem:[%s6654_s17 + $0x10] sm:$0xe] }
  0xd4   : > { %v2062_v28 = vshll.u32 %v1994_v4, 16  ;;  %v5361_v8 = vcombine.low %v2043_v48, %v2057_v12  ;;  %v4298_v20 = vsel %vm6769_vm7, %v5611_v60, %v4297_v63  ;;  %v2068_v24 = vshll.u32 %v7669_v53, 16  ;;  %v2219_v60 = vld [vmem:[%s6654_s17 + $0x18] sm:$0xe] }
  0xd5   : > { %v2061_v47 = vrot.slane %v2059_v58, 4  ;;  %6077 = vmatprep.mubr.msk.bf16.mxu0 %vm511_vm3, %v5615_v15  ;;  %v5616_v5 = vcombine.low %v4294_v29, %v4298_v20  ;;  %v2073_v35 = vshrl.u32 %v1996_v1, 16  ;;  %v2076_v36 = vshll.u32 %v1996_v1, 16 }
  0xd6   : > { %v2064_v50 = vrot.slane %v2062_v28, 5  ;;  %v2070_v22 = vrot.slane %v2068_v24, 5  ;;  %v2082_v32 = vshll.u32 %v7679_v26, 16  ;;  %v2087_v39 = vshrl.u32 %v1998_v7, 16 }
  0xd7   : > { %5944 = vmatmul.mubr.msk.bf16.vlgmr.msra.gmra.mrb[0].mxu1 %vm511_vm3, %v5361_v8  ;;  %v2090_v17 = vshll.u32 %v1998_v7, 16  ;;  %v2075_v13 = vrot.slane %v2073_v35, 4  ;;  %v2078_v9 = vrot.slane %v2076_v36, 5  ;;  %v2096_v56 = vshll.u32 %v7689_v54, 16  ;;  %v5393_v7 = vld [vmem:[%s7965_s3 + $0x30] sm:$0xf] }
  0xd8   : > { %5952 = vmatpush3.bf16.msra.mxu1 %v2299_v41  ;;  %v2065_v44 = vor.u32 %v2064_v50, %v2061_v47  ;;  %v2084_v55 = vrot.slane %v2082_v32, 5  ;;  %v2089_v57 = vrot.slane %v2087_v39, 4  ;;  %v2101_v51 = vshrl.u32 %v2000_v38, 16  ;;  %v6423_v47 = vld [vmem:[%s7101_s12 + $0x30] ss:$8 sps:$4 sm:$0xff]  }
  0xd9   : > { %6078 = vmatmul.mubr.msk.bf16.gmra.mrb[4].mxu0 %vm511_vm3, %v5616_v5  ;;  %v2092_v6 = vrot.slane %v2090_v17, 5  ;;  %v2079_v41 = vor.u32 %v2078_v9, %v2075_v13  ;;  %v2098_v27 = vrot.slane %v2096_v56, 5  ;;  %v2104_v14 = vshll.u32 %v2000_v38, 16  ;;  %6333 = vmatprep.subr.msk.bf16.mxu1 %vm524_vm0, %v5393_v7  ;;  %v2220_v35 = vld [vmem:[%s6654_s17 + $0x20] sm:$0xe] }
  0xda   : > { %v2066_v34 = vrot.slane %v2065_v44, 4  ;;  %6083 = vmatprep.mubr.msk.bf16.mxu0 %vm511_vm3, %v6421_v59  ;;  %v2103_v4 = vrot.slane %v2101_v51, 4  ;;  %v2110_v25 = vshll.u32 %v7708_v11, 16  ;;  %v4675_v31 = vsel %vm524_vm0, %v5654_v40, 0  ;;  %v6424_v17 = vld [vmem:[%s7101_s12 + $0x40] ss:$8 sps:$4 sm:$0xff]  }
  0xdb   : > { %v2093_v18 = vor.u32 %v2092_v6, %v2089_v57  ;;  %v2080_v23 = vrot.slane %v2079_v41, 4  ;;  %v2106_v62 = vrot.slane %v2104_v14, 5  ;;  %v5368_v49 = vrot.slane %v2216_v19, 9  ;;  %v2223_v13 = vld [vmem:[%s6654_s17 + $0x38] sm:$0xe] }
  0xdc   : > { %v2071_v1 = vsel %vm6669_vm4, %v2066_v34, %v2070_v22  ;;  %v2112_v52 = vrot.slane %v2110_v25, 5  ;;  %v2242_v63 = vrot.slane %v7619_v16, 5  ;;  %v5369_v58 = vrot.slane %v2217_v21, 9  ;;  %v2222_v22 = vld [vmem:[%s6654_s17 + $0x30] sm:$0xe] }
  0xdd   : > { %v2094_v48 = vrot.slane %v2093_v18, 4  ;;  %v2085_v12 = vsel %vm6669_vm4, %v2080_v23, %v2084_v55  ;;  %v2107_v15 = vor.u32 %v2106_v62, %v2103_v4  ;;  %v2246_v29 = vrot.slane %v7629_v0, 5  ;;  %v5638_v9 = vld [vmem:[%s7101_s12 + $0x10] sm:$0xf]  ;;  %v7769_v6 = vld [vmem:[%s7101_s12 + $0x14] sm:$0x1] }
  0xde   : > { %v5370_v28 = vrot.slane %v2218_v30, 9  ;;  %v5362_v38 = vcombine.low %v2071_v1, %v2085_v12  ;;  %v2243_v16 = vsel %vm6769_vm7, %v5368_v49, %v2242_v63  ;;  %v2250_v20 = vrot.slane %v7637_v45, 5  ;;  %v5640_v19 = vld [vmem:[%s7101_s12 + $0x18] sm:$0xf]  ;;  %v7776_v34 = vld [vmem:[%s7101_s12 + $0x1c] sm:$0x1] }
  0xdf   : > { %v2099_v8 = vsel %vm6669_vm4, %v2094_v48, %v2098_v27  ;;  %v2108_v24 = vrot.slane %v2107_v15, 4  ;;  %v2247_v59 = vsel %vm6769_vm7, %v5369_v58, %v2246_v29  ;;  %v5371_v0 = vrot.slane %v2219_v60, 9  ;;  %v5679_v18 = vld [vmem:[%s7965_s3 + $0x68] sm:$0xf]  ;;  %v5642_v4 = vld [vmem:[%s7101_s12 + $0x20] sm:$0xf] }
  0xe0   : > { %v2254_v40 = vrot.slane %v7647_v2, 5  ;;  %v7741_v5 = vrot.slane %v2603_v37, 5  ;;  %v7745_v50 = vrot.slane %v2617_v10, 5  ;;  %5947 = vmatprep.mubr.msk.bf16.mxu1 %vm511_vm3, %v5362_v38  ;;  %v5377_v45 = vcombine.low %v2243_v16, %v2247_v59  ;;  %v2221_v37 = vld [vmem:[%s6654_s17 + $0x28] sm:$0xe] }
  0xe1   : > { %6084 = vmatmul.mubr.msk.bf16.vlgmr.msra.gmra.mrb[0].mxu0 %vm511_vm3, %v6422_v33  ;;  %v2258_v36 = vrot.slane %v7669_v53, 5  ;;  %v2113_v46 = vsel %vm6669_vm4, %v2108_v24, %v2112_v52  ;;  %v2251_v42 = vsel %vm6769_vm7, %v5370_v28, %v2250_v20  ;;  %v5372_v10 = vrot.slane %v2220_v35, 9  ;;  %v7787_v1 = vld [vmem:[%s7101_s12 + $0x24] sm:$0x1]  ;;  %v5644_v49 = vld [vmem:[%s7101_s12 + $0x28] sm:$0xf] }
  0xe2   : > { %6092 = vmatpush3.bf16.msra.mxu0 %v4675_v31  ;;  %6087 = vmatprep.mubr.msk.bf16.mxu0 %vm511_vm3, %v6423_v47  ;;  %v2262_v2 = vrot.slane %v7679_v26, 5  ;;  %v5363_v32 = vcombine.low %v2099_v8, %v2113_v46  ;;  %v2255_v53 = vsel %vm6769_vm7, %v5371_v0, %v2254_v40  ;;  %v2418_v39 = vsel %vm524_vm0, %v5393_v7, 0  ;;  %v7797_v63 = vld [vmem:[%s7101_s12 + $0x2c] sm:$0x1] }
  0xe3   : > { %v5373_v44 = vrot.slane %v2221_v37, 9  ;;  %v2259_v56 = vsel %vm6769_vm7, %v5372_v10, %v2258_v36  ;;  %v5374_v55 = vrot.slane %v2222_v22, 9  ;;  %v2266_v26 = vrot.slane %v7689_v54, 5  ;;  %6348 = vmatprep.subr.msk.bf16.mxu0 %vm524_vm0, %v5679_v18  ;;  %v5646_v10 = vld [vmem:[%s7101_s12 + $0x30] sm:$0xf] }
  0xe4   : > { %v5375_v57 = vrot.slane %v2223_v13, 9  ;;  %5948 = vmatmul.mubr.msk.bf16.gmra.mrb[4].mxu1 %vm511_vm3, %v5363_v32  ;;  %v4537_v41 = vshrl.u32 %v5638_v9, 16  ;;  %v4540_v27 = vshll.u32 %v5638_v9, 16  ;;  %v5378_v14 = vcombine.low %v2251_v42, %v2255_v53  ;;  %v6429_v53 = vld [vmem:[%s7965_s3 + $0x34] sm:$0xf] }
  0xe5   : > { %v2263_v51 = vsel %vm6769_vm7, %v5373_v44, %v2262_v2  ;;  %5953 = vmatprep.mubr.msk.bf16.mxu1 %vm511_vm3, %v5377_v45  ;;  %v2270_v54 = vrot.slane %v7708_v11, 5  ;;  %v4546_v21 = vshll.u32 %v7769_v6, 16  ;;  %v4551_v30 = vshrl.u32 %v5640_v19, 16  ;;  %v6425_v9 = vld [vmem:[%s6654_s17 + $0x8] ss:$8 sps:$4 sm:$0xff]  }
  0xe6   : > { %v5379_v25 = vcombine.low %v2259_v56, %v2263_v51  ;;  %v4539_v33 = vrot.slane %v4537_v41, 4  ;;  %v4542_v31 = vrot.slane %v4540_v27, 5  ;;  %v7791_v23 = vsel %vm6769_vm7, %v5374_v55, %v2266_v26  ;;  %v7822_v56 = vld [vmem:[%s7101_s12 + $0x3c] sm:$0x1] }
  0xe7   : > { %v4554_v11 = vshll.u32 %v5640_v19, 16  ;;  %v4560_v62 = vshll.u32 %v7776_v34, 16  ;;  %v4565_v60 = vshrl.u32 %v5642_v4, 16  ;;  %v4553_v52 = vrot.slane %v4551_v30, 4 }
  0xe8   : > { %v4543_v48 = vor.u32 %v4542_v31, %v4539_v33  ;;  %v4568_v58 = vshll.u32 %v5642_v4, 16  ;;  %v4574_v7 = vshll.u32 %v7787_v1, 16  ;;  %v4548_v12 = vrot.slane %v4546_v21, 5  ;;  %v5652_v33 = vld [vmem:[%s7101_s12 + $0x48] sm:$0xf] }
  0xe9   : > { %6088 = vmatmul.mubr.msk.bf16.gmra.mrb[4].mxu0 %vm511_vm3, %v6424_v17  ;;  %v4556_v15 = vrot.slane %v4554_v11, 5  ;;  %v4567_v29 = vrot.slane %v4565_v60, 4  ;;  %v4579_v28 = vshrl.u32 %v5644_v49, 16  ;;  %v2271_v38 = vsel %vm6769_vm7, %v5375_v57, %v2270_v54  ;;  %v5648_v17 = vld [vmem:[%s7101_s12 + $0x38] sm:$0xf] }
  0xea   : > { %v4544_v8 = vrot.slane %v4543_v48, 4  ;;  %v4570_v16 = vrot.slane %v4568_v58, 5  ;;  %v4582_v20 = vshll.u32 %v5644_v49, 16  ;;  %v4562_v24 = vrot.slane %v4560_v62, 5  ;;  %v7829_v54 = vld [vmem:[%s7101_s12 + $0x44] sm:$0x1] }
  0xeb   : > { %v4557_v47 = vor.u32 %v4556_v15, %v4553_v52  ;;  %v4581_v59 = vrot.slane %v4579_v28, 4  ;;  %v4588_v0 = vshll.u32 %v7797_v63, 16  ;;  %v4576_v45 = vrot.slane %v4574_v7, 5 }
  0xec   : > { %5954 = vmatmul.mubr.msk.bf16.vlgmr.msra.gmra.mrb[0].mxu1 %vm511_vm3, %v5378_v14  ;;  %v4571_v40 = vor.u32 %v4570_v16, %v4567_v29  ;;  %v4584_v35 = vrot.slane %v4582_v20, 5  ;;  %v4549_v36 = vsel %vm6669_vm4, %v4544_v8, %v4548_v12  ;;  %v4833_v37 = vsel %vm524_vm0, %v5679_v18, 0  ;;  %v5650_v14 = vld [vmem:[%s7101_s12 + $0x40] sm:$0xf] }
  0xed   : > { %5962 = vmatpush3.bf16.msra.mxu1 %v2418_v39  ;;  %5957 = vmatprep.mubr.msk.bf16.mxu1 %vm511_vm3, %v5379_v25  ;;  %v4558_v46 = vrot.slane %v4557_v47, 4  ;;  %v4590_v42 = vrot.slane %v4588_v0, 5  ;;  %v5380_v2 = vcombine.low %v7791_v23, %v2271_v38  ;;  %v7815_v39 = vld [vmem:[%s7101_s12 + $0x34] sm:$0x1]  ;;  %v4593_v44 = vshrl.u32 %v5646_v10, 16 }
  0xee   : > { %v4572_v22 = vrot.slane %v4571_v40, 4  ;;  %v4585_v32 = vor.u32 %v4584_v35, %v4581_v59  ;;  %6335 = vmatprep.subr.msk.bf16.mxu1 %vm524_vm0, %v6429_v53  ;;  %v4596_v55 = vshll.u32 %v5646_v10, 16  ;;  %v4602_v26 = vshll.u32 %v7815_v39, 16  ;;  %v7837_v23 = vld [vmem:[%s7101_s12 + $0x4c] sm:$0x1] }
  0xef   : > { %v4563_v13 = vsel %vm6669_vm4, %v4558_v46, %v4562_v24  ;;  %v4607_v57 = vshrl.u32 %v5648_v17, 16  ;;  %v4595_v27 = vrot.slane %v4593_v44, 4  ;;  %v4610_v25 = vshll.u32 %v5648_v17, 16  ;;  %v6426_v16 = vld [vmem:[%s6654_s17 + $0x18] ss:$8 sps:$4 sm:$0xff]  }
  0xf0   : > { %v5655_v51 = vcombine.low %v4549_v36, %v4563_v13  ;;  %v4577_v19 = vsel %vm6669_vm4, %v4572_v22, %v4576_v45  ;;  %v4586_v41 = vrot.slane %v4585_v32, 4  ;;  %v4598_v21 = vrot.slane %v4596_v55, 5  ;;  %v6427_v45 = vld [vmem:[%s6654_s17 + $0x28] ss:$8 sps:$4 sm:$0xff]   ;;  %v5664_v36 = vld [vmem:[%s7101_s12 + $0x18] sm:$0xe] }
  0xf1   : > { %v4604_v18 = vrot.slane %v4602_v26, 5  ;;  %v4609_v4 = vrot.slane %v4607_v57, 4  ;;  %v4616_v30 = vshll.u32 %v7822_v56, 16  ;;  %v4621_v11 = vshrl.u32 %v5650_v14, 16  ;;  %v5663_v35 = vld [vmem:[%s7101_s12 + $0x10] sm:$0xe] }
  0xf2   : > { %6093 = vmatprep.mubr.msk.bf16.mxu0 %vm511_vm3, %v5655_v51  ;;  %v4591_v31 = vsel %vm6669_vm4, %v4586_v41, %v4590_v42  ;;  %v4624_v62 = vshll.u32 %v5650_v14, 16  ;;  %v4599_v60 = vor.u32 %v4598_v21, %v4595_v27  ;;  %v4612_v48 = vrot.slane %v4610_v25, 5  ;;  %v5666_v17 = vld [vmem:[%s7101_s12 + $0x28] sm:$0xe]  ;;  %v5412_v51 = vld [vmem:[%s6654_s17 + $0x30] sm:$0xf] }
  0xf3   : > { %v5656_v49 = vcombine.low %v4577_v19, %v4591_v31  ;;  %v4630_v52 = vshll.u32 %v7829_v54, 16  ;;  %v4623_v58 = vrot.slane %v4621_v11, 4  ;;  %v4635_v12 = vshrl.u32 %v5652_v33, 16  ;;  %v5410_v13 = vld [vmem:[%s6654_s17 + $0x28] sm:$0xf] }
  0xf4   : > { %5958 = vmatmul.mubr.msk.bf16.gmra.mrb[4].mxu1 %vm511_vm3, %v5380_v2  ;;  %v4626_v7 = vrot.slane %v4624_v62, 5  ;;  %v4776_v15 = vrot.slane %v7769_v6, 5  ;;  %v4600_v29 = vrot.slane %v4599_v60, 4  ;;  %v4613_v28 = vor.u32 %v4612_v48, %v4609_v4  ;;  %v5665_v2 = vld [vmem:[%s7101_s12 + $0x20] sm:$0xe] }
  0xf5   : > { %6094 = vmatmul.mubr.msk.bf16.vlgmr.msra.gmra.mrb[0].mxu0 %vm511_vm3, %v5656_v49  ;;  %5963 = vmatprep.mubr.msk.bf16.mxu1 %vm511_vm3, %v6425_v9  ;;  %v4618_v38 = vrot.slane %v4616_v30, 5  ;;  %v4638_v8 = vshll.u32 %v5652_v33, 16  ;;  %v4632_v47 = vrot.slane %v4630_v52, 5  ;;  %v4637_v24 = vrot.slane %v4635_v12, 4  ;;  %v6430_v25 = vld [vmem:[%s6654_s17 + $0x2c] sm:$0x1] }
  0xf6   : > { %6102 = vmatpush3.bf16.msra.mxu0 %v4833_v37  ;;  %v4627_v20 = vor.u32 %v4626_v7, %v4623_v58  ;;  %v4644_v6 = vshll.u32 %v7837_v23, 16  ;;  %v4605_v59 = vsel %vm6669_vm4, %v4600_v29, %v4604_v18  ;;  %v4614_v0 = vrot.slane %v4613_v28, 4  ;;  %v5414_v30 = vld [vmem:[%s6654_s17 + $0x38] sm:$0xf]  ;;  %v5416_v11 = vld [vmem:[%s6654_s17 + $0x40] sm:$0xf] }
  0xf7   : > { %v4640_v40 = vrot.slane %v4638_v8, 5  ;;  %v5671_v37 = vrot.slane %v5663_v35, 9  ;;  %v5672_v10 = vrot.slane %v5664_v36, 9  ;;  %v4780_v53 = vrot.slane %v7776_v34, 5  ;;  %v6428_v52 = vld [vmem:[%s6654_s17 + $0x38] ss:$8 sps:$4 sm:$0xff]  }
  0xf8   : > { %v4628_v46 = vrot.slane %v4627_v20, 4  ;;  %v4646_v42 = vrot.slane %v4644_v6, 5  ;;  %v4619_v22 = vsel %vm6669_vm4, %v4614_v0, %v4618_v38  ;;  %v5673_v44 = vrot.slane %v5665_v2, 9  ;;  %v5668_v20 = vld [vmem:[%s7101_s12 + $0x38] sm:$0xe] }
  0xf9   : > { %v4641_v32 = vor.u32 %v4640_v40, %v4637_v24  ;;  %v5657_v9 = vcombine.low %v4605_v59, %v4619_v22  ;;  %v4777_v26 = vsel %vm6769_vm7, %v5671_v37, %v4776_v15  ;;  %v4784_v57 = vrot.slane %v7787_v1, 5  ;;  %v6431_v15 = vld [vmem:[%s6654_s17 + $0x34] sm:$0x1]  ;;  %v5669_v0 = vld [vmem:[%s7101_s12 + $0x40] sm:$0xe]  ;;  %s5177_s17 = sshll.u32 %s7993_s18, 3 }
  0xfa   : > { %v4633_v55 = vsel %vm6669_vm4, %v4628_v46, %v4632_v47  ;;  %v4781_v41 = vsel %vm6769_vm7, %v5672_v10, %v4780_v53  ;;  %v5674_v34 = vrot.slane %v5666_v17, 9  ;;  %v4788_v27 = vrot.slane %v7797_v63, 5  ;;  %v5670_v2 = vld [vmem:[%s7101_s12 + $0x48] sm:$0xe] }
  0xfb   : > { %v4642_v19 = vrot.slane %v4641_v32, 4  ;;  %6097 = vmatprep.mubr.msk.bf16.mxu0 %vm511_vm3, %v5657_v9  ;;  %v5680_v14 = vcombine.low %v4777_v26, %v4781_v41  ;;  %v4785_v21 = vsel %vm6769_vm7, %v5673_v44, %v4784_v57  ;;  %v2566_v1 = vshrl.u32 %v5410_v13, 16 }
  0xfc   : > { %5964 = vmatmul.mubr.msk.bf16.vlgmr.msra.gmra.mrb[0].mxu1 %vm511_vm3, %v6426_v16  ;;  %v2569_v18 = vshll.u32 %v5410_v13, 16  ;;  %v4789_v63 = vsel %vm6769_vm7, %v5674_v34, %v4788_v27  ;;  %v2575_v33 = vshll.u32 %v6430_v25, 16  ;;  %v2580_v31 = vshrl.u32 %v5412_v51, 16 }
  0xfd   : > { %6112 = vmatpush3.bf16.msra.mxu1 %v6544_v3  ;;  %v4647_v4 = vsel %vm6669_vm4, %v4642_v19, %v4646_v42  ;;  %5967 = vmatprep.mubr.msk.bf16.mxu1 %vm511_vm3, %v6427_v45  ;;  %v5681_v49 = vcombine.low %v4785_v21, %v4789_v63  ;;  %v2568_v60 = vrot.slane %v2566_v1, 4  ;;  %v5667_v3 = vld [vmem:[%s7101_s12 + $0x30] sm:$0xe]  ;;  %v2583_v12 = vshll.u32 %v5412_v51, 16  ;;  %s5178_s12 = sshll.u32 %s7987_s19, 6 }
  0xfe   : > { %v5658_v62 = vcombine.low %v4633_v55, %v4647_v4  ;;  %v2571_v48 = vrot.slane %v2569_v18, 5  ;;  %v2577_v58 = vrot.slane %v2575_v33, 5  ;;  %v2582_v7 = vrot.slane %v2580_v31, 4  ;;  %s353_s8 = sadd.s32 %s5178_s12, %s5177_s17 }
  0xff   : > { %v2589_v29 = vshll.u32 %v6431_v15, 16  ;;  %v2594_v38 = vshrl.u32 %v5414_v30, 16  ;;  %v2597_v8 = vshll.u32 %v5414_v30, 16  ;;  %v2608_v16 = vshrl.u32 %v5416_v11, 16  ;;  %s5179_s14 = sshll.u32 %s353_s8, 2 }
 0x100   : > { %6098 = vmatmul.mubr.msk.bf16.gmra.mrb[4].mxu0 %vm511_vm3, %v5658_v62  ;;  %v2572_v28 = vor.u32 %v2571_v48, %v2568_v60  ;;  %v2585_v47 = vrot.slane %v2583_v12, 5  ;;  %v2611_v6 = vshll.u32 %v5416_v11, 16  ;;  %v5675_v59 = vrot.slane %v5667_v3, 9  ;;  %s7924_s25 = scalar_lea.vmem %s7966_s4, %s5179_s14 }
 0x101   : > { %6103 = vmatprep.mubr.msk.bf16.mxu0 %vm511_vm3, %v5680_v14  ;;  %v2591_v24 = vrot.slane %v2589_v29, 5  ;;  %v2596_v45 = vrot.slane %v2594_v38, 4  ;;  %v2599_v35 = vrot.slane %v2597_v8, 5  ;;  %v2610_v36 = vrot.slane %v2608_v16, 4 }
 0x102   : > { %v2573_v40 = vrot.slane %v2572_v28, 4  ;;  %v2586_v46 = vor.u32 %v2585_v47, %v2582_v7  ;;  %v2613_v42 = vrot.slane %v2611_v6, 5  ;;  %v4792_v37 = vrot.slane %v7815_v39, 5 }
 0x103   : > { %v5676_v10 = vrot.slane %v5668_v20, 9  ;;  %v2600_v32 = vor.u32 %v2599_v35, %v2596_v45  ;;  %v4796_v53 = vrot.slane %v7822_v56, 5  ;;  %v5677_v17 = vrot.slane %v5669_v0, 9 }
 0x104   : > { %5968 = vmatmul.mubr.msk.bf16.gmra.mrb[4].mxu1 %vm511_vm3, %v6428_v52  ;;  %v2578_v22 = vsel %vm6669_vm4, %v2573_v40, %v2577_v58  ;;  %v2587_v44 = vrot.slane %v2586_v46, 4  ;;  %v2614_v13 = vor.u32 %v2613_v42, %v2610_v36  ;;  %v4793_v9 = vsel %vm6769_vm7, %v5675_v59, %v4792_v37 }
 0x105   : > { %v4800_v55 = vrot.slane %v7829_v54, 5  ;;  %v2601_v26 = vrot.slane %v2600_v32, 4  ;;  %v4797_v39 = vsel %vm6769_vm7, %v5676_v10, %v4796_v53  ;;  %v5678_v57 = vrot.slane %v5670_v2, 9 }
 0x106   : > { %v4804_v51 = vrot.slane %v7837_v23, 5  ;;  %v2592_v19 = vsel %vm6669_vm4, %v2587_v44, %v2591_v24  ;;  %v2615_v56 = vrot.slane %v2614_v13, 4  ;;  %v5682_v41 = vcombine.low %v4793_v9, %v4797_v39 }
 0x107   : > { %v5421_v34 = vcombine.low %v2578_v22, %v2592_v19  ;;  %v2606_v54 = vsel %vm6669_vm4, %v2601_v26, %v7741_v5  ;;  %v4801_v23 = vsel %vm6769_vm7, %v5677_v17, %v4800_v55 }
 0x108   : > { %6104 = vmatmul.mubr.msk.bf16.vlgmr.msra.gmra.mrb[0].mxu0 %vm511_vm3, %v5681_v49  ;;  %v2620_v27 = vsel %vm6669_vm4, %v2615_v56, %v7745_v50  ;;  %v4805_v14 = vsel %vm6769_vm7, %v5678_v57, %v4804_v51 }
 0x109   : > { %6107 = vmatprep.mubr.msk.bf16.mxu0 %vm511_vm3, %v5682_v41  ;;  %5977 = vmatprep.mubr.msk.bf16.mxu1 %vm511_vm3, %v5421_v34  ;;  %v5422_v21 = vcombine.low %v2606_v54, %v2620_v27  ;;  %v5683_v1 = vcombine.low %v4801_v23, %v4805_v14 }
 0x110   : > { %5978 = vmatmul.mubr.msk.bf16.vlgmr.msra.gmra.mrb[4].mxu1 %vm511_vm3, %v5422_v21  ;;  %6108 = vmatmul.mubr.msk.bf16.gmra.mrb[4].mxu0 %vm511_vm3, %v5683_v1 }
 0x1cf   : > { %v5965_v43 = vpop.f32.mrb[0].mxu1 }
 0x1d0   : > { %v2454_v5 = vpop.f32.mrb[1].mxu1 }
 0x1d1   : > { %v5966_v50 = vpop.f32.mrb[2].mxu1 }
 0x1d2   : > { %v2457_v18 = vpop.f32.mrb[3].mxu1 }
 0x1db   : > { %v6105_v61 = vpop.f32.mrb[0].mxu0 }
 0x1dc   : > { %v6113_v4 = vadd.f32 %v6105_v61, %v5965_v43  ;;  %v4869_v63 = vpop.f32.mrb[1].mxu0 }
 0x1dd   : > { %v6114_v25 = vadd.f32 %v4869_v63, %v2454_v5  ;;  %v6106_v33 = vpop.f32.mrb[2].mxu0 }
 0x1de   : > { %v5700_v31 = vpack.c.bf16 %v6113_v4, %v6113_v4  ;;  %v6115_v30 = vadd.f32 %v6106_v33, %v5966_v50  ;;  %v4872_v11 = vpop.f32.mrb[3].mxu0  ;;  %v4924_v7 = vmul.f32 %v6113_v4, %v6113_v4 }
 0x1df   : > { %v5698_v62 = vpack.c.bf16 %v6114_v25, %v6114_v25  ;;  %v6116_v49 = vadd.f32 %v4872_v11, %v2457_v18  ;;  %v4922_v48 = vmul.f32 %v6114_v25, %v6114_v25 }
 0x1e0   : > { %4979 = vst.msk [vmem:[%s7924_s25 + $0x8] sm:$0xf] %vm4976_vm8, %v5700_v31  ;;  %v5701_v60 = vpack.c.bf16 %v6115_v30, %v6115_v30  ;;  %v4925_v20 = vmul.f32 %v6115_v30, %v6115_v30 }
 0x1e1   : > { %4977 = vst.msk [vmem:[%s7924_s25] sm:$0xf] %vm4976_vm8, %v5698_v62  ;;  %v4908_v3 = vadd.f32 %v6116_v49, %v6114_v25  ;;  %v4923_v52 = vmul.f32 %v6116_v49, %v6116_v49  ;;  %v5699_v58 = vpack.c.bf16 %v6116_v49, %v6116_v49 }
 0x1e2   : > { %4980 = vst.msk [vmem:[%s7924_s25 + $0xc] sm:$0xf] %vm4976_vm8, %v5701_v60 }
 0x1e3   : > { %v4909_v12 = vadd.f32 %v6113_v4, %v4908_v3  ;;  %v4930_v15 = vadd.f32 %v4923_v52, %v4922_v48  ;;  %4978 = vst.msk [vmem:[%s7924_s25 + $0x4] sm:$0xf] %vm4976_vm8, %v5699_v58  ;;  %v5979_v29 = vpop.f32.mrb[4].mxu1  ;;  %v6109_v28 = vpop.f32.mrb[4].mxu0 }
 0x1e4   : > { %v2700_v38 = vpop.f32.mrb[5].mxu1  ;;  %v6117_v8 = vadd.f32 %v6109_v28, %v5979_v29  ;;  %v4885_v16 = vpop.f32.mrb[5].mxu0 }
 0x1e5   : > { %v4931_v47 = vadd.f32 %v4930_v15, %v4924_v7  ;;  %v5980_v24 = vpop.f32.mrb[6].mxu1  ;;  %v6118_v6 = vadd.f32 %v4885_v16, %v2700_v38  ;;  %v4910_v59 = vadd.f32 %v6115_v30, %v4909_v12  ;;  %v6110_v0 = vpop.f32.mrb[6].mxu0 }
 0x1e6   : > { %v5704_v40 = vpack.c.bf16 %v6117_v8, %v6117_v8  ;;  %v2703_v45 = vpop.f32.mrb[7].mxu1  ;;  %v6119_v35 = vadd.f32 %v6110_v0, %v5980_v24  ;;  %v4888_v36 = vpop.f32.mrb[7].mxu0  ;;  %v4928_v13 = vmul.f32 %v6117_v8, %v6117_v8 }
 0x1e7   : > { %v4911_v46 = vadd.f32 %v6118_v6, %v4910_v59  ;;  %v4926_v42 = vmul.f32 %v6118_v6, %v6118_v6  ;;  %v4932_v37 = vadd.f32 %v4931_v47, %v4925_v20  ;;  %v5702_v10 = vpack.c.bf16 %v6118_v6, %v6118_v6 }
 0x1e8   : > { %4983 = vst.msk [vmem:[%s7924_s25 + $0x18] sm:$0xf] %vm4976_vm8, %v5704_v40  ;;  %v5705_v2 = vpack.c.bf16 %v6119_v35, %v6119_v35  ;;  %v6120_v22 = vadd.f32 %v4888_v36, %v2703_v45  ;;  %v4929_v26 = vmul.f32 %v6119_v35, %v6119_v35 }
 0x1e9   : > { %v4933_v32 = vadd.f32 %v4932_v37, %v4926_v42  ;;  %4981 = vst.msk [vmem:[%s7924_s25 + $0x10] sm:$0xf] %vm4976_vm8, %v5702_v10 }
 0x1ea   : > { %4984 = vst.msk [vmem:[%s7924_s25 + $0x1c] sm:$0xf] %vm4976_vm8, %v5705_v2  ;;  %v4912_v53 = vadd.f32 %v6120_v22, %v4911_v46  ;;  %v4927_v17 = vmul.f32 %v6120_v22, %v6120_v22  ;;  %v5703_v44 = vpack.c.bf16 %v6120_v22, %v6120_v22 }
 0x1ec   : > { %v4913_v9 = vadd.f32 %v6117_v8, %v4912_v53  ;;  %v4934_v55 = vadd.f32 %v4933_v32, %v4927_v17  ;;  %4982 = vst.msk [vmem:[%s7924_s25 + $0x14] sm:$0xf] %vm4976_vm8, %v5703_v44 }
 0x1ee   : > { %v4914_v39 = vadd.f32 %v6119_v35, %v4913_v9  ;;  %v4935_v57 = vadd.f32 %v4934_v55, %v4928_v13 }
 0x1f0   : > { %v4915_v51 = vrot.slane %v4914_v39, 4  ;;  %v4936_v19 = vadd.f32 %v4935_v57, %v4929_v26 }
 0x1f2   : > { %v4916_v56 = vadd.f32 %v4915_v51, %v4914_v39  ;;  %v4937_v41 = vrot.slane %v4936_v19, 4 }
 0x1f4   : > { %v4917_v34 = vrot.slane %v4916_v56, 2  ;;  %v4938_v54 = vadd.f32 %v4937_v41, %v4936_v19 }
 0x1f6   : > { %v4918_v27 = vadd.f32 %v4917_v34, %v4916_v56  ;;  %v4939_v23 = vrot.slane %v4938_v54, 2 }
 0x1f8   : > { %v4919_v14 = vrot.slane %v4918_v27, 1  ;;  %v4940_v21 = vadd.f32 %v4939_v23, %v4938_v54 }
 0x1fa   : > { %v4920_v1 = vadd.f32 %v4919_v14, %v4918_v27  ;;  %v4941_v43 = vrot.slane %v4940_v21, 1 }
 0x1fc   : > { %4921 = vst [vmem:[%s363_s10] sm:$0x1] %v4920_v1  ;;  %v4942_v5 = vadd.f32 %v4941_v43, %v4940_v21 }
 0x1fe   : > { %4943 = vst [vmem:[%s363_s10 + $0x1] sm:$0x1] %v4942_v5 }
 0x1ff PF: > { %s16_s22 = sadd.s32 1, %s6470_s22   ;;  %s7976_s18 = smov %s6462_s20 }
 0x200   : > { %p13_p10 = scmp.ge.s32.totalorder %s16_s22, 18   ;;  %s7977_s19 = smov %s6466_s21 }
 0x201   : > { %s7978_s20 = smov %s7981_s23  ;;  %s7979_s21 = smov %s7985_s24 }
 0x202   :  { %15 = sbr.rel (!%p13_p10) target bundleno = 3 (0x3), region = 116 }

</bundles_post_ra>
